<compile_context>
chip_gen: v7x
topology: tpu7x:2x2x1
jax: 0.10.0
libtpu: 0.0.40
codegen_flags: <defaults>
</compile_context>

<pallas_src>
import functools

import jax
import jax.numpy as jnp
from jax.experimental import pallas as pl
from jax.experimental.pallas import tpu as pltpu

BN_EPS = 1e-5
LANE = 128
VMEM_LIMIT = 64 * 1024 * 1024       # scoped-VMEM cap (v7x physical VMEM is 64 MiB)
BAND_BUDGET = 20 * 1024 * 1024      # per-band working-set target (fits all gens)
SUBTILE_ROWS = 256                  # row sub-tile so the f32 acc stays in vregs


def _round_up(x, m):
    return (x + m - 1) // m * m


def _largest_aligned_divisor(n, cap, align=8):
    """Largest divisor of n that is a multiple of `align` and <= cap."""
    best = align
    for d in range(align, min(n, cap) + 1, align):
        if n % d == 0:
            best = d
    return best


def _pick_band_rows(H, W, cin, cpad, budget=BAND_BUDGET):
    """Largest divisor TH of H whose per-band working set fits the VMEM budget."""
    wps = _round_up(W + 2, 8)
    for th in sorted((d for d in range(1, H + 1) if H % d == 0), reverse=True):
        lb = (th + 2) * wps + 8
        r = th * wps
        foot = (2 * lb * cin * 2            # double-buffered input band (bf16)
                + 2 * r * cpad * 2          # double-buffered z output (bf16)
                + lb * cin * 4              # f32 normalized band
                + 6 * lb * cin * 2          # shifted copies (+ folded-K band)
                + lb * LANE * 4             # (Lb, 1) mask pads to 128 lanes
                + 9 * cin * cpad * 2        # resident taps
                + SUBTILE_ROWS * cpad * 4)  # accumulator
        if foot <= budget:
            return th
    return 1
    # TODO(synk): band over N*H jointly with a masked tail band so a prime H
    # still gets full-size blocks.


# ----------------- conv3x3 band pass (optionally fused with input BN+ReLU) -----

def _conv_kernel(x_ref, w_ref, cmask_ref, scale_ref, shift_ref, z_ref, st_ref,
                 *, wps, th, sr, h_img, nb, normalize_input):
    """One flattened zero-padded row band of a 3x3 convolution.

    x_ref     : (1, Lb, Cin)  bf16  band (with 2 halo rows + zero tail), row
                pitch wps = round_up(W+2, 8); valid data sits in cols 1..W.
    w_ref     : (9, Cin, Cpad) or (3, 3*Cin, Cpad) bf16 resident taps.
    cmask_ref : (Lb, 1) f32 resident column-validity mask (1 <= col <= W).
    scale_ref : (1, Cin) f32 resident BN scale of the *input* (stage fusion).
    shift_ref : (1, Cin) f32 resident BN shift of the *input*.
    z_ref     : (1, R, Cpad) bf16 raw conv output (cols 1..W valid).
    st_ref    : (1, 2, Cpad) f32 per-band partials: row0 = sum, row1 = sumsq.
    """
    lb = x_ref.shape[1]
    cpad = w_ref.shape[-1]
    fold_dx = w_ref.shape[0] == 3            # dx taps folded into K = 3*Cin
    r_rows = th * wps

    if normalize_input:
        # Fused BN + ReLU of the previous stage, applied in-registers to the
        # band.  Conv zero-padding positions (pad rows / pad cols) must be
        # re-zeroed after the affine transform, hence the validity mask.
        row0 = 0
        if nb > 1:
            row0 = (pl.program_id(0) % nb) * th      # first padded row of band
        p = jax.lax.broadcasted_iota(jnp.int32, (lb, 1), 0)
        row_ok = (p >= (1 - row0) * wps) & (p < (h_img + 1 - row0) * wps)
        valid = jnp.where(row_ok, cmask_ref[...], 0.0)
        x32 = x_ref[0].astype(jnp.float32)
        x32 = jnp.maximum(x32 * scale_ref[...] + shift_ref[...], 0.0) * valid
    else:
        x32 = x_ref[0].astype(jnp.float32)

    # dx in {-1, 0, +1} as whole-band row shifts (one copy per shift instead of
    # a misaligned relayout slice per tap); dy offsets below are sublane-aligned
    # because wps % 8 == 0.
    # TODO(synk): pltpu.roll would perform these shifts on the idle XLU slot.
    x0 = x32.astype(jnp.bfloat16)
    xm = jnp.roll(x32, 1, axis=0).astype(jnp.bfloat16)     # x[p-1]
    xp = jnp.roll(x32, -1, axis=0).astype(jnp.bfloat16)    # x[p+1]

    if fold_dx:
        srcs = (jnp.concatenate([xm, x0, xp], axis=1),)    # (Lb, 3*Cin)
    else:
        srcs = (xm, x0, xp)

    ssum = jnp.zeros((1, cpad), jnp.float32)
    ssq = jnp.zeros((1, cpad), jnp.float32)
    for t in range(r_rows // sr):                          # unrolled row sub-tiles
        r0 = t * sr
        acc = jnp.zeros((sr, cpad), jnp.float32)           # fits the vreg file
        for dy in range(3):
            base = dy * wps + r0                           # sublane-aligned start
            if fold_dx:
                acc += jnp.dot(srcs[0][base:base + sr, :], w_ref[dy],
                               preferred_element_type=jnp.float32)
            else:
                for dx in range(3):
                    acc += jnp.dot(srcs[dx][base:base + sr, :],
                                   w_ref[3 * dy + dx],
                                   preferred_element_type=jnp.float32)
        z_ref[0, r0:r0 + sr, :] = acc.astype(z_ref.dtype)
        macc = acc * cmask_ref[r0:r0 + sr, :]              # drop junk pad columns
        ssum += jnp.sum(macc, axis=0, keepdims=True)
        ssq += jnp.sum(macc * acc, axis=0, keepdims=True)
    st_ref[0, 0:1, :] = ssum
    st_ref[0, 1:2, :] = ssq


def _conv_pass(xflat, w_oihw, *, N, H, W, cpad, scale_in=None, shift_in=None):
    """One conv3x3 pass over row bands of a flattened zero-padded image.

    xflat: (N, (H+2)*wps, Cin) bf16, valid data in padded rows 1..H / cols 1..W.
    Returns (z_img (N, H, wps, Cpad) bf16 raw conv output, stats (2, Cpad) f32).
    """
    _, _, cin = xflat.shape
    cout, cin_w = w_oihw.shape[0], w_oihw.shape[1]
    wps = _round_up(W + 2, 8)
    th = _pick_band_rows(H, W, cin, cpad)
    nb = H // th
    NB = N * nb
    R = th * wps
    Lb = (th + 2) * wps + 8                      # halo + shift-safe zero tail
    sr = _largest_aligned_divisor(R, SUBTILE_ROWS)

    # Tail-pad the flattened image so every band window exists, then gather the
    # row bands (identity when the whole image fits in one band).
    xext = jnp.pad(xflat, ((0, 0), (0, Lb - (th + 2) * wps), (0, 0)))
    if nb == 1:
        bands = xext                             # (N, Lb, Cin)
    else:
        starts = jnp.arange(nb, dtype=jnp.int32) * (th * wps)
        idx = starts[:, None] + jnp.arange(Lb, dtype=jnp.int32)[None, :]
        bands = xext[:, idx, :].reshape(NB, Lb, cin)
    # TODO(synk): replace the wrapper-side halo gather with in-kernel
    # pltpu.make_async_copy double-buffering from an HBM (pl.ANY) ref.

    # Taps (Cout, Cin_w, 3, 3) -> (3, 3, Cin_w, Cout) -> (9, Cin, Cpad), zero pad.
    wt = jnp.transpose(w_oihw, (2, 3, 1, 0)).reshape(9, cin_w, cout)
    wt = jnp.pad(wt, ((0, 0), (0, cin - cin_w),
                      (0, cpad - cout))).astype(jnp.bfloat16)
    if cin % LANE == 0:
        # Fold the 3 dx taps into the contraction: K = 3*Cin (matches the
        # in-kernel concat order xm | x0 | xp).
        wt = wt.reshape(3, 3 * cin, cpad)
        w_spec = pl.BlockSpec((3, 3 * cin, cpad), lambda i: (0, 0, 0))
    else:
        w_spec = pl.BlockSpec((9, cin, cpad), lambda i: (0, 0, 0))

    # Column-validity mask over flattened positions (padded col in 1..W).
    col = jnp.arange(Lb, dtype=jnp.int32) % wps
    cmask = ((col >= 1) & (col <= W)).astype(jnp.float32).reshape(Lb, 1)

    normalize = scale_in is not None
    if not normalize:
        scale_in = jnp.ones((1, cin), jnp.float32)
        shift_in = jnp.zeros((1, cin), jnp.float32)

    kern = functools.partial(_conv_kernel, wps=wps, th=th, sr=sr,
                             h_img=H, nb=nb, normalize_input=normalize)
    z, st = pl.pallas_call(
        kern,
        grid=(NB,),
        in_specs=[
            pl.BlockSpec((1, Lb, cin), lambda i: (i, 0, 0)),
            w_spec,                                        # resident taps
            pl.BlockSpec((Lb, 1), lambda i: (0, 0)),       # resident column mask
            pl.BlockSpec((1, cin), lambda i: (0, 0)),      # resident input scale
            pl.BlockSpec((1, cin), lambda i: (0, 0)),      # resident input shift
        ],
        out_specs=(
            pl.BlockSpec((1, R, cpad), lambda i: (i, 0, 0)),
            pl.BlockSpec((1, 2, cpad), lambda i: (i, 0, 0)),  # per-band partials
        ),
        out_shape=(
            jax.ShapeDtypeStruct((NB, R, cpad), jnp.bfloat16),
            jax.ShapeDtypeStruct((NB, 2, cpad), jnp.float32),
        ),
        compiler_params=pltpu.CompilerParams(
            dimension_semantics=("parallel",),   # both v7x TensorCores engaged
            vmem_limit_bytes=VMEM_LIMIT),
    )(bands, wt, cmask, scale_in, shift_in)

    stats = jnp.sum(st, axis=0)                  # reduce per-band partials
    z_img = z.reshape(N, H, wps, cpad)
    return z_img, stats


# ----------------------- BN affine hoisting + final epilogue --------------------

def _bn_affine(stats, gamma, beta, count, cpad):
    """Train-mode BatchNorm folded to per-channel scale/shift (computed once)."""
    mean = stats[0] / count
    var = jnp.maximum(stats[1] / count - mean * mean, 0.0)   # biased variance
    g = jnp.pad(gamma.astype(jnp.float32), (0, cpad - gamma.shape[0]))
    b = jnp.pad(beta.astype(jnp.float32), (0, cpad - beta.shape[0]))
    scale = g * jax.lax.rsqrt(var + BN_EPS)
    shift = b - mean * scale
    return scale.reshape(1, cpad), shift.reshape(1, cpad)


def _bn_relu_kernel(z_ref, scale_ref, shift_ref, o_ref):
    z = z_ref[...].astype(jnp.float32)
    o_ref[...] = jnp.maximum(z * scale_ref[...] + shift_ref[...],
                             0.0).astype(o_ref.dtype)


def _bn_relu_pass(z_img, scale, shift):
    """Final-stage BN + ReLU epilogue (scale/shift hoisted to the wrapper)."""
    N, H, wps, cpad = z_img.shape
    M = N * H * wps
    rb = _largest_aligned_divisor(M, 2048)
    y = pl.pallas_call(
        _bn_relu_kernel,
        grid=(M // rb,),
        in_specs=[pl.BlockSpec((rb, cpad), lambda i: (i, 0)),
                  pl.BlockSpec((1, cpad), lambda i: (0, 0)),
                  pl.BlockSpec((1, cpad), lambda i: (0, 0))],
        out_specs=pl.BlockSpec((rb, cpad), lambda i: (i, 0)),
        out_shape=jax.ShapeDtypeStruct((M, cpad), jnp.float32),
        compiler_params=pltpu.CompilerParams(
            dimension_semantics=("parallel",),
            vmem_limit_bytes=VMEM_LIMIT),
    )(z_img.reshape(M, cpad), scale, shift)
    return y.reshape(N, H, wps, cpad)


# --------------------------------- module forward -------------------------------

def double_conv(x_nchw, params):
    """DoubleConv forward (training-mode BatchNorm): NCHW in, NCHW out."""
    w1, b1, g1, be1, w2, b2, g2, be2 = params
    del b1, b2   # conv bias is cancelled exactly by the BN mean subtraction
    N, _, H, W = x_nchw.shape
    out_ch = w1.shape[0]
    cpad = _round_up(max(out_ch, LANE), LANE)
    wps = _round_up(W + 2, 8)
    count = float(N * H * W)

    # Stage 1: zero-padded NHWC image flattened with an 8-aligned row pitch.
    x = jnp.transpose(x_nchw, (0, 2, 3, 1)).astype(jnp.bfloat16)
    xpad = jnp.pad(x, ((0, 0), (1, 1), (1, wps - 1 - W), (0, 0)))
    xflat = xpad.reshape(N, (H + 2) * wps, x.shape[-1])

    z1, s1 = _conv_pass(xflat, w1, N=N, H=H, W=W, cpad=cpad)
    scale1, shift1 = _bn_affine(s1, g1, be1, count, cpad)

    # Stage 2: only re-pad rows of the *raw* z1 (columns already sit in the
    # padded layout); its BN + ReLU is fused into the stage-2 conv kernel.
    z1flat = jnp.pad(z1, ((0, 0), (1, 1), (0, 0), (0, 0))).reshape(
        N, (H + 2) * wps, cpad)
    z2, s2 = _conv_pass(z1flat, w2, N=N, H=H, W=W, cpad=cpad,
                        scale_in=scale1, shift_in=shift1)
    scale2, shift2 = _bn_affine(s2, g2, be2, count, cpad)

    # Final BN + ReLU epilogue, then drop pad columns / pad channels.
    y = _bn_relu_pass(z2, scale2, shift2)                  # (N, H, wps, Cpad)
    y = y[:, :, 1:W + 1, :out_ch]
    return jnp.transpose(y, (0, 3, 1, 2))                  # NHWC -> NCHW


def init_params(key, in_ch, out_ch):
    ks = jax.random.split(key, 4)
    w1 = 0.1 * jax.random.normal(ks[0], (out_ch, in_ch, 3, 3), jnp.float32)
    b1 = 0.05 * jax.random.normal(ks[1], (out_ch,), jnp.float32)
    g1 = jnp.linspace(0.5, 1.5, out_ch, dtype=jnp.float32)
    be1 = jnp.linspace(-0.1, 0.1, out_ch, dtype=jnp.float32)
    w2 = 0.1 * jax.random.normal(ks[2], (out_ch, out_ch, 3, 3), jnp.float32)
    b2 = 0.05 * jax.random.normal(ks[3], (out_ch,), jnp.float32)
    g2 = jnp.linspace(1.5, 0.5, out_ch, dtype=jnp.float32)
    be2 = jnp.linspace(0.1, -0.1, out_ch, dtype=jnp.float32)
    return (w1, b1, g1, be1, w2, b2, g2, be2)


def _reference_double_conv(x_nchw, params):
    """Pure-JAX f32 reference matching the PyTorch module (train-mode BN)."""
    w1, b1, g1, be1, w2, b2, g2, be2 = params

    def stage(x, w, b, g, beta):
        z = jax.lax.conv_general_dilated(
            x, w, window_strides=(1, 1), padding=((1, 1), (1, 1)),
            dimension_numbers=("NCHW", "OIHW", "NCHW"))
        z = z + b[None, :, None, None]
        mean = jnp.mean(z, axis=(0, 2, 3), keepdims=True)
        var = jnp.mean((z - mean) ** 2, axis=(0, 2, 3), keepdims=True)
        zh = (z - mean) * jax.lax.rsqrt(var + BN_EPS)
        return jnp.maximum(zh * g[None, :, None, None] + beta[None, :, None, None], 0.0)

    return stage(stage(x_nchw, w1, b1, g1, be1), w2, b2, g2, be2)


if __name__ == "__main__":
    key = jax.random.PRNGKey(0)
    kx, kp = jax.random.split(key)

    N, in_ch, out_ch, H, W = 2, 4, 8, 16, 16
    x = jax.random.normal(kx, (N, in_ch, H, W), jnp.float32)    # NCHW, like PyTorch
    params = init_params(kp, in_ch, out_ch)

    y = jax.jit(double_conv)(x, params)
    y = jax.block_until_ready(y)

    assert y.shape == (N, out_ch, H, W)
    assert bool(jnp.all(y >= 0.0))                  # ReLU output
    assert bool(jnp.all(jnp.isfinite(y)))

    # loose tolerance: kernel uses bf16 MXU inputs / bf16 intermediates
    y_ref = _reference_double_conv(x, params)
    assert float(jnp.max(jnp.abs(y - y_ref))) < 0.2

    print("KERNEL_OK")
</pallas_src>

<mosaic_0001>
module attributes {stable_mosaic.version = 11 : i64} {
  func.func @_conv_kernel(%arg0: i32, %arg1: memref<1x440x4xbf16, #tpu.memory_space<vmem>>, %arg2: memref<9x4x128xbf16, #tpu.memory_space<vmem>>, %arg3: memref<440x1xf32, #tpu.memory_space<vmem>>, %arg4: memref<1x4xf32, #tpu.memory_space<vmem>>, %arg5: memref<1x4xf32, #tpu.memory_space<vmem>>, %arg6: memref<1x384x128xbf16, #tpu.memory_space<vmem>>, %arg7: memref<1x2x128xf32, #tpu.memory_space<vmem>>) attributes {dimension_semantics = [#tpu.dimension_semantics<parallel>], iteration_bounds = array<i64: 2>, scalar_prefetch = 0 : i64, scratch_operands = 0 : i64, tpu.core_type = #tpu.core_type<tc>, window_params = [{transform_indices = @transform_0, window_bounds = array<i64: 1, 440, 4>}, {pipeline_mode = #tpu.pipeline_mode<synchronous>, transform_indices = @transform_1, window_bounds = array<i64: 9, 4, 128>}, {pipeline_mode = #tpu.pipeline_mode<synchronous>, transform_indices = @transform_2, window_bounds = array<i64: 440, 1>}, {pipeline_mode = #tpu.pipeline_mode<synchronous>, transform_indices = @transform_3, window_bounds = array<i64: 1, 4>}, {pipeline_mode = #tpu.pipeline_mode<synchronous>, transform_indices = @transform_4, window_bounds = array<i64: 1, 4>}, {transform_indices = @transform_5, window_bounds = array<i64: 1, 384, 128>}, {transform_indices = @transform_6, window_bounds = array<i64: 1, 2, 128>}]} {
    %c0 = arith.constant 0 : index
    %c0_0 = arith.constant 0 : index
    %c0_1 = arith.constant 0 : index
    %0 = vector.load %arg1[%c0, %c0_0, %c0_1] : memref<1x440x4xbf16, #tpu.memory_space<vmem>>, vector<1x440x4xbf16>
    %1 = vector.shape_cast %0 : vector<1x440x4xbf16> to vector<440x4xbf16>
    %2 = arith.extf %1 : vector<440x4xbf16> to vector<440x4xf32>
    %3 = arith.truncf %2 : vector<440x4xf32> to vector<440x4xbf16>
    %4 = vector.extract_strided_slice %2 {offsets = [439, 0], sizes = [1, 4], strides = [1, 1]} : vector<440x4xf32> to vector<1x4xf32>
    %5 = vector.extract_strided_slice %2 {offsets = [0, 0], sizes = [439, 4], strides = [1, 1]} : vector<440x4xf32> to vector<439x4xf32>
    %6 = tpu.concatenate %4, %5 in 0 : vector<1x4xf32>, vector<439x4xf32> -> vector<440x4xf32>
    %7 = arith.truncf %6 : vector<440x4xf32> to vector<440x4xbf16>
    %8 = vector.extract_strided_slice %2 {offsets = [1, 0], sizes = [439, 4], strides = [1, 1]} : vector<440x4xf32> to vector<439x4xf32>
    %9 = vector.extract_strided_slice %2 {offsets = [0, 0], sizes = [1, 4], strides = [1, 1]} : vector<440x4xf32> to vector<1x4xf32>
    %10 = tpu.concatenate %8, %9 in 0 : vector<439x4xf32>, vector<1x4xf32> -> vector<440x4xf32>
    %11 = arith.truncf %10 : vector<440x4xf32> to vector<440x4xbf16>
    %cst = arith.constant 0.000000e+00 : f32
    %12 = vector.broadcast %cst : f32 to vector<1x128xf32>
    %cst_2 = arith.constant 0.000000e+00 : f32
    %13 = vector.broadcast %cst_2 : f32 to vector<1x128xf32>
    %cst_3 = arith.constant 0.000000e+00 : f32
    %14 = vector.broadcast %cst_3 : f32 to vector<192x128xf32>
    %15 = vector.extract_strided_slice %7 {offsets = [0, 0], sizes = [192, 4], strides = [1, 1]} : vector<440x4xbf16> to vector<192x4xbf16>
    %c0_4 = arith.constant 0 : index
    %c0_5 = arith.constant 0 : index
    %c0_6 = arith.constant 0 : index
    %16 = vector.load %arg2[%c0_4, %c0_5, %c0_6] : memref<9x4x128xbf16, #tpu.memory_space<vmem>>, vector<1x4x128xbf16>
    %17 = vector.shape_cast %16 : vector<1x4x128xbf16> to vector<4x128xbf16>
    %cst_7 = arith.constant dense<0.000000e+00> : vector<192x128xf32>
    %18 = tpu.matmul %15, %17, %cst_7 {dimension_numbers = #tpu.dot_dimension_numbers<[1], [0], [0], [1], [0, 0, 1, 1], [], []>} : vector<192x4xbf16>, vector<4x128xbf16>, vector<192x128xf32> -> vector<192x128xf32>
    %19 = arith.addf %14, %18 : vector<192x128xf32>
    %20 = vector.extract_strided_slice %3 {offsets = [0, 0], sizes = [192, 4], strides = [1, 1]} : vector<440x4xbf16> to vector<192x4xbf16>
    %c1 = arith.constant 1 : index
    %c0_8 = arith.constant 0 : index
    %c0_9 = arith.constant 0 : index
    %21 = vector.load %arg2[%c1, %c0_8, %c0_9] : memref<9x4x128xbf16, #tpu.memory_space<vmem>>, vector<1x4x128xbf16>
    %22 = vector.shape_cast %21 : vector<1x4x128xbf16> to vector<4x128xbf16>
    %cst_10 = arith.constant dense<0.000000e+00> : vector<192x128xf32>
    %23 = tpu.matmul %20, %22, %cst_10 {dimension_numbers = #tpu.dot_dimension_numbers<[1], [0], [0], [1], [0, 0, 1, 1], [], []>} : vector<192x4xbf16>, vector<4x128xbf16>, vector<192x128xf32> -> vector<192x128xf32>
    %24 = arith.addf %19, %23 : vector<192x128xf32>
    %25 = vector.extract_strided_slice %11 {offsets = [0, 0], sizes = [192, 4], strides = [1, 1]} : vector<440x4xbf16> to vector<192x4xbf16>
    %c2 = arith.constant 2 : index
    %c0_11 = arith.constant 0 : index
    %c0_12 = arith.constant 0 : index
    %26 = vector.load %arg2[%c2, %c0_11, %c0_12] : memref<9x4x128xbf16, #tpu.memory_space<vmem>>, vector<1x4x128xbf16>
    %27 = vector.shape_cast %26 : vector<1x4x128xbf16> to vector<4x128xbf16>
    %cst_13 = arith.constant dense<0.000000e+00> : vector<192x128xf32>
    %28 = tpu.matmul %25, %27, %cst_13 {dimension_numbers = #tpu.dot_dimension_numbers<[1], [0], [0], [1], [0, 0, 1, 1], [], []>} : vector<192x4xbf16>, vector<4x128xbf16>, vector<192x128xf32> -> vector<192x128xf32>
    %29 = arith.addf %24, %28 : vector<192x128xf32>
    %30 = vector.extract_strided_slice %7 {offsets = [24, 0], sizes = [192, 4], strides = [1, 1]} : vector<440x4xbf16> to vector<192x4xbf16>
    %c3 = arith.constant 3 : index
    %c0_14 = arith.constant 0 : index
    %c0_15 = arith.constant 0 : index
    %31 = vector.load %arg2[%c3, %c0_14, %c0_15] : memref<9x4x128xbf16, #tpu.memory_space<vmem>>, vector<1x4x128xbf16>
    %32 = vector.shape_cast %31 : vector<1x4x128xbf16> to vector<4x128xbf16>
    %cst_16 = arith.constant dense<0.000000e+00> : vector<192x128xf32>
    %33 = tpu.matmul %30, %32, %cst_16 {dimension_numbers = #tpu.dot_dimension_numbers<[1], [0], [0], [1], [0, 0, 1, 1], [], []>} : vector<192x4xbf16>, vector<4x128xbf16>, vector<192x128xf32> -> vector<192x128xf32>
    %34 = arith.addf %29, %33 : vector<192x128xf32>
    %35 = vector.extract_strided_slice %3 {offsets = [24, 0], sizes = [192, 4], strides = [1, 1]} : vector<440x4xbf16> to vector<192x4xbf16>
    %c4 = arith.constant 4 : index
    %c0_17 = arith.constant 0 : index
    %c0_18 = arith.constant 0 : index
    %36 = vector.load %arg2[%c4, %c0_17, %c0_18] : memref<9x4x128xbf16, #tpu.memory_space<vmem>>, vector<1x4x128xbf16>
    %37 = vector.shape_cast %36 : vector<1x4x128xbf16> to vector<4x128xbf16>
    %cst_19 = arith.constant dense<0.000000e+00> : vector<192x128xf32>
    %38 = tpu.matmul %35, %37, %cst_19 {dimension_numbers = #tpu.dot_dimension_numbers<[1], [0], [0], [1], [0, 0, 1, 1], [], []>} : vector<192x4xbf16>, vector<4x128xbf16>, vector<192x128xf32> -> vector<192x128xf32>
    %39 = arith.addf %34, %38 : vector<192x128xf32>
    %40 = vector.extract_strided_slice %11 {offsets = [24, 0], sizes = [192, 4], strides = [1, 1]} : vector<440x4xbf16> to vector<192x4xbf16>
    %c5 = arith.constant 5 : index
    %c0_20 = arith.constant 0 : index
    %c0_21 = arith.constant 0 : index
    %41 = vector.load %arg2[%c5, %c0_20, %c0_21] : memref<9x4x128xbf16, #tpu.memory_space<vmem>>, vector<1x4x128xbf16>
    %42 = vector.shape_cast %41 : vector<1x4x128xbf16> to vector<4x128xbf16>
    %cst_22 = arith.constant dense<0.000000e+00> : vector<192x128xf32>
    %43 = tpu.matmul %40, %42, %cst_22 {dimension_numbers = #tpu.dot_dimension_numbers<[1], [0], [0], [1], [0, 0, 1, 1], [], []>} : vector<192x4xbf16>, vector<4x128xbf16>, vector<192x128xf32> -> vector<192x128xf32>
    %44 = arith.addf %39, %43 : vector<192x128xf32>
    %45 = vector.extract_strided_slice %7 {offsets = [48, 0], sizes = [192, 4], strides = [1, 1]} : vector<440x4xbf16> to vector<192x4xbf16>
    %c6 = arith.constant 6 : index
    %c0_23 = arith.constant 0 : index
    %c0_24 = arith.constant 0 : index
    %46 = vector.load %arg2[%c6, %c0_23, %c0_24] : memref<9x4x128xbf16, #tpu.memory_space<vmem>>, vector<1x4x128xbf16>
    %47 = vector.shape_cast %46 : vector<1x4x128xbf16> to vector<4x128xbf16>
    %cst_25 = arith.constant dense<0.000000e+00> : vector<192x128xf32>
    %48 = tpu.matmul %45, %47, %cst_25 {dimension_numbers = #tpu.dot_dimension_numbers<[1], [0], [0], [1], [0, 0, 1, 1], [], []>} : vector<192x4xbf16>, vector<4x128xbf16>, vector<192x128xf32> -> vector<192x128xf32>
    %49 = arith.addf %44, %48 : vector<192x128xf32>
    %50 = vector.extract_strided_slice %3 {offsets = [48, 0], sizes = [192, 4], strides = [1, 1]} : vector<440x4xbf16> to vector<192x4xbf16>
    %c7 = arith.constant 7 : index
    %c0_26 = arith.constant 0 : index
    %c0_27 = arith.constant 0 : index
    %51 = vector.load %arg2[%c7, %c0_26, %c0_27] : memref<9x4x128xbf16, #tpu.memory_space<vmem>>, vector<1x4x128xbf16>
    %52 = vector.shape_cast %51 : vector<1x4x128xbf16> to vector<4x128xbf16>
    %cst_28 = arith.constant dense<0.000000e+00> : vector<192x128xf32>
    %53 = tpu.matmul %50, %52, %cst_28 {dimension_numbers = #tpu.dot_dimension_numbers<[1], [0], [0], [1], [0, 0, 1, 1], [], []>} : vector<192x4xbf16>, vector<4x128xbf16>, vector<192x128xf32> -> vector<192x128xf32>
    %54 = arith.addf %49, %53 : vector<192x128xf32>
    %55 = vector.extract_strided_slice %11 {offsets = [48, 0], sizes = [192, 4], strides = [1, 1]} : vector<440x4xbf16> to vector<192x4xbf16>
    %c8 = arith.constant 8 : index
    %c0_29 = arith.constant 0 : index
    %c0_30 = arith.constant 0 : index
    %56 = vector.load %arg2[%c8, %c0_29, %c0_30] : memref<9x4x128xbf16, #tpu.memory_space<vmem>>, vector<1x4x128xbf16>
    %57 = vector.shape_cast %56 : vector<1x4x128xbf16> to vector<4x128xbf16>
    %cst_31 = arith.constant dense<0.000000e+00> : vector<192x128xf32>
    %58 = tpu.matmul %55, %57, %cst_31 {dimension_numbers = #tpu.dot_dimension_numbers<[1], [0], [0], [1], [0, 0, 1, 1], [], []>} : vector<192x4xbf16>, vector<4x128xbf16>, vector<192x128xf32> -> vector<192x128xf32>
    %59 = arith.addf %54, %58 : vector<192x128xf32>
    %60 = arith.truncf %59 : vector<192x128xf32> to vector<192x128xbf16>
    %c0_32 = arith.constant 0 : index
    %c0_33 = arith.constant 0 : index
    %c0_34 = arith.constant 0 : index
    %61 = vector.load %arg6[%c0_32, %c0_33, %c0_34] : memref<1x384x128xbf16, #tpu.memory_space<vmem>>, vector<1x192x128xbf16>
    %62 = vector.shape_cast %61 : vector<1x192x128xbf16> to vector<192x128xbf16>
    %63 = vector.shape_cast %60 : vector<192x128xbf16> to vector<1x192x128xbf16>
    tpu.vector_store %arg6[%c0_32, %c0_33, %c0_34], %63 {strides = array<i32>} : memref<1x384x128xbf16, #tpu.memory_space<vmem>>, vector<1x192x128xbf16>,
    %c0_35 = arith.constant 0 : index
    %c0_36 = arith.constant 0 : index
    %64 = vector.load %arg3[%c0_35, %c0_36] : memref<440x1xf32, #tpu.memory_space<vmem>>, vector<192x1xf32>
    %65 = vector.broadcast %64 : vector<192x1xf32> to vector<192x128xf32>
    %66 = arith.mulf %59, %65 : vector<192x128xf32>
    %cst_37 = arith.constant dense<0.000000e+00> : vector<128xf32>
    %67 = vector.multi_reduction <add>, %66, %cst_37 [0] : vector<192x128xf32> to vector<128xf32>
    %68 = vector.shape_cast %67 : vector<128xf32> to vector<1x128xf32>
    %69 = arith.addf %12, %68 : vector<1x128xf32>
    %70 = arith.mulf %66, %59 : vector<192x128xf32>
    %cst_38 = arith.constant dense<0.000000e+00> : vector<128xf32>
    %71 = vector.multi_reduction <add>, %70, %cst_38 [0] : vector<192x128xf32> to vector<128xf32>
    %72 = vector.shape_cast %71 : vector<128xf32> to vector<1x128xf32>
    %73 = arith.addf %13, %72 : vector<1x128xf32>
    %cst_39 = arith.constant 0.000000e+00 : f32
    %74 = vector.broadcast %cst_39 : f32 to vector<192x128xf32>
    %75 = vector.extract_strided_slice %7 {offsets = [192, 0], sizes = [192, 4], strides = [1, 1]} : vector<440x4xbf16> to vector<192x4xbf16>
    %c0_40 = arith.constant 0 : index
    %c0_41 = arith.constant 0 : index
    %c0_42 = arith.constant 0 : index
    %76 = vector.load %arg2[%c0_40, %c0_41, %c0_42] : memref<9x4x128xbf16, #tpu.memory_space<vmem>>, vector<1x4x128xbf16>
    %77 = vector.shape_cast %76 : vector<1x4x128xbf16> to vector<4x128xbf16>
    %cst_43 = arith.constant dense<0.000000e+00> : vector<192x128xf32>
    %78 = tpu.matmul %75, %77, %cst_43 {dimension_numbers = #tpu.dot_dimension_numbers<[1], [0], [0], [1], [0, 0, 1, 1], [], []>} : vector<192x4xbf16>, vector<4x128xbf16>, vector<192x128xf32> -> vector<192x128xf32>
    %79 = arith.addf %74, %78 : vector<192x128xf32>
    %80 = vector.extract_strided_slice %3 {offsets = [192, 0], sizes = [192, 4], strides = [1, 1]} : vector<440x4xbf16> to vector<192x4xbf16>
    %c1_44 = arith.constant 1 : index
    %c0_45 = arith.constant 0 : index
    %c0_46 = arith.constant 0 : index
    %81 = vector.load %arg2[%c1_44, %c0_45, %c0_46] : memref<9x4x128xbf16, #tpu.memory_space<vmem>>, vector<1x4x128xbf16>
    %82 = vector.shape_cast %81 : vector<1x4x128xbf16> to vector<4x128xbf16>
    %cst_47 = arith.constant dense<0.000000e+00> : vector<192x128xf32>
    %83 = tpu.matmul %80, %82, %cst_47 {dimension_numbers = #tpu.dot_dimension_numbers<[1], [0], [0], [1], [0, 0, 1, 1], [], []>} : vector<192x4xbf16>, vector<4x128xbf16>, vector<192x128xf32> -> vector<192x128xf32>
    %84 = arith.addf %79, %83 : vector<192x128xf32>
    %85 = vector.extract_strided_slice %11 {offsets = [192, 0], sizes = [192, 4], strides = [1, 1]} : vector<440x4xbf16> to vector<192x4xbf16>
    %c2_48 = arith.constant 2 : index
    %c0_49 = arith.constant 0 : index
    %c0_50 = arith.constant 0 : index
    %86 = vector.load %arg2[%c2_48, %c0_49, %c0_50] : memref<9x4x128xbf16, #tpu.memory_space<vmem>>, vector<1x4x128xbf16>
    %87 = vector.shape_cast %86 : vector<1x4x128xbf16> to vector<4x128xbf16>
    %cst_51 = arith.constant dense<0.000000e+00> : vector<192x128xf32>
    %88 = tpu.matmul %85, %87, %cst_51 {dimension_numbers = #tpu.dot_dimension_numbers<[1], [0], [0], [1], [0, 0, 1, 1], [], []>} : vector<192x4xbf16>, vector<4x128xbf16>, vector<192x128xf32> -> vector<192x128xf32>
    %89 = arith.addf %84, %88 : vector<192x128xf32>
    %90 = vector.extract_strided_slice %7 {offsets = [216, 0], sizes = [192, 4], strides = [1, 1]} : vector<440x4xbf16> to vector<192x4xbf16>
    %c3_52 = arith.constant 3 : index
    %c0_53 = arith.constant 0 : index
    %c0_54 = arith.constant 0 : index
    %91 = vector.load %arg2[%c3_52, %c0_53, %c0_54] : memref<9x4x128xbf16, #tpu.memory_space<vmem>>, vector<1x4x128xbf16>
    %92 = vector.shape_cast %91 : vector<1x4x128xbf16> to vector<4x128xbf16>
    %cst_55 = arith.constant dense<0.000000e+00> : vector<192x128xf32>
    %93 = tpu.matmul %90, %92, %cst_55 {dimension_numbers = #tpu.dot_dimension_numbers<[1], [0], [0], [1], [0, 0, 1, 1], [], []>} : vector<192x4xbf16>, vector<4x128xbf16>, vector<192x128xf32> -> vector<192x128xf32>
    %94 = arith.addf %89, %93 : vector<192x128xf32>
    %95 = vector.extract_strided_slice %3 {offsets = [216, 0], sizes = [192, 4], strides = [1, 1]} : vector<440x4xbf16> to vector<192x4xbf16>
    %c4_56 = arith.constant 4 : index
    %c0_57 = arith.constant 0 : index
    %c0_58 = arith.constant 0 : index
    %96 = vector.load %arg2[%c4_56, %c0_57, %c0_58] : memref<9x4x128xbf16, #tpu.memory_space<vmem>>, vector<1x4x128xbf16>
    %97 = vector.shape_cast %96 : vector<1x4x128xbf16> to vector<4x128xbf16>
    %cst_59 = arith.constant dense<0.000000e+00> : vector<192x128xf32>
    %98 = tpu.matmul %95, %97, %cst_59 {dimension_numbers = #tpu.dot_dimension_numbers<[1], [0], [0], [1], [0, 0, 1, 1], [], []>} : vector<192x4xbf16>, vector<4x128xbf16>, vector<192x128xf32> -> vector<192x128xf32>
    %99 = arith.addf %94, %98 : vector<192x128xf32>
    %100 = vector.extract_strided_slice %11 {offsets = [216, 0], sizes = [192, 4], strides = [1, 1]} : vector<440x4xbf16> to vector<192x4xbf16>
    %c5_60 = arith.constant 5 : index
    %c0_61 = arith.constant 0 : index
    %c0_62 = arith.constant 0 : index
    %101 = vector.load %arg2[%c5_60, %c0_61, %c0_62] : memref<9x4x128xbf16, #tpu.memory_space<vmem>>, vector<1x4x128xbf16>
    %102 = vector.shape_cast %101 : vector<1x4x128xbf16> to vector<4x128xbf16>
    %cst_63 = arith.constant dense<0.000000e+00> : vector<192x128xf32>
    %103 = tpu.matmul %100, %102, %cst_63 {dimension_numbers = #tpu.dot_dimension_numbers<[1], [0], [0], [1], [0, 0, 1, 1], [], []>} : vector<192x4xbf16>, vector<4x128xbf16>, vector<192x128xf32> -> vector<192x128xf32>
    %104 = arith.addf %99, %103 : vector<192x128xf32>
    %105 = vector.extract_strided_slice %7 {offsets = [240, 0], sizes = [192, 4], strides = [1, 1]} : vector<440x4xbf16> to vector<192x4xbf16>
    %c6_64 = arith.constant 6 : index
    %c0_65 = arith.constant 0 : index
    %c0_66 = arith.constant 0 : index
    %106 = vector.load %arg2[%c6_64, %c0_65, %c0_66] : memref<9x4x128xbf16, #tpu.memory_space<vmem>>, vector<1x4x128xbf16>
    %107 = vector.shape_cast %106 : vector<1x4x128xbf16> to vector<4x128xbf16>
    %cst_67 = arith.constant dense<0.000000e+00> : vector<192x128xf32>
    %108 = tpu.matmul %105, %107, %cst_67 {dimension_numbers = #tpu.dot_dimension_numbers<[1], [0], [0], [1], [0, 0, 1, 1], [], []>} : vector<192x4xbf16>, vector<4x128xbf16>, vector<192x128xf32> -> vector<192x128xf32>
    %109 = arith.addf %104, %108 : vector<192x128xf32>
    %110 = vector.extract_strided_slice %3 {offsets = [240, 0], sizes = [192, 4], strides = [1, 1]} : vector<440x4xbf16> to vector<192x4xbf16>
    %c7_68 = arith.constant 7 : index
    %c0_69 = arith.constant 0 : index
    %c0_70 = arith.constant 0 : index
    %111 = vector.load %arg2[%c7_68, %c0_69, %c0_70] : memref<9x4x128xbf16, #tpu.memory_space<vmem>>, vector<1x4x128xbf16>
    %112 = vector.shape_cast %111 : vector<1x4x128xbf16> to vector<4x128xbf16>
    %cst_71 = arith.constant dense<0.000000e+00> : vector<192x128xf32>
    %113 = tpu.matmul %110, %112, %cst_71 {dimension_numbers = #tpu.dot_dimension_numbers<[1], [0], [0], [1], [0, 0, 1, 1], [], []>} : vector<192x4xbf16>, vector<4x128xbf16>, vector<192x128xf32> -> vector<192x128xf32>
    %114 = arith.addf %109, %113 : vector<192x128xf32>
    %115 = vector.extract_strided_slice %11 {offsets = [240, 0], sizes = [192, 4], strides = [1, 1]} : vector<440x4xbf16> to vector<192x4xbf16>
    %c8_72 = arith.constant 8 : index
    %c0_73 = arith.constant 0 : index
    %c0_74 = arith.constant 0 : index
    %116 = vector.load %arg2[%c8_72, %c0_73, %c0_74] : memref<9x4x128xbf16, #tpu.memory_space<vmem>>, vector<1x4x128xbf16>
    %117 = vector.shape_cast %116 : vector<1x4x128xbf16> to vector<4x128xbf16>
    %cst_75 = arith.constant dense<0.000000e+00> : vector<192x128xf32>
    %118 = tpu.matmul %115, %117, %cst_75 {dimension_numbers = #tpu.dot_dimension_numbers<[1], [0], [0], [1], [0, 0, 1, 1], [], []>} : vector<192x4xbf16>, vector<4x128xbf16>, vector<192x128xf32> -> vector<192x128xf32>
    %119 = arith.addf %114, %118 : vector<192x128xf32>
    %120 = arith.truncf %119 : vector<192x128xf32> to vector<192x128xbf16>
    %c0_76 = arith.constant 0 : index
    %c192 = arith.constant 192 : index
    %c0_77 = arith.constant 0 : index
    %121 = vector.load %arg6[%c0_76, %c192, %c0_77] : memref<1x384x128xbf16, #tpu.memory_space<vmem>>, vector<1x192x128xbf16>
    %122 = vector.shape_cast %121 : vector<1x192x128xbf16> to vector<192x128xbf16>
    %123 = vector.shape_cast %120 : vector<192x128xbf16> to vector<1x192x128xbf16>
    tpu.vector_store %arg6[%c0_76, %c192, %c0_77], %123 {strides = array<i32>} : memref<1x384x128xbf16, #tpu.memory_space<vmem>>, vector<1x192x128xbf16>,
    %c192_78 = arith.constant 192 : index
    %c0_79 = arith.constant 0 : index
    %124 = vector.load %arg3[%c192_78, %c0_79] : memref<440x1xf32, #tpu.memory_space<vmem>>, vector<192x1xf32>
    %125 = vector.broadcast %124 : vector<192x1xf32> to vector<192x128xf32>
    %126 = arith.mulf %119, %125 : vector<192x128xf32>
    %cst_80 = arith.constant dense<0.000000e+00> : vector<128xf32>
    %127 = vector.multi_reduction <add>, %126, %cst_80 [0] : vector<192x128xf32> to vector<128xf32>
    %128 = vector.shape_cast %127 : vector<128xf32> to vector<1x128xf32>
    %129 = arith.addf %69, %128 : vector<1x128xf32>
    %130 = arith.mulf %126, %119 : vector<192x128xf32>
    %cst_81 = arith.constant dense<0.000000e+00> : vector<128xf32>
    %131 = vector.multi_reduction <add>, %130, %cst_81 [0] : vector<192x128xf32> to vector<128xf32>
    %132 = vector.shape_cast %131 : vector<128xf32> to vector<1x128xf32>
    %133 = arith.addf %73, %132 : vector<1x128xf32>
    %c0_82 = arith.constant 0 : index
    %c0_83 = arith.constant 0 : index
    %c0_84 = arith.constant 0 : index
    %134 = vector.load %arg7[%c0_82, %c0_83, %c0_84] : memref<1x2x128xf32, #tpu.memory_space<vmem>>, vector<1x1x128xf32>
    %135 = vector.shape_cast %134 : vector<1x1x128xf32> to vector<1x128xf32>
    %136 = vector.shape_cast %129 : vector<1x128xf32> to vector<1x1x128xf32>
    tpu.vector_store %arg7[%c0_82, %c0_83, %c0_84], %136 {strides = array<i32>} : memref<1x2x128xf32, #tpu.memory_space<vmem>>, vector<1x1x128xf32>,
    %c0_85 = arith.constant 0 : index
    %c1_86 = arith.constant 1 : index
    %c0_87 = arith.constant 0 : index
    %137 = vector.load %arg7[%c0_85, %c1_86, %c0_87] : memref<1x2x128xf32, #tpu.memory_space<vmem>>, vector<1x1x128xf32>
    %138 = vector.shape_cast %137 : vector<1x1x128xf32> to vector<1x128xf32>
    %139 = vector.shape_cast %133 : vector<1x128xf32> to vector<1x1x128xf32>
    tpu.vector_store %arg7[%c0_85, %c1_86, %c0_87], %139 {strides = array<i32>} : memref<1x2x128xf32, #tpu.memory_space<vmem>>, vector<1x1x128xf32>,
    return
  }
  func.func @transform_0(%arg0: i32) -> (i32, i32, i32) {
    %c0_i32 = arith.constant 0 : i32
    %c0_i32_0 = arith.constant 0 : i32
    %c0_i32_1 = arith.constant 0 : i32
    return %arg0, %c0_i32, %c0_i32_0 : i32, i32, i32
  }
  func.func @transform_1(%arg0: i32) -> (i32, i32, i32) {
    %c0_i32 = arith.constant 0 : i32
    %c0_i32_0 = arith.constant 0 : i32
    %c0_i32_1 = arith.constant 0 : i32
    %c0_i32_2 = arith.constant 0 : i32
    return %c0_i32, %c0_i32_0, %c0_i32_1 : i32, i32, i32
  }
  func.func @transform_2(%arg0: i32) -> (i32, i32) {
    %c0_i32 = arith.constant 0 : i32
    %c0_i32_0 = arith.constant 0 : i32
    %c0_i32_1 = arith.constant 0 : i32
    return %c0_i32, %c0_i32_0 : i32, i32
  }
  func.func @transform_3(%arg0: i32) -> (i32, i32) {
    %c0_i32 = arith.constant 0 : i32
    %c0_i32_0 = arith.constant 0 : i32
    %c0_i32_1 = arith.constant 0 : i32
    return %c0_i32, %c0_i32_0 : i32, i32
  }
  func.func @transform_4(%arg0: i32) -> (i32, i32) {
    %c0_i32 = arith.constant 0 : i32
    %c0_i32_0 = arith.constant 0 : i32
    %c0_i32_1 = arith.constant 0 : i32
    return %c0_i32, %c0_i32_0 : i32, i32
  }
  func.func @transform_5(%arg0: i32) -> (i32, i32, i32) {
    %c0_i32 = arith.constant 0 : i32
    %c0_i32_0 = arith.constant 0 : i32
    %c0_i32_1 = arith.constant 0 : i32
    return %arg0, %c0_i32, %c0_i32_0 : i32, i32, i32
  }
  func.func @transform_6(%arg0: i32) -> (i32, i32, i32) {
    %c0_i32 = arith.constant 0 : i32
    %c0_i32_0 = arith.constant 0 : i32
    %c0_i32_1 = arith.constant 0 : i32
    return %arg0, %c0_i32, %c0_i32_0 : i32, i32, i32
  }
}

module attributes {stable_mosaic.version = 11 : i64} {
  func.func @_bn_relu_kernel(%arg0: i32, %arg1: memref<768x128xbf16, #tpu.memory_space<vmem>>, %arg2: memref<1x128xf32, #tpu.memory_space<vmem>>, %arg3: memref<1x128xf32, #tpu.memory_space<vmem>>, %arg4: memref<768x128xf32, #tpu.memory_space<vmem>>) attributes {dimension_semantics = [#tpu.dimension_semantics<parallel>], iteration_bounds = array<i64: 1>, scalar_prefetch = 0 : i64, scratch_operands = 0 : i64, tpu.core_type = #tpu.core_type<tc>, window_params = [{transform_indices = @transform_0, window_bounds = array<i64: 768, 128>}, {pipeline_mode = #tpu.pipeline_mode<synchronous>, transform_indices = @transform_1, window_bounds = array<i64: 1, 128>}, {pipeline_mode = #tpu.pipeline_mode<synchronous>, transform_indices = @transform_2, window_bounds = array<i64: 1, 128>}, {transform_indices = @transform_3, window_bounds = array<i64: 768, 128>}]} {
    %c0 = arith.constant 0 : index
    %c0_0 = arith.constant 0 : index
    %0 = vector.load %arg1[%c0, %c0_0] : memref<768x128xbf16, #tpu.memory_space<vmem>>, vector<768x128xbf16>
    %1 = arith.extf %0 : vector<768x128xbf16> to vector<768x128xf32>
    %c0_1 = arith.constant 0 : index
    %c0_2 = arith.constant 0 : index
    %2 = vector.load %arg2[%c0_1, %c0_2] : memref<1x128xf32, #tpu.memory_space<vmem>>, vector<1x128xf32>
    %3 = vector.broadcast %2 : vector<1x128xf32> to vector<768x128xf32>
    %4 = arith.mulf %1, %3 : vector<768x128xf32>
    %c0_3 = arith.constant 0 : index
    %c0_4 = arith.constant 0 : index
    %5 = vector.load %arg3[%c0_3, %c0_4] : memref<1x128xf32, #tpu.memory_space<vmem>>, vector<1x128xf32>
    %6 = vector.broadcast %5 : vector<1x128xf32> to vector<768x128xf32>
    %7 = arith.addf %4, %6 : vector<768x128xf32>
    %cst = arith.constant 0.000000e+00 : f32
    %8 = vector.broadcast %cst : f32 to vector<768x128xf32>
    %9 = arith.maximumf %7, %8 : vector<768x128xf32>
    %c0_5 = arith.constant 0 : index
    %c0_6 = arith.constant 0 : index
    %10 = vector.load %arg4[%c0_5, %c0_6] : memref<768x128xf32, #tpu.memory_space<vmem>>, vector<768x128xf32>
    tpu.vector_store %arg4[%c0_5, %c0_6], %9 {strides = array<i32>} : memref<768x128xf32, #tpu.memory_space<vmem>>, vector<768x128xf32>,
    return
  }
  func.func @transform_0(%arg0: i32) -> (i32, i32) {
    %c0_i32 = arith.constant 0 : i32
    %c0_i32_0 = arith.constant 0 : i32
    return %arg0, %c0_i32 : i32, i32
  }
  func.func @transform_1(%arg0: i32) -> (i32, i32) {
    %c0_i32 = arith.constant 0 : i32
    %c0_i32_0 = arith.constant 0 : i32
    %c0_i32_1 = arith.constant 0 : i32
    return %c0_i32, %c0_i32_0 : i32, i32
  }
  func.func @transform_2(%arg0: i32) -> (i32, i32) {
    %c0_i32 = arith.constant 0 : i32
    %c0_i32_0 = arith.constant 0 : i32
    %c0_i32_1 = arith.constant 0 : i32
    return %c0_i32, %c0_i32_0 : i32, i32
  }
  func.func @transform_3(%arg0: i32) -> (i32, i32) {
    %c0_i32 = arith.constant 0 : i32
    %c0_i32_0 = arith.constant 0 : i32
    return %arg0, %c0_i32 : i32, i32
  }
}

module attributes {stable_mosaic.version = 11 : i64} {
  func.func @_conv_kernel(%arg0: i32, %arg1: memref<1x440x128xbf16, #tpu.memory_space<vmem>>, %arg2: memref<3x384x128xbf16, #tpu.memory_space<vmem>>, %arg3: memref<440x1xf32, #tpu.memory_space<vmem>>, %arg4: memref<1x128xf32, #tpu.memory_space<vmem>>, %arg5: memref<1x128xf32, #tpu.memory_space<vmem>>, %arg6: memref<1x384x128xbf16, #tpu.memory_space<vmem>>, %arg7: memref<1x2x128xf32, #tpu.memory_space<vmem>>) attributes {dimension_semantics = [#tpu.dimension_semantics<parallel>], iteration_bounds = array<i64: 2>, scalar_prefetch = 0 : i64, scratch_operands = 0 : i64, tpu.core_type = #tpu.core_type<tc>, window_params = [{transform_indices = @transform_0, window_bounds = array<i64: 1, 440, 128>}, {pipeline_mode = #tpu.pipeline_mode<synchronous>, transform_indices = @transform_1, window_bounds = array<i64: 3, 384, 128>}, {pipeline_mode = #tpu.pipeline_mode<synchronous>, transform_indices = @transform_2, window_bounds = array<i64: 440, 1>}, {pipeline_mode = #tpu.pipeline_mode<synchronous>, transform_indices = @transform_3, window_bounds = array<i64: 1, 128>}, {pipeline_mode = #tpu.pipeline_mode<synchronous>, transform_indices = @transform_4, window_bounds = array<i64: 1, 128>}, {transform_indices = @transform_5, window_bounds = array<i64: 1, 384, 128>}, {transform_indices = @transform_6, window_bounds = array<i64: 1, 2, 128>}]} {
    %0 = tpu.iota {dimensions = array<i32: 0>} : vector<440x1xi32>
    %c24_i32 = arith.constant 24 : i32
    %1 = vector.broadcast %c24_i32 : i32 to vector<440x1xi32>
    %2 = arith.cmpi sge, %0, %1 : vector<440x1xi32>
    %c408_i32 = arith.constant 408 : i32
    %3 = vector.broadcast %c408_i32 : i32 to vector<440x1xi32>
    %4 = arith.cmpi slt, %0, %3 : vector<440x1xi32>
    %5 = arith.andi %2, %4 : vector<440x1xi1>
    %c0 = arith.constant 0 : index
    %c0_0 = arith.constant 0 : index
    %6 = vector.load %arg3[%c0, %c0_0] : memref<440x1xf32, #tpu.memory_space<vmem>>, vector<440x1xf32>
    %cst = arith.constant 0.000000e+00 : f32
    %7 = vector.broadcast %cst : f32 to vector<440x1xf32>
    %8 = arith.select %5, %6, %7 : vector<440x1xi1>, vector<440x1xf32>
    %c0_1 = arith.constant 0 : index
    %c0_2 = arith.constant 0 : index
    %c0_3 = arith.constant 0 : index
    %9 = vector.load %arg1[%c0_1, %c0_2, %c0_3] : memref<1x440x128xbf16, #tpu.memory_space<vmem>>, vector<1x440x128xbf16>
    %10 = vector.shape_cast %9 : vector<1x440x128xbf16> to vector<440x128xbf16>
    %11 = arith.extf %10 : vector<440x128xbf16> to vector<440x128xf32>
    %c0_4 = arith.constant 0 : index
    %c0_5 = arith.constant 0 : index
    %12 = vector.load %arg4[%c0_4, %c0_5] : memref<1x128xf32, #tpu.memory_space<vmem>>, vector<1x128xf32>
    %13 = vector.broadcast %12 : vector<1x128xf32> to vector<440x128xf32>
    %14 = arith.mulf %11, %13 : vector<440x128xf32>
    %c0_6 = arith.constant 0 : index
    %c0_7 = arith.constant 0 : index
    %15 = vector.load %arg5[%c0_6, %c0_7] : memref<1x128xf32, #tpu.memory_space<vmem>>, vector<1x128xf32>
    %16 = vector.broadcast %15 : vector<1x128xf32> to vector<440x128xf32>
    %17 = arith.addf %14, %16 : vector<440x128xf32>
    %cst_8 = arith.constant 0.000000e+00 : f32
    %18 = vector.broadcast %cst_8 : f32 to vector<440x128xf32>
    %19 = arith.maximumf %17, %18 : vector<440x128xf32>
    %20 = vector.broadcast %8 : vector<440x1xf32> to vector<440x128xf32>
    %21 = arith.mulf %19, %20 : vector<440x128xf32>
    %22 = arith.truncf %21 : vector<440x128xf32> to vector<440x128xbf16>
    %23 = vector.extract_strided_slice %21 {offsets = [439, 0], sizes = [1, 128], strides = [1, 1]} : vector<440x128xf32> to vector<1x128xf32>
    %24 = vector.extract_strided_slice %21 {offsets = [0, 0], sizes = [439, 128], strides = [1, 1]} : vector<440x128xf32> to vector<439x128xf32>
    %25 = tpu.concatenate %23, %24 in 0 : vector<1x128xf32>, vector<439x128xf32> -> vector<440x128xf32>
    %26 = arith.truncf %25 : vector<440x128xf32> to vector<440x128xbf16>
    %27 = vector.extract_strided_slice %21 {offsets = [1, 0], sizes = [439, 128], strides = [1, 1]} : vector<440x128xf32> to vector<439x128xf32>
    %28 = vector.extract_strided_slice %21 {offsets = [0, 0], sizes = [1, 128], strides = [1, 1]} : vector<440x128xf32> to vector<1x128xf32>
    %29 = tpu.concatenate %27, %28 in 0 : vector<439x128xf32>, vector<1x128xf32> -> vector<440x128xf32>
    %30 = arith.truncf %29 : vector<440x128xf32> to vector<440x128xbf16>
    %31 = tpu.concatenate %26, %22, %30 in 1 : vector<440x128xbf16>, vector<440x128xbf16>, vector<440x128xbf16> -> vector<440x384xbf16>
    %cst_9 = arith.constant 0.000000e+00 : f32
    %32 = vector.broadcast %cst_9 : f32 to vector<1x128xf32>
    %cst_10 = arith.constant 0.000000e+00 : f32
    %33 = vector.broadcast %cst_10 : f32 to vector<1x128xf32>
    %cst_11 = arith.constant 0.000000e+00 : f32
    %34 = vector.broadcast %cst_11 : f32 to vector<192x128xf32>
    %35 = vector.extract_strided_slice %31 {offsets = [0, 0], sizes = [192, 384], strides = [1, 1]} : vector<440x384xbf16> to vector<192x384xbf16>
    %c0_12 = arith.constant 0 : index
    %c0_13 = arith.constant 0 : index
    %c0_14 = arith.constant 0 : index
    %36 = vector.load %arg2[%c0_12, %c0_13, %c0_14] : memref<3x384x128xbf16, #tpu.memory_space<vmem>>, vector<1x384x128xbf16>
    %37 = vector.shape_cast %36 : vector<1x384x128xbf16> to vector<384x128xbf16>
    %cst_15 = arith.constant dense<0.000000e+00> : vector<192x128xf32>
    %38 = tpu.matmul %35, %37, %cst_15 {dimension_numbers = #tpu.dot_dimension_numbers<[1], [0], [0], [1], [0, 0, 1, 1], [], []>} : vector<192x384xbf16>, vector<384x128xbf16>, vector<192x128xf32> -> vector<192x128xf32>
    %39 = arith.addf %34, %38 : vector<192x128xf32>
    %40 = vector.extract_strided_slice %31 {offsets = [24, 0], sizes = [192, 384], strides = [1, 1]} : vector<440x384xbf16> to vector<192x384xbf16>
    %c1 = arith.constant 1 : index
    %c0_16 = arith.constant 0 : index
    %c0_17 = arith.constant 0 : index
    %41 = vector.load %arg2[%c1, %c0_16, %c0_17] : memref<3x384x128xbf16, #tpu.memory_space<vmem>>, vector<1x384x128xbf16>
    %42 = vector.shape_cast %41 : vector<1x384x128xbf16> to vector<384x128xbf16>
    %cst_18 = arith.constant dense<0.000000e+00> : vector<192x128xf32>
    %43 = tpu.matmul %40, %42, %cst_18 {dimension_numbers = #tpu.dot_dimension_numbers<[1], [0], [0], [1], [0, 0, 1, 1], [], []>} : vector<192x384xbf16>, vector<384x128xbf16>, vector<192x128xf32> -> vector<192x128xf32>
    %44 = arith.addf %39, %43 : vector<192x128xf32>
    %45 = vector.extract_strided_slice %31 {offsets = [48, 0], sizes = [192, 384], strides = [1, 1]} : vector<440x384xbf16> to vector<192x384xbf16>
    %c2 = arith.constant 2 : index
    %c0_19 = arith.constant 0 : index
    %c0_20 = arith.constant 0 : index
    %46 = vector.load %arg2[%c2, %c0_19, %c0_20] : memref<3x384x128xbf16, #tpu.memory_space<vmem>>, vector<1x384x128xbf16>
    %47 = vector.shape_cast %46 : vector<1x384x128xbf16> to vector<384x128xbf16>
    %cst_21 = arith.constant dense<0.000000e+00> : vector<192x128xf32>
    %48 = tpu.matmul %45, %47, %cst_21 {dimension_numbers = #tpu.dot_dimension_numbers<[1], [0], [0], [1], [0, 0, 1, 1], [], []>} : vector<192x384xbf16>, vector<384x128xbf16>, vector<192x128xf32> -> vector<192x128xf32>
    %49 = arith.addf %44, %48 : vector<192x128xf32>
    %50 = arith.truncf %49 : vector<192x128xf32> to vector<192x128xbf16>
    %c0_22 = arith.constant 0 : index
    %c0_23 = arith.constant 0 : index
    %c0_24 = arith.constant 0 : index
    %51 = vector.load %arg6[%c0_22, %c0_23, %c0_24] : memref<1x384x128xbf16, #tpu.memory_space<vmem>>, vector<1x192x128xbf16>
    %52 = vector.shape_cast %51 : vector<1x192x128xbf16> to vector<192x128xbf16>
    %53 = vector.shape_cast %50 : vector<192x128xbf16> to vector<1x192x128xbf16>
    tpu.vector_store %arg6[%c0_22, %c0_23, %c0_24], %53 {strides = array<i32>} : memref<1x384x128xbf16, #tpu.memory_space<vmem>>, vector<1x192x128xbf16>,
    %c0_25 = arith.constant 0 : index
    %c0_26 = arith.constant 0 : index
    %54 = vector.load %arg3[%c0_25, %c0_26] : memref<440x1xf32, #tpu.memory_space<vmem>>, vector<192x1xf32>
    %55 = vector.broadcast %54 : vector<192x1xf32> to vector<192x128xf32>
    %56 = arith.mulf %49, %55 : vector<192x128xf32>
    %cst_27 = arith.constant dense<0.000000e+00> : vector<128xf32>
    %57 = vector.multi_reduction <add>, %56, %cst_27 [0] : vector<192x128xf32> to vector<128xf32>
    %58 = vector.shape_cast %57 : vector<128xf32> to vector<1x128xf32>
    %59 = arith.addf %32, %58 : vector<1x128xf32>
    %60 = arith.mulf %56, %49 : vector<192x128xf32>
    %cst_28 = arith.constant dense<0.000000e+00> : vector<128xf32>
    %61 = vector.multi_reduction <add>, %60, %cst_28 [0] : vector<192x128xf32> to vector<128xf32>
    %62 = vector.shape_cast %61 : vector<128xf32> to vector<1x128xf32>
    %63 = arith.addf %33, %62 : vector<1x128xf32>
    %cst_29 = arith.constant 0.000000e+00 : f32
    %64 = vector.broadcast %cst_29 : f32 to vector<192x128xf32>
    %65 = vector.extract_strided_slice %31 {offsets = [192, 0], sizes = [192, 384], strides = [1, 1]} : vector<440x384xbf16> to vector<192x384xbf16>
    %c0_30 = arith.constant 0 : index
    %c0_31 = arith.constant 0 : index
    %c0_32 = arith.constant 0 : index
    %66 = vector.load %arg2[%c0_30, %c0_31, %c0_32] : memref<3x384x128xbf16, #tpu.memory_space<vmem>>, vector<1x384x128xbf16>
    %67 = vector.shape_cast %66 : vector<1x384x128xbf16> to vector<384x128xbf16>
    %cst_33 = arith.constant dense<0.000000e+00> : vector<192x128xf32>
    %68 = tpu.matmul %65, %67, %cst_33 {dimension_numbers = #tpu.dot_dimension_numbers<[1], [0], [0], [1], [0, 0, 1, 1], [], []>} : vector<192x384xbf16>, vector<384x128xbf16>, vector<192x128xf32> -> vector<192x128xf32>
    %69 = arith.addf %64, %68 : vector<192x128xf32>
    %70 = vector.extract_strided_slice %31 {offsets = [216, 0], sizes = [192, 384], strides = [1, 1]} : vector<440x384xbf16> to vector<192x384xbf16>
    %c1_34 = arith.constant 1 : index
    %c0_35 = arith.constant 0 : index
    %c0_36 = arith.constant 0 : index
    %71 = vector.load %arg2[%c1_34, %c0_35, %c0_36] : memref<3x384x128xbf16, #tpu.memory_space<vmem>>, vector<1x384x128xbf16>
    %72 = vector.shape_cast %71 : vector<1x384x128xbf16> to vector<384x128xbf16>
    %cst_37 = arith.constant dense<0.000000e+00> : vector<192x128xf32>
    %73 = tpu.matmul %70, %72, %cst_37 {dimension_numbers = #tpu.dot_dimension_numbers<[1], [0], [0], [1], [0, 0, 1, 1], [], []>} : vector<192x384xbf16>, vector<384x128xbf16>, vector<192x128xf32> -> vector<192x128xf32>
    %74 = arith.addf %69, %73 : vector<192x128xf32>
    %75 = vector.extract_strided_slice %31 {offsets = [240, 0], sizes = [192, 384], strides = [1, 1]} : vector<440x384xbf16> to vector<192x384xbf16>
    %c2_38 = arith.constant 2 : index
    %c0_39 = arith.constant 0 : index
    %c0_40 = arith.constant 0 : index
    %76 = vector.load %arg2[%c2_38, %c0_39, %c0_40] : memref<3x384x128xbf16, #tpu.memory_space<vmem>>, vector<1x384x128xbf16>
    %77 = vector.shape_cast %76 : vector<1x384x128xbf16> to vector<384x128xbf16>
    %cst_41 = arith.constant dense<0.000000e+00> : vector<192x128xf32>
    %78 = tpu.matmul %75, %77, %cst_41 {dimension_numbers = #tpu.dot_dimension_numbers<[1], [0], [0], [1], [0, 0, 1, 1], [], []>} : vector<192x384xbf16>, vector<384x128xbf16>, vector<192x128xf32> -> vector<192x128xf32>
    %79 = arith.addf %74, %78 : vector<192x128xf32>
    %80 = arith.truncf %79 : vector<192x128xf32> to vector<192x128xbf16>
    %c0_42 = arith.constant 0 : index
    %c192 = arith.constant 192 : index
    %c0_43 = arith.constant 0 : index
    %81 = vector.load %arg6[%c0_42, %c192, %c0_43] : memref<1x384x128xbf16, #tpu.memory_space<vmem>>, vector<1x192x128xbf16>
    %82 = vector.shape_cast %81 : vector<1x192x128xbf16> to vector<192x128xbf16>
    %83 = vector.shape_cast %80 : vector<192x128xbf16> to vector<1x192x128xbf16>
    tpu.vector_store %arg6[%c0_42, %c192, %c0_43], %83 {strides = array<i32>} : memref<1x384x128xbf16, #tpu.memory_space<vmem>>, vector<1x192x128xbf16>,
    %c192_44 = arith.constant 192 : index
    %c0_45 = arith.constant 0 : index
    %84 = vector.load %arg3[%c192_44, %c0_45] : memref<440x1xf32, #tpu.memory_space<vmem>>, vector<192x1xf32>
    %85 = vector.broadcast %84 : vector<192x1xf32> to vector<192x128xf32>
    %86 = arith.mulf %79, %85 : vector<192x128xf32>
    %cst_46 = arith.constant dense<0.000000e+00> : vector<128xf32>
    %87 = vector.multi_reduction <add>, %86, %cst_46 [0] : vector<192x128xf32> to vector<128xf32>
    %88 = vector.shape_cast %87 : vector<128xf32> to vector<1x128xf32>
    %89 = arith.addf %59, %88 : vector<1x128xf32>
    %90 = arith.mulf %86, %79 : vector<192x128xf32>
    %cst_47 = arith.constant dense<0.000000e+00> : vector<128xf32>
    %91 = vector.multi_reduction <add>, %90, %cst_47 [0] : vector<192x128xf32> to vector<128xf32>
    %92 = vector.shape_cast %91 : vector<128xf32> to vector<1x128xf32>
    %93 = arith.addf %63, %92 : vector<1x128xf32>
    %c0_48 = arith.constant 0 : index
    %c0_49 = arith.constant 0 : index
    %c0_50 = arith.constant 0 : index
    %94 = vector.load %arg7[%c0_48, %c0_49, %c0_50] : memref<1x2x128xf32, #tpu.memory_space<vmem>>, vector<1x1x128xf32>
    %95 = vector.shape_cast %94 : vector<1x1x128xf32> to vector<1x128xf32>
    %96 = vector.shape_cast %89 : vector<1x128xf32> to vector<1x1x128xf32>
    tpu.vector_store %arg7[%c0_48, %c0_49, %c0_50], %96 {strides = array<i32>} : memref<1x2x128xf32, #tpu.memory_space<vmem>>, vector<1x1x128xf32>,
    %c0_51 = arith.constant 0 : index
    %c1_52 = arith.constant 1 : index
    %c0_53 = arith.constant 0 : index
    %97 = vector.load %arg7[%c0_51, %c1_52, %c0_53] : memref<1x2x128xf32, #tpu.memory_space<vmem>>, vector<1x1x128xf32>
    %98 = vector.shape_cast %97 : vector<1x1x128xf32> to vector<1x128xf32>
    %99 = vector.shape_cast %93 : vector<1x128xf32> to vector<1x1x128xf32>
    tpu.vector_store %arg7[%c0_51, %c1_52, %c0_53], %99 {strides = array<i32>} : memref<1x2x128xf32, #tpu.memory_space<vmem>>, vector<1x1x128xf32>,
    return
  }
  func.func @transform_0(%arg0: i32) -> (i32, i32, i32) {
    %c0_i32 = arith.constant 0 : i32
    %c0_i32_0 = arith.constant 0 : i32
    %c0_i32_1 = arith.constant 0 : i32
    return %arg0, %c0_i32, %c0_i32_0 : i32, i32, i32
  }
  func.func @transform_1(%arg0: i32) -> (i32, i32, i32) {
    %c0_i32 = arith.constant 0 : i32
    %c0_i32_0 = arith.constant 0 : i32
    %c0_i32_1 = arith.constant 0 : i32
    %c0_i32_2 = arith.constant 0 : i32
    return %c0_i32, %c0_i32_0, %c0_i32_1 : i32, i32, i32
  }
  func.func @transform_2(%arg0: i32) -> (i32, i32) {
    %c0_i32 = arith.constant 0 : i32
    %c0_i32_0 = arith.constant 0 : i32
    %c0_i32_1 = arith.constant 0 : i32
    return %c0_i32, %c0_i32_0 : i32, i32
  }
  func.func @transform_3(%arg0: i32) -> (i32, i32) {
    %c0_i32 = arith.constant 0 : i32
    %c0_i32_0 = arith.constant 0 : i32
    %c0_i32_1 = arith.constant 0 : i32
    return %c0_i32, %c0_i32_0 : i32, i32
  }
  func.func @transform_4(%arg0: i32) -> (i32, i32) {
    %c0_i32 = arith.constant 0 : i32
    %c0_i32_0 = arith.constant 0 : i32
    %c0_i32_1 = arith.constant 0 : i32
    return %c0_i32, %c0_i32_0 : i32, i32
  }
  func.func @transform_5(%arg0: i32) -> (i32, i32, i32) {
    %c0_i32 = arith.constant 0 : i32
    %c0_i32_0 = arith.constant 0 : i32
    %c0_i32_1 = arith.constant 0 : i32
    return %arg0, %c0_i32, %c0_i32_0 : i32, i32, i32
  }
  func.func @transform_6(%arg0: i32) -> (i32, i32, i32) {
    %c0_i32 = arith.constant 0 : i32
    %c0_i32_0 = arith.constant 0 : i32
    %c0_i32_1 = arith.constant 0 : i32
    return %arg0, %c0_i32, %c0_i32_0 : i32, i32, i32
  }
}

</mosaic_0001>

<bundles_post_ra>
// kernel: double_conv.5
= control target key start
LH: loop header
LB: loop body
LE: loop exit
PB: predicated region body
PF: predicated region fallthrough
CT: control target
= control target key end

     0   :  { %8 = vsyncpa [#allocation3], 0  ;;  %s1282_s0 = inlined_call_operand.hbm [shape: bf16[768,128], index: 0, kind: input, shape index: {}]   ;;  %s1283_s1 = inlined_call_operand.hbm [shape: f32[1,128], index: 1, kind: input, shape index: {}]   ;;  %s1284_s2 = inlined_call_operand.hbm [shape: f32[1,128], index: 2, kind: input, shape index: {}]   ;;  %s1285_s3 = inlined_call_operand.hbm [shape: f32[768,128], index: 3, kind: output, shape index: {}]  }
   0x1   :  { %9 = vsyncpa [#allocation6], 0 }
   0x2   :  { %10 = vsyncpa [#allocation4], 0  ;;  %s1003_s12 = smov [#allocation5]   ;;  %s1004_s14 = smov [#allocation2]  }
   0x3   :  { %s29_s13 = sshll.u32 %s1003_s12, 4  ;;  %s16_s15 = sshll.u32 %s1004_s14, 4  ;;  %s30_s13 = int_to_ptr.vmem [resolvable:$true] %s29_s13  ;;  %s1031_s15 = int_to_ptr.vmem [resolvable:$true] %s16_s15 }
   0x4   :  { %s909_s18 = scalar_lea.hbm %s1283_s1, 16 }
   0x5   :  { %p910_p0 = scmp.ne.s32.totalorder %s1283_s1, %s909_s18  ;;  %p913_p1 = scmp.lt.u32.totalorder %s909_s18, %s1283_s1 }
   0x7   :  { %p915_p2 = pnand %p913_p1, %p910_p0 }
   0x9   :  { %918 = shalt.err (!%p915_p2)
}
   0xa   :  { %s919_s23 = scalar_lea.vmem %s30_s13, 16  ;;  %s923_s24 = scalar_lea.vmem %s30_s13, 32 }
   0xb   :  { %p920_p3 = scmp.ne.s32.totalorder %s30_s13, %s919_s23  ;;  %p924_p4 = scmp.lt.s32.totalorder %s30_s13, %s30_s13 }
   0xc   :  { %p925_p5 = scmp.lt.s32.totalorder %s923_s24, %s919_s23 }
   0xe   :  { %p926_p6 = por %p925_p5, %p924_p4 }
  0x10   :  { %p927_p7 = pnand %p926_p6, %p920_p3 }
  0x12   :  { %930 = shalt.err (!%p927_p7)
}
  0x13   :  { %32 = dma.hbm_to_vmem [thread:$0]  %s1283_s1, 16, %s30_s13, [#allocation6]  }
  0x14   :  { %s931_s29 = scalar_lea.hbm %s1282_s0, 6144 }
  0x15   :  { %p932_p8 = scmp.ne.s32.totalorder %s1282_s0, %s931_s29  ;;  %p935_p9 = scmp.lt.u32.totalorder %s931_s29, %s1282_s0 }
  0x17   :  { %p937_p10 = pnand %p935_p9, %p932_p8 }
  0x19   :  { %940 = shalt.err (!%p937_p10)
}
  0x1a   :  { %s941_s7 = scalar_lea.vmem %s1031_s15, 6144  ;;  %p946_p12 = scmp.lt.s32.totalorder %s1031_s15, %s1031_s15 }
  0x1b   :  { %p942_p11 = scmp.ne.s32.totalorder %s1031_s15, %s941_s7  ;;  %p947_p13 = scmp.lt.s32.totalorder %s941_s7, %s941_s7 }
  0x1d   :  { %p948_p0 = por %p947_p13, %p946_p12 }
  0x1f   :  { %p949_p1 = pnand %p948_p0, %p942_p11 }
  0x21   :  { %952 = shalt.err (!%p949_p1)
}
  0x22   :  { %s1005_s1 = smov 64   ;;  %s1006_s8 = smov 4  }
  0x23   :  { %22 = dma.hbm_to_vmem [thread:$0]  %s1282_s0, 6144, %s1031_s15, [#allocation3], %s1005_s1, %s1005_s1, %s1006_s8  }
  0x24   :  { %s1007_s11 = smov [#allocation7]   ;;  %s953_s16 = scalar_lea.hbm %s1284_s2, 16 }
  0x25   :  { %s39_s12 = sshll.u32 %s1007_s11, 4  ;;  %p954_p2 = scmp.ne.s32.totalorder %s1284_s2, %s953_s16  ;;  %s40_s12 = int_to_ptr.vmem [resolvable:$true] %s39_s12 }
  0x26   :  { %p957_p3 = scmp.lt.u32.totalorder %s953_s16, %s1284_s2 }
  0x28   :  { %p959_p4 = pnand %p957_p3, %p954_p2 }
  0x2a   :  { %962 = shalt.err (!%p959_p4)
}
  0x2b   :  { %s963_s21 = scalar_lea.vmem %s40_s12, 16  ;;  %s967_s0 = scalar_lea.vmem %s40_s12, 32 }
  0x2c   :  { %p964_p5 = scmp.ne.s32.totalorder %s40_s12, %s963_s21  ;;  %p968_p6 = scmp.lt.s32.totalorder %s40_s12, %s40_s12 }
  0x2d   :  { %p969_p7 = scmp.lt.s32.totalorder %s967_s0, %s963_s21 }
  0x2f   :  { %p970_p8 = por %p969_p7, %p968_p6 }
  0x31   :  { %p971_p9 = pnand %p970_p8, %p964_p5 }
  0x33   :  { %974 = shalt.err (!%p971_p9)
}
  0x34   :  { %42 = dma.hbm_to_vmem [thread:$0]  %s1284_s2, 16, %s40_s12, [#allocation6]  }
  0x35   :  { %997 = dma.done.wait [#allocation3], 6144  }
  0x36   :  { %998 = vsyncadd [#allocation3], 4294961152 }
  0x37   :  { %999 = dma.done.wait [#allocation6], 32  }
  0x38   :  { %1000 = vsyncadd [#allocation6], 4294967264  ;;  %v663_v0 = vld [vmem:[#allocation2] sm:$0xff]   ;;  %v854_v4 = vld [vmem:[#allocation2 + $0x8] sm:$0xff]   ;;  %s1008_s2 = smov [#allocation8]  }
  0x39   :  { %v1074_v1 = vld [vmem:[#allocation5] ss:$0 sm:$0xff]  ;;  %v664_v2 = vunpack.c.l.bf16 %v663_v0  ;;  %v665_v3 = vunpack.c.h.bf16 %v663_v0  ;;  %v855_v5 = vld [vmem:[#allocation2 + $0x10] sm:$0xff]   ;;  %v856_v6 = vld [vmem:[#allocation2 + $0x18] sm:$0xff]   ;;  %v668_v8 = vunpack.c.l.bf16 %v854_v4  ;;  %v669_v9 = vunpack.c.h.bf16 %v854_v4  ;;  %s647_s23 = sshll.u32 %s1008_s2, 4  ;;  %s648_s23 = int_to_ptr.vmem [resolvable:$true] %s647_s23 }
  0x3a   :  { %v1076_v7 = vld [vmem:[#allocation7] ss:$0 sm:$0xff]  ;;  %v672_v10 = vunpack.c.l.bf16 %v855_v5  ;;  %v673_v11 = vunpack.c.h.bf16 %v855_v5  ;;  %v676_v14 = vunpack.c.l.bf16 %v856_v6  ;;  %v677_v15 = vunpack.c.h.bf16 %v856_v6  ;;  %v858_v33 = vld [vmem:[#allocation2 + $0x28] sm:$0xff]   ;;  %v859_v34 = vld [vmem:[#allocation2 + $0x30] sm:$0xff]   ;;  %s975_s24 = scalar_lea.vmem %s648_s23, 12288  ;;  %p980_p11 = scmp.lt.s32.totalorder %s648_s23, %s648_s23 }
  0x3b   :  { %v251_v12 = vmul.f32 %v664_v2, %v1074_v1  ;;  %v252_v13 = vmul.f32 %v665_v3, %v1074_v1  ;;  %v253_v16 = vmul.f32 %v668_v8, %v1074_v1  ;;  %v254_v17 = vmul.f32 %v669_v9, %v1074_v1  ;;  %v857_v28 = vld [vmem:[#allocation2 + $0x20] sm:$0xff]   ;;  %v860_v39 = vld [vmem:[#allocation2 + $0x38] sm:$0xff]   ;;  %v862_v6 = vld [vmem:[#allocation2 + $0x48] sm:$0xff]   ;;  %p976_p10 = scmp.ne.s32.totalorder %s648_s23, %s975_s24  ;;  %p981_p12 = scmp.lt.s32.totalorder %s975_s24, %s975_s24 }
  0x3c   :  { %v255_v18 = vmul.f32 %v672_v10, %v1074_v1  ;;  %v256_v19 = vmul.f32 %v673_v11, %v1074_v1  ;;  %v257_v22 = vmul.f32 %v676_v14, %v1074_v1  ;;  %v258_v23 = vmul.f32 %v677_v15, %v1074_v1  ;;  %v861_v0 = vld [vmem:[#allocation2 + $0x40] sm:$0xff]   ;;  %v863_v8 = vld [vmem:[#allocation2 + $0x50] sm:$0xff]  }
  0x3d   :  { %v354_v20 = vadd.f32 %v1076_v7, %v251_v12  ;;  %v355_v21 = vadd.f32 %v1076_v7, %v252_v13  ;;  %v356_v24 = vadd.f32 %v1076_v7, %v253_v16  ;;  %v357_v25 = vadd.f32 %v1076_v7, %v254_v17  ;;  %v864_v13 = vld [vmem:[#allocation2 + $0x58] sm:$0xff]   ;;  %p982_p13 = por %p981_p12, %p980_p11 }
  0x3e   :  { %v358_v26 = vadd.f32 %v1076_v7, %v255_v18  ;;  %v359_v27 = vadd.f32 %v1076_v7, %v256_v19  ;;  %v360_v31 = vadd.f32 %v1076_v7, %v257_v22  ;;  %v361_v32 = vadd.f32 %v1076_v7, %v258_v23 }
  0x3f   :  { %v450_v29 = vmax.f32 %v354_v20, 0.0  ;;  %v451_v30 = vmax.f32 %v355_v21, 0.0  ;;  %v452_v35 = vmax.f32 %v356_v24, 0.0  ;;  %v453_v36 = vmax.f32 %v357_v25, 0.0  ;;  %p983_p0 = pnand %p982_p13, %p976_p10 }
  0x40   :  { %v454_v37 = vmax.f32 %v358_v26, 0.0  ;;  %v455_v38 = vmax.f32 %v359_v27, 0.0  ;;  %v456_v40 = vmax.f32 %v360_v31, 0.0  ;;  %v457_v41 = vmax.f32 %v361_v32, 0.0 }
  0x41   :  { %546 = vst [vmem:[#allocation8] sm:$0xff] %v450_v29  ;;  %547 = vst [vmem:[#allocation8 + $0x8] sm:$0xff] %v451_v30  ;;  %v680_v42 = vunpack.c.l.bf16 %v857_v28  ;;  %v681_v43 = vunpack.c.h.bf16 %v857_v28  ;;  %v684_v44 = vunpack.c.l.bf16 %v858_v33  ;;  %v685_v45 = vunpack.c.h.bf16 %v858_v33 }
  0x42   :  { %548 = vst [vmem:[#allocation8 + $0x10] sm:$0xff] %v452_v35  ;;  %549 = vst [vmem:[#allocation8 + $0x18] sm:$0xff] %v453_v36  ;;  %v688_v46 = vunpack.c.l.bf16 %v859_v34  ;;  %v689_v47 = vunpack.c.h.bf16 %v859_v34  ;;  %v692_v50 = vunpack.c.l.bf16 %v860_v39  ;;  %v693_v51 = vunpack.c.h.bf16 %v860_v39 }
  0x43   :  { %550 = vst [vmem:[#allocation8 + $0x20] sm:$0xff] %v454_v37  ;;  %551 = vst [vmem:[#allocation8 + $0x28] sm:$0xff] %v455_v38  ;;  %v259_v48 = vmul.f32 %v680_v42, %v1074_v1  ;;  %v260_v49 = vmul.f32 %v681_v43, %v1074_v1  ;;  %v261_v52 = vmul.f32 %v684_v44, %v1074_v1  ;;  %v696_v16 = vunpack.c.l.bf16 %v861_v0  ;;  %v865_v38 = vld [vmem:[#allocation2 + $0x60] sm:$0xff]   ;;  %v866_v43 = vld [vmem:[#allocation2 + $0x68] sm:$0xff]  }
  0x44   :  { %552 = vst [vmem:[#allocation8 + $0x30] sm:$0xff] %v456_v40  ;;  %553 = vst [vmem:[#allocation8 + $0x38] sm:$0xff] %v457_v41  ;;  %v262_v53 = vmul.f32 %v685_v45, %v1074_v1  ;;  %v263_v54 = vmul.f32 %v688_v46, %v1074_v1  ;;  %v264_v55 = vmul.f32 %v689_v47, %v1074_v1  ;;  %v697_v17 = vunpack.c.h.bf16 %v861_v0  ;;  %v867_v44 = vld [vmem:[#allocation2 + $0x70] sm:$0xff]  }
  0x45   :  { %v362_v56 = vadd.f32 %v1076_v7, %v259_v48  ;;  %v363_v57 = vadd.f32 %v1076_v7, %v260_v49  ;;  %v265_v58 = vmul.f32 %v692_v50, %v1074_v1  ;;  %v266_v59 = vmul.f32 %v693_v51, %v1074_v1  ;;  %v868_v49 = vld [vmem:[#allocation2 + $0x78] sm:$0xff]  }
  0x46   :  { %v364_v60 = vadd.f32 %v1076_v7, %v261_v52  ;;  %v365_v61 = vadd.f32 %v1076_v7, %v262_v53  ;;  %v366_v62 = vadd.f32 %v1076_v7, %v263_v54  ;;  %v367_v63 = vadd.f32 %v1076_v7, %v264_v55 }
  0x47   :  { %v458_v2 = vmax.f32 %v362_v56, 0.0  ;;  %v459_v3 = vmax.f32 %v363_v57, 0.0  ;;  %v368_v4 = vadd.f32 %v1076_v7, %v265_v58  ;;  %v369_v5 = vadd.f32 %v1076_v7, %v266_v59 }
  0x48   :  { %v460_v9 = vmax.f32 %v364_v60, 0.0  ;;  %v461_v10 = vmax.f32 %v365_v61, 0.0  ;;  %v462_v11 = vmax.f32 %v366_v62, 0.0  ;;  %v463_v12 = vmax.f32 %v367_v63, 0.0 }
  0x49   :  { %554 = vst [vmem:[#allocation8 + $0x40] sm:$0xff] %v458_v2  ;;  %555 = vst [vmem:[#allocation8 + $0x48] sm:$0xff] %v459_v3  ;;  %v464_v14 = vmax.f32 %v368_v4, 0.0  ;;  %v465_v15 = vmax.f32 %v369_v5, 0.0  ;;  %v700_v18 = vunpack.c.l.bf16 %v862_v6  ;;  %v701_v19 = vunpack.c.h.bf16 %v862_v6 }
  0x4a   :  { %556 = vst [vmem:[#allocation8 + $0x50] sm:$0xff] %v460_v9  ;;  %557 = vst [vmem:[#allocation8 + $0x58] sm:$0xff] %v461_v10  ;;  %v704_v20 = vunpack.c.l.bf16 %v863_v8  ;;  %v705_v21 = vunpack.c.h.bf16 %v863_v8  ;;  %v267_v22 = vmul.f32 %v696_v16, %v1074_v1  ;;  %v268_v23 = vmul.f32 %v697_v17, %v1074_v1  ;;  %v870_v17 = vld [vmem:[#allocation2 + $0x88] sm:$0xff]  }
  0x4b   :  { %558 = vst [vmem:[#allocation8 + $0x60] sm:$0xff] %v462_v11  ;;  %559 = vst [vmem:[#allocation8 + $0x68] sm:$0xff] %v463_v12  ;;  %v708_v24 = vunpack.c.l.bf16 %v864_v13  ;;  %v709_v25 = vunpack.c.h.bf16 %v864_v13  ;;  %v269_v26 = vmul.f32 %v700_v18, %v1074_v1  ;;  %v270_v27 = vmul.f32 %v701_v19, %v1074_v1  ;;  %v869_v12 = vld [vmem:[#allocation2 + $0x80] sm:$0xff]   ;;  %v871_v18 = vld [vmem:[#allocation2 + $0x90] sm:$0xff]  }
  0x4c   :  { %560 = vst [vmem:[#allocation8 + $0x70] sm:$0xff] %v464_v14  ;;  %561 = vst [vmem:[#allocation8 + $0x78] sm:$0xff] %v465_v15  ;;  %v271_v28 = vmul.f32 %v704_v20, %v1074_v1  ;;  %v272_v29 = vmul.f32 %v705_v21, %v1074_v1  ;;  %v370_v30 = vadd.f32 %v1076_v7, %v267_v22  ;;  %v712_v52 = vunpack.c.l.bf16 %v865_v38 }
  0x4d   :  { %v371_v31 = vadd.f32 %v1076_v7, %v268_v23  ;;  %v273_v32 = vmul.f32 %v708_v24, %v1074_v1  ;;  %v274_v33 = vmul.f32 %v709_v25, %v1074_v1  ;;  %v372_v34 = vadd.f32 %v1076_v7, %v269_v26  ;;  %v872_v23 = vld [vmem:[#allocation2 + $0x98] sm:$0xff]  }
  0x4e   :  { %v373_v35 = vadd.f32 %v1076_v7, %v270_v27  ;;  %v374_v36 = vadd.f32 %v1076_v7, %v271_v28  ;;  %v375_v37 = vadd.f32 %v1076_v7, %v272_v29  ;;  %v466_v39 = vmax.f32 %v370_v30, 0.0 }
  0x4f   :  { %v467_v40 = vmax.f32 %v371_v31, 0.0  ;;  %v376_v41 = vadd.f32 %v1076_v7, %v273_v32  ;;  %v377_v42 = vadd.f32 %v1076_v7, %v274_v33  ;;  %v468_v45 = vmax.f32 %v372_v34, 0.0 }
  0x50   :  { %v469_v46 = vmax.f32 %v373_v35, 0.0  ;;  %v470_v47 = vmax.f32 %v374_v36, 0.0  ;;  %v471_v48 = vmax.f32 %v375_v37, 0.0  ;;  %562 = vst [vmem:[#allocation8 + $0x80] sm:$0xff] %v466_v39  ;;  %v713_v53 = vunpack.c.h.bf16 %v865_v38 }
  0x51   :  { %563 = vst [vmem:[#allocation8 + $0x88] sm:$0xff] %v467_v40  ;;  %v472_v50 = vmax.f32 %v376_v41, 0.0  ;;  %v473_v51 = vmax.f32 %v377_v42, 0.0  ;;  %564 = vst [vmem:[#allocation8 + $0x90] sm:$0xff] %v468_v45  ;;  %v716_v54 = vunpack.c.l.bf16 %v866_v43  ;;  %v717_v55 = vunpack.c.h.bf16 %v866_v43 }
  0x52   :  { %565 = vst [vmem:[#allocation8 + $0x98] sm:$0xff] %v469_v46  ;;  %566 = vst [vmem:[#allocation8 + $0xa0] sm:$0xff] %v470_v47  ;;  %v720_v56 = vunpack.c.l.bf16 %v867_v44  ;;  %v721_v57 = vunpack.c.h.bf16 %v867_v44  ;;  %v275_v58 = vmul.f32 %v712_v52, %v1074_v1  ;;  %v276_v59 = vmul.f32 %v713_v53, %v1074_v1  ;;  %v874_v53 = vld [vmem:[#allocation2 + $0xa8] sm:$0xff]  }
  0x53   :  { %567 = vst [vmem:[#allocation8 + $0xa8] sm:$0xff] %v471_v48  ;;  %568 = vst [vmem:[#allocation8 + $0xb0] sm:$0xff] %v472_v50  ;;  %v724_v60 = vunpack.c.l.bf16 %v868_v49  ;;  %v725_v61 = vunpack.c.h.bf16 %v868_v49  ;;  %v277_v62 = vmul.f32 %v716_v54, %v1074_v1  ;;  %v278_v63 = vmul.f32 %v717_v55, %v1074_v1  ;;  %v873_v48 = vld [vmem:[#allocation2 + $0xa0] sm:$0xff]   ;;  %v875_v54 = vld [vmem:[#allocation2 + $0xb0] sm:$0xff]  }
  0x54   :  { %569 = vst [vmem:[#allocation8 + $0xb8] sm:$0xff] %v473_v51  ;;  %v279_v0 = vmul.f32 %v720_v56, %v1074_v1  ;;  %v280_v2 = vmul.f32 %v721_v57, %v1074_v1  ;;  %v378_v3 = vadd.f32 %v1076_v7, %v275_v58  ;;  %v379_v4 = vadd.f32 %v1076_v7, %v276_v59  ;;  %v876_v59 = vld [vmem:[#allocation2 + $0xb8] sm:$0xff]  }
  0x55   :  { %v281_v5 = vmul.f32 %v724_v60, %v1074_v1  ;;  %v282_v6 = vmul.f32 %v725_v61, %v1074_v1  ;;  %v380_v8 = vadd.f32 %v1076_v7, %v277_v62  ;;  %v381_v9 = vadd.f32 %v1076_v7, %v278_v63 }
  0x56   :  { %v382_v10 = vadd.f32 %v1076_v7, %v279_v0  ;;  %v383_v11 = vadd.f32 %v1076_v7, %v280_v2  ;;  %v474_v13 = vmax.f32 %v378_v3, 0.0  ;;  %v475_v14 = vmax.f32 %v379_v4, 0.0 }
  0x57   :  { %v384_v15 = vadd.f32 %v1076_v7, %v281_v5  ;;  %v385_v16 = vadd.f32 %v1076_v7, %v282_v6  ;;  %v476_v19 = vmax.f32 %v380_v8, 0.0  ;;  %v477_v20 = vmax.f32 %v381_v9, 0.0 }
  0x58   :  { %v478_v21 = vmax.f32 %v382_v10, 0.0  ;;  %v479_v22 = vmax.f32 %v383_v11, 0.0  ;;  %570 = vst [vmem:[#allocation8 + $0xc0] sm:$0xff] %v474_v13  ;;  %571 = vst [vmem:[#allocation8 + $0xc8] sm:$0xff] %v475_v14  ;;  %v728_v26 = vunpack.c.l.bf16 %v869_v12  ;;  %v729_v27 = vunpack.c.h.bf16 %v869_v12 }
  0x59   :  { %v480_v24 = vmax.f32 %v384_v15, 0.0  ;;  %v481_v25 = vmax.f32 %v385_v16, 0.0  ;;  %572 = vst [vmem:[#allocation8 + $0xd0] sm:$0xff] %v476_v19  ;;  %573 = vst [vmem:[#allocation8 + $0xd8] sm:$0xff] %v477_v20  ;;  %v732_v28 = vunpack.c.l.bf16 %v870_v17  ;;  %v733_v29 = vunpack.c.h.bf16 %v870_v17 }
  0x5a   :  { %574 = vst [vmem:[#allocation8 + $0xe0] sm:$0xff] %v478_v21  ;;  %575 = vst [vmem:[#allocation8 + $0xe8] sm:$0xff] %v479_v22  ;;  %v736_v30 = vunpack.c.l.bf16 %v871_v18  ;;  %v737_v31 = vunpack.c.h.bf16 %v871_v18  ;;  %v283_v32 = vmul.f32 %v728_v26, %v1074_v1  ;;  %v284_v33 = vmul.f32 %v729_v27, %v1074_v1  ;;  %v877_v22 = vld [vmem:[#allocation2 + $0xc0] sm:$0xff]   ;;  %v878_v27 = vld [vmem:[#allocation2 + $0xc8] sm:$0xff]  }
  0x5b   :  { %576 = vst [vmem:[#allocation8 + $0xf0] sm:$0xff] %v480_v24  ;;  %577 = vst [vmem:[#allocation8 + $0xf8] sm:$0xff] %v481_v25  ;;  %v740_v34 = vunpack.c.l.bf16 %v872_v23  ;;  %v741_v35 = vunpack.c.h.bf16 %v872_v23  ;;  %v285_v36 = vmul.f32 %v732_v28, %v1074_v1  ;;  %v286_v37 = vmul.f32 %v733_v29, %v1074_v1  ;;  %v879_v28 = vld [vmem:[#allocation2 + $0xd0] sm:$0xff]  }
  0x5c   :  { %v287_v38 = vmul.f32 %v736_v30, %v1074_v1  ;;  %v288_v39 = vmul.f32 %v737_v31, %v1074_v1  ;;  %v386_v40 = vadd.f32 %v1076_v7, %v283_v32  ;;  %v387_v41 = vadd.f32 %v1076_v7, %v284_v33  ;;  %v880_v33 = vld [vmem:[#allocation2 + $0xd8] sm:$0xff]  }
  0x5d   :  { %v289_v42 = vmul.f32 %v740_v34, %v1074_v1  ;;  %v290_v43 = vmul.f32 %v741_v35, %v1074_v1  ;;  %v388_v44 = vadd.f32 %v1076_v7, %v285_v36  ;;  %v389_v45 = vadd.f32 %v1076_v7, %v286_v37 }
  0x5e   :  { %v390_v46 = vadd.f32 %v1076_v7, %v287_v38  ;;  %v391_v47 = vadd.f32 %v1076_v7, %v288_v39  ;;  %v482_v49 = vmax.f32 %v386_v40, 0.0  ;;  %v483_v50 = vmax.f32 %v387_v41, 0.0 }
  0x5f   :  { %v392_v51 = vadd.f32 %v1076_v7, %v289_v42  ;;  %v393_v52 = vadd.f32 %v1076_v7, %v290_v43  ;;  %v484_v55 = vmax.f32 %v388_v44, 0.0  ;;  %v485_v56 = vmax.f32 %v389_v45, 0.0 }
  0x60   :  { %v486_v57 = vmax.f32 %v390_v46, 0.0  ;;  %v487_v58 = vmax.f32 %v391_v47, 0.0  ;;  %578 = vst [vmem:[#allocation8 + $0x100] sm:$0xff] %v482_v49  ;;  %579 = vst [vmem:[#allocation8 + $0x108] sm:$0xff] %v483_v50  ;;  %v744_v62 = vunpack.c.l.bf16 %v873_v48  ;;  %v745_v63 = vunpack.c.h.bf16 %v873_v48 }
  0x61   :  { %v488_v60 = vmax.f32 %v392_v51, 0.0  ;;  %v489_v61 = vmax.f32 %v393_v52, 0.0  ;;  %580 = vst [vmem:[#allocation8 + $0x110] sm:$0xff] %v484_v55  ;;  %581 = vst [vmem:[#allocation8 + $0x118] sm:$0xff] %v485_v56  ;;  %v748_v0 = vunpack.c.l.bf16 %v874_v53  ;;  %v749_v2 = vunpack.c.h.bf16 %v874_v53 }
  0x62   :  { %582 = vst [vmem:[#allocation8 + $0x120] sm:$0xff] %v486_v57  ;;  %583 = vst [vmem:[#allocation8 + $0x128] sm:$0xff] %v487_v58  ;;  %v752_v3 = vunpack.c.l.bf16 %v875_v54  ;;  %v753_v4 = vunpack.c.h.bf16 %v875_v54  ;;  %v291_v5 = vmul.f32 %v744_v62, %v1074_v1  ;;  %v292_v6 = vmul.f32 %v745_v63, %v1074_v1  ;;  %v881_v58 = vld [vmem:[#allocation2 + $0xe0] sm:$0xff]   ;;  %v882_v63 = vld [vmem:[#allocation2 + $0xe8] sm:$0xff]  }
  0x63   :  { %584 = vst [vmem:[#allocation8 + $0x130] sm:$0xff] %v488_v60  ;;  %585 = vst [vmem:[#allocation8 + $0x138] sm:$0xff] %v489_v61  ;;  %v756_v8 = vunpack.c.l.bf16 %v876_v59  ;;  %v757_v9 = vunpack.c.h.bf16 %v876_v59  ;;  %v293_v10 = vmul.f32 %v748_v0, %v1074_v1  ;;  %v294_v11 = vmul.f32 %v749_v2, %v1074_v1  ;;  %v883_v0 = vld [vmem:[#allocation2 + $0xf0] sm:$0xff]  }
  0x64   :  { %v295_v12 = vmul.f32 %v752_v3, %v1074_v1  ;;  %v296_v13 = vmul.f32 %v753_v4, %v1074_v1  ;;  %v394_v14 = vadd.f32 %v1076_v7, %v291_v5  ;;  %v395_v15 = vadd.f32 %v1076_v7, %v292_v6  ;;  %v884_v6 = vld [vmem:[#allocation2 + $0xf8] sm:$0xff]  }
  0x65   :  { %v297_v16 = vmul.f32 %v756_v8, %v1074_v1  ;;  %v298_v17 = vmul.f32 %v757_v9, %v1074_v1  ;;  %v396_v18 = vadd.f32 %v1076_v7, %v293_v10  ;;  %v397_v19 = vadd.f32 %v1076_v7, %v294_v11 }
  0x66   :  { %v398_v20 = vadd.f32 %v1076_v7, %v295_v12  ;;  %v399_v21 = vadd.f32 %v1076_v7, %v296_v13  ;;  %v490_v23 = vmax.f32 %v394_v14, 0.0  ;;  %v491_v24 = vmax.f32 %v395_v15, 0.0 }
  0x67   :  { %v400_v25 = vadd.f32 %v1076_v7, %v297_v16  ;;  %v401_v26 = vadd.f32 %v1076_v7, %v298_v17  ;;  %v492_v29 = vmax.f32 %v396_v18, 0.0  ;;  %v493_v30 = vmax.f32 %v397_v19, 0.0 }
  0x68   :  { %v494_v31 = vmax.f32 %v398_v20, 0.0  ;;  %v495_v32 = vmax.f32 %v399_v21, 0.0  ;;  %586 = vst [vmem:[#allocation8 + $0x140] sm:$0xff] %v490_v23  ;;  %587 = vst [vmem:[#allocation8 + $0x148] sm:$0xff] %v491_v24  ;;  %v760_v36 = vunpack.c.l.bf16 %v877_v22  ;;  %v761_v37 = vunpack.c.h.bf16 %v877_v22 }
  0x69   :  { %v496_v34 = vmax.f32 %v400_v25, 0.0  ;;  %v497_v35 = vmax.f32 %v401_v26, 0.0  ;;  %588 = vst [vmem:[#allocation8 + $0x150] sm:$0xff] %v492_v29  ;;  %589 = vst [vmem:[#allocation8 + $0x158] sm:$0xff] %v493_v30  ;;  %v764_v38 = vunpack.c.l.bf16 %v878_v27  ;;  %v765_v39 = vunpack.c.h.bf16 %v878_v27 }
  0x6a   :  { %590 = vst [vmem:[#allocation8 + $0x160] sm:$0xff] %v494_v31  ;;  %591 = vst [vmem:[#allocation8 + $0x168] sm:$0xff] %v495_v32  ;;  %v768_v40 = vunpack.c.l.bf16 %v879_v28  ;;  %v769_v41 = vunpack.c.h.bf16 %v879_v28  ;;  %v299_v42 = vmul.f32 %v760_v36, %v1074_v1  ;;  %v300_v43 = vmul.f32 %v761_v37, %v1074_v1  ;;  %v885_v32 = vld [vmem:[#allocation2 + $0x100] sm:$0xff]   ;;  %v886_v37 = vld [vmem:[#allocation2 + $0x108] sm:$0xff]  }
  0x6b   :  { %592 = vst [vmem:[#allocation8 + $0x170] sm:$0xff] %v496_v34  ;;  %593 = vst [vmem:[#allocation8 + $0x178] sm:$0xff] %v497_v35  ;;  %v772_v44 = vunpack.c.l.bf16 %v880_v33  ;;  %v773_v45 = vunpack.c.h.bf16 %v880_v33  ;;  %v301_v46 = vmul.f32 %v764_v38, %v1074_v1  ;;  %v302_v47 = vmul.f32 %v765_v39, %v1074_v1  ;;  %v887_v38 = vld [vmem:[#allocation2 + $0x110] sm:$0xff]  }
  0x6c   :  { %v303_v48 = vmul.f32 %v768_v40, %v1074_v1  ;;  %v304_v49 = vmul.f32 %v769_v41, %v1074_v1  ;;  %v402_v50 = vadd.f32 %v1076_v7, %v299_v42  ;;  %v403_v51 = vadd.f32 %v1076_v7, %v300_v43  ;;  %v888_v43 = vld [vmem:[#allocation2 + $0x118] sm:$0xff]  }
  0x6d   :  { %v305_v52 = vmul.f32 %v772_v44, %v1074_v1  ;;  %v306_v53 = vmul.f32 %v773_v45, %v1074_v1  ;;  %v404_v54 = vadd.f32 %v1076_v7, %v301_v46  ;;  %v405_v55 = vadd.f32 %v1076_v7, %v302_v47 }
  0x6e   :  { %v406_v56 = vadd.f32 %v1076_v7, %v303_v48  ;;  %v407_v57 = vadd.f32 %v1076_v7, %v304_v49  ;;  %v498_v59 = vmax.f32 %v402_v50, 0.0  ;;  %v499_v60 = vmax.f32 %v403_v51, 0.0 }
  0x6f   :  { %v408_v61 = vadd.f32 %v1076_v7, %v305_v52  ;;  %v409_v62 = vadd.f32 %v1076_v7, %v306_v53  ;;  %v500_v2 = vmax.f32 %v404_v54, 0.0  ;;  %v501_v3 = vmax.f32 %v405_v55, 0.0 }
  0x70   :  { %v502_v4 = vmax.f32 %v406_v56, 0.0  ;;  %v503_v5 = vmax.f32 %v407_v57, 0.0  ;;  %594 = vst [vmem:[#allocation8 + $0x180] sm:$0xff] %v498_v59  ;;  %595 = vst [vmem:[#allocation8 + $0x188] sm:$0xff] %v499_v60  ;;  %v776_v10 = vunpack.c.l.bf16 %v881_v58  ;;  %v777_v11 = vunpack.c.h.bf16 %v881_v58 }
  0x71   :  { %v504_v8 = vmax.f32 %v408_v61, 0.0  ;;  %v505_v9 = vmax.f32 %v409_v62, 0.0  ;;  %596 = vst [vmem:[#allocation8 + $0x190] sm:$0xff] %v500_v2  ;;  %597 = vst [vmem:[#allocation8 + $0x198] sm:$0xff] %v501_v3  ;;  %v780_v12 = vunpack.c.l.bf16 %v882_v63  ;;  %v781_v13 = vunpack.c.h.bf16 %v882_v63 }
  0x72   :  { %598 = vst [vmem:[#allocation8 + $0x1a0] sm:$0xff] %v502_v4  ;;  %599 = vst [vmem:[#allocation8 + $0x1a8] sm:$0xff] %v503_v5  ;;  %v784_v14 = vunpack.c.l.bf16 %v883_v0  ;;  %v785_v15 = vunpack.c.h.bf16 %v883_v0  ;;  %v307_v16 = vmul.f32 %v776_v10, %v1074_v1  ;;  %v308_v17 = vmul.f32 %v777_v11, %v1074_v1  ;;  %v889_v5 = vld [vmem:[#allocation2 + $0x120] sm:$0xff]   ;;  %v890_v11 = vld [vmem:[#allocation2 + $0x128] sm:$0xff]  }
  0x73   :  { %600 = vst [vmem:[#allocation8 + $0x1b0] sm:$0xff] %v504_v8  ;;  %601 = vst [vmem:[#allocation8 + $0x1b8] sm:$0xff] %v505_v9  ;;  %v788_v18 = vunpack.c.l.bf16 %v884_v6  ;;  %v789_v19 = vunpack.c.h.bf16 %v884_v6  ;;  %v309_v20 = vmul.f32 %v780_v12, %v1074_v1  ;;  %v310_v21 = vmul.f32 %v781_v13, %v1074_v1  ;;  %v891_v12 = vld [vmem:[#allocation2 + $0x130] sm:$0xff]  }
  0x74   :  { %v311_v22 = vmul.f32 %v784_v14, %v1074_v1  ;;  %v312_v23 = vmul.f32 %v785_v15, %v1074_v1  ;;  %v410_v24 = vadd.f32 %v1076_v7, %v307_v16  ;;  %v411_v25 = vadd.f32 %v1076_v7, %v308_v17  ;;  %v892_v17 = vld [vmem:[#allocation2 + $0x138] sm:$0xff]  }
  0x75   :  { %v313_v26 = vmul.f32 %v788_v18, %v1074_v1  ;;  %v314_v27 = vmul.f32 %v789_v19, %v1074_v1  ;;  %v412_v28 = vadd.f32 %v1076_v7, %v309_v20  ;;  %v413_v29 = vadd.f32 %v1076_v7, %v310_v21 }
  0x76   :  { %v414_v30 = vadd.f32 %v1076_v7, %v311_v22  ;;  %v415_v31 = vadd.f32 %v1076_v7, %v312_v23  ;;  %v506_v33 = vmax.f32 %v410_v24, 0.0  ;;  %v507_v34 = vmax.f32 %v411_v25, 0.0 }
  0x77   :  { %v416_v35 = vadd.f32 %v1076_v7, %v313_v26  ;;  %v417_v36 = vadd.f32 %v1076_v7, %v314_v27  ;;  %v508_v39 = vmax.f32 %v412_v28, 0.0  ;;  %v509_v40 = vmax.f32 %v413_v29, 0.0 }
  0x78   :  { %v510_v41 = vmax.f32 %v414_v30, 0.0  ;;  %v511_v42 = vmax.f32 %v415_v31, 0.0  ;;  %602 = vst [vmem:[#allocation8 + $0x1c0] sm:$0xff] %v506_v33  ;;  %603 = vst [vmem:[#allocation8 + $0x1c8] sm:$0xff] %v507_v34  ;;  %v792_v46 = vunpack.c.l.bf16 %v885_v32  ;;  %v793_v47 = vunpack.c.h.bf16 %v885_v32 }
  0x79   :  { %v512_v44 = vmax.f32 %v416_v35, 0.0  ;;  %v513_v45 = vmax.f32 %v417_v36, 0.0  ;;  %604 = vst [vmem:[#allocation8 + $0x1d0] sm:$0xff] %v508_v39  ;;  %605 = vst [vmem:[#allocation8 + $0x1d8] sm:$0xff] %v509_v40  ;;  %v796_v48 = vunpack.c.l.bf16 %v886_v37  ;;  %v797_v49 = vunpack.c.h.bf16 %v886_v37 }
  0x7a   :  { %606 = vst [vmem:[#allocation8 + $0x1e0] sm:$0xff] %v510_v41  ;;  %607 = vst [vmem:[#allocation8 + $0x1e8] sm:$0xff] %v511_v42  ;;  %v800_v50 = vunpack.c.l.bf16 %v887_v38  ;;  %v801_v51 = vunpack.c.h.bf16 %v887_v38  ;;  %v315_v52 = vmul.f32 %v792_v46, %v1074_v1  ;;  %v316_v53 = vmul.f32 %v793_v47, %v1074_v1  ;;  %v893_v42 = vld [vmem:[#allocation2 + $0x140] sm:$0xff]   ;;  %v894_v47 = vld [vmem:[#allocation2 + $0x148] sm:$0xff]  }
  0x7b   :  { %608 = vst [vmem:[#allocation8 + $0x1f0] sm:$0xff] %v512_v44  ;;  %609 = vst [vmem:[#allocation8 + $0x1f8] sm:$0xff] %v513_v45  ;;  %v804_v54 = vunpack.c.l.bf16 %v888_v43  ;;  %v805_v55 = vunpack.c.h.bf16 %v888_v43  ;;  %v317_v56 = vmul.f32 %v796_v48, %v1074_v1  ;;  %v318_v57 = vmul.f32 %v797_v49, %v1074_v1  ;;  %v895_v48 = vld [vmem:[#allocation2 + $0x150] sm:$0xff]  }
  0x7c   :  { %v319_v58 = vmul.f32 %v800_v50, %v1074_v1  ;;  %v320_v59 = vmul.f32 %v801_v51, %v1074_v1  ;;  %v418_v60 = vadd.f32 %v1076_v7, %v315_v52  ;;  %v419_v61 = vadd.f32 %v1076_v7, %v316_v53  ;;  %v896_v53 = vld [vmem:[#allocation2 + $0x158] sm:$0xff]  }
  0x7d   :  { %v321_v62 = vmul.f32 %v804_v54, %v1074_v1  ;;  %v322_v63 = vmul.f32 %v805_v55, %v1074_v1  ;;  %v420_v0 = vadd.f32 %v1076_v7, %v317_v56  ;;  %v421_v2 = vadd.f32 %v1076_v7, %v318_v57 }
  0x7e   :  { %v422_v3 = vadd.f32 %v1076_v7, %v319_v58  ;;  %v423_v4 = vadd.f32 %v1076_v7, %v320_v59  ;;  %v514_v6 = vmax.f32 %v418_v60, 0.0  ;;  %v515_v8 = vmax.f32 %v419_v61, 0.0 }
  0x7f   :  { %v424_v9 = vadd.f32 %v1076_v7, %v321_v62  ;;  %v425_v10 = vadd.f32 %v1076_v7, %v322_v63  ;;  %v516_v13 = vmax.f32 %v420_v0, 0.0  ;;  %v517_v14 = vmax.f32 %v421_v2, 0.0 }
  0x80   :  { %v518_v15 = vmax.f32 %v422_v3, 0.0  ;;  %v519_v16 = vmax.f32 %v423_v4, 0.0  ;;  %610 = vst [vmem:[#allocation8 + $0x200] sm:$0xff] %v514_v6  ;;  %611 = vst [vmem:[#allocation8 + $0x208] sm:$0xff] %v515_v8  ;;  %v808_v20 = vunpack.c.l.bf16 %v889_v5  ;;  %v809_v21 = vunpack.c.h.bf16 %v889_v5 }
  0x81   :  { %v520_v18 = vmax.f32 %v424_v9, 0.0  ;;  %v521_v19 = vmax.f32 %v425_v10, 0.0  ;;  %612 = vst [vmem:[#allocation8 + $0x210] sm:$0xff] %v516_v13  ;;  %613 = vst [vmem:[#allocation8 + $0x218] sm:$0xff] %v517_v14  ;;  %v812_v22 = vunpack.c.l.bf16 %v890_v11  ;;  %v813_v23 = vunpack.c.h.bf16 %v890_v11 }
  0x82   :  { %614 = vst [vmem:[#allocation8 + $0x220] sm:$0xff] %v518_v15  ;;  %615 = vst [vmem:[#allocation8 + $0x228] sm:$0xff] %v519_v16  ;;  %v816_v24 = vunpack.c.l.bf16 %v891_v12  ;;  %v817_v25 = vunpack.c.h.bf16 %v891_v12  ;;  %v323_v26 = vmul.f32 %v808_v20, %v1074_v1  ;;  %v324_v27 = vmul.f32 %v809_v21, %v1074_v1  ;;  %v897_v16 = vld [vmem:[#allocation2 + $0x160] sm:$0xff]   ;;  %v898_v21 = vld [vmem:[#allocation2 + $0x168] sm:$0xff]  }
  0x83   :  { %616 = vst [vmem:[#allocation8 + $0x230] sm:$0xff] %v520_v18  ;;  %617 = vst [vmem:[#allocation8 + $0x238] sm:$0xff] %v521_v19  ;;  %v820_v28 = vunpack.c.l.bf16 %v892_v17  ;;  %v821_v29 = vunpack.c.h.bf16 %v892_v17  ;;  %v325_v30 = vmul.f32 %v812_v22, %v1074_v1  ;;  %v326_v31 = vmul.f32 %v813_v23, %v1074_v1  ;;  %v899_v22 = vld [vmem:[#allocation2 + $0x170] sm:$0xff]  }
  0x84   :  { %v327_v32 = vmul.f32 %v816_v24, %v1074_v1  ;;  %v328_v33 = vmul.f32 %v817_v25, %v1074_v1  ;;  %v426_v34 = vadd.f32 %v1076_v7, %v323_v26  ;;  %v427_v35 = vadd.f32 %v1076_v7, %v324_v27  ;;  %v900_v27 = vld [vmem:[#allocation2 + $0x178] sm:$0xff]  }
  0x85   :  { %v329_v36 = vmul.f32 %v820_v28, %v1074_v1  ;;  %v330_v37 = vmul.f32 %v821_v29, %v1074_v1  ;;  %v428_v38 = vadd.f32 %v1076_v7, %v325_v30  ;;  %v429_v39 = vadd.f32 %v1076_v7, %v326_v31 }
  0x86   :  { %v430_v40 = vadd.f32 %v1076_v7, %v327_v32  ;;  %v431_v41 = vadd.f32 %v1076_v7, %v328_v33  ;;  %v522_v43 = vmax.f32 %v426_v34, 0.0  ;;  %v523_v44 = vmax.f32 %v427_v35, 0.0 }
  0x87   :  { %v432_v45 = vadd.f32 %v1076_v7, %v329_v36  ;;  %v433_v46 = vadd.f32 %v1076_v7, %v330_v37  ;;  %v524_v49 = vmax.f32 %v428_v38, 0.0  ;;  %v525_v50 = vmax.f32 %v429_v39, 0.0 }
  0x88   :  { %v526_v51 = vmax.f32 %v430_v40, 0.0  ;;  %v527_v52 = vmax.f32 %v431_v41, 0.0  ;;  %618 = vst [vmem:[#allocation8 + $0x240] sm:$0xff] %v522_v43  ;;  %619 = vst [vmem:[#allocation8 + $0x248] sm:$0xff] %v523_v44  ;;  %v824_v56 = vunpack.c.l.bf16 %v893_v42  ;;  %v825_v57 = vunpack.c.h.bf16 %v893_v42 }
  0x89   :  { %v528_v54 = vmax.f32 %v432_v45, 0.0  ;;  %v529_v55 = vmax.f32 %v433_v46, 0.0  ;;  %620 = vst [vmem:[#allocation8 + $0x250] sm:$0xff] %v524_v49  ;;  %621 = vst [vmem:[#allocation8 + $0x258] sm:$0xff] %v525_v50  ;;  %v828_v58 = vunpack.c.l.bf16 %v894_v47  ;;  %v829_v59 = vunpack.c.h.bf16 %v894_v47 }
  0x8a   :  { %622 = vst [vmem:[#allocation8 + $0x260] sm:$0xff] %v526_v51  ;;  %623 = vst [vmem:[#allocation8 + $0x268] sm:$0xff] %v527_v52  ;;  %v832_v60 = vunpack.c.l.bf16 %v895_v48  ;;  %v833_v61 = vunpack.c.h.bf16 %v895_v48  ;;  %v331_v62 = vmul.f32 %v824_v56, %v1074_v1  ;;  %v332_v63 = vmul.f32 %v825_v57, %v1074_v1 }
  0x8b   :  { %624 = vst [vmem:[#allocation8 + $0x270] sm:$0xff] %v528_v54  ;;  %625 = vst [vmem:[#allocation8 + $0x278] sm:$0xff] %v529_v55  ;;  %v836_v0 = vunpack.c.l.bf16 %v896_v53  ;;  %v837_v2 = vunpack.c.h.bf16 %v896_v53  ;;  %v333_v3 = vmul.f32 %v828_v58, %v1074_v1  ;;  %v334_v4 = vmul.f32 %v829_v59, %v1074_v1 }
  0x8c   :  { %v335_v5 = vmul.f32 %v832_v60, %v1074_v1  ;;  %v336_v6 = vmul.f32 %v833_v61, %v1074_v1  ;;  %v434_v8 = vadd.f32 %v1076_v7, %v331_v62  ;;  %v435_v9 = vadd.f32 %v1076_v7, %v332_v63 }
  0x8d   :  { %v337_v10 = vmul.f32 %v836_v0, %v1074_v1  ;;  %v338_v11 = vmul.f32 %v837_v2, %v1074_v1  ;;  %v436_v12 = vadd.f32 %v1076_v7, %v333_v3  ;;  %v437_v13 = vadd.f32 %v1076_v7, %v334_v4 }
  0x8e   :  { %v438_v14 = vadd.f32 %v1076_v7, %v335_v5  ;;  %v439_v15 = vadd.f32 %v1076_v7, %v336_v6  ;;  %v530_v17 = vmax.f32 %v434_v8, 0.0  ;;  %v531_v18 = vmax.f32 %v435_v9, 0.0 }
  0x8f   :  { %v440_v19 = vadd.f32 %v1076_v7, %v337_v10  ;;  %v441_v20 = vadd.f32 %v1076_v7, %v338_v11  ;;  %v532_v23 = vmax.f32 %v436_v12, 0.0  ;;  %v533_v24 = vmax.f32 %v437_v13, 0.0 }
  0x90   :  { %v534_v25 = vmax.f32 %v438_v14, 0.0  ;;  %v535_v26 = vmax.f32 %v439_v15, 0.0  ;;  %626 = vst [vmem:[#allocation8 + $0x280] sm:$0xff] %v530_v17  ;;  %627 = vst [vmem:[#allocation8 + $0x288] sm:$0xff] %v531_v18  ;;  %v840_v30 = vunpack.c.l.bf16 %v897_v16  ;;  %v841_v31 = vunpack.c.h.bf16 %v897_v16 }
  0x91   :  { %v536_v28 = vmax.f32 %v440_v19, 0.0  ;;  %v537_v29 = vmax.f32 %v441_v20, 0.0  ;;  %628 = vst [vmem:[#allocation8 + $0x290] sm:$0xff] %v532_v23  ;;  %629 = vst [vmem:[#allocation8 + $0x298] sm:$0xff] %v533_v24  ;;  %v844_v32 = vunpack.c.l.bf16 %v898_v21  ;;  %v845_v33 = vunpack.c.h.bf16 %v898_v21 }
  0x92   :  { %630 = vst [vmem:[#allocation8 + $0x2a0] sm:$0xff] %v534_v25  ;;  %631 = vst [vmem:[#allocation8 + $0x2a8] sm:$0xff] %v535_v26  ;;  %v848_v34 = vunpack.c.l.bf16 %v899_v22  ;;  %v849_v35 = vunpack.c.h.bf16 %v899_v22  ;;  %v339_v36 = vmul.f32 %v840_v30, %v1074_v1  ;;  %v340_v37 = vmul.f32 %v841_v31, %v1074_v1 }
  0x93   :  { %632 = vst [vmem:[#allocation8 + $0x2b0] sm:$0xff] %v536_v28  ;;  %633 = vst [vmem:[#allocation8 + $0x2b8] sm:$0xff] %v537_v29  ;;  %v852_v38 = vunpack.c.l.bf16 %v900_v27  ;;  %v853_v39 = vunpack.c.h.bf16 %v900_v27  ;;  %v341_v40 = vmul.f32 %v844_v32, %v1074_v1  ;;  %v342_v41 = vmul.f32 %v845_v33, %v1074_v1 }
  0x94   :  { %v343_v42 = vmul.f32 %v848_v34, %v1074_v1  ;;  %v344_v43 = vmul.f32 %v849_v35, %v1074_v1  ;;  %v442_v44 = vadd.f32 %v1076_v7, %v339_v36  ;;  %v443_v45 = vadd.f32 %v1076_v7, %v340_v37 }
  0x95   :  { %v345_v46 = vmul.f32 %v852_v38, %v1074_v1  ;;  %v346_v47 = vmul.f32 %v853_v39, %v1074_v1  ;;  %v444_v48 = vadd.f32 %v1076_v7, %v341_v40  ;;  %v445_v49 = vadd.f32 %v1076_v7, %v342_v41 }
  0x96   :  { %v446_v50 = vadd.f32 %v1076_v7, %v343_v42  ;;  %v447_v51 = vadd.f32 %v1076_v7, %v344_v43  ;;  %v538_v52 = vmax.f32 %v442_v44, 0.0  ;;  %v539_v53 = vmax.f32 %v443_v45, 0.0 }
  0x97   :  { %v448_v54 = vadd.f32 %v1076_v7, %v345_v46  ;;  %v449_v55 = vadd.f32 %v1076_v7, %v346_v47  ;;  %v540_v56 = vmax.f32 %v444_v48, 0.0  ;;  %v541_v57 = vmax.f32 %v445_v49, 0.0 }
  0x98   :  { %v542_v58 = vmax.f32 %v446_v50, 0.0  ;;  %v543_v1 = vmax.f32 %v447_v51, 0.0  ;;  %634 = vst [vmem:[#allocation8 + $0x2c0] sm:$0xff] %v538_v52  ;;  %635 = vst [vmem:[#allocation8 + $0x2c8] sm:$0xff] %v539_v53 }
  0x99   :  { %v544_v59 = vmax.f32 %v448_v54, 0.0  ;;  %v545_v60 = vmax.f32 %v449_v55, 0.0  ;;  %636 = vst [vmem:[#allocation8 + $0x2d0] sm:$0xff] %v540_v56  ;;  %637 = vst [vmem:[#allocation8 + $0x2d8] sm:$0xff] %v541_v57 }
  0x9a   :  { %638 = vst [vmem:[#allocation8 + $0x2e0] sm:$0xff] %v542_v58  ;;  %639 = vst [vmem:[#allocation8 + $0x2e8] sm:$0xff] %v543_v1 }
  0x9b   :  { %640 = vst [vmem:[#allocation8 + $0x2f0] sm:$0xff] %v544_v59  ;;  %641 = vst [vmem:[#allocation8 + $0x2f8] sm:$0xff] %v545_v60 }
  0x9c   :  { %986 = shalt.err (!%p983_p0)
}
  0x9d   :  { %s987_s27 = scalar_lea.hbm %s1285_s3, 12288 }
  0x9e   :  { %p988_p1 = scmp.ne.s32.totalorder %s1285_s3, %s987_s27  ;;  %p991_p2 = scmp.lt.u32.totalorder %s987_s27, %s1285_s3 }
  0xa0   :  { %p993_p3 = pnand %p991_p2, %p988_p1 }
  0xa2   :  { %996 = shalt.err (!%p993_p3)
}
  0xa3   :  { %s1009_s5 = smov 128   ;;  %s1010_s6 = smov 8  }
  0xa4   :  { %653 = dma.vmem_to_hbm [thread:$0]  %s648_s23, 12288, %s1285_s3, [#allocation4], %s1009_s5, %s1009_s5, %s1010_s6  }
  0xa5   :  { %1001 = dma.done.wait [#allocation4], 12288  }
  0xa6   :  { %1002 = vsyncadd [#allocation4], 4294955008 }
  0xa7   :  { %657 = vsyncpa [#allocation3], 1 }
  0xa8   :  { %658 = vsyncpa [#allocation6], 1 }
  0xa9   :  { %659 = vsyncpa [#allocation4], 1 }

// kernel: double_conv.3
= control target key start
LH: loop header
LB: loop body
LE: loop exit
PB: predicated region body
PF: predicated region fallthrough
CT: control target
= control target key end

     0   :  { %12 = vsyncpa [#allocation3], 0  ;;  %s9285_s0 = inlined_call_operand.hbm [shape: bf16[2,440,4], index: 0, kind: input, shape index: {}]   ;;  %s9286_s1 = inlined_call_operand.hbm [shape: bf16[9,4,128], index: 1, kind: input, shape index: {}]   ;;  %s9287_s2 = inlined_call_operand.hbm [shape: f32[440,1], index: 2, kind: input, shape index: {}]   ;;  %s9288_s3 = inlined_call_operand.hbm [shape: f32[1,4], index: 3, kind: input, shape index: {}]   ;;  %s9289_s4 = inlined_call_operand.hbm [shape: f32[1,4], index: 4, kind: input, shape index: {}]   ;;  %s9290_s5 = inlined_call_operand.hbm [shape: bf16[2,384,128], index: 5, kind: output, shape index: {0}]   ;;  %s9291_s6 = inlined_call_operand.hbm [shape: f32[2,2,128], index: 6, kind: output, shape index: {1}]  }
   0x1   :  { %14 = vsyncpa [#allocation3 + $0x1], 0 }
   0x2   :  { %15 = vsyncpa [#allocation6], 0 }
   0x3   :  { %16 = vsyncpa [#allocation9], 0 }
   0x4   :  { %17 = vsyncpa [#allocation4], 0 }
   0x5   :  { %19 = vsyncpa [#allocation4 + $0x1], 0 }
   0x6   :  { %20 = vsyncpa [#allocation13], 0 }
   0x7   :  { %22 = vsyncpa [#allocation13 + $0x1], 0  ;;  %s7440_s21 = smov 0   ;;  %s7442_s22 = smov 0  }
   0x8   :  { %s7444_s23 = smov 0   ;;  %s7446_s24 = smov 0  }
   0x9 LB: > { %s7461_s25 = sadd.s32 4294967295, %s7387_s24   ;;  %s5312_s26 = sadd.s32 4294967294, %s7387_s24   ;;  %s7387_s24 = sphi %s7446_s24, %s9643_s24   ;;  %s7383_s23 = sphi %s7444_s23, %s9642_s23   ;;  %s7379_s22 = sphi %s7442_s22, %s9641_s22   ;;  %s7375_s21 = sphi %s7440_s21, %s9640_s21  }
   0xa   : > { %p48_p0 = scmp.ne.s32.totalorder %s7379_s22, %s7375_s21  ;;  %p9292_p1 = scmp.eq.s32.totalorder %s7461_s25, 0 }
   0xb   : > { %p162_p3 = scmp.eq.s32.totalorder %s5312_s26, 1  ;;  %p5313_p5 = scmp.ge.s32.totalorder %s7387_s24, 1 }
   0xc   : > { %p7470_p4 = por %p9292_p1, %p48_p0  ;;  %p195_p7 = scmp.lt.s32.totalorder %s7387_s24, 3 }
   0xd   : > { %p7475_p6 = por %p162_p3, %p48_p0  ;;  %s7389_s30 = smov [#allocation5]  }
   0xe   : > { %s9388_s27 = scalar_select %p7470_p4, 1, 0 }
   0xf   : > { %s9389_s28 = scalar_select %p7475_p6, 1, 0 }
  0x10   : > { %p7480_p8 = pnand %p5313_p5, %p195_p7  ;;  %s207_s7 = sshll.u32 %s7389_s30, 4  ;;  %s7484_s7 = int_to_ptr.vmem [resolvable:$true] %s207_s7 }
  0x11   : > { %s7390_s9 = smov [#allocation8]   ;;  %s7391_s11 = smov [#allocation7]  }
  0x12   : > { %s9390_s29 = scalar_select %p7480_p8, 1, 0 }
  0x13   : > { %p6968_p9 = pneg %p7480_p8  ;;  %s234_s10 = sshll.u32 %s7390_s9, 4  ;;  %s7495_s10 = int_to_ptr.vmem [resolvable:$true] %s234_s10 }
  0x14   : > { %s7497_s12 = sshll.u32 %s7391_s11, 4  ;;  %s7139_s15 = scalar_lea.hbm %s9286_s1, 288  ;;  %s221_s12 = int_to_ptr.vmem [resolvable:$true] %s7497_s12 }
  0x15   : > { %p7491_p11 = pnand %p6968_p9, %p9292_p1  ;;  %p7140_p12 = scmp.ne.s32.totalorder %s9286_s1, %s7139_s15 }
  0x16   : > { %p7146_p5 = scmp.lt.u32.totalorder %s7139_s15, %s9286_s1 }
  0x17   : > { %p7507_p13 = pneg %p7491_p11 }
  0x19   : > { %p7142_p0 = pnand %p7507_p13, %p7140_p12 }
  0x1b   : > { %p7143_p3 = pneg %p7142_p0 }
  0x1d   : > { %p7148_p7 = pnand %p7146_p5, %p7143_p3 }
  0x1f   : > { %7151 = shalt.err (!%p7148_p7)
}
  0x20   : > { %s7152_s26 = scalar_lea.vmem %s7484_s7, 288  ;;  %p7160_p2 = scmp.lt.s32.totalorder %s7484_s7, %s7484_s7 }
  0x21   : > { %p7153_p9 = scmp.ne.s32.totalorder %s7484_s7, %s7152_s26  ;;  %p7161_p6 = scmp.lt.s32.totalorder %s7152_s26, %s7152_s26 }
  0x23   : > { %p7155_p10 = pnand %p7153_p9, %p7507_p13  ;;  %p7162_p12 = por %p7161_p6, %p7160_p2 }
  0x25   : > { %p7156_p1 = pneg %p7155_p10 }
  0x27   : > { %p7163_p0 = pnand %p7162_p12, %p7156_p1 }
  0x29   : > { %7166 = shalt.err (!%p7163_p0)
}
  0x2a   : > { %s7392_s30 = smov 32   ;;  %s7393_s9 = smov 2  }
  0x2b   : > { %6971 = dma.hbm_to_vmem [thread:$0]  (!%p7491_p11), %s9286_s1, 288, %s7484_s7, [#allocation6], %s7392_s30, %s7392_s30, %s7393_s9  }
  0x2c   : > { %s7167_s16 = scalar_lea.hbm %s9288_s3, 16 }
  0x2d   : > { %p7168_p2 = scmp.ne.s32.totalorder %s9288_s3, %s7167_s16  ;;  %p7174_p10 = scmp.lt.u32.totalorder %s7167_s16, %s9288_s3 }
  0x2f   : > { %p7170_p1 = pnand %p7168_p2, %p7507_p13 }
  0x31   : > { %p7171_p6 = pneg %p7170_p1 }
  0x33   : > { %p7176_p3 = pnand %p7174_p10, %p7171_p6 }
  0x35   : > { %7179 = shalt.err (!%p7176_p3)
}
  0x36   : > { %s7180_s7 = scalar_lea.vmem %s7495_s10, 16  ;;  %s7187_s30 = scalar_lea.vmem %s7495_s10, 32 }
  0x37   : > { %p7181_p5 = scmp.ne.s32.totalorder %s7495_s10, %s7180_s7  ;;  %p7188_p12 = scmp.lt.s32.totalorder %s7495_s10, %s7495_s10 }
  0x38   : > { %p7189_p0 = scmp.lt.s32.totalorder %s7187_s30, %s7180_s7 }
  0x39   : > { %p7183_p7 = pnand %p7181_p5, %p7507_p13 }
  0x3a   : > { %p7190_p2 = por %p7189_p0, %p7188_p12 }
  0x3b   : > { %p7184_p9 = pneg %p7183_p7 }
  0x3d   : > { %p7191_p1 = pnand %p7190_p2, %p7184_p9 }
  0x3f   : > { %7194 = shalt.err (!%p7191_p1)
}
  0x40   : > { %6977 = dma.hbm_to_vmem [thread:$0]  (!%p7491_p11), %s9288_s3, 16, %s7495_s10, [#allocation9]  }
  0x41   : > { %s7195_s15 = scalar_lea.hbm %s9287_s2, 7040 }
  0x42   : > { %p7196_p6 = scmp.ne.s32.totalorder %s9287_s2, %s7195_s15  ;;  %p7202_p5 = scmp.lt.u32.totalorder %s7195_s15, %s9287_s2 }
  0x44   : > { %p7198_p10 = pnand %p7196_p6, %p7507_p13 }
  0x46   : > { %p7199_p3 = pneg %p7198_p10 }
  0x48   : > { %p7204_p7 = pnand %p7202_p5, %p7199_p3 }
  0x4a   : > { %7207 = shalt.err (!%p7204_p7)
}
  0x4b   : > { %s7208_s26 = scalar_lea.vmem %s221_s12, 7040  ;;  %p7216_p2 = scmp.lt.s32.totalorder %s221_s12, %s221_s12 }
  0x4c   : > { %p7209_p9 = scmp.ne.s32.totalorder %s221_s12, %s7208_s26  ;;  %p7217_p1 = scmp.lt.s32.totalorder %s7208_s26, %s7208_s26 }
  0x4e   : > { %p7211_p12 = pnand %p7209_p9, %p7507_p13  ;;  %p7218_p4 = por %p7217_p1, %p7216_p2 }
  0x50   : > { %p7212_p0 = pneg %p7211_p12 }
  0x52   : > { %p7219_p8 = pnand %p7218_p4, %p7212_p0 }
  0x54   : > { %7222 = shalt.err (!%p7219_p8)
}
  0x55   : > { %s7394_s10 = smov 128   ;;  %s7395_s7 = smov 8  }
  0x56   : > { %6974 = dma.hbm_to_vmem [thread:$0]  (!%p7491_p11), %s9287_s2, 7040, %s221_s12, [#allocation6], %s7394_s10, %s7394_s10, %s7395_s7  }
  0x57   : > { %s7396_s11 = smov [#allocation10]   ;;  %s7223_s16 = scalar_lea.hbm %s9289_s4, 16 }
  0x58   : > { %s245_s13 = sshll.u32 %s7396_s11, 4  ;;  %p7224_p4 = scmp.ne.s32.totalorder %s9289_s4, %s7223_s16  ;;  %s246_s13 = int_to_ptr.vmem [resolvable:$true] %s245_s13 }
  0x59   : > { %p7230_p10 = scmp.lt.u32.totalorder %s7223_s16, %s9289_s4 }
  0x5a   : > { %p7226_p8 = pnand %p7224_p4, %p7507_p13 }
  0x5c   : > { %p7227_p6 = pneg %p7226_p8 }
  0x5e   : > { %p7232_p3 = pnand %p7230_p10, %p7227_p6 }
  0x60   : > { %7235 = shalt.err (!%p7232_p3)
}
  0x61   : > { %s7236_s12 = scalar_lea.vmem %s246_s13, 16  ;;  %s7243_s10 = scalar_lea.vmem %s246_s13, 32 }
  0x62   : > { %p7237_p5 = scmp.ne.s32.totalorder %s246_s13, %s7236_s12  ;;  %p7244_p12 = scmp.lt.s32.totalorder %s246_s13, %s246_s13 }
  0x63   : > { %p7245_p0 = scmp.lt.s32.totalorder %s7243_s10, %s7236_s12 }
  0x64   : > { %p7239_p7 = pnand %p7237_p5, %p7507_p13 }
  0x65   : > { %p7246_p2 = por %p7245_p0, %p7244_p12 }
  0x66   : > { %p7240_p9 = pneg %p7239_p7 }
  0x68   : > { %p7247_p1 = pnand %p7246_p2, %p7240_p9 }
  0x6a   : > { %7250 = shalt.err (!%p7247_p1)
}
  0x6b   : > { %6980 = dma.hbm_to_vmem [thread:$0]  (!%p7491_p11), %s9289_s4, 16, %s246_s13, [#allocation9]  }
  0x6c   : > { %s7590_s18 = sadd.s32 1, %s7387_s24   ;;  %s35_s9 = sadd.s32 1, %s7383_s23 }
  0x6d   : > { %s32_s8 = ssub.s32 %s7387_s24, %s7590_s18  ;;  %p42_p13 = scmp.ne.s32.totalorder %s7383_s23, %s7379_s22 }
  0x6e   : > { %p33_p4 = scmp.eq.s32.totalorder %s32_s8, 0  ;;  %p43_p8 = scmp.eq.s32.totalorder %s7387_s24, 0 }
  0x6f   : > { %p9393_p6 = scmp.eq.s32.totalorder %s7461_s25, 1  ;;  %p6996_p3 = scmp.lt.s32.totalorder %s7387_s24, 2 }
  0x70   : > { %s7606_s14 = scalar_select %p33_p4, %s7383_s23, %s35_s9  }
  0x71   : > { %p7600_p10 = por %p9393_p6, %p42_p13  ;;  %p44_p5 = por %p43_p8, %p42_p13 }
  0x72   : > { %s256_s15 = sand.u32 1, %s7383_s23   ;;  %s6942_s13 = smul.u32 3520, %s7387_s24 }
  0x73   : > { %s6941_s16 = smul.u32 220, %s256_s15  ;;  %p7610_p11 = pnand %p6996_p3, %p44_p5 }
  0x74   : > { %s7617_s26 = scalar_lea.hbm %s9285_s0, %s6942_s13  ;;  %s7621_s7 = scalar_lea.sflag [#allocation3], %s256_s15 }
  0x75   : > { %s260_s12 = scalar_lea.vmem [#allocation2], %s6941_s16  ;;  %s7251_s30 = scalar_lea.hbm %s7617_s26, 3520 }
  0x76   : > { %s267_s10 = sshll.u32 %s260_s12, 4  ;;  %p7252_p7 = scmp.ne.s32.totalorder %s7617_s26, %s7251_s30  ;;  %s7619_s10 = int_to_ptr.vmem [resolvable:$true] %s267_s10 }
  0x77   : > { %p7253_p9 = pneg %p7610_p11  ;;  %s7256_s13 = scalar_lea.hbm %s9285_s0, 7040 }
  0x78   : > { %p7257_p2 = scmp.lt.u32.totalorder %s7617_s26, %s9285_s0  ;;  %p7258_p1 = scmp.lt.u32.totalorder %s7256_s13, %s7251_s30 }
  0x79   : > { %p7254_p12 = pnand %p7253_p9, %p7252_p7  ;;  %p7260_p4 = scmp.lt.u32.totalorder %s7251_s30, %s7617_s26 }
  0x7a   : > { %p7259_p13 = por %p7258_p1, %p7257_p2 }
  0x7b   : > { %p7255_p0 = pneg %p7254_p12 }
  0x7c   : > { %p7261_p8 = por %p7260_p4, %p7259_p13 }
  0x7e   : > { %p7262_p6 = pnand %p7261_p8, %p7255_p0 }
  0x80   : > { %7265 = shalt.err (!%p7262_p6)
}
  0x81   : > { %s7266_s15 = scalar_lea.vmem %s7619_s10, 3520  ;;  %s7397_s16 = smov [#allocation2]  }
  0x82   : > { %p7267_p3 = scmp.ne.s32.totalorder %s7619_s10, %s7266_s15  ;;  %s7271_s12 = sshll.u32 %s7397_s16, 4  ;;  %s7272_s12 = int_to_ptr.vmem [resolvable:$false] %s7271_s12 }
  0x83   : > { %s7273_s9 = scalar_lea.vmem %s7272_s12, 7040  ;;  %p7274_p12 = scmp.lt.s32.totalorder %s7619_s10, %s7272_s12 }
  0x84   : > { %p7269_p5 = pnand %p7267_p3, %p7253_p9  ;;  %p7275_p2 = scmp.lt.s32.totalorder %s7273_s9, %s7266_s15 }
  0x86   : > { %p7270_p7 = pneg %p7269_p5  ;;  %p7276_p1 = por %p7275_p2, %p7274_p12 }
  0x88   : > { %p7277_p13 = pnand %p7276_p1, %p7270_p7 }
  0x8a   : > { %7280 = shalt.err (!%p7277_p13)
}
  0x8b   : > { %s7398_s30 = smov 64   ;;  %s7399_s8 = smov 4  }
  0x8c   : > { %6984 = dma.hbm_to_vmem [thread:$0]  (!%p7610_p11), %s7617_s26, 3520, %s7619_s10, %s7621_s7, %s7398_s30, %s7398_s30, %s7399_s8  }
  0x8d   : > { %p9396_p9 = scmp.ne.s32.totalorder %s9390_s29, 0 }
  0x8f   : > { %279 = sbr.rel (%p9396_p9) target bundleno = 864 (0x360), region = 40 }
  0x96   : > { %s7652_s13 = sand.u32 1, %s7379_s22   ;;  %p9397_p0 = scmp.ne.s32.totalorder %s9388_s27, 0 }
  0x97   : > { %s6943_s19 = smul.u32 220, %s7652_s13  ;;  %s282_s20 = scalar_lea.sflag [#allocation3], %s7652_s13 }
  0x99   : > { %s7656_s15 = scalar_lea.vmem [#allocation2], %s6943_s19 }
  0x9a   : > { %7354 = dma.done.wait (%p9397_p0), %s282_s20, 3520  }
  0x9b   : > { %7356 = vsyncadd (%p9397_p0), %s282_s20, 4294963776  ;;  %p9398_p11 = scmp.eq.s32.totalorder %s7461_s25, 0 }
  0x9d   : > { %7358 = dma.done.wait (%p9398_p11), [#allocation6], 7328   ;;  %p9399_p4 = pmov %p9398_p11 }
  0x9f   : > { %7360 = vsyncadd (%p9399_p4), [#allocation6], 4294959968  ;;  %p9400_p8 = pmov %p9399_p4 }
  0xa0   : > { %p9401_p6 = pmov %p9399_p4 }
  0xa1   : > { %7362 = dma.done.wait (%p9400_p8), [#allocation9], 32  }
  0xa2   : > { %7364 = vsyncadd (%p9401_p6), [#allocation9], 4294967264  ;;  %vm984_vm0 = vcmask 1041408   ;;  %v886_v0 = vld [vmem:[#allocation5 + $0x2] sm:$0x3]  ;;  %v7671_v2 = vld [vmem:[%s7656_s15] sm:$0xff]  }
  0xa3   : > { %v3039_v1 = vld [vmem:[#allocation5 + $0x2] sm:$0x3]  ;;  %9402 = vst [vmem:[#allocation19_spill] sm:$0xff] %v7671_v2  ;;  %vm947_vm1 = vcmask 31744   ;;  %6923 = vmatprep.subr.msk.bf16.mxu0 %vm984_vm0, %v886_v0  ;;  %v986_v3 = vsel %vm984_vm0, %v886_v0, 0  ;;  %vm503_vm2 = vcmask 1040384  }
  0xa4   : > { %6932 = vmatprep.subr.msk.bf16.mxu1 %vm984_vm0, %v3039_v1  ;;  %v3113_v4 = vsel %vm984_vm0, %v3039_v1, 0  ;;  %v7678_v5 = vld [vmem:[%s7656_s15 + $0x5c] sm:$0xf]  ;;  %v7681_v6 = vld [vmem:[%s7656_s15 + $0x60] sm:$0xf]  ;;  %6072 = vmatpush3.bf16.msra.mxu0 %v986_v3  ;;  %vm1494_vm3 = vcmask 1043456  }
  0xa5   : > { %9403 = vst [vmem:[#allocation20_spill] sm:$0xff] %v7678_v5  ;;  %9404 = vst [vmem:[#allocation21_spill] sm:$0xff] %v7681_v6  ;;  %6306 = vmatpush3.bf16.msra.mxu1 %v3113_v4  ;;  %v7684_v7 = vld [vmem:[%s7656_s15 + $0x64] sm:$0xf]  ;;  %v7689_v9 = vld [vmem:[%s7656_s15 + $0x68] sm:$0xf]  ;;  %6073 = vmatprep.mubr.msk.bf16.mxu0 %vm947_vm1, %v7671_v2 }
  0xa6   : > { %9405 = vst [vmem:[#allocation22_spill] sm:$0xff] %v7684_v7  ;;  %9406 = vst [vmem:[#allocation23_spill] sm:$0xff] %v7689_v9  ;;  %v7694_v10 = vld [vmem:[%s7656_s15 + $0x8] sm:$0xf]  ;;  %v7697_v11 = vld [vmem:[%s7656_s15 + $0xc] sm:$0xf]  ;;  %v7703_v14 = vcombine.low %v7681_v6, %v7684_v7  ;;  %v9439_v36 = vunpack.c.l.bf16 %v7684_v7 }
  0xa7   : > { %9407 = vst [vmem:[#allocation24_spill] sm:$0xff] %v7694_v10  ;;  %9408 = vst [vmem:[#allocation25_spill] sm:$0xff] %v7697_v11  ;;  %v884_v12 = vld [vmem:[#allocation5] sm:$0x3]  ;;  %v7707_v15 = vld [vmem:[%s7656_s15 + $0x6c] sm:$0xf]  ;;  %v5327_v17 = vcombine.low %v7694_v10, %v7697_v11 }
  0xa8   : > { %9409 = vst [vmem:[#allocation26_spill] sm:$0xff] %v7703_v14  ;;  %6924 = vmatprep.subr.msk.bf16.mxu0 %vm984_vm0, %v884_v12  ;;  %v3038_v16 = vld [vmem:[#allocation5] sm:$0x3]  ;;  %6307 = vmatprep.mubr.msk.bf16.mxu1 %vm947_vm1, %v7703_v14  ;;  %v7716_v18 = vcombine.low %v7689_v9, %v7707_v15  ;;  %v1154_v19 = vsel %vm984_vm0, %v884_v12, 0  ;;  %v7721_v21 = vld [vmem:[%s7656_s15 + $0x10] sm:$0xf] }
  0xa9   : > { %6933 = vmatprep.subr.msk.bf16.mxu1 %vm984_vm0, %v3038_v16  ;;  %v3272_v20 = vsel %vm984_vm0, %v3038_v16, 0  ;;  %v7724_v22 = vld [vmem:[%s7656_s15 + $0x14] sm:$0xf]  ;;  %6074 = vmatmul.mubr.msk.bf16.vlgmr.msra.gmra.mrb[0].mxu0 %vm947_vm1, %v5327_v17  ;;  %v7728_v23 = vld [vmem:[%s7656_s15 + $0x70] sm:$0xf]  ;;  %vm693_vm4 = vcmask 1046528  }
  0xaa   : > { %9410 = vst [vmem:[#allocation27_spill] sm:$0xff] %v7716_v18  ;;  %6308 = vmatmul.mubr.msk.bf16.vlgmr.msra.gmra.mrb[0].mxu1 %vm947_vm1, %v7716_v18  ;;  %6098 = vmatpush3.bf16.msra.mxu0 %v1154_v19  ;;  %v7733_v24 = vld [vmem:[%s7656_s15 + $0x74] sm:$0xf]  ;;  %v7736_v25 = vld [vmem:[%s7656_s15 + $0x18] sm:$0xf]  ;;  %v5328_v27 = vcombine.low %v7721_v21, %v7724_v22  ;;  %s6944_s27 = smul.u32 192, %s7652_s13 }
  0xab   : > { %v7739_v26 = vld [vmem:[%s7656_s15 + $0x1c] sm:$0xf]  ;;  %6332 = vmatpush3.bf16.msra.mxu1 %v3272_v20  ;;  %v7744_v28 = vld [vmem:[%s7656_s15 + $0x78] sm:$0xf]  ;;  %v7750_v30 = vld [vmem:[%s7656_s15 + $0x20] sm:$0xf]  ;;  %v7755_v31 = vcombine.low %v7728_v23, %v7733_v24 }
  0xac   : > { %9411 = vst [vmem:[#allocation28_spill] sm:$0xff] %v7739_v26  ;;  %v7747_v29 = vld [vmem:[%s7656_s15 + $0x7c] sm:$0xf]  ;;  %6077 = vmatprep.mubr.msk.bf16.mxu0 %vm947_vm1, %v5328_v27  ;;  %v7759_v32 = vcombine.low %v7736_v25, %v7739_v26  ;;  %v7762_v33 = vld [vmem:[%s7656_s15 + $0x24] sm:$0xf]  ;;  %s9081_s29 = scalar_lea.vmem [#allocation11], %s6944_s27 }
  0xad   : > { %9412 = vst [vmem:[#allocation29_spill] sm:$0xff] %v7747_v29  ;;  %9413 = vst [vmem:[#allocation30_spill] sm:$0xff] %v7755_v31  ;;  %v7765_v34 = vld [vmem:[%s7656_s15 + $0x80] sm:$0xf]  ;;  %v7768_v35 = vld [vmem:[%s7656_s15 + $0x84] sm:$0xf]  ;;  %6311 = vmatprep.mubr.msk.bf16.mxu1 %vm947_vm1, %v7755_v31  ;;  %v7776_v37 = vcombine.low %v7744_v28, %v7747_v29  ;;  %v7782_v39 = vcombine.low %v7750_v30, %v7762_v33 }
  0xae   : > { %9414 = vst [vmem:[#allocation31_spill] sm:$0xff] %v7759_v32  ;;  %v7786_v40 = vcombine.low %v7765_v34, %v7768_v35  ;;  %v7795_v41 = vld [vmem:[%s7656_s15 + $0x28] sm:$0xf]  ;;  %v7798_v42 = vld [vmem:[%s7656_s15 + $0x2c] sm:$0xf]  ;;  %s6945_s17 = smul.u32 3072, %s7461_s25 }
  0xaf   : > { %9415 = vst [vmem:[#allocation32_spill] sm:$0xff] %v7776_v37  ;;  %9416 = vst [vmem:[#allocation33_spill] sm:$0xff] %v7782_v39  ;;  %v7801_v43 = vld [vmem:[%s7656_s15 + $0x88] sm:$0xf]  ;;  %v7806_v44 = vld [vmem:[%s7656_s15 + $0x8c] sm:$0xf]  ;;  %v7822_v49 = vcombine.low %v7795_v41, %v7798_v42 }
  0xb0   : > { %9417 = vst [vmem:[#allocation34_spill] sm:$0xff] %v7786_v40  ;;  %v7809_v45 = vld [vmem:[%s7656_s15 + $0x30] sm:$0xf]  ;;  %v7812_v46 = vld [vmem:[%s7656_s15 + $0x34] sm:$0xf]  ;;  %v7828_v51 = vcombine.low %v7801_v43, %v7806_v44  ;;  %s5156_s26 = sshll.u32 %s9081_s29, 4  ;;  %s9198_s16 = scalar_lea.hbm %s9290_s5, %s6945_s17  ;;  %s9203_s26 = int_to_ptr.vmem [resolvable:$true] %s5156_s26 }
  0xb1   : > { %6078 = vmatmul.mubr.msk.bf16.gmra.mrb[4].mxu0 %vm947_vm1, %v7759_v32  ;;  %v7815_v47 = vld [vmem:[%s7656_s15 + $0x90] sm:$0xf]  ;;  %v7818_v48 = vld [vmem:[%s7656_s15 + $0x94] sm:$0xf]  ;;  %9418 = vst [vmem:[#allocation35_spill] sm:$0xff] %v7822_v49  ;;  %v7832_v52 = vcombine.low %v7809_v45, %v7812_v46  ;;  %s5138_s12 = scalar_lea.sflag [#allocation4], %s7652_s13 }
  0xb2   : > { %6312 = vmatmul.mubr.msk.bf16.gmra.mrb[4].mxu1 %vm947_vm1, %v7776_v37  ;;  %6081 = vmatprep.mubr.msk.bf16.mxu0 %vm947_vm1, %v7782_v39  ;;  %v7824_v50 = vld [vmem:[#allocation5 + $0x4] sm:$0x3]  ;;  %9419 = vst [vmem:[#allocation36_spill] sm:$0xff] %v7828_v51  ;;  %v7840_v54 = vcombine.low %v7815_v47, %v7818_v48  ;;  %v7851_v55 = vld [vmem:[%s7656_s15 + $0x38] sm:$0xf]  ;;  %s7281_s9 = scalar_lea.vmem %s9203_s26, 3072 }
  0xb3   : > { %6315 = vmatprep.mubr.msk.bf16.mxu1 %vm947_vm1, %v7786_v40  ;;  %9420 = vst [vmem:[#allocation37_spill] sm:$0xff] %v7832_v52  ;;  %6925 = vmatprep.subr.msk.bf16.mxu0 %vm984_vm0, %v7824_v50  ;;  %v7836_v53 = vld [vmem:[#allocation5 + $0x4] sm:$0x3]  ;;  %v7857_v57 = vld [vmem:[%s7656_s15 + $0x98] sm:$0xf]  ;;  %p7282_p3 = scmp.ne.s32.totalorder %s9203_s26, %s7281_s9  ;;  %s7401_s30 = smov [#allocation11]  }
  0xb4   : > { %9421 = vst [vmem:[#allocation38_spill] sm:$0xff] %v7840_v54  ;;  %6934 = vmatprep.subr.msk.bf16.mxu1 %vm984_vm0, %v7836_v53  ;;  %v7854_v56 = vld [vmem:[%s7656_s15 + $0x3c] sm:$0xf]  ;;  %v7865_v59 = vld [vmem:[%s7656_s15 + $0x40] sm:$0xf]  ;;  %s7285_s8 = sshll.u32 %s7401_s30, 4  ;;  %s7286_s8 = int_to_ptr.vmem [resolvable:$false] %s7285_s8 }
  0xb5   : > { %v7862_v58 = vld [vmem:[%s7656_s15 + $0x9c] sm:$0xf]  ;;  %v7868_v60 = vld [vmem:[%s7656_s15 + $0x44] sm:$0xf]  ;;  %v7871_v61 = vld [vmem:[%s7656_s15 + $0xa0] sm:$0xf]  ;;  %v7878_v63 = vcombine.low %v7851_v55, %v7854_v56  ;;  %p7283_p5 = pnand %p7282_p3, %p7600_p10  ;;  %p7288_p12 = scmp.lt.s32.totalorder %s9203_s26, %s7286_s8 }
  0xb6   : > { %v7874_v62 = vld [vmem:[%s7656_s15 + $0xa4] sm:$0xf]  ;;  %v7882_v0 = vcombine.low %v7857_v57, %v7862_v58  ;;  %v7886_v1 = vcombine.low %v7865_v59, %v7868_v60  ;;  %v7893_v4 = vld [vmem:[%s7656_s15 + $0xd8] sm:$0xf]  ;;  %v7904_v17 = vld [vmem:[%s7656_s15 + $0x48] sm:$0xf] }
  0xb7   : > { %9422 = vst [vmem:[#allocation39_spill] sm:$0xff] %v7878_v63  ;;  %v7890_v3 = vcombine.low %v7871_v61, %v7874_v62  ;;  %9426 = vst [vmem:[#allocation43_spill] sm:$0xff] %v7893_v4  ;;  %v7907_v19 = vld [vmem:[%s7656_s15 + $0x4c] sm:$0xf]  ;;  %v7910_v20 = vld [vmem:[%s7656_s15 + $0xa8] sm:$0xf]  ;;  %p7284_p7 = pneg %p7283_p5 }
  0xb8   : > { %9423 = vst [vmem:[#allocation40_spill] sm:$0xff] %v7882_v0  ;;  %9424 = vst [vmem:[#allocation41_spill] sm:$0xff] %v7886_v1  ;;  %v7915_v27 = vld [vmem:[%s7656_s15 + $0xac] sm:$0xf]  ;;  %v7918_v13 = vld [vmem:[%s7656_s15 + $0x50] sm:$0xf]  ;;  %v7935_v14 = vcombine.low %v7904_v17, %v7907_v19 }
  0xb9   : > { %6082 = vmatmul.mubr.msk.bf16.gmra.mrb[8].mxu0 %vm947_vm1, %v7822_v49  ;;  %9425 = vst [vmem:[#allocation42_spill] sm:$0xff] %v7890_v3  ;;  %v7921_v8 = vld [vmem:[%s7656_s15 + $0x54] sm:$0xf]  ;;  %v7928_v31 = vld [vmem:[%s7656_s15 + $0xb0] sm:$0xf]  ;;  %v7943_v16 = vcombine.low %v7910_v20, %v7915_v27  ;;  %v9438_v49 = vunpack.c.l.bf16 %v7681_v6  ;;  %v9444_v6 = vunpack.c.l.bf16 %v7689_v9  ;;  %v9449_v9 = vunpack.c.l.bf16 %v7724_v22  ;;  %s7287_s19 = scalar_lea.vmem %s7286_s8, 6144 }
  0xba   : > { %6316 = vmatmul.mubr.msk.bf16.gmra.mrb[8].mxu1 %vm947_vm1, %v7828_v51  ;;  %6085 = vmatprep.mubr.msk.bf16.mxu0 %vm947_vm1, %v7832_v52  ;;  %9427 = vst [vmem:[#allocation44_spill] sm:$0xff] %v7921_v8  ;;  %v7931_v18 = vld [vmem:[%s7656_s15 + $0xb4] sm:$0xf]  ;;  %9429 = vst [vmem:[#allocation46_spill] sm:$0xff] %v7935_v14  ;;  %v7947_v12 = vcombine.low %v7918_v13, %v7921_v8  ;;  %v9436_v52 = vunpack.c.l.bf16 %v7678_v5  ;;  %v7983_v39 = vld [vmem:[%s7656_s15 + $0xb8] sm:$0xf]  ;;  %p7289_p2 = scmp.lt.s32.totalorder %s7287_s19, %s7281_s9 }
  0xbb   : > { %6319 = vmatprep.mubr.msk.bf16.mxu1 %vm947_vm1, %v7840_v54  ;;  %9428 = vst [vmem:[#allocation45_spill] sm:$0xff] %v7931_v18  ;;  %9432 = vst [vmem:[#allocation47_spill] sm:$0xff] %v7943_v16  ;;  %v551_v40 = vrot.slane %v9438_v49, 7  ;;  %v9440_v49 = vunpack.c.l.bf16 %v7694_v10 }
  0xbc   : > { %9433 = vst [vmem:[#allocation48_spill] sm:$0xff] %v7947_v12  ;;  %v7959_v51 = vrot.slane %v9436_v52, 7  ;;  %v7974_v52 = vld [vmem:[%s7656_s15 + $0x58] sm:$0xf]  ;;  %p7290_p1 = por %p7289_p2, %p7288_p12 }
  0xbd   : > { %v7999_v7 = vcombine.low %v7974_v52, %v7678_v5  ;;  %v9448_v5 = vunpack.c.l.bf16 %v7721_v21 }
  0xbe   : > { %9437 = vst [vmem:[#allocation50_spill] sm:$0xff] %v7959_v51  ;;  %p7291_p13 = pnand %p7290_p1, %p7284_p7 }
  0xbf   : > { %9443 = vst [vmem:[#allocation52_spill] sm:$0xff] %v7999_v7  ;;  %v511_v10 = vrot.slane %v9448_v5, 7  ;;  %v9452_v5 = vunpack.c.l.bf16 %v7739_v26 }
  0xc1   : > { %6086 = vmatmul.mubr.msk.bf16.gmra.mrb[12].mxu0 %vm947_vm1, %v7878_v63  ;;  %v553_v63 = vrot.slane %v9439_v36, 7  ;;  %v9441_v36 = vunpack.c.l.bf16 %v7697_v11 }
  0xc2   : > { %6320 = vmatmul.mubr.msk.bf16.gmra.mrb[12].mxu1 %vm947_vm1, %v7882_v0  ;;  %6089 = vmatprep.mubr.msk.bf16.mxu0 %vm947_vm1, %v7886_v1  ;;  %v9431_v0 = vunpack.c.h.bf16 %v7671_v2 }
  0xc3   : > { %6323 = vmatprep.mubr.msk.bf16.mxu1 %vm947_vm1, %v7890_v3  ;;  %v9430_v3 = vunpack.c.l.bf16 %v7671_v2  ;;  %v509_v37 = vrot.slane %v9441_v36, 7  ;;  %v554_v36 = vsel %vm503_vm2, %v551_v40, %v553_v63  ;;  %v9334_v2 = vunpack.c.l.bf16 %v7736_v25 }
  0xc4   : > { %v505_v38 = vrot.slane %v9431_v0, 7  ;;  %v9435_v0 = vunpack.c.l.bf16 %v7893_v4  ;;  %v7986_v4 = vld [vmem:[%s7656_s15 + $0xbc] sm:$0xf] }
  0xc5   : > { %v504_v1 = vrot.slane %v9430_v3, 7  ;;  %v7953_v3 = vcombine.low %v7928_v31, %v7931_v18  ;;  %9442 = vst [vmem:[#allocation51_spill] sm:$0xff] %v7986_v4 }
  0xc6   : > { %v447_v54 = vrot.slane %v9435_v0, 7  ;;  %v507_v0 = vrot.slane %v9440_v49, 7  ;;  %v552_v49 = vsel %vm503_vm2, %v7959_v51, %v551_v40 }
  0xc7   : > { %9434 = vst [vmem:[#allocation49_spill] sm:$0xff] %v7953_v3  ;;  %v8009_v40 = vpack.c.bf16 %v554_v36, %v552_v49  ;;  %v512_v49 = vsel %vm503_vm2, %v509_v37, %v511_v10 }
  0xc8   : > { %v508_v11 = vsel %vm503_vm2, %v505_v38, %v507_v0 }
  0xc9   : > { %6090 = vmatmul.mubr.msk.bf16.gmra.mrb[16].mxu0 %vm947_vm1, %v7935_v14  ;;  %v665_v14 = vsel %vm503_vm2, %v447_v54, %v504_v1  ;;  %v555_v54 = vrot.slane %v9444_v6, 7  ;;  %9447 = vst [vmem:[#allocation54_spill] sm:$0xff] %v8009_v40  ;;  %v513_v6 = vrot.slane %v9449_v9, 7  ;;  %v1324_v9 = vsel %vm984_vm0, %v7824_v50, 0 }
  0xca   : > { %6324 = vmatmul.mubr.msk.bf16.gmra.mrb[16].mxu1 %vm947_vm1, %v7943_v16  ;;  %6093 = vmatprep.mubr.msk.bf16.mxu0 %vm947_vm1, %v7947_v12  ;;  %v506_v16 = vsel %vm503_vm2, %v504_v1, %v505_v38  ;;  %v8005_v1 = vcombine.low %v7983_v39, %v7986_v4  ;;  %v9446_v12 = vunpack.c.l.bf16 %v7707_v15  ;;  %v9451_v38 = vunpack.c.l.bf16 %v7733_v24 }
  0xcb   : > { %6327 = vmatprep.mubr.msk.bf16.mxu1 %vm947_vm1, %v7953_v3  ;;  %v666_v32 = vpack.c.bf16 %v506_v16, %v665_v14  ;;  %v510_v3 = vsel %vm503_vm2, %v507_v0, %v509_v37  ;;  %v9450_v14 = vunpack.c.l.bf16 %v7728_v23  ;;  %v556_v0 = vsel %vm503_vm2, %v553_v63, %v555_v54 }
  0xcc   : > { %9445 = vst [vmem:[#allocation53_spill] sm:$0xff] %v8005_v1  ;;  %v557_v51 = vrot.slane %v9446_v12, 7  ;;  %v561_v16 = vrot.slane %v9451_v38, 7  ;;  %v8038_v38 = vpack.c.bf16 %v510_v3, %v508_v11  ;;  %v515_v4 = vrot.slane %v9334_v2, 7 }
  0xcd   : > { %v559_v12 = vrot.slane %v9450_v14, 7  ;;  %v9454_v11 = vunpack.c.l.bf16 %v7744_v28  ;;  %v9455_v50 = vunpack.c.l.bf16 %v7747_v29  ;;  %v9459_v2 = vunpack.c.l.bf16 %v7765_v34 }
  0xce   : > { %v558_v63 = vsel %vm503_vm2, %v555_v54, %v557_v51 }
  0xcf   : > { %v560_v36 = vsel %vm503_vm2, %v557_v51, %v559_v12  ;;  %v562_v14 = vsel %vm503_vm2, %v559_v12, %v561_v16  ;;  %v8050_v54 = vpack.c.bf16 %v558_v63, %v556_v0  ;;  %v563_v3 = vrot.slane %v9454_v11, 7 }
  0xd0   : > { %v565_v37 = vrot.slane %v9455_v50, 7  ;;  %v9458_v12 = vunpack.c.l.bf16 %v7762_v33  ;;  %v567_v26 = vrot.slane %v9459_v2, 7  ;;  %v9460_v0 = vunpack.c.l.bf16 %v7768_v35 }
  0xd1   : > { %6094 = vmatmul.mubr.msk.bf16.gmra.mrb[20].mxu0 %vm947_vm1, %v7999_v7  ;;  %9453 = vst [vmem:[#allocation55_spill] sm:$0xff] %v8050_v54  ;;  %v9337_v63 = vunpack.c.l.bf16 %v7795_v41  ;;  %v9340_v11 = vunpack.c.l.bf16 %v7798_v42  ;;  %v3432_v50 = vsel %vm984_vm0, %v7836_v53, 0  ;;  %v8070_v29 = vpack.c.bf16 %v562_v14, %v560_v36 }
  0xd2   : > { %6328 = vmatmul.mubr.msk.bf16.gmra.mrb[20].mxu1 %vm947_vm1, %v8005_v1  ;;  %6099 = vmatprep.mubr.msk.bf16.mxu0 %vm947_vm1, %v666_v32  ;;  %v514_v32 = vsel %vm503_vm2, %v511_v10, %v513_v6  ;;  %v517_v1 = vrot.slane %v9452_v5, 7  ;;  %v9456_v10 = vunpack.c.l.bf16 %v7750_v30  ;;  %v569_v5 = vrot.slane %v9460_v0, 7 }
  0xd3   : > { %6333 = vmatprep.mubr.msk.bf16.mxu1 %vm947_vm1, %v8009_v40  ;;  %v8058_v51 = vpack.c.bf16 %v514_v32, %v512_v49  ;;  %v521_v40 = vrot.slane %v9458_v12, 7  ;;  %9461 = vst [vmem:[#allocation57_spill] sm:$0xff] %v8070_v29  ;;  %v9341_v49 = vunpack.c.l.bf16 %v7801_v43  ;;  %v516_v2 = vsel %vm503_vm2, %v513_v6, %v515_v4  ;;  %v8078_v12 = vld [vmem:[#allocation5 + $0x6] sm:$0x3] }
  0xd4   : > { %v519_v7 = vrot.slane %v9456_v10, 7  ;;  %v518_v10 = vsel %vm503_vm2, %v515_v4, %v517_v1  ;;  %v564_v53 = vsel %vm503_vm2, %v561_v16, %v563_v3  ;;  %v566_v36 = vsel %vm503_vm2, %v563_v3, %v565_v37  ;;  %v8086_v32 = vld [vmem:[#allocation5 + $0x6] sm:$0x3] }
  0xd5   : > { %9457 = vst [vmem:[#allocation56_spill] sm:$0xff] %v8058_v51  ;;  %v568_v0 = vsel %vm503_vm2, %v565_v37, %v567_v26  ;;  %v525_v3 = vrot.slane %v9340_v11, 7  ;;  %v571_v16 = vrot.slane %v9341_v49, 7 }
  0xd6   : > { %v520_v14 = vsel %vm503_vm2, %v517_v1, %v519_v7  ;;  %v522_v4 = vsel %vm503_vm2, %v519_v7, %v521_v40  ;;  %v8100_v1 = vpack.c.bf16 %v518_v10, %v516_v2  ;;  %v8106_v7 = vpack.c.bf16 %v566_v36, %v564_v53 }
  0xd7   : > { %v9466_v2 = vunpack.c.l.bf16 %v7806_v44  ;;  %v9469_v36 = vunpack.c.l.bf16 %v7815_v47 }
  0xd8   : > { %9462 = vst [vmem:[#allocation58_spill] sm:$0xff] %v8100_v1  ;;  %9463 = vst [vmem:[#allocation59_spill] sm:$0xff] %v8106_v7 }
  0xd9   : > { %6100 = vmatmul.mubr.msk.bf16.vlgmr.msra.gmra.mrb[0].mxu0 %vm947_vm1, %v8038_v38  ;;  %v573_v10 = vrot.slane %v9466_v2, 7  ;;  %v572_v2 = vsel %vm503_vm2, %v569_v5, %v571_v16 }
  0xda   : > { %6334 = vmatmul.mubr.msk.bf16.vlgmr.msra.gmra.mrb[0].mxu1 %vm947_vm1, %v8050_v54  ;;  %6124 = vmatpush3.bf16.msra.mxu0 %v1324_v9  ;;  %v570_v9 = vsel %vm503_vm2, %v567_v26, %v569_v5  ;;  %v8108_v26 = vpack.c.bf16 %v522_v4, %v520_v14  ;;  %v575_v14 = vrot.slane %v9469_v36, 7  ;;  %v9473_v5 = vunpack.c.l.bf16 %v7854_v56 }
  0xdb   : > { %6358 = vmatpush3.bf16.msra.mxu1 %v3432_v50  ;;  %6103 = vmatprep.mubr.msk.bf16.mxu0 %vm947_vm1, %v8058_v51  ;;  %v523_v50 = vrot.slane %v9337_v63, 7  ;;  %v8110_v37 = vpack.c.bf16 %v570_v9, %v568_v0  ;;  %v9467_v63 = vunpack.c.l.bf16 %v7809_v45  ;;  %v9470_v0 = vunpack.c.l.bf16 %v7818_v48 }
  0xdc   : > { %6337 = vmatprep.mubr.msk.bf16.mxu1 %vm947_vm1, %v8070_v29  ;;  %6926 = vmatprep.subr.msk.bf16.mxu0 %vm984_vm0, %v8078_v12  ;;  %9464 = vst [vmem:[#allocation60_spill] sm:$0xff] %v8108_v26  ;;  %v9468_v29 = vunpack.c.l.bf16 %v7812_v46  ;;  %v574_v49 = vsel %vm503_vm2, %v571_v16, %v573_v10  ;;  %v533_v16 = vrot.slane %v9473_v5, 7  ;;  %v9477_v9 = vunpack.c.l.bf16 %v7862_v58 }
  0xdd   : > { %6935 = vmatprep.subr.msk.bf16.mxu1 %vm984_vm0, %v8086_v32  ;;  %9465 = vst [vmem:[#allocation61_spill] sm:$0xff] %v8110_v37  ;;  %v527_v6 = vrot.slane %v9467_v63, 7  ;;  %v577_v4 = vrot.slane %v9470_v0, 7  ;;  %v524_v36 = vsel %vm503_vm2, %v521_v40, %v523_v50  ;;  %v526_v0 = vsel %vm503_vm2, %v523_v50, %v525_v3 }
  0xde   : > { %v529_v53 = vrot.slane %v9468_v29, 7  ;;  %v8150_v50 = vpack.c.bf16 %v526_v0, %v524_v36 }
  0xdf   : > { %v528_v63 = vsel %vm503_vm2, %v525_v3, %v527_v6  ;;  %v578_v40 = vsel %vm503_vm2, %v575_v14, %v577_v4 }
  0xe0   : > { %v530_v29 = vsel %vm503_vm2, %v527_v6, %v529_v53  ;;  %9471 = vst [vmem:[#allocation62_spill] sm:$0xff] %v8150_v50  ;;  %v9476_v6 = vunpack.c.l.bf16 %v7857_v57 }
  0xe1   : > { %6104 = vmatmul.mubr.msk.bf16.gmra.mrb[4].mxu0 %vm947_vm1, %v8100_v1  ;;  %v8156_v1 = vpack.c.bf16 %v574_v49, %v572_v2  ;;  %v8158_v3 = vpack.c.bf16 %v530_v29, %v528_v63  ;;  %v9481_v49 = vunpack.c.l.bf16 %v7871_v61  ;;  %v9482_v63 = vunpack.c.l.bf16 %v7874_v62 }
  0xe2   : > { %6338 = vmatmul.mubr.msk.bf16.gmra.mrb[4].mxu1 %vm947_vm1, %v8106_v7  ;;  %6107 = vmatprep.mubr.msk.bf16.mxu0 %vm947_vm1, %v8108_v26  ;;  %v576_v26 = vsel %vm503_vm2, %v573_v10, %v575_v14  ;;  %v579_v11 = vrot.slane %v9476_v6, 7  ;;  %v581_v10 = vrot.slane %v9477_v9, 7  ;;  %v9479_v14 = vunpack.c.l.bf16 %v7865_v59 }
  0xe3   : > { %6341 = vmatprep.mubr.msk.bf16.mxu1 %vm947_vm1, %v8110_v37  ;;  %v9472_v37 = vunpack.c.l.bf16 %v7851_v55  ;;  %9474 = vst [vmem:[#allocation63_spill] sm:$0xff] %v8156_v1  ;;  %9475 = vst [vmem:[#allocation64_spill] sm:$0xff] %v8158_v3  ;;  %v8164_v54 = vpack.c.bf16 %v578_v40, %v576_v26  ;;  %v583_v2 = vrot.slane %v9481_v49, 7  ;;  %v585_v29 = vrot.slane %v9482_v63, 7 }
  0xe4   : > { %v535_v36 = vrot.slane %v9479_v14, 7  ;;  %v580_v49 = vsel %vm503_vm2, %v577_v4, %v579_v11  ;;  %v582_v63 = vsel %vm503_vm2, %v579_v11, %v581_v10  ;;  %v9485_v26 = vunpack.c.l.bf16 %v7904_v17 }
  0xe5   : > { %v531_v7 = vrot.slane %v9472_v37, 7  ;;  %9478 = vst [vmem:[#allocation65_spill] sm:$0xff] %v8164_v54  ;;  %v9480_v37 = vunpack.c.l.bf16 %v7868_v60  ;;  %v584_v5 = vsel %vm503_vm2, %v581_v10, %v583_v2  ;;  %v8200_v11 = vpack.c.bf16 %v582_v63, %v580_v49 }
  0xe6   : > { %v9489_v6 = vunpack.c.l.bf16 %v7915_v27  ;;  %v9492_v49 = vunpack.c.l.bf16 %v7921_v8 }
  0xe7   : > { %v537_v0 = vrot.slane %v9480_v37, 7  ;;  %v532_v40 = vsel %vm503_vm2, %v529_v53, %v531_v7  ;;  %v534_v37 = vsel %vm503_vm2, %v531_v7, %v533_v16  ;;  %v536_v53 = vsel %vm503_vm2, %v533_v16, %v535_v36  ;;  %9484 = vst [vmem:[#allocation67_spill] sm:$0xff] %v8200_v11 }
  0xe8   : > { %v586_v7 = vsel %vm503_vm2, %v583_v2, %v585_v29  ;;  %v8198_v4 = vpack.c.bf16 %v534_v37, %v532_v40  ;;  %v589_v10 = vrot.slane %v9489_v6, 7  ;;  %v9490_v2 = vunpack.c.l.bf16 %v7918_v13 }
  0xe9   : > { %6108 = vmatmul.mubr.msk.bf16.gmra.mrb[8].mxu0 %vm947_vm1, %v8150_v50  ;;  %v538_v14 = vsel %vm503_vm2, %v535_v36, %v537_v0  ;;  %v9488_v36 = vunpack.c.l.bf16 %v7910_v20  ;;  %v8214_v37 = vpack.c.bf16 %v586_v7, %v584_v5  ;;  %v545_v63 = vrot.slane %v9492_v49, 7  ;;  %v9495_v7 = vld [vmem:[#allocation51_spill] sm:$0xff] }
  0xea   : > { %6342 = vmatmul.mubr.msk.bf16.gmra.mrb[8].mxu1 %vm947_vm1, %v8156_v1  ;;  %6111 = vmatprep.mubr.msk.bf16.mxu0 %vm947_vm1, %v8158_v3  ;;  %9483 = vst [vmem:[#allocation66_spill] sm:$0xff] %v8198_v4  ;;  %v539_v3 = vrot.slane %v9485_v26, 7  ;;  %v8206_v1 = vpack.c.bf16 %v538_v14, %v536_v53  ;;  %v543_v40 = vrot.slane %v9490_v2, 7  ;;  %v9493_v26 = vunpack.c.l.bf16 %v7928_v31 }
  0xeb   : > { %6345 = vmatprep.mubr.msk.bf16.mxu1 %vm947_vm1, %v8164_v54  ;;  %v9486_v54 = vunpack.c.l.bf16 %v7907_v19  ;;  %v587_v9 = vrot.slane %v9488_v36, 7  ;;  %9491 = vst [vmem:[#allocation69_spill] sm:$0xff] %v8214_v37  ;;  %v9371_v2 = vrot.slane %v8058_v51, 4 }
  0xec   : > { %9487 = vst [vmem:[#allocation68_spill] sm:$0xff] %v8206_v1  ;;  %v591_v50 = vrot.slane %v9493_v26, 7  ;;  %v540_v6 = vsel %vm503_vm2, %v537_v0, %v539_v3  ;;  %v546_v0 = vsel %vm503_vm2, %v543_v40, %v545_v63 }
  0xed   : > { %v541_v16 = vrot.slane %v9486_v54, 7  ;;  %v9494_v54 = vunpack.c.l.bf16 %v7931_v18  ;;  %v588_v49 = vsel %vm503_vm2, %v585_v29, %v587_v9  ;;  %v590_v26 = vsel %vm503_vm2, %v587_v9, %v589_v10  ;;  %v9504_v18 = vld [vmem:[#allocation24_spill] sm:$0xff] }
  0xee   : > { %v592_v36 = vsel %vm503_vm2, %v589_v10, %v591_v50  ;;  %v9503_v10 = vunpack.c.l.bf16 %v7974_v52  ;;  %v9505_v8 = vunpack.c.l.bf16 %v9504_v18 }
  0xef   : > { %v593_v14 = vrot.slane %v9494_v54, 7  ;;  %v542_v5 = vsel %vm503_vm2, %v539_v3, %v541_v16  ;;  %v544_v54 = vsel %vm503_vm2, %v541_v16, %v543_v40  ;;  %v1495_v3 = vrot.slane %v8038_v38, 4 }
  0xf0   : > { %v8245_v9 = vpack.c.bf16 %v542_v5, %v540_v6  ;;  %v8254_v38 = vpack.c.bf16 %v590_v26, %v588_v49  ;;  %v9507_v5 = vunpack.c.l.bf16 %v7983_v39 }
  0xf1   : > { %6112 = vmatmul.mubr.msk.bf16.gmra.mrb[12].mxu0 %vm947_vm1, %v8198_v4  ;;  %v594_v53 = vsel %vm503_vm2, %v591_v50, %v593_v14  ;;  %v8250_v16 = vsel %vm1494_vm3, %v1495_v3, %v9371_v2  ;;  %v8256_v4 = vpack.c.bf16 %v546_v0, %v544_v54  ;;  %v547_v50 = vrot.slane %v9503_v10, 7  ;;  %v9512_v54 = vld [vmem:[#allocation22_spill] sm:$0xff]  ;;  %v9514_v10 = vld [vmem:[#allocation23_spill] sm:$0xff] }
  0xf2   : > { %6346 = vmatmul.mubr.msk.bf16.gmra.mrb[12].mxu1 %vm947_vm1, %v8200_v11  ;;  %6115 = vmatprep.mubr.msk.bf16.mxu0 %vm947_vm1, %v8206_v1  ;;  %v9496_v1 = vld [vmem:[#allocation19_spill] sm:$0xff]  ;;  %9498 = vst [vmem:[#allocation51_spill] sm:$0xff] %v8245_v9  ;;  %9501 = vst [vmem:[#allocation70_spill] sm:$0xff] %v8254_v38  ;;  %v8262_v6 = vpack.c.bf16 %v594_v53, %v592_v36  ;;  %v595_v51 = vrot.slane %v9507_v5, 7  ;;  %v9508_v3 = vunpack.c.l.bf16 %v9495_v7  ;;  %v9513_v0 = vunpack.c.l.bf16 %v9512_v54  ;;  %v9516_v53 = vld [vmem:[#allocation50_spill] sm:$0xff] }
  0xf3   : > { %6349 = vmatprep.mubr.msk.bf16.mxu1 %vm947_vm1, %v8214_v37  ;;  %v9497_v29 = vunpack.c.l.bf16 %v9496_v1  ;;  %9499 = vst [vmem:[#allocation19_spill] sm:$0xff] %v8250_v16  ;;  %v9500_v40 = vunpack.c.h.bf16 %v9496_v1  ;;  %9502 = vst [vmem:[#allocation71_spill] sm:$0xff] %v8256_v4  ;;  %v9510_v1 = vld [vmem:[#allocation21_spill] sm:$0xff]  ;;  %v9515_v16 = vunpack.c.l.bf16 %v9514_v10  ;;  %v550_v36 = vsel %vm503_vm2, %v547_v50, %v9516_v53 }
  0xf4   : > { %9506 = vst [vmem:[#allocation24_spill] sm:$0xff] %v8262_v6  ;;  %v8268_v2 = vrot.slane %v9508_v3, 7  ;;  %v9511_v49 = vunpack.c.l.bf16 %v9510_v1 }
  0xf5   : > { %v694_v11 = vrot.slane %v9497_v29, 1  ;;  %v695_v37 = vrot.slane %v9500_v40, 1  ;;  %v697_v29 = vrot.slane %v9505_v8, 1  ;;  %v743_v40 = vrot.slane %v9513_v0, 1  ;;  %v9517_v0 = vld [vmem:[#allocation25_spill] sm:$0xff] }
  0xf6   : > { %9509 = vst [vmem:[#allocation72_spill] sm:$0xff] %v8268_v2  ;;  %v8272_v26 = vrot.slane %v9511_v49, 1  ;;  %v745_v18 = vrot.slane %v9515_v16, 1  ;;  %v548_v8 = vsel %vm503_vm2, %v545_v63, %v547_v50  ;;  %v596_v16 = vsel %vm503_vm2, %v593_v14, %v595_v51 }
  0xf7   : > { %v598_v5 = vsel %vm503_vm2, %v595_v51, %v8268_v2  ;;  %v696_v3 = vsel %vm693_vm4, %v694_v11, %v695_v37  ;;  %v698_v49 = vsel %vm693_vm4, %v695_v37, %v697_v29  ;;  %v9518_v10 = vunpack.c.l.bf16 %v9517_v0 }
  0xf8   : > { %v9519_v63 = vunpack.c.l.bf16 %v7721_v21  ;;  %v744_v50 = vsel %vm693_vm4, %v8272_v26, %v743_v40  ;;  %v746_v53 = vsel %vm693_vm4, %v743_v40, %v745_v18  ;;  %v9520_v14 = vunpack.c.l.bf16 %v7707_v15 }
  0xf9   : > { %6116 = vmatmul.mubr.msk.bf16.gmra.mrb[16].mxu0 %vm947_vm1, %v8245_v9  ;;  %v699_v54 = vrot.slane %v9518_v10, 1  ;;  %v9521_v51 = vunpack.c.l.bf16 %v7728_v23  ;;  %v8305_v11 = vpack.c.bf16 %v550_v36, %v548_v8  ;;  %v8307_v37 = vpack.c.bf16 %v598_v5, %v596_v16 }
  0xfa   : > { %6350 = vmatmul.mubr.msk.bf16.gmra.mrb[16].mxu1 %vm947_vm1, %v8254_v38  ;;  %6119 = vmatprep.mubr.msk.bf16.mxu0 %vm947_vm1, %v8256_v4  ;;  %v701_v1 = vrot.slane %v9519_v63, 1  ;;  %v857_v0 = vpack.c.bf16 %v698_v49, %v696_v3  ;;  %v8309_v10 = vpack.c.bf16 %v746_v53, %v744_v50  ;;  %v9522_v4 = vunpack.c.l.bf16 %v7724_v22  ;;  %v9526_v50 = vld [vmem:[#allocation28_spill] sm:$0xff] }
  0xfb   : > { %6353 = vmatprep.mubr.msk.bf16.mxu1 %vm947_vm1, %v8262_v6  ;;  %v747_v6 = vrot.slane %v9520_v14, 1  ;;  %v749_v2 = vrot.slane %v9521_v51, 1  ;;  %v700_v21 = vsel %vm693_vm4, %v697_v29, %v699_v54  ;;  %v9523_v15 = vunpack.c.l.bf16 %v7736_v25 }
  0xfc   : > { %v702_v63 = vsel %vm693_vm4, %v699_v54, %v701_v1  ;;  %v703_v40 = vrot.slane %v9522_v4, 1  ;;  %v9524_v36 = vunpack.c.l.bf16 %v7733_v24  ;;  %v9525_v29 = vunpack.c.l.bf16 %v7744_v28 }
  0xfd   : > { %v705_v14 = vrot.slane %v9523_v15, 1  ;;  %v748_v23 = vsel %vm693_vm4, %v745_v18, %v747_v6  ;;  %v750_v8 = vsel %vm693_vm4, %v747_v6, %v749_v2  ;;  %v8330_v4 = vpack.c.bf16 %v702_v63, %v700_v21  ;;  %v9529_v63 = vld [vmem:[#allocation29_spill] sm:$0xff] }
  0xfe   : > { %v751_v16 = vrot.slane %v9524_v36, 1  ;;  %v753_v5 = vrot.slane %v9525_v29, 1  ;;  %v8332_v54 = vpack.c.bf16 %v750_v8, %v748_v23  ;;  %v704_v6 = vsel %vm693_vm4, %v701_v1, %v703_v40 }
  0xff   : > { %v706_v18 = vsel %vm693_vm4, %v703_v40, %v705_v14  ;;  %v9527_v53 = vunpack.c.l.bf16 %v9526_v50  ;;  %v1557_v21 = vsel %vm984_vm0, %v8078_v12, 0  ;;  %v9530_v23 = vunpack.c.l.bf16 %v9529_v63 }
 0x100   : > { %v752_v3 = vsel %vm693_vm4, %v749_v2, %v751_v16  ;;  %v754_v49 = vsel %vm693_vm4, %v751_v16, %v753_v5  ;;  %v9531_v1 = vunpack.c.l.bf16 %v7765_v34  ;;  %v9532_v40 = vunpack.c.l.bf16 %v7762_v33 }
 0x101   : > { %6120 = vmatmul.mubr.msk.bf16.gmra.mrb[20].mxu0 %vm947_vm1, %v8305_v11  ;;  %v707_v51 = vrot.slane %v9527_v53, 1  ;;  %v755_v8 = vrot.slane %v9530_v23, 1  ;;  %v8350_v29 = vpack.c.bf16 %v706_v18, %v704_v6  ;;  %v9533_v16 = vunpack.c.l.bf16 %v7795_v41  ;;  %v8366_v41 = vld [vmem:[#allocation5 + $0x8] sm:$0x3] }
 0x102   : > { %6354 = vmatmul.mubr.msk.bf16.gmra.mrb[20].mxu1 %vm947_vm1, %v8307_v37  ;;  %6125 = vmatprep.mubr.msk.bf16.mxu0 %vm947_vm1, %v857_v0  ;;  %v9528_v0 = vunpack.c.l.bf16 %v7750_v30  ;;  %v757_v36 = vrot.slane %v9531_v1, 1  ;;  %v711_v2 = vrot.slane %v9532_v40, 1  ;;  %v9534_v30 = vunpack.c.l.bf16 %v7768_v35  ;;  %v8373_v6 = vld [vmem:[#allocation5 + $0x8] sm:$0x3] }
 0x103   : > { %6359 = vmatprep.mubr.msk.bf16.mxu1 %vm947_vm1, %v8309_v10  ;;  %v713_v50 = vrot.slane %v9533_v16, 1  ;;  %v3661_v63 = vsel %vm984_vm0, %v8086_v32, 0  ;;  %v8360_v23 = vpack.c.bf16 %v754_v49, %v752_v3  ;;  %v708_v33 = vsel %vm693_vm4, %v705_v14, %v707_v51 }
 0x104   : > { %v709_v15 = vrot.slane %v9528_v0, 1  ;;  %v759_v53 = vrot.slane %v9534_v30, 1  ;;  %v9535_v0 = vunpack.c.l.bf16 %v7801_v43  ;;  %v756_v35 = vsel %vm693_vm4, %v753_v5, %v755_v8 }
 0x105   : > { %v758_v43 = vsel %vm693_vm4, %v755_v8, %v757_v36  ;;  %v714_v14 = vsel %vm693_vm4, %v711_v2, %v713_v50  ;;  %v9538_v40 = vunpack.c.l.bf16 %v7806_v44  ;;  %v9539_v16 = vunpack.c.l.bf16 %v7815_v47 }
 0x106   : > { %v761_v12 = vrot.slane %v9535_v0, 1  ;;  %v710_v34 = vsel %vm693_vm4, %v707_v51, %v709_v15  ;;  %v712_v32 = vsel %vm693_vm4, %v709_v15, %v711_v2  ;;  %v760_v18 = vsel %vm693_vm4, %v757_v36, %v759_v53 }
 0x107   : > { %v8384_v5 = vpack.c.bf16 %v710_v34, %v708_v33  ;;  %v8386_v49 = vpack.c.bf16 %v758_v43, %v756_v35  ;;  %v9536_v51 = vunpack.c.l.bf16 %v7798_v42  ;;  %v8394_v1 = vpack.c.bf16 %v714_v14, %v712_v32 }
 0x108   : > { %v762_v3 = vsel %vm693_vm4, %v759_v53, %v761_v12  ;;  %v763_v2 = vrot.slane %v9538_v40, 1  ;;  %v765_v30 = vrot.slane %v9539_v16, 1  ;;  %v9540_v53 = vunpack.c.l.bf16 %v7812_v46 }
 0x109   : > { %6126 = vmatmul.mubr.msk.bf16.vlgmr.msra.gmra.mrb[0].mxu0 %vm947_vm1, %v8330_v4  ;;  %v715_v15 = vrot.slane %v9536_v51, 1  ;;  %v8396_v36 = vpack.c.bf16 %v762_v3, %v760_v18  ;;  %v9541_v0 = vunpack.c.l.bf16 %v7851_v55  ;;  %v9543_v34 = vunpack.c.l.bf16 %v7857_v57 }
 0x10a   : > { %6360 = vmatmul.mubr.msk.bf16.vlgmr.msra.gmra.mrb[0].mxu1 %vm947_vm1, %v8332_v54  ;;  %6150 = vmatpush3.bf16.msra.mxu0 %v1557_v21  ;;  %v9537_v21 = vunpack.c.l.bf16 %v7809_v45  ;;  %v719_v42 = vrot.slane %v9540_v53, 1  ;;  %v764_v46 = vsel %vm693_vm4, %v761_v12, %v763_v2  ;;  %v1939_v55 = vrot.slane %v8330_v4, 4 }
 0x10b   : > { %6384 = vmatpush3.bf16.msra.mxu1 %v3661_v63  ;;  %6129 = vmatprep.mubr.msk.bf16.mxu0 %vm947_vm1, %v8350_v29  ;;  %v721_v45 = vrot.slane %v9541_v0, 1  ;;  %v9542_v63 = vunpack.c.l.bf16 %v7818_v48  ;;  %v769_v35 = vrot.slane %v9543_v34, 1  ;;  %v716_v44 = vsel %vm693_vm4, %v713_v50, %v715_v15 }
 0x10c   : > { %6363 = vmatprep.mubr.msk.bf16.mxu1 %vm947_vm1, %v8360_v23  ;;  %6927 = vmatprep.subr.msk.bf16.mxu0 %vm984_vm0, %v8366_v41  ;;  %v717_v8 = vrot.slane %v9537_v21, 1  ;;  %v766_v48 = vsel %vm693_vm4, %v763_v2, %v765_v30  ;;  %v9377_v57 = vrot.slane %v8350_v29, 4  ;;  %v9544_v4 = vunpack.c.l.bf16 %v7854_v56 }
 0x10d   : > { %6936 = vmatprep.subr.msk.bf16.mxu1 %vm984_vm0, %v8373_v6  ;;  %v767_v33 = vrot.slane %v9542_v63, 1  ;;  %v722_v43 = vsel %vm693_vm4, %v719_v42, %v721_v45  ;;  %v8437_v51 = vpack.c.bf16 %v766_v48, %v764_v46  ;;  %v9546_v2 = vunpack.c.l.bf16 %v7862_v58 }
 0x10e   : > { %v718_v47 = vsel %vm693_vm4, %v715_v15, %v717_v8  ;;  %v720_v50 = vsel %vm693_vm4, %v717_v8, %v719_v42  ;;  %v8431_v12 = vsel %vm1494_vm3, %v1939_v55, %v9377_v57  ;;  %v723_v3 = vrot.slane %v9544_v4, 1 }
 0x10f   : > { %v768_v32 = vsel %vm693_vm4, %v765_v30, %v767_v33  ;;  %v770_v14 = vsel %vm693_vm4, %v767_v33, %v769_v35  ;;  %v8433_v18 = vpack.c.bf16 %v718_v47, %v716_v44  ;;  %v8439_v15 = vpack.c.bf16 %v722_v43, %v720_v50 }
 0x110   : > { %v8441_v21 = vpack.c.bf16 %v770_v14, %v768_v32  ;;  %v9545_v8 = vunpack.c.l.bf16 %v7865_v59  ;;  %v771_v16 = vrot.slane %v9546_v2, 1  ;;  %v9547_v30 = vunpack.c.l.bf16 %v7871_v61  ;;  %v9556_v2 = vld [vmem:[#allocation44_spill] sm:$0xff] }
 0x111   : > { %6130 = vmatmul.mubr.msk.bf16.gmra.mrb[4].mxu0 %vm947_vm1, %v8384_v5  ;;  %v9548_v42 = vunpack.c.l.bf16 %v7868_v60  ;;  %v9549_v56 = vunpack.c.l.bf16 %v7904_v17  ;;  %v9550_v33 = vunpack.c.l.bf16 %v7874_v62  ;;  %v9551_v44 = vunpack.c.l.bf16 %v7910_v20 }
 0x112   : > { %6364 = vmatmul.mubr.msk.bf16.gmra.mrb[4].mxu1 %vm947_vm1, %v8386_v49  ;;  %6133 = vmatprep.mubr.msk.bf16.mxu0 %vm947_vm1, %v8394_v1  ;;  %v725_v40 = vrot.slane %v9545_v8, 1  ;;  %v773_v53 = vrot.slane %v9547_v30, 1  ;;  %v724_v58 = vsel %vm693_vm4, %v721_v45, %v723_v3  ;;  %v772_v60 = vsel %vm693_vm4, %v769_v35, %v771_v16 }
 0x113   : > { %6367 = vmatprep.mubr.msk.bf16.mxu1 %vm947_vm1, %v8396_v36  ;;  %v727_v0 = vrot.slane %v9548_v42, 1  ;;  %v729_v63 = vrot.slane %v9549_v56, 1  ;;  %v775_v34 = vrot.slane %v9550_v33, 1  ;;  %v777_v47 = vrot.slane %v9551_v44, 1  ;;  %v9559_v42 = vld [vmem:[#allocation45_spill] sm:$0xff] }
 0x114   : > { %v726_v59 = vsel %vm693_vm4, %v723_v3, %v725_v40  ;;  %v774_v61 = vsel %vm693_vm4, %v771_v16, %v773_v53  ;;  %v9552_v45 = vunpack.c.l.bf16 %v7907_v19  ;;  %v9553_v35 = vunpack.c.l.bf16 %v7918_v13 }
 0x115   : > { %v728_v62 = vsel %vm693_vm4, %v725_v40, %v727_v0  ;;  %v730_v17 = vsel %vm693_vm4, %v727_v0, %v729_v63  ;;  %v776_v20 = vsel %vm693_vm4, %v773_v53, %v775_v34  ;;  %v778_v46 = vsel %vm693_vm4, %v775_v34, %v777_v47  ;;  %v8498_v34 = vld [vmem:[%s7656_s15 + $0xc0] sm:$0xf] }
 0x116   : > { %v8473_v48 = vpack.c.bf16 %v726_v59, %v724_v58  ;;  %v731_v55 = vrot.slane %v9552_v45, 1  ;;  %v8477_v50 = vpack.c.bf16 %v774_v61, %v772_v60  ;;  %v8479_v43 = vpack.c.bf16 %v730_v17, %v728_v62  ;;  %v9562_v62 = vld [vmem:[#allocation20_spill] sm:$0xff] }
 0x117   : > { %v733_v32 = vrot.slane %v9553_v35, 1  ;;  %v9554_v14 = vunpack.c.l.bf16 %v7915_v27  ;;  %v8485_v3 = vpack.c.bf16 %v778_v46, %v776_v20  ;;  %v9555_v8 = vunpack.c.l.bf16 %v7928_v31 }
 0x118   : > { %v9557_v16 = vunpack.c.l.bf16 %v9556_v2  ;;  %v9558_v19 = vunpack.c.l.bf16 %v7974_v52  ;;  %v9560_v0 = vunpack.c.l.bf16 %v9559_v42  ;;  %v9561_v13 = vunpack.c.l.bf16 %v7983_v39  ;;  %v9567_v42 = vld [vmem:[#allocation58_spill] sm:$0xff] }
 0x119   : > { %6134 = vmatmul.mubr.msk.bf16.gmra.mrb[8].mxu0 %vm947_vm1, %v8433_v18  ;;  %v779_v4 = vrot.slane %v9554_v14, 1  ;;  %v781_v40 = vrot.slane %v9555_v8, 1  ;;  %v732_v31 = vsel %vm693_vm4, %v729_v63, %v731_v55  ;;  %v734_v27 = vsel %vm693_vm4, %v731_v55, %v733_v32 }
 0x11a   : > { %6368 = vmatmul.mubr.msk.bf16.gmra.mrb[8].mxu1 %vm947_vm1, %v8437_v51  ;;  %6137 = vmatprep.mubr.msk.bf16.mxu0 %vm947_vm1, %v8439_v15  ;;  %v735_v30 = vrot.slane %v9557_v16, 1  ;;  %v737_v53 = vrot.slane %v9558_v19, 1  ;;  %v783_v56 = vrot.slane %v9560_v0, 1  ;;  %v785_v33 = vrot.slane %v9561_v13, 1  ;;  %v9566_v16 = vld [vmem:[#allocation57_spill] sm:$0xff]  ;;  %v9569_v13 = vld [vmem:[#allocation59_spill] sm:$0xff] }
 0x11b   : > { %6371 = vmatprep.mubr.msk.bf16.mxu1 %vm947_vm1, %v8441_v21  ;;  %v780_v52 = vsel %vm693_vm4, %v777_v47, %v779_v4  ;;  %v782_v39 = vsel %vm693_vm4, %v779_v4, %v781_v40  ;;  %v9379_v59 = vunpack.c.l.bf16 %v8498_v34  ;;  %v8517_v63 = vpack.c.bf16 %v734_v27, %v732_v31  ;;  %v9570_v31 = vld [vmem:[#allocation60_spill] sm:$0xff] }
 0x11c   : > { %v736_v44 = vsel %vm693_vm4, %v733_v32, %v735_v30  ;;  %v738_v58 = vsel %vm693_vm4, %v735_v30, %v737_v53  ;;  %v784_v60 = vsel %vm693_vm4, %v781_v40, %v783_v56  ;;  %v786_v61 = vsel %vm693_vm4, %v783_v56, %v785_v33  ;;  %v9565_v40 = vld [vmem:[#allocation55_spill] sm:$0xff] }
 0x11d   : > { %v9563_v17 = vunpack.c.l.bf16 %v9562_v62  ;;  %v8521_v20 = vpack.c.bf16 %v782_v39, %v780_v52  ;;  %v8523_v46 = vpack.c.bf16 %v738_v58, %v736_v44  ;;  %v8525_v45 = vpack.c.bf16 %v786_v61, %v784_v60  ;;  %v9568_v56 = vld [vmem:[#allocation19_spill] sm:$0xff]  ;;  %v8564_v52 = vld [vmem:[%s7656_s15 + $0xc4] sm:$0xf]  ;;  %v9573_v61 = vld [vmem:[#allocation56_spill] sm:$0xff] }
 0x11e   : > { %v9564_v55 = vunpack.c.l.bf16 %v9495_v7  ;;  %v789_v32 = vrot.slane %v9379_v59, 1  ;;  %v9378_v2 = vrot.slane %v9565_v40, 4  ;;  %v3600_v30 = vrot.slane %v9566_v16, 4  ;;  %v8567_v39 = vld [vmem:[%s7656_s15 + $0xc8] sm:$0xf]  ;;  %v9571_v44 = vld [vmem:[#allocation61_spill] sm:$0xff] }
 0x11f   : > { %v739_v47 = vrot.slane %v9563_v17, 1  ;;  %v1498_v0 = vrot.slane %v9567_v42, 4  ;;  %v1500_v27 = vrot.slane %v9570_v31, 4  ;;  %v3604_v58 = vrot.slane %v9571_v44, 4  ;;  %v8571_v60 = vld [vmem:[%s7656_s15 + $0xcc] sm:$0xf] }
 0x120   : > { %v787_v35 = vrot.slane %v9564_v55, 1  ;;  %9572 = vst [vmem:[#allocation50_spill] sm:$0xff] %v8571_v60  ;;  %v9574_v17 = vrot.slane %v9573_v61, 4  ;;  %v9579_v16 = vld [vmem:[#allocation64_spill] sm:$0xff] }
 0x121   : > { %6138 = vmatmul.mubr.msk.bf16.gmra.mrb[12].mxu0 %vm947_vm1, %v8473_v48  ;;  %v740_v14 = vsel %vm693_vm4, %v737_v53, %v739_v47  ;;  %v742_v4 = vsel %vm693_vm4, %v739_v47, %v8272_v26  ;;  %v3601_v26 = vsel %vm1494_vm3, %v9378_v2, %v3600_v30  ;;  %v1504_v44 = vrot.slane %v9579_v16, 4 }
 0x122   : > { %6372 = vmatmul.mubr.msk.bf16.gmra.mrb[12].mxu1 %vm947_vm1, %v8477_v50  ;;  %6141 = vmatprep.mubr.msk.bf16.mxu0 %vm947_vm1, %v8479_v43  ;;  %v788_v7 = vsel %vm693_vm4, %v785_v33, %v787_v35  ;;  %v790_v8 = vsel %vm693_vm4, %v787_v35, %v789_v32  ;;  %v8546_v19 = vpack.c.bf16 %v742_v4, %v740_v14  ;;  %v3602_v33 = vrot.slane %v9569_v13, 4 }
 0x123   : > { %6375 = vmatprep.mubr.msk.bf16.mxu1 %vm947_vm1, %v8485_v3  ;;  %v8548_v53 = vpack.c.bf16 %v790_v8, %v788_v7  ;;  %v1499_v47 = vsel %vm1494_vm3, %v9574_v17, %v1498_v0  ;;  %v1769_v35 = vsel %vm984_vm0, %v8366_v41, 0  ;;  %v440_v14 = vunpack.c.l.bf16 %v8564_v52  ;;  %v8582_v7 = vld [vmem:[%s7656_s15 + $0xd0] sm:$0xff]   ;;  %v8591_v41 = vld [vmem:[#allocation5 + $0xa] sm:$0x3] }
 0x124   : > { %v3603_v55 = vsel %vm1494_vm3, %v3600_v30, %v3602_v33  ;;  %v9381_v4 = vunpack.c.l.bf16 %v8567_v39  ;;  %9575 = vst [vmem:[#allocation25_spill] sm:$0xff] %v8582_v7  ;;  %v3872_v8 = vsel %vm984_vm0, %v8373_v6, 0  ;;  %v9382_v61 = vunpack.c.l.bf16 %v8582_v7  ;;  %v9576_v6 = vld [vmem:[#allocation62_spill] sm:$0xff] }
 0x125   : > { %v3605_v30 = vsel %vm1494_vm3, %v3602_v33, %v3604_v58  ;;  %v791_v17 = vrot.slane %v440_v14, 1  ;;  %v1502_v2 = vrot.slane %v9576_v6, 4  ;;  %v9578_v33 = vld [vmem:[#allocation63_spill] sm:$0xff] }
 0x126   : > { %v793_v57 = vrot.slane %v9381_v4, 1 }
 0x127   : > { %v792_v4 = vsel %vm693_vm4, %v789_v32, %v791_v17  ;;  %v1503_v32 = vsel %vm1494_vm3, %v1500_v27, %v1502_v2  ;;  %v1505_v7 = vsel %vm1494_vm3, %v1502_v2, %v1504_v44 }
 0x129   : > { %6142 = vmatmul.mubr.msk.bf16.gmra.mrb[16].mxu0 %vm947_vm1, %v8517_v63 }
 0x12a   : > { %6376 = vmatmul.mubr.msk.bf16.gmra.mrb[16].mxu1 %vm947_vm1, %v8521_v20  ;;  %6145 = vmatprep.mubr.msk.bf16.mxu0 %vm947_vm1, %v8523_v46 }
 0x12b   : > { %6379 = vmatprep.mubr.msk.bf16.mxu1 %vm947_vm1, %v8525_v45 }
 0x131   : > { %6146 = vmatmul.mubr.msk.bf16.gmra.mrb[20].mxu0 %vm947_vm1, %v8546_v19 }
 0x132   : > { %6380 = vmatmul.mubr.msk.bf16.gmra.mrb[20].mxu1 %vm947_vm1, %v8548_v53  ;;  %6151 = vmatprep.mubr.msk.bf16.mxu0 %vm947_vm1, %v9568_v56  ;;  %v442_v56 = vunpack.c.l.bf16 %v8571_v60  ;;  %v8601_v60 = vrot.slane %v9382_v61, 1 }
 0x133   : > { %6385 = vmatprep.mubr.msk.bf16.mxu1 %vm947_vm1, %v3601_v26  ;;  %v1501_v26 = vsel %vm1494_vm3, %v1498_v0, %v1500_v27  ;;  %v8597_v0 = vld [vmem:[#allocation5 + $0xa] sm:$0x3] }
 0x134   : > { %v795_v59 = vrot.slane %v442_v56, 1  ;;  %9577 = vst [vmem:[#allocation28_spill] sm:$0xff] %v8601_v60 }
 0x139   : > { %6152 = vmatmul.mubr.msk.bf16.vlgmr.msra.gmra.mrb[0].mxu0 %vm947_vm1, %v1499_v47  ;;  %v3606_v47 = vrot.slane %v9578_v33, 4 }
 0x13a   : > { %6386 = vmatmul.mubr.msk.bf16.vlgmr.msra.gmra.mrb[0].mxu1 %vm947_vm1, %v3603_v55  ;;  %6176 = vmatpush3.bf16.msra.mxu0 %v1769_v35  ;;  %v794_v55 = vsel %vm693_vm4, %v791_v17, %v793_v57  ;;  %v9580_v35 = vld [vmem:[#allocation65_spill] sm:$0xff] }
 0x13b   : > { %6410 = vmatpush3.bf16.msra.mxu1 %v3872_v8  ;;  %6155 = vmatprep.mubr.msk.bf16.mxu0 %vm947_vm1, %v1501_v26  ;;  %v3608_v6 = vrot.slane %v9580_v35, 4  ;;  %v8612_v61 = vpack.c.bf16 %v794_v55, %v792_v4  ;;  %v796_v8 = vsel %vm693_vm4, %v793_v57, %v795_v59  ;;  %v798_v26 = vsel %vm693_vm4, %v795_v59, %v8601_v60  ;;  %v9581_v57 = vld [vmem:[#allocation66_spill] sm:$0xff]  ;;  %v9582_v59 = vld [vmem:[#allocation67_spill] sm:$0xff]  ;;  %v9583_v55 = vld [vmem:[#allocation68_spill] sm:$0xff] }
 0x13c   : > { %6389 = vmatprep.mubr.msk.bf16.mxu1 %vm947_vm1, %v3605_v30  ;;  %6928 = vmatprep.subr.msk.bf16.mxu0 %vm984_vm0, %v8591_v41  ;;  %v8620_v17 = vpack.c.bf16 %v798_v26, %v796_v8  ;;  %v3607_v30 = vsel %vm1494_vm3, %v3604_v58, %v3606_v47  ;;  %v1506_v4 = vrot.slane %v9581_v57, 4  ;;  %v3610_v27 = vrot.slane %v9582_v59, 4  ;;  %v9584_v26 = vld [vmem:[#allocation69_spill] sm:$0xff]  ;;  %v9588_v59 = vld [vmem:[#allocation72_spill] sm:$0xff] }
 0x13d   : > { %6937 = vmatprep.subr.msk.bf16.mxu1 %vm984_vm0, %v8597_v0  ;;  %v3609_v35 = vsel %vm1494_vm3, %v3606_v47, %v3608_v6  ;;  %v1508_v8 = vrot.slane %v9583_v55, 4  ;;  %v3612_v58 = vrot.slane %v9584_v26, 4  ;;  %v1510_v26 = vrot.slane %v8245_v9, 4  ;;  %v9587_v55 = vld [vmem:[#allocation24_spill] sm:$0xff] }
 0x13e   : > { %v1507_v2 = vsel %vm1494_vm3, %v1504_v44, %v1506_v4  ;;  %v3611_v47 = vsel %vm1494_vm3, %v3608_v6, %v3610_v27  ;;  %v3614_v44 = vrot.slane %v8254_v38, 4  ;;  %v9586_v6 = vld [vmem:[#allocation71_spill] sm:$0xff]  ;;  %v9589_v38 = vunpack.c.l.bf16 %v8567_v39 }
 0x13f   : > { %v8658_v57 = vrot.slane %v442_v56, 7 }
 0x141   : > { %6156 = vmatmul.mubr.msk.bf16.gmra.mrb[4].mxu0 %vm947_vm1, %v1503_v32  ;;  %v1509_v32 = vsel %vm1494_vm3, %v1506_v4, %v1508_v8  ;;  %v1512_v4 = vrot.slane %v9586_v6, 4  ;;  %v603_v6 = vrot.slane %v9589_v38, 7 }
 0x142   : > { %6390 = vmatmul.mubr.msk.bf16.gmra.mrb[4].mxu1 %vm947_vm1, %v3607_v30  ;;  %6159 = vmatprep.mubr.msk.bf16.mxu0 %vm947_vm1, %v1505_v7  ;;  %v3613_v30 = vsel %vm1494_vm3, %v3610_v27, %v3612_v58  ;;  %v9585_v7 = vunpack.c.l.bf16 %v8498_v34  ;;  %v3616_v27 = vrot.slane %v9587_v55, 4 }
 0x143   : > { %6393 = vmatprep.mubr.msk.bf16.mxu1 %vm947_vm1, %v3609_v35  ;;  %v601_v35 = vrot.slane %v440_v14, 7  ;;  %v1511_v14 = vsel %vm1494_vm3, %v1508_v8, %v1510_v26  ;;  %v9590_v8 = vld [vmem:[#allocation54_spill] sm:$0xff] }
 0x144   : > { %v599_v60 = vrot.slane %v9585_v7, 7  ;;  %v3617_v9 = vsel %vm1494_vm3, %v3614_v44, %v3616_v27 }
 0x145   : > { %v604_v56 = vsel %vm503_vm2, %v601_v35, %v603_v6 }
 0x146   : > { %v602_v7 = vsel %vm503_vm2, %v599_v60, %v601_v35 }
 0x149   : > { %6160 = vmatmul.mubr.msk.bf16.gmra.mrb[8].mxu0 %vm947_vm1, %v1507_v2  ;;  %v600_v2 = vsel %vm503_vm2, %v9588_v59, %v599_v60  ;;  %v1514_v60 = vrot.slane %v8305_v11, 4  ;;  %v3618_v59 = vrot.slane %v8307_v37, 4 }
 0x14a   : > { %6394 = vmatmul.mubr.msk.bf16.gmra.mrb[8].mxu1 %vm947_vm1, %v3611_v47  ;;  %6163 = vmatprep.mubr.msk.bf16.mxu0 %vm947_vm1, %v1509_v32  ;;  %v3615_v47 = vsel %vm1494_vm3, %v3612_v58, %v3614_v44  ;;  %v1513_v32 = vsel %vm1494_vm3, %v1510_v26, %v1512_v4  ;;  %v1516_v26 = vrot.slane %v9590_v8, 4  ;;  %v606_v58 = vsel %vm503_vm2, %v603_v6, %v8658_v57 }
 0x14b   : > { %6397 = vmatprep.mubr.msk.bf16.mxu1 %vm947_vm1, %v3613_v30  ;;  %v8654_v30 = vpack.c.bf16 %v602_v7, %v600_v2  ;;  %v1515_v44 = vsel %vm1494_vm3, %v1512_v4, %v1514_v60  ;;  %v3619_v2 = vsel %vm1494_vm3, %v3616_v27, %v3618_v59  ;;  %v8674_v7 = vpack.c.bf16 %v606_v58, %v604_v56  ;;  %v7102_v27 = vld [vmem:[%s7656_s15 + $0xc] sm:$0xf]  ;;  %v7105_v56 = vld [vmem:[%s7656_s15 + $0x70] sm:$0xf] }
 0x14c   : > { %v9591_v6 = vrot.slane %v9565_v40, 4 }
 0x14d   : > { %v3620_v38 = vrot.slane %v8654_v30, 4  ;;  %v3622_v35 = vrot.slane %v8674_v7, 4 }
 0x14e   : > { %v1519_v4 = vsel %vm1494_vm3, %v1516_v26, %v9591_v6 }
 0x151   : > { %6164 = vmatmul.mubr.msk.bf16.gmra.mrb[12].mxu0 %vm947_vm1, %v1511_v14  ;;  %v3621_v14 = vsel %vm1494_vm3, %v3618_v59, %v3620_v38  ;;  %v7104_v59 = vld [vmem:[%s7656_s15 + $0x6c] sm:$0xf] }
 0x152   : > { %6398 = vmatmul.mubr.msk.bf16.gmra.mrb[12].mxu1 %vm947_vm1, %v3615_v47  ;;  %6167 = vmatprep.mubr.msk.bf16.mxu0 %vm947_vm1, %v1513_v32  ;;  %v7103_v47 = vld [vmem:[%s7656_s15 + $0x10] sm:$0xf]  ;;  %v5542_v58 = vcombine.low %v7104_v59, %v7105_v56 }
 0x153   : > { %6401 = vmatprep.mubr.msk.bf16.mxu1 %vm947_vm1, %v3617_v9  ;;  %v1517_v9 = vsel %vm1494_vm3, %v1514_v60, %v1516_v26  ;;  %v5386_v32 = vcombine.low %v7102_v27, %v7103_v47  ;;  %v3623_v60 = vsel %vm1494_vm3, %v3620_v38, %v3622_v35  ;;  %v2001_v26 = vsel %vm984_vm0, %v8591_v41, 0  ;;  %v7109_v35 = vld [vmem:[%s7656_s15 + $0x80] sm:$0xf]  ;;  %v8706_v41 = vld [vmem:[#allocation5 + $0xc] sm:$0x3] }
 0x154   : > { %v4101_v38 = vsel %vm984_vm0, %v8597_v0, 0  ;;  %v9593_v27 = vcombine.low %v7733_v24, %v7744_v28  ;;  %v8712_v0 = vld [vmem:[#allocation5 + $0xc] sm:$0x3]  ;;  %v7115_v59 = vld [vmem:[%s7656_s15 + $0x30] sm:$0xf] }
 0x155   : > { %v7112_v24 = vld [vmem:[%s7656_s15 + $0x84] sm:$0xf]  ;;  %v7113_v28 = vld [vmem:[%s7656_s15 + $0x88] sm:$0xf] }
 0x159   : > { %6168 = vmatmul.mubr.msk.bf16.gmra.mrb[16].mxu0 %vm947_vm1, %v1515_v44  ;;  %v7106_v44 = vld [vmem:[%s7656_s15 + $0x1c] sm:$0xf] }
 0x15a   : > { %6402 = vmatmul.mubr.msk.bf16.gmra.mrb[16].mxu1 %vm947_vm1, %v3619_v2  ;;  %6171 = vmatprep.mubr.msk.bf16.mxu0 %vm947_vm1, %v1517_v9  ;;  %v7107_v2 = vld [vmem:[%s7656_s15 + $0x20] sm:$0xf] }
 0x15b   : > { %6405 = vmatprep.mubr.msk.bf16.mxu1 %vm947_vm1, %v3621_v14  ;;  %v5388_v9 = vcombine.low %v7106_v44, %v7107_v2  ;;  %v7108_v14 = vld [vmem:[%s7656_s15 + $0x7c] sm:$0xf] }
 0x15c   : > { %v5544_v6 = vcombine.low %v7108_v14, %v7109_v35  ;;  %v2788_v2 = vld [vmem:[#allocation7 + $0x10] sm:$0xff]  ;;  %v7118_v14 = vld [vmem:[%s7656_s15 + $0x34] sm:$0xf] }
 0x15d   : > { %v7119_v35 = vld [vmem:[%s7656_s15 + $0x38] sm:$0xf] }
 0x161   : > { %6172 = vmatmul.mubr.msk.bf16.gmra.mrb[20].mxu0 %vm947_vm1, %v1519_v4  ;;  %v9592_v4 = vcombine.low %v7724_v22, %v7736_v25  ;;  %v7110_v22 = vld [vmem:[%s7656_s15 + $0x24] sm:$0xf]  ;;  %v7111_v25 = vld [vmem:[%s7656_s15 + $0x28] sm:$0xf] }
 0x162   : > { %6406 = vmatmul.mubr.msk.bf16.gmra.mrb[20].mxu1 %vm947_vm1, %v3623_v60  ;;  %6177 = vmatprep.mubr.msk.bf16.mxu0 %vm947_vm1, %v5386_v32  ;;  %v5389_v47 = vcombine.low %v7110_v22, %v7111_v25  ;;  %v5545_v32 = vcombine.low %v7112_v24, %v7113_v28  ;;  %v7114_v60 = vld [vmem:[%s7656_s15 + $0x2c] sm:$0xf]  ;;  %v7121_v22 = vld [vmem:[%s7656_s15 + $0x98] sm:$0xf]  ;;  %v7123_v24 = vld [vmem:[%s7656_s15 + $0x40] sm:$0xf] }
 0x163   : > { %6411 = vmatprep.mubr.msk.bf16.mxu1 %vm947_vm1, %v5542_v58  ;;  %v5390_v56 = vcombine.low %v7114_v60, %v7115_v59  ;;  %v7116_v58 = vld [vmem:[%s7656_s15 + $0x8c] sm:$0xf]  ;;  %v7124_v60 = vld [vmem:[%s7656_s15 + $0x9c] sm:$0xf]  ;;  %v7125_v59 = vld [vmem:[%s7656_s15 + $0xa0] sm:$0xf] }
 0x169   : > { %6178 = vmatmul.mubr.msk.bf16.vlgmr.msra.gmra.mrb[0].mxu0 %vm947_vm1, %v9592_v4  ;;  %v2789_v4 = vld [vmem:[#allocation7 + $0x18] sm:$0xff] }
 0x16a   : > { %6412 = vmatmul.mubr.msk.bf16.vlgmr.msra.gmra.mrb[0].mxu1 %vm947_vm1, %v9593_v27  ;;  %6202 = vmatpush3.bf16.msra.mxu0 %v2001_v26  ;;  %v7117_v26 = vld [vmem:[%s7656_s15 + $0x90] sm:$0xf]  ;;  %v7120_v27 = vld [vmem:[%s7656_s15 + $0x94] sm:$0xf] }
 0x16b   : > { %6436 = vmatpush3.bf16.msra.mxu1 %v4101_v38  ;;  %6181 = vmatprep.mubr.msk.bf16.mxu0 %vm947_vm1, %v5388_v9  ;;  %v5546_v44 = vcombine.low %v7116_v58, %v7117_v26  ;;  %v2786_v9 = vld [vmem:[#allocation7] sm:$0xff]  ;;  %v7400_v38 = vmov 0   ;;  %v5547_v25 = vcombine.low %v7120_v27, %v7121_v22  ;;  %v2791_v58 = vld [vmem:[#allocation7 + $0x28] sm:$0xff] }
 0x16c   : > { %6415 = vmatprep.mubr.msk.bf16.mxu1 %vm947_vm1, %v5544_v6  ;;  %6929 = vmatprep.subr.msk.bf16.mxu0 %vm984_vm0, %v8706_v41  ;;  %v5391_v6 = vcombine.low %v7118_v14, %v7119_v35  ;;  %v2790_v26 = vld [vmem:[#allocation7 + $0x20] sm:$0xff]  ;;  %v7128_v14 = vld [vmem:[%s7656_s15 + $0xa4] sm:$0xf] }
 0x16d   : > { %6938 = vmatprep.subr.msk.bf16.mxu1 %vm984_vm0, %v8712_v0  ;;  %7048 = vset.pattern.permute.xlu1 %v7400_v38  ;;  %v7129_v35 = vld [vmem:[%s7656_s15 + $0xa8] sm:$0xf]  ;;  %v7131_v27 = vld [vmem:[%s7656_s15 + $0x50] sm:$0xf] }
 0x16e   : > { %7047 = vset.pattern.permute.xlu0 %v7400_v38  ;;  %2822 = vperm.xlu1 %7048, %v2788_v2   ;;  %v7127_v2 = vld [vmem:[%s7656_s15 + $0x48] sm:$0xf] }
 0x16f   : > { %2812 = vperm.xlu0 %7047, %v2786_v9   ;;  %v2793_v38 = vld [vmem:[#allocation7 + $0x38] sm:$0xff] }
 0x171   : > { %6182 = vmatmul.mubr.msk.bf16.gmra.mrb[4].mxu0 %vm947_vm1, %v5389_v47  ;;  %v7122_v47 = vld [vmem:[%s7656_s15 + $0x3c] sm:$0xf] }
 0x172   : > { %6416 = vmatmul.mubr.msk.bf16.gmra.mrb[4].mxu1 %vm947_vm1, %v5545_v32  ;;  %6185 = vmatprep.mubr.msk.bf16.mxu0 %vm947_vm1, %v5390_v56  ;;  %v5392_v28 = vcombine.low %v7122_v47, %v7123_v24  ;;  %v2787_v32 = vld [vmem:[#allocation7 + $0x8] sm:$0xff]  ;;  %v5548_v56 = vcombine.low %v7124_v60, %v7125_v59  ;;  %v7132_v47 = vld [vmem:[%s7656_s15 + $0xac] sm:$0xf] }
 0x173   : > { %6419 = vmatprep.mubr.msk.bf16.mxu1 %vm947_vm1, %v5546_v44  ;;  %2827 = vperm.xlu1 %7048, %v2789_v4   ;;  %v7126_v44 = vld [vmem:[%s7656_s15 + $0x44] sm:$0xf]  ;;  %v7130_v4 = vld [vmem:[%s7656_s15 + $0x4c] sm:$0xf]  ;;  %v7133_v24 = vld [vmem:[%s7656_s15 + $0xb0] sm:$0xf] }
 0x174   : > { %2817 = vperm.xlu0 %7047, %v2787_v32   ;;  %v5393_v9 = vcombine.low %v7126_v44, %v7127_v2  ;;  %v5394_v22 = vcombine.low %v7130_v4, %v7131_v27  ;;  %v2795_v32 = vld [vmem:[#allocation7 + $0x48] sm:$0xff]  ;;  %v2794_v60 = vld [vmem:[#allocation7 + $0x40] sm:$0xff] }
 0x175   : > { %v7134_v59 = vld [vmem:[%s7656_s15 + $0x54] sm:$0xf]  ;;  %v7137_v2 = vld [vmem:[%s7656_s15 + $0xb8] sm:$0xf] }
 0x176   : > { %v7136_v44 = vld [vmem:[%s7656_s15 + $0xb4] sm:$0xf] }
 0x177   : > { %2837 = vperm.xlu1 %7048, %v2791_v58   ;;  %v2799_v27 = vld [vmem:[#allocation7 + $0x68] sm:$0xff] }
 0x178   : > { %2832 = vperm.xlu0 %7047, %v2790_v26   ;;  %v2797_v26 = vld [vmem:[#allocation7 + $0x58] sm:$0xff] }
 0x179   : > { %6186 = vmatmul.mubr.msk.bf16.gmra.mrb[8].mxu0 %vm947_vm1, %v5391_v6  ;;  %v5549_v6 = vcombine.low %v7128_v14, %v7129_v35  ;;  %v7138_v14 = vld [vmem:[%s7656_s15 + $0xbc] sm:$0xf] }
 0x17a   : > { %6420 = vmatmul.mubr.msk.bf16.gmra.mrb[8].mxu1 %vm947_vm1, %v5547_v25  ;;  %6189 = vmatprep.mubr.msk.bf16.mxu0 %vm947_vm1, %v5392_v28  ;;  %v2792_v25 = vld [vmem:[#allocation7 + $0x30] sm:$0xff]  ;;  %v5550_v28 = vcombine.low %v7132_v47, %v7133_v24  ;;  %v5552_v35 = vcombine.low %v7138_v14, %v8498_v34  ;;  %v4040_v47 = vrot.slane %v8360_v23, 4  ;;  %v2801_v24 = vld [vmem:[#allocation7 + $0x78] sm:$0xff] }
 0x17b   : > { %6423 = vmatprep.mubr.msk.bf16.mxu1 %vm947_vm1, %v5548_v56  ;;  %2847 = vperm.xlu1 %7048, %v2793_v38   ;;  %v7135_v56 = vld [vmem:[%s7656_s15 + $0x58] sm:$0xf]  ;;  %v5551_v38 = vcombine.low %v7136_v44, %v7137_v2  ;;  %v4883_v44 = vld [vmem:[#allocation7 + $0xc0] sm:$0xff]  ;;  %v4042_v2 = vrot.slane %v8386_v49, 4  ;;  %v4886_v14 = vld [vmem:[#allocation7 + $0xd8] sm:$0xff] }
 0x17c   : > { %2842 = vperm.xlu0 %7047, %v2792_v25   ;;  %v5395_v58 = vcombine.low %v7134_v59, %v7135_v56  ;;  %v1962_v25 = vrot.slane %v8332_v54, 4  ;;  %v9597_v59 = vld [vmem:[#allocation23_spill] sm:$0xff] }
 0x17f   : > { %2857 = vperm.xlu1 %7048, %v2795_v32   ;;  %v2800_v32 = vld [vmem:[#allocation7 + $0x70] sm:$0xff] }
 0x180   : > { %2852 = vperm.xlu0 %7047, %v2794_v60   ;;  %v9596_v60 = vld [vmem:[#allocation22_spill] sm:$0xff] }
 0x181   : > { %6190 = vmatmul.mubr.msk.bf16.gmra.mrb[12].mxu0 %vm947_vm1, %v5393_v9  ;;  %v2796_v9 = vld [vmem:[#allocation7 + $0x50] sm:$0xff]  ;;  %v9598_v56 = vcombine.low %v9596_v60, %v9597_v59  ;;  %v4887_v60 = vld [vmem:[#allocation7 + $0xe0] sm:$0xff]  ;;  %v4048_v59 = vrot.slane %v8441_v21, 4 }
 0x182   : > { %6424 = vmatmul.mubr.msk.bf16.gmra.mrb[12].mxu1 %vm947_vm1, %v5549_v6  ;;  %6193 = vmatprep.mubr.msk.bf16.mxu0 %vm947_vm1, %v5394_v22  ;;  %v9594_v6 = vld [vmem:[#allocation21_spill] sm:$0xff]  ;;  %v2798_v22 = vld [vmem:[#allocation7 + $0x60] sm:$0xff] }
 0x183   : > { %6427 = vmatprep.mubr.msk.bf16.mxu1 %vm947_vm1, %v5550_v28  ;;  %2867 = vperm.xlu1 %7048, %v2797_v26   ;;  %v9595_v4 = vcombine.low %v9562_v62, %v9594_v6  ;;  %v5553_v28 = vcombine.low %v8564_v52, %v8567_v39  ;;  %v4041_v62 = vsel %vm1494_vm3, %v1962_v25, %v4040_v47  ;;  %v4884_v26 = vld [vmem:[#allocation7 + $0xc8] sm:$0xff] }
 0x184   : > { %2862 = vperm.xlu0 %7047, %v2796_v9   ;;  %v4044_v9 = vrot.slane %v8396_v36, 4 }
 0x187   : > { %2877 = vperm.xlu1 %7048, %v2799_v27   ;;  %v2168_v27 = vsel %vm984_vm0, %v8706_v41, 0  ;;  %v4888_v41 = vld [vmem:[#allocation7 + $0xe8] sm:$0xff] }
 0x188   : > { %2872 = vperm.xlu0 %7047, %v2798_v22   ;;  %v4267_v22 = vsel %vm984_vm0, %v8712_v0, 0  ;;  %v4046_v0 = vrot.slane %v8437_v51, 4 }
 0x189   : > { %6194 = vmatmul.mubr.msk.bf16.gmra.mrb[16].mxu0 %vm947_vm1, %v5395_v58  ;;  %v1942_v58 = vrot.slane %v8384_v5, 4 }
 0x18a   : > { %6428 = vmatmul.mubr.msk.bf16.gmra.mrb[16].mxu1 %vm947_vm1, %v5551_v38  ;;  %6197 = vmatprep.mubr.msk.bf16.mxu0 %vm947_vm1, %v9595_v4  ;;  %v1944_v38 = vrot.slane %v8394_v1, 4  ;;  %v4885_v4 = vld [vmem:[#allocation7 + $0xd0] sm:$0xff] }
 0x18b   : > { %6431 = vmatprep.mubr.msk.bf16.mxu1 %vm947_vm1, %v5552_v35  ;;  %2887 = vperm.xlu1 %7048, %v2801_v24   ;;  %v9599_v35 = vrot.slane %v8350_v29, 4  ;;  %v1946_v29 = vrot.slane %v8433_v18, 4 }
 0x18c   : > { %2882 = vperm.xlu0 %7047, %v2800_v32   ;;  %v1945_v24 = vsel %vm1494_vm3, %v1942_v58, %v1944_v38  ;;  %v8799_v32 = vld [vmem:[#allocation5 + $0xe] sm:$0x3] }
 0x18d   : > { %v1943_v6 = vsel %vm1494_vm3, %v9599_v35, %v1942_v58  ;;  %v4890_v58 = vld [vmem:[#allocation7 + $0xf8] sm:$0xff]  ;;  %v1950_v35 = vrot.slane %v8473_v48, 4 }
 0x18f   : > { %4914 = vperm.xlu1 %7048, %v4884_v26   ;;  %v4047_v26 = vsel %vm1494_vm3, %v4044_v9, %v4046_v0 }
 0x190   : > { %4909 = vperm.xlu0 %7047, %v4883_v44  }
 0x191   : > { %6198 = vmatmul.mubr.msk.bf16.gmra.mrb[20].mxu0 %vm947_vm1, %v9598_v56  ;;  %v1947_v56 = vsel %vm1494_vm3, %v1944_v38, %v1946_v29  ;;  %v4050_v38 = vrot.slane %v8477_v50, 4 }
 0x192   : > { %6432 = vmatmul.mubr.msk.bf16.gmra.mrb[20].mxu1 %vm947_vm1, %v5553_v28  ;;  %6203 = vmatprep.mubr.msk.bf16.mxu0 %vm947_vm1, %v8431_v12  ;;  %v4043_v12 = vsel %vm1494_vm3, %v4040_v47, %v4042_v2  ;;  %v4045_v28 = vsel %vm1494_vm3, %v4042_v2, %v4044_v9  ;;  %v8803_v47 = vld [vmem:[#allocation5 + $0xe] sm:$0x3]  ;;  %v4049_v2 = vsel %vm1494_vm3, %v4046_v0, %v4048_v59  ;;  %v1952_v9 = vrot.slane %v8479_v43, 4 }
 0x193   : > { %6437 = vmatprep.mubr.msk.bf16.mxu1 %vm947_vm1, %v4041_v62  ;;  %4924 = vperm.xlu1 %7048, %v4886_v14   ;;  %v1948_v62 = vrot.slane %v8439_v15, 4  ;;  %v4889_v14 = vld [vmem:[#allocation7 + $0xf0] sm:$0xff]  ;;  %v1954_v0 = vrot.slane %v8517_v63, 4 }
 0x194   : > { %4919 = vperm.xlu0 %7047, %v4885_v4   ;;  %v4052_v4 = vrot.slane %v8485_v3, 4 }
 0x195   : > { %v1949_v44 = vsel %vm1494_vm3, %v1946_v29, %v1948_v62 }
 0x196   : > { %v4053_v29 = vsel %vm1494_vm3, %v4050_v38, %v4052_v4 }
 0x197   : > { %4934 = vperm.xlu1 %7048, %v4888_v41   ;;  %v4893_v41 = vld [vmem:[#allocation7 + $0x110] sm:$0xff] }
 0x198   : > { %4929 = vperm.xlu0 %7047, %v4887_v60   ;;  %v4896_v60 = vld [vmem:[#allocation7 + $0x128] sm:$0xff] }
 0x199   : > { %6204 = vmatmul.mubr.msk.bf16.vlgmr.msra.gmra.mrb[0].mxu0 %vm947_vm1, %v1943_v6  ;;  %v4892_v6 = vld [vmem:[#allocation7 + $0x108] sm:$0xff] }
 0x19a   : > { %6438 = vmatmul.mubr.msk.bf16.vlgmr.msra.gmra.mrb[0].mxu1 %vm947_vm1, %v4043_v12  ;;  %6228 = vmatpush3.bf16.msra.mxu0 %v2168_v27  ;;  %v4891_v12 = vld [vmem:[#allocation7 + $0x100] sm:$0xff]  ;;  %v1951_v27 = vsel %vm1494_vm3, %v1948_v62, %v1950_v35  ;;  %v4054_v62 = vrot.slane %v8521_v20, 4 }
 0x19b   : > { %6462 = vmatpush3.bf16.msra.mxu1 %v4267_v22  ;;  %6207 = vmatprep.mubr.msk.bf16.mxu0 %vm947_vm1, %v1945_v24  ;;  %v4894_v22 = vld [vmem:[#allocation7 + $0x118] sm:$0xff]  ;;  %v4051_v24 = vsel %vm1494_vm3, %v4048_v59, %v4050_v38  ;;  %v1956_v59 = vrot.slane %v8523_v46, 4  ;;  %v1958_v38 = vrot.slane %v8546_v19, 4 }
 0x19c   : > { %6441 = vmatprep.mubr.msk.bf16.mxu1 %vm947_vm1, %v4045_v28  ;;  %6930 = vmatprep.subr.msk.bf16.mxu0 %vm984_vm0, %v8799_v32  ;;  %v1953_v28 = vsel %vm1494_vm3, %v1950_v35, %v1952_v9 }
 0x19d   : > { %6939 = vmatprep.subr.msk.bf16.mxu1 %vm984_vm0, %v8803_v47  ;;  %4944 = vperm.xlu1 %7048, %v4890_v58   ;;  %v4895_v58 = vld [vmem:[#allocation7 + $0x120] sm:$0xff] }
 0x19e   : > { %4939 = vperm.xlu0 %7047, %v4889_v14   ;;  %v1957_v14 = vsel %vm1494_vm3, %v1954_v0, %v1956_v59 }
 0x1a1   : > { %6208 = vmatmul.mubr.msk.bf16.gmra.mrb[4].mxu0 %vm947_vm1, %v1947_v56  ;;  %4954 = vperm.xlu1 %7048, %v4892_v6   ;;  %v4056_v56 = vrot.slane %v8525_v45, 4  ;;  %v4897_v6 = vld [vmem:[#allocation7 + $0x130] sm:$0xff] }
 0x1a2   : > { %6442 = vmatmul.mubr.msk.bf16.gmra.mrb[4].mxu1 %vm947_vm1, %v4047_v26  ;;  %6211 = vmatprep.mubr.msk.bf16.mxu0 %vm947_vm1, %v1949_v44  ;;  %v1955_v26 = vsel %vm1494_vm3, %v1952_v9, %v1954_v0  ;;  %v4898_v44 = vld [vmem:[#allocation7 + $0x138] sm:$0xff]  ;;  %v4058_v9 = vrot.slane %v8548_v53, 4 }
 0x1a3   : > { %6445 = vmatprep.mubr.msk.bf16.mxu1 %vm947_vm1, %v4049_v2  ;;  %4949 = vperm.xlu0 %7047, %v4891_v12   ;;  %v4055_v2 = vsel %vm1494_vm3, %v4052_v4, %v4054_v62  ;;  %v4057_v35 = vsel %vm1494_vm3, %v4054_v62, %v4056_v56  ;;  %v4899_v12 = vld [vmem:[#allocation7 + $0x140] sm:$0xff]  ;;  %v1960_v4 = vrot.slane %v8309_v10, 4  ;;  %v4901_v62 = vld [vmem:[#allocation7 + $0x150] sm:$0xff] }
 0x1a5   : > { %4964 = vperm.xlu1 %7048, %v4894_v22   ;;  %v2802_v22 = vld [vmem:[#allocation7 + $0x80] sm:$0xff] }
 0x1a7   : > { %4959 = vperm.xlu0 %7047, %v4893_v41   ;;  %v1961_v41 = vsel %vm1494_vm3, %v1958_v38, %v1960_v4 }
 0x1a9   : > { %6212 = vmatmul.mubr.msk.bf16.gmra.mrb[8].mxu0 %vm947_vm1, %v1951_v27  ;;  %4974 = vperm.xlu1 %7048, %v4896_v60   ;;  %v4060_v27 = vrot.slane %v8612_v61, 4  ;;  %v2803_v60 = vld [vmem:[#allocation7 + $0x88] sm:$0xff] }
 0x1aa   : > { %6446 = vmatmul.mubr.msk.bf16.gmra.mrb[8].mxu1 %vm947_vm1, %v4051_v24  ;;  %6215 = vmatprep.mubr.msk.bf16.mxu0 %vm947_vm1, %v1953_v28  ;;  %v1959_v24 = vsel %vm1494_vm3, %v1956_v59, %v1958_v38  ;;  %v4900_v28 = vld [vmem:[#allocation7 + $0x148] sm:$0xff]  ;;  %v4062_v59 = vrot.slane %v8620_v17, 4  ;;  %v4442_v38 = vsel %vm984_vm0, %v8803_v47, 0  ;;  %v4906_v47 = vld [vmem:[#allocation7 + $0x178] sm:$0xff] }
 0x1ab   : > { %6449 = vmatprep.mubr.msk.bf16.mxu1 %vm947_vm1, %v4053_v29  ;;  %4969 = vperm.xlu0 %7047, %v4895_v58   ;;  %v4059_v29 = vsel %vm1494_vm3, %v4056_v56, %v4058_v9  ;;  %v4061_v0 = vsel %vm1494_vm3, %v4058_v9, %v4060_v27  ;;  %v2804_v56 = vld [vmem:[#allocation7 + $0x90] sm:$0xff]  ;;  %v1963_v58 = vsel %vm1494_vm3, %v1960_v4, %v1962_v25  ;;  %v4904_v25 = vld [vmem:[#allocation7 + $0x168] sm:$0xff]  ;;  %v9601_v4 = vld [vmem:[#allocation62_spill] sm:$0xff] }
 0x1ac   : > { %v2807_v9 = vld [vmem:[#allocation7 + $0xa8] sm:$0xff] }
 0x1ad   : > { %4984 = vperm.xlu1 %7048, %v4898_v44   ;;  %v4063_v44 = vsel %vm1494_vm3, %v4060_v27, %v4062_v59  ;;  %v9602_v27 = vld [vmem:[#allocation65_spill] sm:$0xff] }
 0x1af   : > { %4979 = vperm.xlu0 %7047, %v4897_v6   ;;  %v2344_v6 = vsel %vm984_vm0, %v8799_v32, 0  ;;  %v4905_v32 = vld [vmem:[#allocation7 + $0x170] sm:$0xff] }
 0x1b1   : > { %6216 = vmatmul.mubr.msk.bf16.gmra.mrb[12].mxu0 %vm947_vm1, %v1955_v26  ;;  %4989 = vperm.xlu1 %7048, %v4899_v12   ;;  %v4902_v26 = vld [vmem:[#allocation7 + $0x158] sm:$0xff] }
 0x1b2   : > { %6450 = vmatmul.mubr.msk.bf16.gmra.mrb[12].mxu1 %vm947_vm1, %v4055_v2  ;;  %6219 = vmatprep.mubr.msk.bf16.mxu0 %vm947_vm1, %v1957_v14  ;;  %v2805_v2 = vld [vmem:[#allocation7 + $0x98] sm:$0xff]  ;;  %v4903_v14 = vld [vmem:[#allocation7 + $0x160] sm:$0xff] }
 0x1b3   : > { %6453 = vmatprep.mubr.msk.bf16.mxu1 %vm947_vm1, %v4057_v35  ;;  %2892 = vperm.xlu0 %7047, %v2802_v22   ;;  %v2806_v35 = vld [vmem:[#allocation7 + $0xa0] sm:$0xff]  ;;  %v2500_v12 = vld [vmem:[#allocation5 + $0x10] sm:$0x3] }
 0x1b4   : > { %v9603_v22 = vld [vmem:[#allocation66_spill] sm:$0xff] }
 0x1b5   : > { %4994 = vperm.xlu1 %7048, %v4900_v28   ;;  %v9605_v28 = vld [vmem:[#allocation68_spill] sm:$0xff] }
 0x1b7   : > { %2897 = vperm.xlu0 %7047, %v2803_v60   ;;  %v9610_v60 = vld [vmem:[#allocation25_spill] sm:$0xff] }
 0x1b8   : > { %v9611_v59 = vunpack.c.l.bf16 %v9610_v60 }
 0x1b9   : > { %6220 = vmatmul.mubr.msk.bf16.gmra.mrb[16].mxu0 %vm947_vm1, %v1959_v24  ;;  %4999 = vperm.xlu1 %7048, %v4901_v62   ;;  %v2809_v24 = vld [vmem:[#allocation7 + $0xb8] sm:$0xff]  ;;  %v444_v62 = vunpack.c.h.bf16 %v9610_v60 }
 0x1ba   : > { %6454 = vmatmul.mubr.msk.bf16.gmra.mrb[16].mxu1 %vm947_vm1, %v4059_v29  ;;  %6223 = vmatprep.mubr.msk.bf16.mxu0 %vm947_vm1, %v1961_v41  ;;  %v9606_v29 = vld [vmem:[#allocation69_spill] sm:$0xff]  ;;  %v9608_v41 = vld [vmem:[#allocation70_spill] sm:$0xff] }
 0x1bb   : > { %6457 = vmatprep.mubr.msk.bf16.mxu1 %vm947_vm1, %v4061_v0  ;;  %2902 = vperm.xlu0 %7047, %v2804_v56   ;;  %v9609_v0 = vld [vmem:[#allocation71_spill] sm:$0xff]  ;;  %v607_v56 = vrot.slane %v9611_v59, 7 }
 0x1bd   : > { %5004 = vperm.xlu1 %7048, %v4902_v26   ;;  %v9612_v26 = vld [vmem:[#allocation57_spill] sm:$0xff] }
 0x1bf   : > { %2907 = vperm.xlu0 %7047, %v2805_v2   ;;  %v9617_v2 = vld [vmem:[#allocation35_spill] sm:$0xff] }
 0x1c1   : > { %6224 = vmatmul.mubr.msk.bf16.gmra.mrb[20].mxu0 %vm947_vm1, %v1963_v58  ;;  %5009 = vperm.xlu1 %7048, %v4903_v14   ;;  %v609_v58 = vrot.slane %v444_v62, 7  ;;  %v9618_v14 = vld [vmem:[#allocation36_spill] sm:$0xff] }
 0x1c2   : > { %6458 = vmatmul.mubr.msk.bf16.gmra.mrb[20].mxu1 %vm947_vm1, %v4063_v44  ;;  %6229 = vmatprep.mubr.msk.bf16.mxu0 %vm947_vm1, %v9567_v42  ;;  %v9600_v42 = vld [vmem:[#allocation61_spill] sm:$0xff] }
 0x1c3   : > { %6463 = vmatprep.mubr.msk.bf16.mxu1 %vm947_vm1, %v9569_v13  ;;  %2912 = vperm.xlu0 %7047, %v2806_v35   ;;  %v4597_v13 = vld [vmem:[#allocation5 + $0x10] sm:$0x3]  ;;  %v9615_v44 = vld [vmem:[#allocation33_spill] sm:$0xff] }
 0x1c4   : > { %v9619_v35 = vld [vmem:[#allocation37_spill] sm:$0xff] }
 0x1c5   : > { %5014 = vperm.xlu1 %7048, %v4904_v25   ;;  %v9620_v25 = vld [vmem:[#allocation38_spill] sm:$0xff] }
 0x1c7   : > { %2917 = vperm.xlu0 %7047, %v2807_v9   ;;  %v9626_v9 = vld [vmem:[#allocation47_spill] sm:$0xff] }
 0x1c9   : > { %6230 = vmatmul.mubr.msk.bf16.vlgmr.msra.gmra.mrb[0].mxu0 %vm947_vm1, %v9570_v31  ;;  %5019 = vperm.xlu1 %7048, %v4905_v32   ;;  %v2808_v31 = vld [vmem:[#allocation7 + $0xb0] sm:$0xff] }
 0x1ca   : > { %6464 = vmatmul.mubr.msk.bf16.vlgmr.msra.gmra.mrb[0].mxu1 %vm947_vm1, %v9600_v42  ;;  %6254 = vmatpush3.bf16.msra.mxu0 %v2344_v6  ;;  %v9621_v6 = vld [vmem:[#allocation39_spill] sm:$0xff]  ;;  %v9624_v42 = vld [vmem:[#allocation42_spill] sm:$0xff]  ;;  %v9628_v32 = vld [vmem:[#allocation49_spill] sm:$0xff] }
 0x1cb   : > { %6488 = vmatpush3.bf16.msra.mxu1 %v4442_v38  ;;  %6233 = vmatprep.mubr.msk.bf16.mxu0 %vm947_vm1, %v9601_v4  ;;  %v9622_v38 = vld [vmem:[#allocation40_spill] sm:$0xff] }
 0x1cc   : > { %6467 = vmatprep.mubr.msk.bf16.mxu1 %vm947_vm1, %v9578_v33  ;;  %6931 = vmatprep.subr.msk.bf16.mxu0 %vm984_vm0, %v2500_v12  ;;  %v9604_v33 = vld [vmem:[#allocation67_spill] sm:$0xff]  ;;  %v9627_v4 = vld [vmem:[#allocation48_spill] sm:$0xff] }
 0x1cd   : > { %6940 = vmatprep.subr.msk.bf16.mxu1 %vm984_vm0, %v4597_v13  ;;  %2922 = vperm.xlu0 %7047, %v2808_v31   ;;  %v9629_v31 = vld [vmem:[#allocation52_spill] sm:$0xff] }
 0x1ce   : > { %5024 = vperm.xlu1 %7048, %v4906_v47   ;;  %v9630_v47 = vld [vmem:[#allocation53_spill] sm:$0xff] }
 0x1d1   : > { %6234 = vmatmul.mubr.msk.bf16.gmra.mrb[4].mxu0 %vm947_vm1, %v9579_v16  ;;  %2927 = vperm.xlu0 %7047, %v2809_v24   ;;  %v9607_v16 = vld [vmem:[#allocation51_spill] sm:$0xff] }
 0x1d2   : > { %6468 = vmatmul.mubr.msk.bf16.gmra.mrb[4].mxu1 %vm947_vm1, %v9602_v27  ;;  %6237 = vmatprep.mubr.msk.bf16.mxu0 %vm947_vm1, %v9603_v22  ;;  %v5590_v27 = vcombine.low %v8498_v34, %v8564_v52  ;;  %v9631_v22 = vld [vmem:[#allocation50_spill] sm:$0xff] }
 0x1d3   : > { %6471 = vmatprep.mubr.msk.bf16.mxu1 %vm947_vm1, %v9604_v33  ;;  %v5591_v24 = vcombine.low %v8567_v39, %v9631_v22  ;;  %v9632_v33 = vld [vmem:[#allocation26_spill] sm:$0xff] }
 0x1d9   : > { %6238 = vmatmul.mubr.msk.bf16.gmra.mrb[8].mxu0 %vm947_vm1, %v9605_v28  ;;  %v9633_v28 = vld [vmem:[#allocation27_spill] sm:$0xff] }
 0x1da   : > { %6472 = vmatmul.mubr.msk.bf16.gmra.mrb[8].mxu1 %vm947_vm1, %v9606_v29  ;;  %6241 = vmatprep.mubr.msk.bf16.mxu0 %vm947_vm1, %v9607_v16  ;;  %v9634_v29 = vld [vmem:[#allocation30_spill] sm:$0xff] }
 0x1db   : > { %6475 = vmatprep.mubr.msk.bf16.mxu1 %vm947_vm1, %v9608_v41 }
 0x1e1   : > { %6242 = vmatmul.mubr.msk.bf16.gmra.mrb[12].mxu0 %vm947_vm1, %v9609_v0 }
 0x1e2   : > { %6476 = vmatmul.mubr.msk.bf16.gmra.mrb[12].mxu1 %vm947_vm1, %v9587_v55  ;;  %6245 = vmatprep.mubr.msk.bf16.mxu0 %vm947_vm1, %v8305_v11  ;;  %v608_v11 = vsel %vm503_vm2, %v8658_v57, %v607_v56  ;;  %v9616_v57 = vld [vmem:[#allocation34_spill] sm:$0xff] }
 0x1e3   : > { %6479 = vmatprep.mubr.msk.bf16.mxu1 %vm947_vm1, %v8307_v37  ;;  %v610_v37 = vsel %vm503_vm2, %v607_v56, %v609_v58 }
 0x1e4   : > { %v692_v55 = vpack.c.bf16 %v610_v37, %v608_v11 }
 0x1e9   : > { %6246 = vmatmul.mubr.msk.bf16.gmra.mrb[16].mxu0 %vm947_vm1, %v9590_v8  ;;  %v9613_v8 = vld [vmem:[#allocation31_spill] sm:$0xff] }
 0x1ea   : > { %6480 = vmatmul.mubr.msk.bf16.gmra.mrb[16].mxu1 %vm947_vm1, %v8654_v30  ;;  %6249 = vmatprep.mubr.msk.bf16.mxu0 %vm947_vm1, %v9565_v40  ;;  %v9614_v30 = vld [vmem:[#allocation32_spill] sm:$0xff]  ;;  %v2511_v40 = vsel %vm984_vm0, %v2500_v12, 0  ;;  %v9623_v12 = vld [vmem:[#allocation41_spill] sm:$0xff] }
 0x1eb   : > { %6483 = vmatprep.mubr.msk.bf16.mxu1 %vm947_vm1, %v8674_v7  ;;  %v4608_v7 = vsel %vm984_vm0, %v4597_v13, 0  ;;  %v9625_v13 = vld [vmem:[#allocation46_spill] sm:$0xff] }
 0x1f1   : > { %6250 = vmatmul.mubr.msk.bf16.gmra.mrb[20].mxu0 %vm947_vm1, %v9612_v26 }
 0x1f2   : > { %6484 = vmatmul.mubr.msk.bf16.gmra.mrb[20].mxu1 %vm947_vm1, %v692_v55  ;;  %6255 = vmatprep.mubr.msk.bf16.mxu0 %vm947_vm1, %v9613_v8 }
 0x1f3   : > { %6489 = vmatprep.mubr.msk.bf16.mxu1 %vm947_vm1, %v9614_v30 }
 0x1f9   : > { %6256 = vmatmul.mubr.msk.bf16.vlgmr.msra.gmra.mrb[0].mxu0 %vm947_vm1, %v9615_v44 }
 0x1fa   : > { %6490 = vmatmul.mubr.msk.bf16.vlgmr.msra.gmra.mrb[0].mxu1 %vm947_vm1, %v9616_v57  ;;  %6280 = vmatpush3.bf16.msra.mxu0 %v2511_v40 }
 0x1fb   : > { %6514 = vmatpush3.bf16.msra.mxu1 %v4608_v7  ;;  %6259 = vmatprep.mubr.msk.bf16.mxu0 %vm947_vm1, %v9617_v2 }
 0x1fc   : > { %6493 = vmatprep.mubr.msk.bf16.mxu1 %vm947_vm1, %v9618_v14 }
 0x201   : > { %6260 = vmatmul.mubr.msk.bf16.gmra.mrb[4].mxu0 %vm947_vm1, %v9619_v35 }
 0x202   : > { %6494 = vmatmul.mubr.msk.bf16.gmra.mrb[4].mxu1 %vm947_vm1, %v9620_v25  ;;  %6263 = vmatprep.mubr.msk.bf16.mxu0 %vm947_vm1, %v9621_v6 }
 0x203   : > { %6497 = vmatprep.mubr.msk.bf16.mxu1 %vm947_vm1, %v9622_v38 }
 0x209   : > { %6264 = vmatmul.mubr.msk.bf16.gmra.mrb[8].mxu0 %vm947_vm1, %v9623_v12 }
 0x20a   : > { %6498 = vmatmul.mubr.msk.bf16.gmra.mrb[8].mxu1 %vm947_vm1, %v9624_v42  ;;  %6267 = vmatprep.mubr.msk.bf16.mxu0 %vm947_vm1, %v9625_v13 }
 0x20b   : > { %6501 = vmatprep.mubr.msk.bf16.mxu1 %vm947_vm1, %v9626_v9 }
 0x211   : > { %6268 = vmatmul.mubr.msk.bf16.gmra.mrb[12].mxu0 %vm947_vm1, %v9627_v4 }
 0x212   : > { %6502 = vmatmul.mubr.msk.bf16.gmra.mrb[12].mxu1 %vm947_vm1, %v9628_v32  ;;  %6271 = vmatprep.mubr.msk.bf16.mxu0 %vm947_vm1, %v9629_v31 }
 0x213   : > { %6505 = vmatprep.mubr.msk.bf16.mxu1 %vm947_vm1, %v9630_v47 }
 0x219   : > { %6272 = vmatmul.mubr.msk.bf16.gmra.mrb[16].mxu0 %vm947_vm1, %v9632_v33 }
 0x21a   : > { %6506 = vmatmul.mubr.msk.bf16.gmra.mrb[16].mxu1 %vm947_vm1, %v5590_v27  ;;  %6275 = vmatprep.mubr.msk.bf16.mxu0 %vm947_vm1, %v9633_v28 }
 0x21b   : > { %6509 = vmatprep.mubr.msk.bf16.mxu1 %vm947_vm1, %v5591_v24 }
 0x221   : > { %6276 = vmatmul.mubr.msk.bf16.gmra.mrb[20].mxu0 %vm947_vm1, %v9634_v29 }
 0x222   : > { %6510 = vmatmul.mubr.msk.bf16.gmra.mrb[20].mxu1 %vm947_vm1, %v9610_v60  ;;  %6281 = vmatprep.mubr.msk.bf16.mxu0 %vm947_vm1, %v8384_v5  ;;  %v799_v5 = vrot.slane %v444_v62, 1 }
 0x223   : > { %6515 = vmatprep.mubr.msk.bf16.mxu1 %vm947_vm1, %v8386_v49  ;;  %v9635_v49 = vld [vmem:[#allocation43_spill] sm:$0xff] }
 0x229   : > { %6282 = vmatmul.mubr.msk.bf16.vlgmr.msra.gmra.mrb[0].mxu0 %vm947_vm1, %v8394_v1  ;;  %v9636_v1 = vunpack.c.l.bf16 %v9635_v49 }
 0x22a   : > { %6516 = vmatmul.mubr.msk.bf16.vlgmr.msra.gmra.mrb[0].mxu1 %vm947_vm1, %v8396_v36  ;;  %6285 = vmatprep.mubr.msk.bf16.mxu0 %vm947_vm1, %v8433_v18  ;;  %v9637_v18 = vld [vmem:[#allocation28_spill] sm:$0xff] }
 0x22b   : > { %6519 = vmatprep.mubr.msk.bf16.mxu1 %vm947_vm1, %v8437_v51  ;;  %v801_v36 = vrot.slane %v9636_v1, 1  ;;  %v800_v51 = vsel %vm693_vm4, %v9637_v18, %v799_v5 }
 0x231   : > { %6286 = vmatmul.mubr.msk.bf16.gmra.mrb[4].mxu0 %vm947_vm1, %v8439_v15  ;;  %v802_v15 = vsel %vm693_vm4, %v799_v5, %v801_v36 }
 0x232   : > { %6520 = vmatmul.mubr.msk.bf16.gmra.mrb[4].mxu1 %vm947_vm1, %v8441_v21  ;;  %6289 = vmatprep.mubr.msk.bf16.mxu0 %vm947_vm1, %v8473_v48  ;;  %v883_v21 = vpack.c.bf16 %v802_v15, %v800_v51  ;;  %v2813_v48 = vpop.permute.xlu0 %2812 }
 0x233   : > { %6523 = vmatprep.mubr.msk.bf16.mxu1 %vm947_vm1, %v8477_v50 }
 0x239   : > { %6290 = vmatmul.mubr.msk.bf16.gmra.mrb[8].mxu0 %vm947_vm1, %v8479_v43  ;;  %v2818_v43 = vpop.permute.xlu0 %2817 }
 0x23a   : > { %6524 = vmatmul.mubr.msk.bf16.gmra.mrb[8].mxu1 %vm947_vm1, %v8485_v3  ;;  %6293 = vmatprep.mubr.msk.bf16.mxu0 %vm947_vm1, %v8517_v63 }
 0x23b   : > { %6527 = vmatprep.mubr.msk.bf16.mxu1 %vm947_vm1, %v8521_v20 }
 0x241   : > { %6294 = vmatmul.mubr.msk.bf16.gmra.mrb[12].mxu0 %vm947_vm1, %v8523_v46 }
 0x242   : > { %6528 = vmatmul.mubr.msk.bf16.gmra.mrb[12].mxu1 %vm947_vm1, %v8525_v45  ;;  %6297 = vmatprep.mubr.msk.bf16.mxu0 %vm947_vm1, %v8546_v19 }
 0x243   : > { %6531 = vmatprep.mubr.msk.bf16.mxu1 %vm947_vm1, %v8548_v53 }
 0x249   : > { %6298 = vmatmul.mubr.msk.bf16.gmra.mrb[16].mxu0 %vm947_vm1, %v8309_v10  ;;  %v2823_v10 = vpop.permute.xlu1 %2822 }
 0x24a   : > { %6532 = vmatmul.mubr.msk.bf16.gmra.mrb[16].mxu1 %vm947_vm1, %v8612_v61  ;;  %6301 = vmatprep.mubr.msk.bf16.mxu0 %vm947_vm1, %v8332_v54  ;;  %v9030_v54 = vpop.permute.xlu0 %2832 }
 0x24b   : > { %6535 = vmatprep.mubr.msk.bf16.mxu1 %vm947_vm1, %v8620_v17 }
 0x24d   : > { %v2828_v50 = vpop.permute.xlu1 %2827 }
 0x24e   : > { %v9034_v63 = vpop.permute.xlu0 %2842 }
 0x251   : > { %6302 = vmatmul.mubr.msk.bf16.gmra.mrb[20].mxu0 %vm947_vm1, %v8360_v23  ;;  %v9028_v3 = vpop.permute.xlu1 %2837 }
 0x252   : > { %6536 = vmatmul.mubr.msk.bf16.gmra.mrb[20].mxu1 %vm947_vm1, %v883_v21  ;;  %v9038_v46 = vpop.permute.xlu0 %2852 }
 0x255   : > { %v9032_v34 = vpop.permute.xlu1 %2847 }
 0x256   : > { %v9042_v23 = vpop.permute.xlu0 %2862 }
 0x259   : > { %v9036_v20 = vpop.permute.xlu1 %2857 }
 0x25a   : > { %v9046_v53 = vpop.permute.xlu0 %2872 }
 0x25d   : > { %v9040_v45 = vpop.permute.xlu1 %2867 }
 0x25e   : > { %v9050_v39 = vpop.permute.xlu0 %2882 }
 0x261   : > { %v9044_v19 = vpop.permute.xlu1 %2877 }
 0x262   : > { %v4910_v17 = vpop.permute.xlu0 %4909 }
 0x265   : > { %v9048_v52 = vpop.permute.xlu1 %2887 }
 0x266   : > { %v4920_v41 = vpop.permute.xlu0 %4919 }
 0x269   : > { %v4915_v61 = vpop.permute.xlu1 %4914 }
 0x26a   : > { %v9054_v60 = vpop.permute.xlu0 %4929 }
 0x26d   : > { %v4925_v16 = vpop.permute.xlu1 %4924 }
 0x26e   : > { %v9058_v59 = vpop.permute.xlu0 %4939 }
 0x271   : > { %v9052_v0 = vpop.permute.xlu1 %4934 }
 0x272   : > { %v9062_v58 = vpop.permute.xlu0 %4949 }
 0x275   : > { %v9056_v62 = vpop.permute.xlu1 %4944 }
 0x276   : > { %v9066_v37 = vpop.permute.xlu0 %4959 }
 0x279   : > { %v9060_v56 = vpop.permute.xlu1 %4954 }
 0x27a   : > { %v9070_v26 = vpop.permute.xlu0 %4969 }
 0x27d   : > { %v9064_v11 = vpop.permute.xlu1 %4964 }
 0x27e   : > { %v9074_v30 = vpop.permute.xlu0 %4979 }
 0x281   : > { %v9068_v55 = vpop.permute.xlu1 %4974 }
 0x282   : > { %v9079_v7 = vpop.permute.xlu0 %2892 }
 0x285   : > { %v9072_v8 = vpop.permute.xlu1 %4984 }
 0x286   : > { %v9088_v1 = vpop.permute.xlu0 %2897 }
 0x289   : > { %v9077_v40 = vpop.permute.xlu1 %4989 }
 0x28d   : > { %v9085_v33 = vpop.permute.xlu1 %4994 }
 0x2fc   : > { %v6283_v44 = vpop.f32.mrb[0].mxu0 }
 0x2fd   : > { %v6517_v57 = vpop.f32.mrb[0].mxu1  ;;  %v2547_v2 = vpop.f32.mrb[1].mxu0  ;;  %v2932_v4 = vmul.f32 %v6283_v44, %v2823_v10 }
 0x2fe   : > { %v4644_v14 = vpop.f32.mrb[1].mxu1  ;;  %v6284_v35 = vpop.f32.mrb[2].mxu0  ;;  %v2930_v25 = vmul.f32 %v2813_v48, %v2547_v2  ;;  %v5029_v32 = vmul.f32 %v6517_v57, %v4920_v41 }
 0x2ff   : > { %v5702_v6 = vpack.c.bf16 %v6284_v35, %v6283_v44  ;;  %v6518_v38 = vpop.f32.mrb[2].mxu1  ;;  %v2550_v12 = vpop.f32.mrb[3].mxu0  ;;  %v5027_v42 = vmul.f32 %v4910_v17, %v4644_v14  ;;  %v2933_v27 = vmul.f32 %v6284_v35, %v2828_v50  ;;  %v2986_v21 = vmul.f32 %v6283_v44, %v2932_v4 }
 0x300   : > { %v5762_v13 = vpack.c.bf16 %v6518_v38, %v6517_v57  ;;  %v4647_v9 = vpop.f32.mrb[3].mxu1  ;;  %v5697_v31 = vpack.c.bf16 %v2550_v12, %v2547_v2  ;;  %v2931_v47 = vmul.f32 %v2818_v43, %v2550_v12  ;;  %v2984_v28 = vmul.f32 %v2930_v25, %v2547_v2 }
 0x301   : > { %5814 = vst [vmem:[%s9081_s29 + $0x8] sm:$0xff] %v5702_v6   ;;  %v5757_v22 = vpack.c.bf16 %v4647_v9, %v4644_v14  ;;  %v5028_v24 = vmul.f32 %v4915_v61, %v4647_v9  ;;  %v5030_v29 = vmul.f32 %v6518_v38, %v4925_v16  ;;  %v5081_v36 = vmul.f32 %v5027_v42, %v4644_v14 }
 0x302   : > { %5826 = vst [vmem:[%s9081_s29 + $0x68] sm:$0xff] %v5762_v13   ;;  %5698 = vst [vmem:[%s9081_s29] sm:$0xff] %v5697_v31   ;;  %v2954_v5 = vadd.f32 %v2931_v47, %v2930_v25  ;;  %v2985_v49 = vmul.f32 %v2931_v47, %v2550_v12  ;;  %v5083_v10 = vmul.f32 %v6517_v57, %v5029_v32 }
 0x303   : > { %5825 = vst [vmem:[%s9081_s29 + $0x60] sm:$0xff] %v5757_v22   ;;  %v5051_v18 = vadd.f32 %v5028_v24, %v5027_v42  ;;  %v5082_v51 = vmul.f32 %v5028_v24, %v4647_v9  ;;  %v2987_v17 = vmul.f32 %v6284_v35, %v2933_v27  ;;  %v5084_v12 = vmul.f32 %v6518_v38, %v5030_v29 }
 0x304   : > { %v6287_v15 = vpop.f32.mrb[4].mxu0  ;;  %v2955_v48 = vadd.f32 %v2954_v5, %v2932_v4  ;;  %v3008_v50 = vadd.f32 %v2985_v49, %v2984_v28  ;;  %v9095_v5 = vpop.permute.xlu1 %4999 }
 0x305   : > { %v6521_v43 = vpop.f32.mrb[4].mxu1  ;;  %v2563_v61 = vpop.f32.mrb[5].mxu0  ;;  %v5052_v41 = vadd.f32 %v5051_v18, %v5029_v32  ;;  %v5105_v2 = vadd.f32 %v5082_v51, %v5081_v36  ;;  %v2936_v57 = vmul.f32 %v6287_v15, %v9034_v63 }
 0x306   : > { %v2934_v16 = vmul.f32 %v9030_v54, %v2563_v61  ;;  %v4660_v25 = vpop.f32.mrb[5].mxu1  ;;  %v6288_v6 = vpop.f32.mrb[6].mxu0  ;;  %v3009_v13 = vadd.f32 %v3008_v50, %v2986_v21  ;;  %v2956_v14 = vadd.f32 %v2955_v48, %v2933_v27  ;;  %v5033_v38 = vmul.f32 %v6521_v43, %v9058_v59 }
 0x307   : > { %v5031_v42 = vmul.f32 %v9054_v60, %v4660_v25  ;;  %v6522_v9 = vpop.f32.mrb[6].mxu1  ;;  %v2566_v31 = vpop.f32.mrb[7].mxu0  ;;  %v5106_v44 = vadd.f32 %v5105_v2, %v5083_v10  ;;  %v5053_v47 = vadd.f32 %v5052_v41, %v5030_v29  ;;  %v5712_v24 = vpack.c.bf16 %v6288_v6, %v6287_v15 }
 0x308   : > { %v2988_v4 = vmul.f32 %v2934_v16, %v2563_v61  ;;  %v4663_v35 = vpop.f32.mrb[7].mxu1  ;;  %v2957_v32 = vadd.f32 %v2956_v14, %v2934_v16  ;;  %v3010_v22 = vadd.f32 %v3009_v13, %v2987_v17  ;;  %v5772_v60 = vpack.c.bf16 %v6522_v9, %v6521_v43  ;;  %v9100_v18 = vpop.permute.xlu0 %2902 }
 0x309   : > { %v5085_v54 = vmul.f32 %v5031_v42, %v4660_v25  ;;  %v5054_v28 = vadd.f32 %v5053_v47, %v5031_v42  ;;  %v5107_v27 = vadd.f32 %v5106_v44, %v5084_v12  ;;  %5816 = vst [vmem:[%s9081_s29 + $0x18] sm:$0xff] %v5712_v24   ;;  %v2937_v63 = vmul.f32 %v6288_v6, %v9032_v34 }
 0x30a   : > { %v3011_v49 = vadd.f32 %v3010_v22, %v2988_v4  ;;  %v5707_v36 = vpack.c.bf16 %v2566_v31, %v2563_v61  ;;  %v2935_v29 = vmul.f32 %v9028_v3, %v2566_v31  ;;  %5828 = vst [vmem:[%s9081_s29 + $0x78] sm:$0xff] %v5772_v60   ;;  %v5034_v59 = vmul.f32 %v6522_v9, %v9056_v62 }
 0x30b   : > { %v5108_v51 = vadd.f32 %v5107_v27, %v5085_v54  ;;  %v5767_v21 = vpack.c.bf16 %v4663_v35, %v4660_v25  ;;  %v5032_v10 = vmul.f32 %v9052_v0, %v4663_v35  ;;  %v2990_v50 = vmul.f32 %v6287_v15, %v2936_v57 }
 0x30c   : > { %v6291_v48 = vpop.f32.mrb[8].mxu0  ;;  %5815 = vst [vmem:[%s9081_s29 + $0x10] sm:$0xff] %v5707_v36   ;;  %v2958_v17 = vadd.f32 %v2957_v32, %v2935_v29  ;;  %v2989_v41 = vmul.f32 %v2935_v29, %v2566_v31  ;;  %v5087_v61 = vmul.f32 %v6521_v43, %v5033_v38  ;;  %v2991_v42 = vmul.f32 %v6288_v6, %v2937_v63 }
 0x30d   : > { %v6525_v2 = vpop.f32.mrb[8].mxu1  ;;  %v2579_v34 = vpop.f32.mrb[9].mxu0  ;;  %5827 = vst [vmem:[%s9081_s29 + $0x70] sm:$0xff] %v5767_v21   ;;  %v5055_v16 = vadd.f32 %v5054_v28, %v5032_v10  ;;  %v5086_v3 = vmul.f32 %v5032_v10, %v4663_v35  ;;  %v5088_v4 = vmul.f32 %v6522_v9, %v5034_v59  ;;  %v2940_v43 = vmul.f32 %v6291_v48, %v9042_v23 }
 0x30e   : > { %v2938_v12 = vmul.f32 %v9038_v46, %v2579_v34  ;;  %v4676_v13 = vpop.f32.mrb[9].mxu1  ;;  %v6292_v14 = vpop.f32.mrb[10].mxu0  ;;  %v2959_v62 = vadd.f32 %v2958_v17, %v2936_v57  ;;  %v3012_v25 = vadd.f32 %v3011_v49, %v2989_v41  ;;  %v5037_v9 = vmul.f32 %v6525_v2, %v9066_v37 }
 0x30f   : > { %v5035_v0 = vmul.f32 %v9062_v58, %v4676_v13  ;;  %v6526_v44 = vpop.f32.mrb[10].mxu1  ;;  %v2582_v15 = vpop.f32.mrb[11].mxu0  ;;  %v5056_v47 = vadd.f32 %v5055_v16, %v5033_v38  ;;  %v5109_v31 = vadd.f32 %v5108_v51, %v5086_v3  ;;  %v5722_v46 = vpack.c.bf16 %v6292_v14, %v6291_v48 }
 0x310   : > { %v4679_v32 = vpop.f32.mrb[11].mxu1  ;;  %v3013_v22 = vadd.f32 %v3012_v25, %v2990_v50  ;;  %v2960_v35 = vadd.f32 %v2959_v62, %v2937_v63  ;;  %v2992_v54 = vmul.f32 %v2938_v12, %v2579_v34  ;;  %v5782_v28 = vpack.c.bf16 %v6526_v44, %v6525_v2  ;;  %v9110_v58 = vpop.permute.xlu1 %5004 }
 0x311   : > { %v5110_v24 = vadd.f32 %v5109_v31, %v5087_v61  ;;  %v5057_v6 = vadd.f32 %v5056_v47, %v5034_v59  ;;  %v5089_v57 = vmul.f32 %v5035_v0, %v4676_v13  ;;  %5818 = vst [vmem:[%s9081_s29 + $0x28] sm:$0xff] %v5722_v46   ;;  %v5717_v60 = vpack.c.bf16 %v2582_v15, %v2579_v34  ;;  %v9114_v23 = vpop.permute.xlu0 %2907 }
 0x312   : > { %v2961_v38 = vadd.f32 %v2960_v35, %v2938_v12  ;;  %v3014_v27 = vadd.f32 %v3013_v22, %v2991_v42  ;;  %v2941_v36 = vmul.f32 %v6292_v14, %v9040_v45  ;;  %5830 = vst [vmem:[%s9081_s29 + $0x88] sm:$0xff] %v5782_v28   ;;  %v2939_v29 = vmul.f32 %v9036_v20, %v2582_v15 }
 0x313   : > { %v5058_v49 = vadd.f32 %v5057_v6, %v5035_v0  ;;  %v5111_v63 = vadd.f32 %v5110_v24, %v5088_v4  ;;  %v5038_v21 = vmul.f32 %v6526_v44, %v9064_v11  ;;  %5817 = vst [vmem:[%s9081_s29 + $0x20] sm:$0xff] %v5717_v60   ;;  %v5777_v37 = vpack.c.bf16 %v4679_v32, %v4676_v13 }
 0x314   : > { %v6295_v51 = vpop.f32.mrb[12].mxu0  ;;  %v3015_v59 = vadd.f32 %v3014_v27, %v2992_v54  ;;  %v5036_v10 = vmul.f32 %v9060_v56, %v4679_v32  ;;  %v2994_v41 = vmul.f32 %v6291_v48, %v2940_v43  ;;  %v2962_v61 = vadd.f32 %v2961_v38, %v2939_v29 }
 0x315   : > { %v6529_v50 = vpop.f32.mrb[12].mxu1  ;;  %v2595_v17 = vpop.f32.mrb[13].mxu0  ;;  %v5112_v34 = vadd.f32 %v5111_v63, %v5089_v57  ;;  %v2993_v16 = vmul.f32 %v2939_v29, %v2582_v15  ;;  %v5091_v12 = vmul.f32 %v6525_v2, %v5037_v9  ;;  %5829 = vst [vmem:[%s9081_s29 + $0x80] sm:$0xff] %v5777_v37   ;;  %v2995_v0 = vmul.f32 %v6292_v14, %v2941_v36 }
 0x316   : > { %v4692_v3 = vpop.f32.mrb[13].mxu1  ;;  %v6296_v45 = vpop.f32.mrb[14].mxu0  ;;  %v5059_v20 = vadd.f32 %v5058_v49, %v5036_v10  ;;  %v5090_v42 = vmul.f32 %v5036_v10, %v4679_v32  ;;  %v2942_v62 = vmul.f32 %v9046_v53, %v2595_v17  ;;  %v2963_v13 = vadd.f32 %v2962_v61, %v2940_v43 }
 0x317   : > { %v6530_v25 = vpop.f32.mrb[14].mxu1  ;;  %v2598_v11 = vpop.f32.mrb[15].mxu0  ;;  %v3016_v4 = vadd.f32 %v3015_v59, %v2993_v16  ;;  %v5039_v56 = vmul.f32 %v9070_v26, %v4692_v3  ;;  %v5092_v48 = vmul.f32 %v6526_v44, %v5038_v21  ;;  %v2944_v22 = vmul.f32 %v6295_v51, %v9050_v39 }
 0x318   : > { %v4695_v47 = vpop.f32.mrb[15].mxu1  ;;  %v5060_v31 = vadd.f32 %v5059_v20, %v5037_v9  ;;  %v5113_v15 = vadd.f32 %v5112_v34, %v5090_v42  ;;  %v2964_v35 = vadd.f32 %v2963_v13, %v2941_v36  ;;  %v2996_v54 = vmul.f32 %v2942_v62, %v2595_v17  ;;  %v9126_v53 = vpop.permute.xlu1 %5009 }
 0x319   : > { %v3017_v2 = vadd.f32 %v3016_v4, %v2994_v41  ;;  %v5732_v32 = vpack.c.bf16 %v6296_v45, %v6295_v51  ;;  %v5093_v43 = vmul.f32 %v5039_v56, %v4692_v3  ;;  %v5792_v24 = vpack.c.bf16 %v6530_v25, %v6529_v50  ;;  %v9128_v6 = vpop.permute.xlu0 %2912 }
 0x31a   : > { %v5114_v46 = vadd.f32 %v5113_v15, %v5091_v12  ;;  %v5061_v14 = vadd.f32 %v5060_v31, %v5038_v21  ;;  %v5041_v26 = vmul.f32 %v6529_v50, %v9074_v30  ;;  %v2965_v44 = vadd.f32 %v2964_v35, %v2942_v62 }
 0x31b   : > { %v3018_v57 = vadd.f32 %v3017_v2, %v2995_v0  ;;  %5820 = vst [vmem:[%s9081_s29 + $0x38] sm:$0xff] %v5732_v32   ;;  %v5727_v39 = vpack.c.bf16 %v2598_v11, %v2595_v17  ;;  %v2945_v27 = vmul.f32 %v6296_v45, %v9048_v52  ;;  %5832 = vst [vmem:[%s9081_s29 + $0x98] sm:$0xff] %v5792_v24  }
 0x31c   : > { %v9132_v28 = vpop.f32.mrb[16].mxu0  ;;  %v5062_v9 = vadd.f32 %v5061_v14, %v5039_v56  ;;  %v5115_v38 = vadd.f32 %v5114_v46, %v5092_v48  ;;  %v2943_v60 = vmul.f32 %v9044_v19, %v2598_v11  ;;  %v5042_v30 = vmul.f32 %v6530_v25, %v9072_v8  ;;  %v9151_v4 = vpop.permute.xlu1 %5014 }
 0x31d   : > { %v9137_v49 = vpop.f32.mrb[16].mxu1  ;;  %v2611_v63 = vpop.f32.mrb[17].mxu0  ;;  %v3019_v36 = vadd.f32 %v3018_v57, %v2996_v54  ;;  %5819 = vst [vmem:[%s9081_s29 + $0x30] sm:$0xff] %v5727_v39   ;;  %v5787_v29 = vpack.c.bf16 %v4695_v47, %v4692_v3  ;;  %v5040_v59 = vmul.f32 %v9068_v55, %v4695_v47  ;;  %v2998_v10 = vmul.f32 %v6295_v51, %v2944_v22 }
 0x31e   : > { %v4708_v21 = vpop.f32.mrb[17].mxu1  ;;  %v9142_v37 = vpop.f32.mrb[18].mxu0  ;;  %v5116_v17 = vadd.f32 %v5115_v38, %v5093_v43  ;;  %v2966_v52 = vadd.f32 %v2965_v44, %v2943_v60  ;;  %v2997_v41 = vmul.f32 %v2943_v60, %v2598_v11  ;;  %v5095_v61 = vmul.f32 %v6529_v50, %v5041_v26 }
 0x31f   : > { %v9144_v34 = vpop.f32.mrb[18].mxu1  ;;  %v2614_v19 = vpop.f32.mrb[19].mxu0  ;;  %5831 = vst [vmem:[%s9081_s29 + $0x90] sm:$0xff] %v5787_v29   ;;  %v5063_v16 = vadd.f32 %v5062_v9, %v5040_v59  ;;  %v5094_v12 = vmul.f32 %v5040_v59, %v4695_v47  ;;  %v2946_v8 = vmul.f32 %v9079_v7, %v2611_v63  ;;  %v2999_v3 = vmul.f32 %v6296_v45, %v2945_v27 }
 0x320   : > { %v4711_v20 = vpop.f32.mrb[19].mxu1  ;;  %v2967_v42 = vadd.f32 %v2966_v52, %v2944_v22  ;;  %v3020_v55 = vadd.f32 %v3019_v36, %v2997_v41  ;;  %v5043_v62 = vmul.f32 %v9077_v40, %v4708_v21  ;;  %v5096_v0 = vmul.f32 %v6530_v25, %v5042_v30  ;;  %v9155_v45 = vpop.permute.xlu0 %2917 }
 0x321   : > { %v5064_v51 = vadd.f32 %v5063_v16, %v5041_v26  ;;  %v5117_v13 = vadd.f32 %v5116_v17, %v5094_v12  ;;  %v2948_v11 = vmul.f32 %v9132_v28, %v9100_v18  ;;  %v3000_v47 = vmul.f32 %v2946_v8, %v2611_v63  ;;  %v5020_v52 = vpop.permute.xlu1 %5019 }
 0x322   : > { %v3021_v50 = vadd.f32 %v3020_v55, %v2998_v10  ;;  %v2968_v56 = vadd.f32 %v2967_v42, %v2945_v27  ;;  %v5742_v7 = vpack.c.bf16 %v9142_v37, %v9132_v28  ;;  %v5097_v25 = vmul.f32 %v5043_v62, %v4708_v21 }
 0x323   : > { %v5118_v48 = vadd.f32 %v5117_v13, %v5095_v61  ;;  %v5065_v40 = vadd.f32 %v5064_v51, %v5042_v30  ;;  %v5802_v31 = vpack.c.bf16 %v9144_v34, %v9137_v49  ;;  %v5045_v18 = vmul.f32 %v9137_v49, %v9095_v5 }
 0x324   : > { %v9159_v15 = vpop.f32.mrb[20].mxu0  ;;  %v2969_v22 = vadd.f32 %v2968_v56, %v2946_v8  ;;  %v3022_v2 = vadd.f32 %v3021_v50, %v2999_v3  ;;  %5822 = vst [vmem:[%s9081_s29 + $0x48] sm:$0xff] %v5742_v7   ;;  %v5737_v35 = vpack.c.bf16 %v2614_v19, %v2611_v63  ;;  %v2949_v43 = vmul.f32 %v9142_v37, %v9114_v23 }
 0x325   : > { %v9164_v54 = vpop.f32.mrb[20].mxu1  ;;  %v2627_v32 = vpop.f32.mrb[21].mxu0  ;;  %v5066_v46 = vadd.f32 %v5065_v40, %v5043_v62  ;;  %v5119_v14 = vadd.f32 %v5118_v48, %v5096_v0  ;;  %5834 = vst [vmem:[%s9081_s29 + $0xa8] sm:$0xff] %v5802_v31   ;;  %v2947_v24 = vmul.f32 %v9088_v1, %v2614_v19  ;;  %v5046_v57 = vmul.f32 %v9144_v34, %v9110_v58 }
 0x326   : > { %v4724_v26 = vpop.f32.mrb[21].mxu1  ;;  %v9170_v44 = vpop.f32.mrb[22].mxu0  ;;  %v3023_v5 = vadd.f32 %v3022_v2, %v3000_v47  ;;  %5821 = vst [vmem:[%s9081_s29 + $0x40] sm:$0xff] %v5737_v35   ;;  %v5797_v39 = vpack.c.bf16 %v4711_v20, %v4708_v21  ;;  %v5044_v9 = vmul.f32 %v9085_v33, %v4711_v20  ;;  %v3002_v1 = vmul.f32 %v9132_v28, %v2948_v11 }
 0x327   : > { %v9176_v38 = vpop.f32.mrb[22].mxu1  ;;  %v2630_v27 = vpop.f32.mrb[23].mxu0  ;;  %v5120_v60 = vadd.f32 %v5119_v14, %v5097_v25  ;;  %v2970_v23 = vadd.f32 %v2969_v22, %v2947_v24  ;;  %v3001_v63 = vmul.f32 %v2947_v24, %v2614_v19  ;;  %v2950_v59 = vmul.f32 %v9128_v6, %v2627_v32 }
 0x328   : > { %v4727_v36 = vpop.f32.mrb[23].mxu1  ;;  %5833 = vst [vmem:[%s9081_s29 + $0xa0] sm:$0xff] %v5797_v39   ;;  %v5067_v30 = vadd.f32 %v5066_v46, %v5044_v9  ;;  %v5098_v29 = vmul.f32 %v5044_v9, %v4711_v20  ;;  %v2923_v58 = vpop.permute.xlu0 %2922  ;;  %v5099_v21 = vmul.f32 %v9137_v49, %v5045_v18  ;;  %v5047_v17 = vmul.f32 %v9126_v53, %v4724_v26 }
 0x329   : > { %v2971_v10 = vadd.f32 %v2970_v23, %v2948_v11  ;;  %v3024_v33 = vadd.f32 %v3023_v5, %v3001_v63  ;;  %v3003_v41 = vmul.f32 %v9142_v37, %v2949_v43  ;;  %v5100_v19 = vmul.f32 %v9144_v34, %v5046_v57  ;;  %v5025_v7 = vpop.permute.xlu1 %5024 }
 0x32a   : > { %v5068_v28 = vadd.f32 %v5067_v30, %v5045_v18  ;;  %v5121_v61 = vadd.f32 %v5120_v60, %v5098_v29  ;;  %v3004_v12 = vmul.f32 %v2950_v59, %v2627_v32  ;;  %v5752_v49 = vpack.c.bf16 %v9170_v44, %v9159_v15 }
 0x32b   : > { %v3025_v16 = vadd.f32 %v3024_v33, %v3002_v1  ;;  %v2972_v6 = vadd.f32 %v2971_v10, %v2949_v43  ;;  %v5101_v3 = vmul.f32 %v5047_v17, %v4724_v26  ;;  %v5812_v53 = vpack.c.bf16 %v9176_v38, %v9164_v54 }
 0x32c   : > { %v5122_v8 = vadd.f32 %v5121_v61, %v5099_v21  ;;  %v5069_v20 = vadd.f32 %v5068_v28, %v5046_v57  ;;  %5824 = vst [vmem:[%s9081_s29 + $0x58] sm:$0xff] %v5752_v49   ;;  %v5747_v42 = vpack.c.bf16 %v2630_v27, %v2627_v32  ;;  %v2952_v55 = vmul.f32 %v9159_v15, %v2923_v58  ;;  %v2928_v13 = vpop.permute.xlu0 %2927 }
 0x32d   : > { %v2973_v37 = vadd.f32 %v2972_v6, %v2950_v59  ;;  %v3026_v34 = vadd.f32 %v3025_v16, %v3003_v41  ;;  %5836 = vst [vmem:[%s9081_s29 + $0xb8] sm:$0xff] %v5812_v53   ;;  %v2951_v51 = vmul.f32 %v9155_v45, %v2630_v27  ;;  %v5049_v11 = vmul.f32 %v9164_v54, %v5020_v52 }
 0x32e   : > { %v5070_v62 = vadd.f32 %v5069_v20, %v5047_v17  ;;  %v5123_v0 = vadd.f32 %v5122_v8, %v5100_v19  ;;  %5823 = vst [vmem:[%s9081_s29 + $0x50] sm:$0xff] %v5747_v42   ;;  %v5807_v56 = vpack.c.bf16 %v4727_v36, %v4724_v26  ;;  %v5048_v47 = vmul.f32 %v9151_v4, %v4727_v36 }
 0x32f   : > { %v3027_v50 = vadd.f32 %v3026_v34, %v3004_v12  ;;  %v2953_v48 = vmul.f32 %v9170_v44, %v2928_v13  ;;  %v2974_v40 = vadd.f32 %v2973_v37, %v2951_v51  ;;  %v3005_v25 = vmul.f32 %v2951_v51, %v2630_v27 }
 0x330   : > { %v5124_v45 = vadd.f32 %v5123_v0, %v5101_v3  ;;  %v5050_v31 = vmul.f32 %v9176_v38, %v5025_v7  ;;  %5835 = vst [vmem:[%s9081_s29 + $0xb0] sm:$0xff] %v5807_v56   ;;  %v5071_v18 = vadd.f32 %v5070_v62, %v5048_v47  ;;  %v5102_v22 = vmul.f32 %v5048_v47, %v4727_v36 }
 0x331   : > { %v3006_v2 = vmul.f32 %v9159_v15, %v2952_v55  ;;  %v2975_v4 = vadd.f32 %v2974_v40, %v2952_v55  ;;  %v3028_v35 = vadd.f32 %v3027_v50, %v3005_v25 }
 0x332   : > { %7294 = shalt.err (!%p7291_p13)
}
 0x333   : > { %s7295_s20 = scalar_lea.hbm %s9198_s16, 3072  ;;  %s7299_s29 = scalar_lea.hbm %s9290_s5, 6144 }
 0x334   : > { %p7296_p9 = scmp.ne.s32.totalorder %s9198_s16, %s7295_s20  ;;  %p7300_p4 = scmp.lt.u32.totalorder %s9198_s16, %s9290_s5 }
 0x335   : > { %p7301_p8 = scmp.lt.u32.totalorder %s7299_s29, %s7295_s20  ;;  %p7303_p3 = scmp.lt.u32.totalorder %s7295_s20, %s9198_s16 }
 0x336   : > { %p7297_p0 = pnand %p7296_p9, %p7600_p10 }
 0x337   : > { %p7302_p6 = por %p7301_p8, %p7300_p4 }
 0x338   : > { %p7298_p11 = pneg %p7297_p0 }
 0x339   : > { %p7304_p5 = por %p7303_p3, %p7302_p6 }
 0x33b   : > { %p7305_p7 = pnand %p7304_p5, %p7298_p11 }
 0x33d   : > { %7308 = shalt.err (!%p7305_p7)
}
 0x33e   : > { %s7402_s7 = smov 64   ;;  %s7403_s9 = smov 4   ;;  %v5103_v15 = vmul.f32 %v9164_v54, %v5049_v11  ;;  %v5072_v32 = vadd.f32 %v5071_v18, %v5049_v11  ;;  %v5125_v46 = vadd.f32 %v5124_v45, %v5102_v22  ;;  %v3007_v14 = vmul.f32 %v9170_v44, %v2953_v48 }
 0x33f   : > { %6964 = dma.vmem_to_hbm [thread:$0]  (%p7600_p10), %s9203_s26, 3072, %s9198_s16, %s5138_s12, %s7402_s7, %s7402_s7, %s7403_s9   ;;  %v2976_v43 = vadd.f32 %v2975_v4, %v2953_v48  ;;  %v3029_v24 = vadd.f32 %v3028_v35, %v3006_v2  ;;  %v5104_v26 = vmul.f32 %v9176_v38, %v5050_v31 }
 0x340   : > { %v5073_v5 = vadd.f32 %v5072_v32, %v5050_v31  ;;  %v5126_v57 = vadd.f32 %v5125_v46, %v5103_v15  ;;  %s5325_s26 = sshll.u32 %s7652_s13, 1  ;;  %s5643_s16 = sshll.u32 %s7461_s25, 5 }
 0x341   : > { %v2977_v39 = vrot.slane %v2976_v43, 4  ;;  %v3030_v9 = vadd.f32 %v3029_v24, %v3007_v14  ;;  %s334_s12 = scalar_lea.vmem [#allocation12], %s5325_s26  ;;  %s9241_s20 = scalar_lea.hbm %s9291_s6, %s5643_s16 }
 0x342   : > { %v5074_v27 = vrot.slane %v5073_v5, 4  ;;  %v5127_v60 = vadd.f32 %v5126_v57, %v5104_v26  ;;  %s5172_s30 = sshll.u32 %s334_s12, 4  ;;  %s5143_s15 = scalar_lea.sflag [#allocation13], %s7652_s13  ;;  %s9243_s30 = int_to_ptr.vmem [resolvable:$true] %s5172_s30 }
 0x343   : > { %v2978_v23 = vadd.f32 %v2977_v39, %v2976_v43  ;;  %v3031_v63 = vrot.slane %v3030_v9, 4  ;;  %s7309_s27 = scalar_lea.vmem %s9243_s30, 32  ;;  %s7404_s25 = smov [#allocation12]  }
 0x344   : > { %v5075_v36 = vadd.f32 %v5074_v27, %v5073_v5  ;;  %v5128_v1 = vrot.slane %v5127_v60, 4  ;;  %p7310_p12 = scmp.ne.s32.totalorder %s9243_s30, %s7309_s27  ;;  %s7313_s29 = sshll.u32 %s7404_s25, 4  ;;  %s7314_s29 = int_to_ptr.vmem [resolvable:$false] %s7313_s29 }
 0x345   : > { %v2979_v54 = vrot.slane %v2978_v23, 2  ;;  %v3032_v30 = vadd.f32 %v3031_v63, %v3030_v9  ;;  %s7315_s17 = scalar_lea.vmem %s7314_s29, 64  ;;  %p7316_p13 = scmp.lt.s32.totalorder %s9243_s30, %s7314_s29 }
 0x346   : > { %v5076_v29 = vrot.slane %v5075_v36, 2  ;;  %v5129_v44 = vadd.f32 %v5128_v1, %v5127_v60  ;;  %p7311_p2 = pnand %p7310_p12, %p7600_p10  ;;  %p7317_p9 = scmp.lt.s32.totalorder %s7315_s17, %s7309_s27 }
 0x347   : > { %v2980_v59 = vadd.f32 %v2979_v54, %v2978_v23  ;;  %v3033_v58 = vrot.slane %v3032_v30, 2 }
 0x348   : > { %v5077_v38 = vadd.f32 %v5076_v29, %v5075_v36  ;;  %v5130_v21 = vrot.slane %v5129_v44, 2  ;;  %p7312_p1 = pneg %p7311_p2  ;;  %p7318_p0 = por %p7317_p9, %p7316_p13 }
 0x349   : > { %v2981_v10 = vrot.slane %v2980_v59, 1  ;;  %v3034_v33 = vadd.f32 %v3033_v58, %v3032_v30 }
 0x34a   : > { %v5078_v17 = vrot.slane %v5077_v38, 1  ;;  %v5131_v52 = vadd.f32 %v5130_v21, %v5129_v44  ;;  %p7319_p11 = pnand %p7318_p0, %p7312_p1 }
 0x34b   : > { %v2982_v41 = vadd.f32 %v2981_v10, %v2980_v59  ;;  %v3035_v19 = vrot.slane %v3034_v33, 1 }
 0x34c   : > { %v5079_v28 = vadd.f32 %v5078_v17, %v5077_v38  ;;  %v5132_v61 = vrot.slane %v5131_v52, 1 }
 0x34d   : > { %v3036_v16 = vadd.f32 %v3035_v19, %v3034_v33 }
 0x34e   : > { %v5133_v6 = vadd.f32 %v5132_v61, %v5131_v52  ;;  %v5080_v12 = vadd.f32 %v5079_v28, %v2982_v41 }
 0x350   : > { %v5134_v49 = vadd.f32 %v5133_v6, %v3036_v16  ;;  %5135 = vst [vmem:[%s334_s12] sm:$0x1] %v5080_v12 }
 0x352   : > { %5136 = vst [vmem:[%s334_s12 + $0x1] sm:$0x1] %v5134_v49 }
 0x353   : > { %7322 = shalt.err (!%p7319_p11)
}
 0x354   : > { %s7323_s13 = scalar_lea.hbm %s9241_s20, 32  ;;  %s7327_s9 = scalar_lea.hbm %s9291_s6, 64 }
 0x355   : > { %p7324_p4 = scmp.ne.s32.totalorder %s9241_s20, %s7323_s13  ;;  %p7328_p3 = scmp.lt.u32.totalorder %s9241_s20, %s9291_s6 }
 0x356   : > { %p7329_p5 = scmp.lt.u32.totalorder %s7327_s9, %s7323_s13  ;;  %p7331_p12 = scmp.lt.u32.totalorder %s7323_s13, %s9241_s20 }
 0x357   : > { %p7325_p8 = pnand %p7324_p4, %p7600_p10 }
 0x358   : > { %p7330_p7 = por %p7329_p5, %p7328_p3 }
 0x359   : > { %p7326_p6 = pneg %p7325_p8 }
 0x35a   : > { %p7332_p2 = por %p7331_p12, %p7330_p7 }
 0x35c   : > { %p7333_p1 = pnand %p7332_p2, %p7326_p6 }
 0x35e   : > { %7336 = shalt.err (!%p7333_p1)
}
 0x35f   : > { %6965 = dma.vmem_to_hbm [thread:$0]  (%p7600_p10), %s9243_s30, 32, %s9241_s20, %s5143_s15  }
 0x360 PF: > { %s5184_s12 = sand.u32 1, %s7375_s21   ;;  %p9638_p13 = scmp.ne.s32.totalorder %s9389_s28, 0 }
 0x361   : > { %p9639_p9 = scmp.ge.s32.totalorder %s7387_s24, 2  ;;  %s5185_s8 = scalar_lea.sflag [#allocation4], %s5184_s12 }
 0x363   : > { %p6986_p0 = pnand %p9639_p9, %p9638_p13 }
 0x365   : > { %7366 = dma.done.wait (!%p6986_p0), %s5185_s8, 3072  }
 0x366   : > { %7368 = vsyncadd (!%p6986_p0), %s5185_s8, 4294964224  ;;  %s5194_s19 = scalar_lea.sflag [#allocation13], %s5184_s12 }
 0x367   : > { %7370 = dma.done.wait (!%p6986_p0), %s5194_s19, 32  }
 0x368   : > { %7372 = vsyncadd (!%p6986_p0), %s5194_s19, 4294967264  ;;  %p25_p10 = scmp.ge.s32.totalorder %s7590_s18, 4   ;;  %s9640_s21 = smov %s7379_s22 }
 0x369   : > { %s9641_s22 = smov %s7383_s23  ;;  %s9642_s23 = smov %s7606_s14 }
 0x36a   : > { %s9643_s24 = smov %s7590_s18  ;;  %27 = sbr.rel (!%p25_p10) target bundleno = 9 (0x9), region = 126 }
 0x371   :  { %5199 = vsyncpa [#allocation3], 1 }
 0x372   :  { %5201 = vsyncpa [#allocation3 + $0x1], 1 }
 0x373   :  { %5202 = vsyncpa [#allocation6], 1 }
 0x374   :  { %5203 = vsyncpa [#allocation9], 1 }
 0x375   :  { %5204 = vsyncpa [#allocation4], 1 }
 0x376   :  { %5206 = vsyncpa [#allocation4 + $0x1], 1 }
 0x377   :  { %5207 = vsyncpa [#allocation13], 1 }
 0x378   :  { %5209 = vsyncpa [#allocation13 + $0x1], 1 }

// kernel: double_conv.4
= control target key start
LH: loop header
LB: loop body
LE: loop exit
PB: predicated region body
PF: predicated region fallthrough
CT: control target
= control target key end

     0   :  { %12 = vsyncpa [#allocation3], 0  ;;  %s10443_s0 = inlined_call_operand.hbm [shape: bf16[2,440,128], index: 0, kind: input, shape index: {}]   ;;  %s10444_s1 = inlined_call_operand.hbm [shape: bf16[3,384,128], index: 1, kind: input, shape index: {}]   ;;  %s10445_s2 = inlined_call_operand.hbm [shape: f32[440,1], index: 2, kind: input, shape index: {}]   ;;  %s10446_s3 = inlined_call_operand.hbm [shape: f32[1,128], index: 3, kind: input, shape index: {}]   ;;  %s10447_s4 = inlined_call_operand.hbm [shape: f32[1,128], index: 4, kind: input, shape index: {}]   ;;  %s10448_s5 = inlined_call_operand.hbm [shape: bf16[2,384,128], index: 5, kind: output, shape index: {0}]   ;;  %s10449_s6 = inlined_call_operand.hbm [shape: f32[2,2,128], index: 6, kind: output, shape index: {1}]  }
   0x1   :  { %14 = vsyncpa [#allocation3 + $0x1], 0 }
   0x2   :  { %15 = vsyncpa [#allocation6], 0 }
   0x3   :  { %16 = vsyncpa [#allocation9], 0 }
   0x4   :  { %17 = vsyncpa [#allocation4], 0 }
   0x5   :  { %19 = vsyncpa [#allocation4 + $0x1], 0 }
   0x6   :  { %20 = vsyncpa [#allocation13], 0 }
   0x7   :  { %22 = vsyncpa [#allocation13 + $0x1], 0  ;;  %s7963_s21 = smov 0   ;;  %s7965_s22 = smov 0  }
   0x8   :  { %s7967_s23 = smov 0   ;;  %s7969_s24 = smov 0  }
   0x9 LB: > { %s7984_s25 = sadd.s32 4294967295, %s7911_s24   ;;  %s5717_s26 = sadd.s32 4294967294, %s7911_s24   ;;  %s7911_s24 = sphi %s7969_s24, %s10915_s24   ;;  %s7907_s23 = sphi %s7967_s23, %s10914_s23   ;;  %s7903_s22 = sphi %s7965_s22, %s10913_s22   ;;  %s7899_s21 = sphi %s7963_s21, %s10912_s21  }
   0xa   : > { %p48_p0 = scmp.ne.s32.totalorder %s7903_s22, %s7899_s21  ;;  %p10450_p1 = scmp.eq.s32.totalorder %s7984_s25, 0 }
   0xb   : > { %p162_p3 = scmp.eq.s32.totalorder %s5717_s26, 1  ;;  %p5718_p5 = scmp.ge.s32.totalorder %s7911_s24, 1 }
   0xc   : > { %p7993_p4 = por %p10450_p1, %p48_p0  ;;  %p195_p7 = scmp.lt.s32.totalorder %s7911_s24, 3 }
   0xd   : > { %p7998_p6 = por %p162_p3, %p48_p0  ;;  %s7913_s30 = smov [#allocation5]  }
   0xe   : > { %s10561_s27 = scalar_select %p7993_p4, 1, 0 }
   0xf   : > { %s10562_s28 = scalar_select %p7998_p6, 1, 0 }
  0x10   : > { %p8003_p8 = pnand %p5718_p5, %p195_p7  ;;  %s207_s7 = sshll.u32 %s7913_s30, 4  ;;  %s8007_s7 = int_to_ptr.vmem [resolvable:$true] %s207_s7 }
  0x11   : > { %s7914_s9 = smov [#allocation8]   ;;  %s7915_s11 = smov [#allocation7]  }
  0x12   : > { %s10563_s29 = scalar_select %p8003_p8, 1, 0 }
  0x13   : > { %p7410_p9 = pneg %p8003_p8  ;;  %s234_s10 = sshll.u32 %s7914_s9, 4  ;;  %s8018_s10 = int_to_ptr.vmem [resolvable:$true] %s234_s10 }
  0x14   : > { %s8020_s12 = sshll.u32 %s7915_s11, 4  ;;  %s7663_s15 = scalar_lea.hbm %s10444_s1, 9216  ;;  %s221_s12 = int_to_ptr.vmem [resolvable:$true] %s8020_s12 }
  0x15   : > { %p8014_p11 = pnand %p7410_p9, %p10450_p1  ;;  %p7664_p12 = scmp.ne.s32.totalorder %s10444_s1, %s7663_s15 }
  0x16   : > { %p7670_p5 = scmp.lt.u32.totalorder %s7663_s15, %s10444_s1 }
  0x17   : > { %p8030_p13 = pneg %p8014_p11 }
  0x19   : > { %p7666_p0 = pnand %p8030_p13, %p7664_p12 }
  0x1b   : > { %p7667_p3 = pneg %p7666_p0 }
  0x1d   : > { %p7672_p7 = pnand %p7670_p5, %p7667_p3 }
  0x1f   : > { %7675 = shalt.err (!%p7672_p7)
}
  0x20   : > { %s7676_s26 = scalar_lea.vmem %s8007_s7, 9216  ;;  %p7684_p2 = scmp.lt.s32.totalorder %s8007_s7, %s8007_s7 }
  0x21   : > { %p7677_p9 = scmp.ne.s32.totalorder %s8007_s7, %s7676_s26  ;;  %p7685_p6 = scmp.lt.s32.totalorder %s7676_s26, %s7676_s26 }
  0x23   : > { %p7679_p10 = pnand %p7677_p9, %p8030_p13  ;;  %p7686_p12 = por %p7685_p6, %p7684_p2 }
  0x25   : > { %p7680_p1 = pneg %p7679_p10 }
  0x27   : > { %p7687_p0 = pnand %p7686_p12, %p7680_p1 }
  0x29   : > { %7690 = shalt.err (!%p7687_p0)
}
  0x2a   : > { %s10453_s30 = smov 64   ;;  %s10454_s9 = smov 4  }
  0x2b   : > { %7413 = dma.hbm_to_vmem [thread:$0]  (!%p8014_p11), %s10444_s1, 9216, %s8007_s7, [#allocation6], %s10453_s30, %s10453_s30, %s10454_s9  }
  0x2c   : > { %s7691_s16 = scalar_lea.hbm %s10446_s3, 16 }
  0x2d   : > { %p7692_p1 = scmp.ne.s32.totalorder %s10446_s3, %s7691_s16  ;;  %p7698_p10 = scmp.lt.u32.totalorder %s7691_s16, %s10446_s3 }
  0x2f   : > { %p7694_p2 = pnand %p7692_p1, %p8030_p13 }
  0x31   : > { %p7695_p6 = pneg %p7694_p2 }
  0x33   : > { %p7700_p3 = pnand %p7698_p10, %p7695_p6 }
  0x35   : > { %7703 = shalt.err (!%p7700_p3)
}
  0x36   : > { %s7704_s7 = scalar_lea.vmem %s8018_s10, 16  ;;  %s7711_s11 = scalar_lea.vmem %s8018_s10, 32 }
  0x37   : > { %p7705_p5 = scmp.ne.s32.totalorder %s8018_s10, %s7704_s7  ;;  %p7712_p12 = scmp.lt.s32.totalorder %s8018_s10, %s8018_s10 }
  0x38   : > { %p7713_p0 = scmp.lt.s32.totalorder %s7711_s11, %s7704_s7 }
  0x39   : > { %p7707_p7 = pnand %p7705_p5, %p8030_p13 }
  0x3a   : > { %p7714_p1 = por %p7713_p0, %p7712_p12 }
  0x3b   : > { %p7708_p9 = pneg %p7707_p7 }
  0x3d   : > { %p7715_p2 = pnand %p7714_p1, %p7708_p9 }
  0x3f   : > { %7718 = shalt.err (!%p7715_p2)
}
  0x40   : > { %7419 = dma.hbm_to_vmem [thread:$0]  (!%p8014_p11), %s10446_s3, 16, %s8018_s10, [#allocation9]  }
  0x41   : > { %s7719_s17 = scalar_lea.hbm %s10445_s2, 7040 }
  0x42   : > { %p7720_p6 = scmp.ne.s32.totalorder %s10445_s2, %s7719_s17  ;;  %p7726_p5 = scmp.lt.u32.totalorder %s7719_s17, %s10445_s2 }
  0x44   : > { %p7722_p10 = pnand %p7720_p6, %p8030_p13 }
  0x46   : > { %p7723_p3 = pneg %p7722_p10 }
  0x48   : > { %p7728_p7 = pnand %p7726_p5, %p7723_p3 }
  0x4a   : > { %7731 = shalt.err (!%p7728_p7)
}
  0x4b   : > { %s7732_s11 = scalar_lea.vmem %s221_s12, 7040  ;;  %p7740_p1 = scmp.lt.s32.totalorder %s221_s12, %s221_s12 }
  0x4c   : > { %p7733_p9 = scmp.ne.s32.totalorder %s221_s12, %s7732_s11  ;;  %p7741_p2 = scmp.lt.s32.totalorder %s7732_s11, %s7732_s11 }
  0x4e   : > { %p7735_p12 = pnand %p7733_p9, %p8030_p13  ;;  %p7742_p4 = por %p7741_p2, %p7740_p1 }
  0x50   : > { %p7736_p0 = pneg %p7735_p12 }
  0x52   : > { %p7743_p8 = pnand %p7742_p4, %p7736_p0 }
  0x54   : > { %7746 = shalt.err (!%p7743_p8)
}
  0x55   : > { %s7918_s10 = smov 128   ;;  %s7919_s13 = smov 8  }
  0x56   : > { %7416 = dma.hbm_to_vmem [thread:$0]  (!%p8014_p11), %s10445_s2, 7040, %s221_s12, [#allocation6], %s7918_s10, %s7918_s10, %s7919_s13  }
  0x57   : > { %s7920_s16 = smov [#allocation10]   ;;  %s7747_s26 = scalar_lea.hbm %s10447_s4, 16 }
  0x58   : > { %s245_s17 = sshll.u32 %s7920_s16, 4  ;;  %p7748_p4 = scmp.ne.s32.totalorder %s10447_s4, %s7747_s26  ;;  %s246_s17 = int_to_ptr.vmem [resolvable:$true] %s245_s17 }
  0x59   : > { %p7754_p10 = scmp.lt.u32.totalorder %s7747_s26, %s10447_s4 }
  0x5a   : > { %p7750_p8 = pnand %p7748_p4, %p8030_p13 }
  0x5c   : > { %p7751_p6 = pneg %p7750_p8 }
  0x5e   : > { %p7756_p3 = pnand %p7754_p10, %p7751_p6 }
  0x60   : > { %7759 = shalt.err (!%p7756_p3)
}
  0x61   : > { %s7760_s12 = scalar_lea.vmem %s246_s17, 16  ;;  %s7767_s10 = scalar_lea.vmem %s246_s17, 32 }
  0x62   : > { %p7761_p5 = scmp.ne.s32.totalorder %s246_s17, %s7760_s12  ;;  %p7768_p12 = scmp.lt.s32.totalorder %s246_s17, %s246_s17 }
  0x63   : > { %p7769_p0 = scmp.lt.s32.totalorder %s7767_s10, %s7760_s12 }
  0x64   : > { %p7763_p7 = pnand %p7761_p5, %p8030_p13 }
  0x65   : > { %p7770_p1 = por %p7769_p0, %p7768_p12 }
  0x66   : > { %p7764_p9 = pneg %p7763_p7 }
  0x68   : > { %p7771_p2 = pnand %p7770_p1, %p7764_p9 }
  0x6a   : > { %7774 = shalt.err (!%p7771_p2)
}
  0x6b   : > { %7422 = dma.hbm_to_vmem [thread:$0]  (!%p8014_p11), %s10447_s4, 16, %s246_s17, [#allocation9]  }
  0x6c   : > { %s8116_s18 = sadd.s32 1, %s7911_s24   ;;  %s35_s30 = sadd.s32 1, %s7907_s23 }
  0x6d   : > { %s32_s8 = ssub.s32 %s7911_s24, %s8116_s18  ;;  %p42_p13 = scmp.ne.s32.totalorder %s7907_s23, %s7903_s22 }
  0x6e   : > { %p33_p4 = scmp.eq.s32.totalorder %s32_s8, 0  ;;  %p43_p8 = scmp.eq.s32.totalorder %s7911_s24, 0 }
  0x6f   : > { %p10566_p6 = scmp.eq.s32.totalorder %s7984_s25, 1  ;;  %p7438_p3 = scmp.lt.s32.totalorder %s7911_s24, 2 }
  0x70   : > { %s8132_s15 = scalar_select %p33_p4, %s7907_s23, %s35_s30  }
  0x71   : > { %p8126_p10 = por %p10566_p6, %p42_p13  ;;  %p44_p5 = por %p43_p8, %p42_p13 }
  0x72   : > { %s256_s16 = sand.u32 1, %s7907_s23   ;;  %s7384_s17 = smul.u32 3520, %s7911_s24 }
  0x73   : > { %s7383_s19 = smul.u32 220, %s256_s16  ;;  %p8136_p11 = pnand %p7438_p3, %p44_p5 }
  0x74   : > { %s8143_s11 = scalar_lea.hbm %s10443_s0, %s7384_s17  ;;  %s8147_s13 = scalar_lea.sflag [#allocation3], %s256_s16 }
  0x75   : > { %s260_s12 = scalar_lea.vmem [#allocation2], %s7383_s19  ;;  %s7775_s14 = scalar_lea.hbm %s8143_s11, 3520 }
  0x76   : > { %s267_s10 = sshll.u32 %s260_s12, 4  ;;  %p7776_p7 = scmp.ne.s32.totalorder %s8143_s11, %s7775_s14  ;;  %s8145_s10 = int_to_ptr.vmem [resolvable:$true] %s267_s10 }
  0x77   : > { %p7777_p9 = pneg %p8136_p11  ;;  %s7780_s17 = scalar_lea.hbm %s10443_s0, 7040 }
  0x78   : > { %p7781_p1 = scmp.lt.u32.totalorder %s8143_s11, %s10443_s0  ;;  %p7782_p2 = scmp.lt.u32.totalorder %s7780_s17, %s7775_s14 }
  0x79   : > { %p7778_p12 = pnand %p7777_p9, %p7776_p7  ;;  %p7784_p4 = scmp.lt.u32.totalorder %s7775_s14, %s8143_s11 }
  0x7a   : > { %p7783_p13 = por %p7782_p2, %p7781_p1 }
  0x7b   : > { %p7779_p0 = pneg %p7778_p12 }
  0x7c   : > { %p7785_p8 = por %p7784_p4, %p7783_p13 }
  0x7e   : > { %p7786_p6 = pnand %p7785_p8, %p7779_p0 }
  0x80   : > { %7789 = shalt.err (!%p7786_p6)
}
  0x81   : > { %s7790_s16 = scalar_lea.vmem %s8145_s10, 3520  ;;  %s7921_s19 = smov [#allocation2]  }
  0x82   : > { %p7791_p3 = scmp.ne.s32.totalorder %s8145_s10, %s7790_s16  ;;  %s7795_s12 = sshll.u32 %s7921_s19, 4  ;;  %s7796_s12 = int_to_ptr.vmem [resolvable:$false] %s7795_s12 }
  0x83   : > { %s7797_s30 = scalar_lea.vmem %s7796_s12, 7040  ;;  %p7798_p12 = scmp.lt.s32.totalorder %s8145_s10, %s7796_s12 }
  0x84   : > { %p7793_p5 = pnand %p7791_p3, %p7777_p9  ;;  %p7799_p1 = scmp.lt.s32.totalorder %s7797_s30, %s7790_s16 }
  0x86   : > { %p7794_p7 = pneg %p7793_p5  ;;  %p7800_p2 = por %p7799_p1, %p7798_p12 }
  0x88   : > { %p7801_p13 = pnand %p7800_p2, %p7794_p7 }
  0x8a   : > { %7804 = shalt.err (!%p7801_p13)
}
  0x8b   : > { %s10569_s14 = smov 4   ;;  %s10570_s8 = smov 64  }
  0x8c   : > { %7426 = dma.hbm_to_vmem [thread:$0]  (!%p8136_p11), %s8143_s11, 3520, %s8145_s10, %s8147_s13, %s10570_s8, %s10570_s8, %s10569_s14  }
  0x8d   : > { %p10571_p9 = scmp.ne.s32.totalorder %s10563_s29, 0 }
  0x8f   : > { %279 = sbr.rel (%p10571_p9) target bundleno = 1016 (0x3f8), region = 40 }
  0x96   : > { %s8181_s17 = sand.u32 1, %s7903_s22   ;;  %p10572_p0 = scmp.ne.s32.totalorder %s10561_s27, 0 }
  0x97   : > { %s7385_s26 = smul.u32 220, %s8181_s17  ;;  %s282_s7 = scalar_lea.sflag [#allocation3], %s8181_s17 }
  0x99   : > { %s8185_s16 = scalar_lea.vmem [#allocation2], %s7385_s26 }
  0x9a   : > { %7878 = dma.done.wait (%p10572_p0), %s282_s7, 3520  }
  0x9b   : > { %7880 = vsyncadd (%p10572_p0), %s282_s7, 4294963776  ;;  %p10573_p11 = scmp.eq.s32.totalorder %s7984_s25, 0 }
  0x9d   : > { %7882 = dma.done.wait (%p10573_p11), [#allocation6], 16256   ;;  %p10574_p4 = pmov %p10573_p11 }
  0x9f   : > { %7884 = vsyncadd (%p10574_p4), [#allocation6], 4294951040  ;;  %p10575_p8 = pmov %p10574_p4 }
  0xa0   : > { %p10576_p6 = pmov %p10574_p4 }
  0xa1   : > { %7886 = dma.done.wait (%p10575_p8), [#allocation9], 32  }
  0xa2   : > { %7888 = vsyncadd (%p10576_p6), [#allocation9], 4294967264  ;;  %v7922_v0 = vmov 0   ;;  %v7923_v1 = vmov 0.0   ;;  %v8200_v2 = vld [vmem:[#allocation7 + $0x20] sm:$0xff]  ;;  %v8202_v3 = vld [vmem:[#allocation7 + $0x18] sm:$0xff] }
  0xa3   : > { %7488 = vset.pattern.permute.xlu0 %v7922_v0  ;;  %7494 = vset.pattern.permute.xlu1 %v7922_v0  ;;  %v8206_v4 = vld [vmem:[#allocation7 + $0x28] sm:$0xff]  ;;  %v8210_v5 = vld [vmem:[#allocation7 + $0x30] sm:$0xff]  ;;  %v8212_v6 = vld [vmem:[#allocation7 + $0x38] sm:$0xff]  ;;  %vm1560_vm0 = vcmask 1046528   ;;  %vm1370_vm1 = vcmask 1040384   ;;  %vm1887_vm2 = vcmask 1043456  }
  0xa4   : > { %7490 = vperm.xlu0 %7488, %v7923_v1   ;;  %978 = vperm.xlu1 %7494, %v8200_v2   ;;  %v8216_v7 = vld [vmem:[#allocation7 + $0x40] sm:$0xff]  ;;  %v8218_v8 = vld [vmem:[#allocation7 + $0x48] sm:$0xff]  ;;  %v8222_v9 = vld [vmem:[#allocation7 + $0x50] sm:$0xff]  ;;  %s7386_s27 = smul.u32 192, %s8181_s17  ;;  %s5543_s12 = scalar_lea.sflag [#allocation4], %s8181_s17 }
  0xa5   : > { %v8224_v10 = vld [vmem:[#allocation7 + $0x58] sm:$0xff]  ;;  %v8226_v11 = vld [vmem:[#allocation7 + $0x60] sm:$0xff]  ;;  %v570_v12 = vld [vmem:[#allocation7 + $0x68] sm:$0xff]  ;;  %s7387_s20 = smul.u32 3072, %s7984_s25  ;;  %s7924_s14 = smov [#allocation11]  }
  0xa6   : > { %v7505_v13 = vld [vmem:[#allocation5 + $0x100] sm:$0xff]   ;;  %v8230_v16 = vld [vmem:[#allocation7 + $0x70] sm:$0xff]  ;;  %v572_v17 = vld [vmem:[#allocation7 + $0x78] sm:$0xff]  ;;  %s9981_s29 = scalar_lea.vmem [#allocation11], %s7386_s27  ;;  %s7809_s8 = sshll.u32 %s7924_s14, 4  ;;  %s7810_s8 = int_to_ptr.vmem [resolvable:$false] %s7809_s8 }
  0xa7   : > { %v7506_v14 = vld [vmem:[#allocation5 + $0x40] sm:$0xff]   ;;  %6255 = vmatprep.subr.bf16.mxu0 %v7505_v13  ;;  %v7509_v19 = vld [vmem:[#allocation5 + $0x108] sm:$0xff]   ;;  %v7513_v25 = vld [vmem:[#allocation5 + $0x110] sm:$0xff]   ;;  %s5561_s11 = sshll.u32 %s9981_s29, 4  ;;  %s10365_s19 = scalar_lea.hbm %s10448_s5, %s7387_s20  ;;  %s10367_s11 = int_to_ptr.vmem [resolvable:$true] %s5561_s11 }
  0xa8   : > { %973 = vperm.xlu0 %7488, %v8202_v3   ;;  %983 = vperm.xlu1 %7494, %v8206_v4   ;;  %v7507_v15 = vld [vmem:[#allocation5 + $0xc0] sm:$0xff]   ;;  %v7510_v20 = vld [vmem:[#allocation5 + $0x48] sm:$0xff]   ;;  %v7514_v26 = vld [vmem:[#allocation5 + $0x50] sm:$0xff]   ;;  %s7805_s30 = scalar_lea.vmem %s10367_s11, 3072  ;;  %s7811_s26 = scalar_lea.vmem %s7810_s8, 6144 }
  0xa9   : > { %6363 = vmatprep.subr.bf16.mxu1 %v7506_v14  ;;  %v7508_v18 = vld [vmem:[#allocation5] sm:$0xff]   ;;  %6256 = vmatpush3.bf16.msra.mxu0 %v7507_v15  ;;  %v7511_v21 = vld [vmem:[#allocation5 + $0xc8] sm:$0xff]   ;;  %v7515_v27 = vld [vmem:[#allocation5 + $0xd0] sm:$0xff]   ;;  %p7806_p3 = scmp.ne.s32.totalorder %s10367_s11, %s7805_s30  ;;  %p7812_p12 = scmp.lt.s32.totalorder %s10367_s11, %s7810_s8 }
  0xaa   : > { %6364 = vmatpush3.bf16.msra.mxu1 %v7508_v18  ;;  %6257 = vmatprep.subr.bf16.mxu0 %v7509_v19  ;;  %v573_v22 = vld [vmem:[#allocation7 + $0x80] sm:$0xff]  ;;  %v574_v23 = vld [vmem:[#allocation7 + $0x88] sm:$0xff]  ;;  %v575_v28 = vld [vmem:[#allocation7 + $0x90] sm:$0xff]  ;;  %p7813_p1 = scmp.lt.s32.totalorder %s7811_s26, %s7805_s30 }
  0xab   : > { %6365 = vmatprep.subr.bf16.mxu1 %v7510_v20  ;;  %v7512_v24 = vld [vmem:[#allocation5 + $0x8] sm:$0xff]   ;;  %v576_v29 = vld [vmem:[#allocation7 + $0x98] sm:$0xff]  ;;  %v7516_v30 = vld [vmem:[#allocation5 + $0x10] sm:$0xff]   ;;  %p7807_p5 = pnand %p7806_p3, %p8126_p10 }
  0xac   : > { %7496 = vperm.xlu0 %7488, %v7923_v1   ;;  %988 = vperm.xlu1 %7494, %v8210_v5   ;;  %v7517_v31 = vld [vmem:[#allocation5 + $0x118] sm:$0xff]   ;;  %v577_v35 = vld [vmem:[#allocation7 + $0xa0] sm:$0xff]  ;;  %v578_v36 = vld [vmem:[#allocation7 + $0xa8] sm:$0xff]  ;;  %p7814_p2 = por %p7813_p1, %p7812_p12 }
  0xad   : > { %6258 = vmatpush3.bf16.msra.mxu0 %v7511_v21  ;;  %v7518_v32 = vld [vmem:[#allocation5 + $0x58] sm:$0xff]   ;;  %v7521_v37 = vld [vmem:[#allocation5 + $0x120] sm:$0xff]   ;;  %v579_v39 = vld [vmem:[#allocation7 + $0xb0] sm:$0xff]  ;;  %p7808_p7 = pneg %p7807_p5 }
  0xae   : > { %6366 = vmatpush3.bf16.msra.mxu1 %v7512_v24  ;;  %6259 = vmatprep.subr.bf16.mxu0 %v7513_v25  ;;  %v7519_v33 = vld [vmem:[#allocation5 + $0xd8] sm:$0xff]   ;;  %v7522_v38 = vld [vmem:[#allocation5 + $0x60] sm:$0xff]   ;;  %v7525_v43 = vld [vmem:[#allocation5 + $0x128] sm:$0xff]  }
  0xaf   : > { %6367 = vmatprep.subr.bf16.mxu1 %v7514_v26  ;;  %v7520_v34 = vld [vmem:[#allocation5 + $0x18] sm:$0xff]   ;;  %v7523_v40 = vld [vmem:[#allocation5 + $0xe0] sm:$0xff]   ;;  %v7526_v44 = vld [vmem:[#allocation5 + $0x68] sm:$0xff]   ;;  %p7815_p13 = pnand %p7814_p2, %p7808_p7 }
  0xb0   : > { %993 = vperm.xlu0 %7488, %v8212_v6   ;;  %998 = vperm.xlu1 %7494, %v8216_v7   ;;  %v7524_v41 = vld [vmem:[#allocation5 + $0x20] sm:$0xff]   ;;  %v580_v42 = vld [vmem:[#allocation7 + $0xb8] sm:$0xff]  ;;  %v7527_v45 = vld [vmem:[#allocation5 + $0xe8] sm:$0xff]  }
  0xb1   : > { %6260 = vmatpush3.bf16.msra.mxu0 %v7515_v27  ;;  %v8234_v46 = vld [vmem:[#allocation7 + $0xc0] sm:$0xff]  ;;  %v8236_v47 = vld [vmem:[#allocation7 + $0xc8] sm:$0xff]  ;;  %v7529_v49 = vld [vmem:[#allocation5 + $0x130] sm:$0xff]  }
  0xb2   : > { %6368 = vmatpush3.bf16.msra.mxu1 %v7516_v30  ;;  %6261 = vmatprep.subr.bf16.mxu0 %v7517_v31  ;;  %v7528_v48 = vld [vmem:[#allocation5 + $0x28] sm:$0xff]   ;;  %v8238_v50 = vld [vmem:[#allocation7 + $0xd0] sm:$0xff]  ;;  %v8242_v52 = vld [vmem:[#allocation7 + $0xd8] sm:$0xff] }
  0xb3   : > { %6369 = vmatprep.subr.bf16.mxu1 %v7518_v32  ;;  %v7530_v51 = vld [vmem:[#allocation5 + $0x70] sm:$0xff]   ;;  %v8244_v55 = vld [vmem:[#allocation7 + $0xe0] sm:$0xff]  ;;  %v8246_v56 = vld [vmem:[#allocation7 + $0xe8] sm:$0xff] }
  0xb4   : > { %1003 = vperm.xlu0 %7488, %v8218_v8   ;;  %1008 = vperm.xlu1 %7494, %v8222_v9   ;;  %v7531_v53 = vld [vmem:[#allocation5 + $0xf0] sm:$0xff]   ;;  %v7533_v57 = vld [vmem:[#allocation5 + $0x138] sm:$0xff]   ;;  %v8250_v61 = vld [vmem:[#allocation5 + $0x140] sm:$0xff]  }
  0xb5   : > { %6262 = vmatpush3.bf16.msra.mxu0 %v7519_v33  ;;  %v7532_v54 = vld [vmem:[#allocation5 + $0x30] sm:$0xff]   ;;  %v7534_v58 = vld [vmem:[#allocation5 + $0x78] sm:$0xff]   ;;  %v8254_v62 = vld [vmem:[#allocation5 + $0x80] sm:$0xff]  }
  0xb6   : > { %6370 = vmatpush3.bf16.msra.mxu1 %v7520_v34  ;;  %6263 = vmatprep.subr.bf16.mxu0 %v7521_v37  ;;  %v7535_v59 = vld [vmem:[#allocation5 + $0xf8] sm:$0xff]   ;;  %v8256_v63 = vld [vmem:[#allocation7 + $0xf0] sm:$0xff]  ;;  %v590_v13 = vld [vmem:[#allocation7 + $0x108] sm:$0xff] }
  0xb7   : > { %6371 = vmatprep.subr.bf16.mxu1 %v7522_v38  ;;  %v7536_v60 = vld [vmem:[#allocation5 + $0x38] sm:$0xff]   ;;  %v591_v14 = vld [vmem:[#allocation7 + $0x110] sm:$0xff]  ;;  %v594_v18 = vld [vmem:[#allocation7 + $0x128] sm:$0xff] }
  0xb8   : > { %1013 = vperm.xlu0 %7488, %v8224_v10   ;;  %1018 = vperm.xlu1 %7494, %v8226_v11   ;;  %v588_v0 = vld [vmem:[#allocation7 + $0xf8] sm:$0xff]  ;;  %v595_v19 = vld [vmem:[#allocation7 + $0x130] sm:$0xff]  ;;  %v597_v21 = vld [vmem:[#allocation7 + $0x140] sm:$0xff] }
  0xb9   : > { %6264 = vmatpush3.bf16.msra.mxu0 %v7523_v40  ;;  %v592_v15 = vld [vmem:[#allocation7 + $0x118] sm:$0xff]  ;;  %v6206_v25 = vld [vmem:[%s8185_s16 + $0x8] sm:$0xff]   ;;  %v601_v26 = vld [vmem:[#allocation7 + $0x160] sm:$0xff] }
  0xba   : > { %6372 = vmatpush3.bf16.msra.mxu1 %v7524_v41  ;;  %6265 = vmatprep.subr.bf16.mxu0 %v7525_v43  ;;  %v596_v20 = vld [vmem:[#allocation7 + $0x138] sm:$0xff]  ;;  %v5985_v31 = vunpack.c.h.bf16 %v6206_v25  ;;  %v603_v32 = vld [vmem:[#allocation7 + $0x170] sm:$0xff]  ;;  %v5979_v37 = vld [vmem:[%s8185_s16] sm:$0xff]  }
  0xbb   : > { %6373 = vmatprep.subr.bf16.mxu1 %v7526_v44  ;;  %v600_v24 = vld [vmem:[#allocation7 + $0x158] sm:$0xff]  ;;  %v605_v41 = vld [vmem:[#allocation7 + $0x180] sm:$0xff] }
  0xbc   : > { %1023 = vperm.xlu0 %7488, %v570_v12   ;;  %1028 = vperm.xlu1 %7494, %v8230_v16   ;;  %v8261_v12 = vld [vmem:[#allocation7 + $0x100] sm:$0xff]  ;;  %v6207_v27 = vld [vmem:[%s8185_s16 + $0x10] sm:$0xff]  }
  0xbd   : > { %6266 = vmatpush3.bf16.msra.mxu0 %v7527_v45  ;;  %v8266_v30 = vld [vmem:[#allocation8] ss:$0 sm:$0xff]  ;;  %v5988_v33 = vunpack.c.l.bf16 %v6207_v27  ;;  %v721_v38 = vld [vmem:[%s8185_s16 + $0xd8] sm:$0xf]  ;;  %v6209_v43 = vld [vmem:[%s8185_s16 + $0x20] sm:$0xff]   ;;  %v5989_v44 = vunpack.c.h.bf16 %v6207_v27 }
  0xbe   : > { %6374 = vmatpush3.bf16.msra.mxu1 %v7528_v48  ;;  %6267 = vmatprep.subr.bf16.mxu0 %v7529_v49  ;;  %v604_v34 = vld [vmem:[#allocation7 + $0x178] sm:$0xff]  ;;  %v606_v45 = vld [vmem:[#allocation7 + $0x188] sm:$0xff]  ;;  %v5980_v49 = vunpack.c.l.bf16 %v5979_v37  ;;  %v5997_v27 = vunpack.c.h.bf16 %v6209_v43 }
  0xbf   : > { %6375 = vmatprep.subr.bf16.mxu1 %v7530_v51  ;;  %v6208_v40 = vld [vmem:[%s8185_s16 + $0x18] sm:$0xff]   ;;  %v776_v51 = vunpack.c.l.bf16 %v721_v38 }
  0xc0   : > { %1033 = vperm.xlu0 %7488, %v572_v17   ;;  %1038 = vperm.xlu1 %7494, %v573_v22   ;;  %v593_v17 = vld [vmem:[#allocation7 + $0x120] sm:$0xff]  ;;  %v598_v22 = vld [vmem:[#allocation7 + $0x148] sm:$0xff] }
  0xc1   : > { %6268 = vmatpush3.bf16.msra.mxu0 %v7531_v53 }
  0xc2   : > { %6376 = vmatpush3.bf16.msra.mxu1 %v7532_v54  ;;  %6269 = vmatprep.subr.bf16.mxu0 %v7533_v57  ;;  %v5992_v54 = vunpack.c.l.bf16 %v6208_v40  ;;  %v5993_v57 = vunpack.c.h.bf16 %v6208_v40  ;;  %v3399_v40 = vld [vmem:[#allocation7 + $0x8] sm:$0xff] }
  0xc3   : > { %6377 = vmatprep.subr.bf16.mxu1 %v7534_v58  ;;  %v5981_v58 = vunpack.c.h.bf16 %v5979_v37 }
  0xc4   : > { %1043 = vperm.xlu0 %7488, %v574_v23   ;;  %1048 = vperm.xlu1 %7494, %v575_v28   ;;  %v599_v23 = vld [vmem:[#allocation7 + $0x150] sm:$0xff]  ;;  %v602_v28 = vld [vmem:[#allocation7 + $0x168] sm:$0xff] }
  0xc5   : > { %6270 = vmatpush3.bf16.msra.mxu0 %v7535_v59 }
  0xc6   : > { %6378 = vmatpush3.bf16.msra.mxu1 %v7536_v60  ;;  %6903 = vmatprep.subr.bf16.mxu0 %v8250_v61  ;;  %v5996_v60 = vunpack.c.l.bf16 %v6209_v43  ;;  %v3400_v43 = vld [vmem:[#allocation7 + $0x10] sm:$0xff] }
  0xc7   : > { %6943 = vmatprep.subr.bf16.mxu1 %v8254_v62 }
  0xc8   : > { %1053 = vperm.xlu0 %7488, %v576_v29   ;;  %1058 = vperm.xlu1 %7494, %v577_v35   ;;  %v5984_v29 = vunpack.c.l.bf16 %v6206_v25  ;;  %v8268_v35 = vld [vmem:[#allocation10] ss:$0 sm:$0xff] }
  0xcc   : > { %1063 = vperm.xlu0 %7488, %v578_v36   ;;  %1068 = vperm.xlu1 %7494, %v579_v39   ;;  %v786_v36 = vmul.f32 %v5984_v29, %v8266_v30  ;;  %v787_v39 = vmul.f32 %v5985_v31, %v8266_v30 }
  0xce   : > { %v8278_v48 = vadd.f32 %v8268_v35, %v786_v36  ;;  %v8281_v53 = vadd.f32 %v8268_v35, %v787_v39 }
  0xd0   : > { %1073 = vperm.xlu0 %7488, %v580_v42   ;;  %1078 = vperm.xlu1 %7494, %v8234_v46   ;;  %v788_v42 = vmul.f32 %v5988_v33, %v8266_v30 }
  0xd2   : > { %v8284_v59 = vadd.f32 %v8268_v35, %v788_v42  ;;  %v793_v42 = vmul.f32 %v5997_v27, %v8266_v30 }
  0xd4   : > { %1083 = vperm.xlu0 %7488, %v8236_v47   ;;  %1088 = vperm.xlu1 %7494, %v8238_v50   ;;  %v905_v25 = vmax.f32 %v8284_v59, 0.0 }
  0xd8   : > { %1093 = vperm.xlu0 %7488, %v8242_v52   ;;  %1098 = vperm.xlu1 %7494, %v8244_v55  }
  0xdc   : > { %1103 = vperm.xlu0 %7488, %v8246_v56   ;;  %1108 = vperm.xlu1 %7494, %v8256_v63  }
  0xe0   : > { %1113 = vperm.xlu0 %7488, %v588_v0   ;;  %1118 = vperm.xlu1 %7494, %v8261_v12   ;;  %v607_v0 = vld [vmem:[#allocation7 + $0x190] sm:$0xff] }
  0xe4   : > { %1123 = vperm.xlu0 %7488, %v590_v13   ;;  %1128 = vperm.xlu1 %7494, %v591_v14   ;;  %v789_v13 = vmul.f32 %v5989_v44, %v8266_v30  ;;  %v903_v14 = vmax.f32 %v8278_v48, 0.0 }
  0xe6   : > { %v8301_v29 = vadd.f32 %v8268_v35, %v789_v13 }
  0xe8   : > { %1133 = vperm.xlu0 %7488, %v592_v15   ;;  %1138 = vperm.xlu1 %7494, %v593_v17   ;;  %v784_v15 = vmul.f32 %v5980_v49, %v8266_v30  ;;  %v838_v17 = vmul.f32 %v8266_v30, %v776_v51  ;;  %v906_v44 = vmax.f32 %v8301_v29, 0.0 }
  0xea   : > { %v8307_v33 = vadd.f32 %v8268_v35, %v838_v17 }
  0xec   : > { %1143 = vperm.xlu0 %7488, %v594_v18   ;;  %1148 = vperm.xlu1 %7494, %v595_v19   ;;  %v6210_v18 = vld [vmem:[%s8185_s16 + $0x28] sm:$0xff]   ;;  %v904_v19 = vmax.f32 %v8281_v53, 0.0 }
  0xed   : > { %v6000_v31 = vunpack.c.l.bf16 %v6210_v18 }
  0xf0   : > { %1153 = vperm.xlu0 %7488, %v596_v20   ;;  %1158 = vperm.xlu1 %7494, %v597_v21   ;;  %v790_v20 = vmul.f32 %v5992_v54, %v8266_v30  ;;  %v791_v21 = vmul.f32 %v5993_v57, %v8266_v30  ;;  %v955_v57 = vmax.f32 %v8307_v33, 0.0 }
  0xf2   : > { %v8310_v37 = vadd.f32 %v8268_v35, %v790_v20  ;;  %v8313_v38 = vadd.f32 %v8268_v35, %v791_v21  ;;  %v6214_v20 = vld [vmem:[%s8185_s16 + $0x48] sm:$0xff]  }
  0xf4   : > { %1163 = vperm.xlu0 %7488, %v598_v22   ;;  %1168 = vperm.xlu1 %7494, %v599_v23   ;;  %v785_v22 = vmul.f32 %v5981_v58, %v8266_v30  ;;  %v6211_v23 = vld [vmem:[%s8185_s16 + $0x30] sm:$0xff]   ;;  %v10585_v33 = vmax.f32 %v8310_v37, 0.0 }
  0xf5   : > { %v6004_v36 = vunpack.c.l.bf16 %v6211_v23  ;;  %v6005_v49 = vunpack.c.h.bf16 %v6211_v23 }
  0xf6   : > { %v8316_v39 = vadd.f32 %v8268_v35, %v785_v22 }
  0xf7   : > { %v797_v22 = vmul.f32 %v6005_v49, %v8266_v30 }
  0xf8   : > { %1173 = vperm.xlu0 %7488, %v600_v24   ;;  %1178 = vperm.xlu1 %7494, %v601_v26   ;;  %v3398_v24 = vld [vmem:[#allocation7] sm:$0xff]  ;;  %v792_v26 = vmul.f32 %v5996_v60, %v8266_v30  ;;  %v796_v60 = vmul.f32 %v6004_v36, %v8266_v30  ;;  %v902_v13 = vmax.f32 %v8316_v39, 0.0 }
  0xfc   : > { %1183 = vperm.xlu0 %7488, %v602_v28   ;;  %1188 = vperm.xlu1 %7494, %v603_v32   ;;  %v6212_v28 = vld [vmem:[%s8185_s16 + $0x38] sm:$0xff]   ;;  %v8304_v32 = vadd.f32 %v8268_v35, %v784_v15  ;;  %v6213_v15 = vld [vmem:[%s8185_s16 + $0x40] sm:$0xff]  }
  0xfd   : > { %v6008_v51 = vunpack.c.l.bf16 %v6212_v28  ;;  %v6009_v27 = vunpack.c.h.bf16 %v6212_v28  ;;  %v6013_v36 = vunpack.c.h.bf16 %v6213_v15 }
  0xff   : > { %v798_v23 = vmul.f32 %v6008_v51, %v8266_v30 }
 0x100   : > { %1193 = vperm.xlu0 %7488, %v604_v34   ;;  %1198 = vperm.xlu1 %7494, %v605_v41   ;;  %v6001_v34 = vunpack.c.h.bf16 %v6210_v18  ;;  %v8319_v41 = vadd.f32 %v8268_v35, %v792_v26  ;;  %v8335_v18 = vadd.f32 %v8268_v35, %v793_v42  ;;  %v8347_v26 = vadd.f32 %v8268_v35, %v796_v60  ;;  %v6216_v60 = vld [vmem:[%s8185_s16 + $0x58] sm:$0xff]   ;;  %v6217_v42 = vld [vmem:[%s8185_s16 + $0x60] sm:$0xff]  }
 0x101   : > { %v8358_v49 = vadd.f32 %v8268_v35, %v798_v23  ;;  %v6025_v17 = vunpack.c.h.bf16 %v6216_v60  ;;  %v6028_v51 = vunpack.c.l.bf16 %v6217_v42 }
 0x102   : > { %v795_v58 = vmul.f32 %v6001_v34, %v8266_v30  ;;  %v6215_v34 = vld [vmem:[%s8185_s16 + $0x50] sm:$0xff]  }
 0x104   : > { %1203 = vperm.xlu0 %7488, %v606_v45   ;;  %1208 = vperm.xlu1 %7494, %v607_v0   ;;  %v794_v45 = vmul.f32 %v6000_v31, %v8266_v30  ;;  %v6012_v31 = vunpack.c.l.bf16 %v6213_v15  ;;  %v6020_v15 = vunpack.c.l.bf16 %v6215_v34 }
 0x106   : > { %v8339_v21 = vadd.f32 %v8268_v35, %v794_v45  ;;  %v8355_v45 = vadd.f32 %v8268_v35, %v797_v22 }
 0x108   : > { %7501 = vperm.xlu0 %7488, %v7923_v1   ;;  %1223 = vperm.xlu1 %7494, %v7923_v1   ;;  %v7650_v1 = vld [vmem:[#allocation7 + $0x78] sm:$0xff] }
 0x10c   : > { %3424 = vperm.xlu0 %7488, %v3398_v24   ;;  %3429 = vperm.xlu1 %7494, %v3399_v40   ;;  %v8344_v24 = vadd.f32 %v8268_v35, %v795_v58  ;;  %v6016_v40 = vunpack.c.l.bf16 %v6214_v20  ;;  %v799_v58 = vmul.f32 %v6009_v27, %v8266_v30 }
 0x10e   : > { %v802_v22 = vmul.f32 %v6016_v40, %v8266_v30  ;;  %v8373_v27 = vadd.f32 %v8268_v35, %v799_v58  ;;  %v6024_v40 = vunpack.c.l.bf16 %v6216_v60 }
 0x110   : > { %3434 = vperm.xlu0 %7488, %v3400_v43   ;;  %3439 = vperm.xlu1 %7494, %v8202_v3   ;;  %v800_v3 = vmul.f32 %v6012_v31, %v8266_v30  ;;  %v801_v43 = vmul.f32 %v6013_v36, %v8266_v30  ;;  %v804_v36 = vmul.f32 %v6020_v15, %v8266_v30 }
 0x112   : > { %v8376_v31 = vadd.f32 %v8268_v35, %v800_v3  ;;  %v8395_v60 = vadd.f32 %v8268_v35, %v804_v36  ;;  %v6219_v36 = vld [vmem:[%s8185_s16 + $0x70] sm:$0xff]  }
 0x114   : > { %3444 = vperm.xlu0 %7488, %v8200_v2   ;;  %v6017_v2 = vunpack.c.h.bf16 %v6214_v20  ;;  %3449 = vperm.xlu1 %7494, %v8206_v4   ;;  %v6021_v20 = vunpack.c.h.bf16 %v6215_v34  ;;  %v8381_v4 = vadd.f32 %v8268_v35, %v801_v43 }
 0x116   : > { %v803_v28 = vmul.f32 %v6017_v2, %v8266_v30  ;;  %v805_v3 = vmul.f32 %v6021_v20, %v8266_v30  ;;  %v806_v2 = vmul.f32 %v6024_v40, %v8266_v30  ;;  %v6029_v20 = vunpack.c.h.bf16 %v6217_v42 }
 0x118   : > { %3454 = vperm.xlu0 %7488, %v8210_v5   ;;  %v8384_v5 = vadd.f32 %v8268_v35, %v802_v22  ;;  %3459 = vperm.xlu1 %7494, %v8212_v6   ;;  %v8392_v43 = vadd.f32 %v8268_v35, %v803_v28  ;;  %v807_v6 = vmul.f32 %v6025_v17, %v8266_v30  ;;  %v6218_v28 = vld [vmem:[%s8185_s16 + $0x68] sm:$0xff]   ;;  %v6036_v17 = vunpack.c.l.bf16 %v6219_v36 }
 0x119   : > { %v808_v22 = vmul.f32 %v6028_v51, %v8266_v30  ;;  %v8406_v58 = vadd.f32 %v8268_v35, %v805_v3  ;;  %v809_v42 = vmul.f32 %v6029_v20, %v8266_v30 }
 0x11a   : > { %v8415_v51 = vadd.f32 %v8268_v35, %v807_v6  ;;  %v6033_v6 = vunpack.c.h.bf16 %v6218_v28 }
 0x11c   : > { %3464 = vperm.xlu0 %7488, %v8216_v7   ;;  %3469 = vperm.xlu1 %7494, %v8218_v8   ;;  %v8412_v7 = vadd.f32 %v8268_v35, %v806_v2 }
 0x120   : > { %3474 = vperm.xlu0 %7488, %v8222_v9   ;;  %v8418_v9 = vadd.f32 %v8268_v35, %v808_v22  ;;  %3479 = vperm.xlu1 %7494, %v8224_v10  }
 0x122   : > { %10577 = vst [vmem:[#allocation19_spill] sm:$0xff] %v8418_v9 }
 0x123   : > { %v7491_v34 = vpop.permute.xlu0 %7490  ;;  %v979_v40 = vpop.permute.xlu1 %978 }
 0x124   : > { %v7493_v8 = vunpack.i.h.bf16 %v7491_v34  ;;  %v7492_v15 = vunpack.i.l.bf16 %v7491_v34  ;;  %3484 = vperm.xlu0 %7488, %v8226_v11   ;;  %v6032_v34 = vunpack.c.l.bf16 %v6218_v28  ;;  %v7649_v28 = vld [vmem:[#allocation7 + $0x68] sm:$0xff]  ;;  %v811_v11 = vmul.f32 %v6033_v6, %v8266_v30 }
 0x125   : > { %3489 = vperm.xlu1 %7494, %v7649_v28  }
 0x126   : > { %v8425_v3 = vmul.f32 %v7493_v8, %v903_v14  ;;  %v8429_v2 = vmul.f32 %v7492_v15, %v902_v13  ;;  %v6037_v14 = vunpack.c.h.bf16 %v6219_v36  ;;  %v8437_v8 = vld [vmem:[%s8185_s16 + $0x78] sm:$0xff]   ;;  %v8442_v13 = vmul.f32 %v979_v40, %v905_v25 }
 0x127   : > { %v974_v23 = vpop.permute.xlu0 %973  ;;  %v8450_v36 = vadd.f32 %v8268_v35, %v809_v42  ;;  %v810_v48 = vmul.f32 %v6032_v34, %v8266_v30  ;;  %v812_v25 = vmul.f32 %v6036_v17, %v8266_v30  ;;  %v984_v42 = vpop.permute.xlu1 %983  ;;  %v6041_v10 = vunpack.c.h.bf16 %v8437_v8 }
 0x128   : > { %v10455_v20 = vrot.slane %v8429_v2, 1  ;;  %v1564_v39 = vrot.slane %v8425_v3, 1  ;;  %10578 = vst [vmem:[#allocation20_spill] sm:$0xff] %v8442_v13  ;;  %v8446_v15 = vmul.f32 %v974_v23, %v904_v19  ;;  %3494 = vperm.xlu0 %7488, %v8230_v16   ;;  %v1374_v53 = vrot.slane %v8425_v3, 7  ;;  %v8467_v23 = vld [vmem:[%s8185_s16 + $0x80] sm:$0xff]  }
 0x129   : > { %v10456_v19 = vrot.slane %v8442_v13, 1  ;;  %v1372_v6 = vrot.slane %v8429_v2, 7  ;;  %v8472_v28 = vmul.f32 %v6037_v14, %v8266_v30  ;;  %3499 = vperm.xlu1 %7494, %v7650_v1   ;;  %v8482_v0 = vadd.f32 %v8268_v35, %v810_v48 }
 0x12a   : > { %v8457_v59 = vsel %vm1560_vm0, %v10455_v20, %v1564_v39  ;;  %v8463_v16 = vpack.c.bf16 %v8446_v15, %v8425_v3  ;;  %v1566_v40 = vrot.slane %v8446_v15, 1  ;;  %v1376_v22 = vrot.slane %v8446_v15, 7 }
 0x12b   : > { %10579 = vst [vmem:[#allocation21_spill] sm:$0xff] %v8457_v59  ;;  %v7497_v34 = vpop.permute.xlu0 %7496  ;;  %v8478_v3 = vmul.f32 %v984_v42, %v906_v44  ;;  %10580 = vst [vmem:[#allocation22_spill] sm:$0xff] %v8482_v0  ;;  %v6044_v14 = vunpack.c.l.bf16 %v8467_v23  ;;  %v1378_v29 = vrot.slane %v8442_v13, 7  ;;  %v10582_v48 = vmax.f32 %v8304_v32, 0.0 }
 0x12c   : > { %v7499_v17 = vunpack.i.h.bf16 %v7497_v34  ;;  %v7498_v20 = vunpack.i.l.bf16 %v7497_v34  ;;  %5314 = vperm.xlu0 %7488, %v8234_v46   ;;  %v1567_v54 = vsel %vm1560_vm0, %v1564_v39, %v1566_v40  ;;  %v1569_v8 = vsel %vm1560_vm0, %v1566_v40, %v10456_v19  ;;  %v989_v39 = vpop.permute.xlu1 %988 }
 0x12d   : > { %v8492_v44 = vpack.c.bf16 %v8478_v3, %v8442_v13  ;;  %v1891_v1 = vrot.slane %v8463_v16, 4  ;;  %v1375_v40 = vsel %vm1370_vm1, %v1372_v6, %v1374_v53  ;;  %v8505_v34 = vadd.f32 %v8268_v35, %v811_v11  ;;  %5319 = vperm.xlu1 %7494, %v8236_v47  }
 0x12e   : > { %v8496_v46 = vmul.f32 %v7499_v17, %v955_v57  ;;  %v8501_v15 = vmul.f32 %v7498_v20, %v10582_v48  ;;  %v8507_v19 = vpack.c.bf16 %v1569_v8, %v1567_v54  ;;  %v8512_v57 = vmul.f32 %v989_v39, %v10585_v33 }
 0x12f   : > { %v994_v42 = vpop.permute.xlu0 %993  ;;  %10583 = vst [vmem:[#allocation24_spill] sm:$0xff] %v8505_v34  ;;  %v10586_v17 = vmax.f32 %v8313_v38, 0.0  ;;  %v1377_v20 = vsel %vm1370_vm1, %v1374_v53, %v1376_v22  ;;  %v1380_v11 = vrot.slane %v8478_v3, 7  ;;  %v1892_v37 = vrot.slane %v8492_v44, 4 }
 0x130   : > { %10581 = vst [vmem:[#allocation23_spill] sm:$0xff] %v8496_v46  ;;  %10584 = vst [vmem:[#allocation25_spill] sm:$0xff] %v8507_v19  ;;  %v1314_v9 = vrot.slane %v8496_v46, 7  ;;  %5324 = vperm.xlu0 %7488, %v8238_v50   ;;  %v1371_v54 = vrot.slane %v8501_v15, 7  ;;  %v1286_v8 = vpack.c.bf16 %v8429_v2, %v8501_v15  ;;  %v1382_v48 = vrot.slane %v8512_v57, 7  ;;  %v999_v39 = vpop.permute.xlu1 %998 }
 0x131   : > { %v8516_v32 = vmul.f32 %v994_v42, %v10586_v17  ;;  %v1893_v42 = vsel %vm1887_vm2, %v1891_v1, %v1892_v37  ;;  %v10588_v19 = vmax.f32 %v8319_v41, 0.0  ;;  %v10589_v13 = vmax.f32 %v8335_v18, 0.0  ;;  %5329 = vperm.xlu1 %7494, %v8242_v52  }
 0x132   : > { %2577 = vmatprep.mubr.bf16.mxu1 %v1286_v8  ;;  %v1373_v17 = vsel %vm1370_vm1, %v1371_v54, %v1372_v6  ;;  %v1532_v46 = vsel %vm1370_vm1, %v1314_v9, %v1371_v54  ;;  %2175 = vmatprep.mubr.bf16.mxu0 %v1893_v42  ;;  %v8546_v50 = vadd.f32 %v8268_v35, %v812_v25  ;;  %v10591_v1 = vrot.slane %v8512_v57, 1 }
 0x133   : > { %v8530_v47 = vpack.c.bf16 %v8516_v32, %v8512_v57  ;;  %v1574_v53 = vrot.slane %v8516_v32, 1  ;;  %v1004_v33 = vpop.permute.xlu0 %1003  ;;  %v8539_v38 = vmul.f32 %v999_v39, %v10588_v19  ;;  %v815_v8 = vmul.f32 %v6041_v10, %v8266_v30 }
 0x134   : > { %v8543_v59 = vmul.f32 %v1004_v33, %v10589_v13  ;;  %10590 = vst [vmem:[#allocation27_spill] sm:$0xff] %v8546_v50  ;;  %5334 = vperm.xlu0 %7488, %v8244_v55   ;;  %v1533_v41 = vpack.c.bf16 %v1373_v17, %v1532_v46  ;;  %v1379_v9 = vsel %vm1370_vm1, %v1376_v22, %v1378_v29  ;;  %v1561_v13 = vrot.slane %v8501_v15, 1  ;;  %v1009_v22 = vpop.permute.xlu1 %1008  ;;  %v8567_v15 = vld [vmem:[#allocation5 + $0x88] sm:$0xff]   ;;  %v8815_v50 = vld [vmem:[%s8185_s16 + $0xb8] sm:$0xff]  }
 0x135   : > { %10587 = vst [vmem:[#allocation26_spill] sm:$0xff] %v8530_v47  ;;  %v1575_v6 = vsel %vm1560_vm0, %v10591_v1, %v1574_v53  ;;  %v1383_v19 = vsel %vm1370_vm1, %v1380_v11, %v1382_v48  ;;  %v1576_v25 = vrot.slane %v8539_v38, 1  ;;  %v8559_v10 = vpack.c.bf16 %v1377_v20, %v1375_v40  ;;  %5339 = vperm.xlu1 %7494, %v8246_v56  }
 0x136   : > { %v10592_v54 = vrot.slane %v8516_v32, 7  ;;  %v1578_v52 = vrot.slane %v8543_v59, 1  ;;  %2578 = vmatmul.mubr.bf16.vlgmr.msra.gmra.mrb[0].mxu1 %v1533_v41  ;;  %v1381_v55 = vsel %vm1370_vm1, %v1378_v29, %v1380_v11  ;;  %v1899_v46 = vrot.slane %v8530_v47, 4 }
 0x137   : > { %v1014_v42 = vpop.permute.xlu0 %1013  ;;  %v1577_v33 = vsel %vm1560_vm0, %v1574_v53, %v1576_v25  ;;  %v8570_v17 = vpack.c.bf16 %v1381_v55, %v1379_v9  ;;  %2585 = vmatprep.mubr.bf16.mxu1 %v8463_v16  ;;  %v816_v20 = vmul.f32 %v6044_v14, %v8266_v30  ;;  %v10593_v11 = vmax.f32 %v8339_v21, 0.0  ;;  %6944 = vmatpush3.bf16.msra.mxu1 %v8254_v62 }
 0x138   : > { %v1385_v39 = vsel %vm1370_vm1, %v1382_v48, %v10592_v54  ;;  %v8575_v48 = vpack.c.bf16 %v1577_v33, %v1575_v6  ;;  %v1579_v29 = vsel %vm1560_vm0, %v1576_v25, %v1578_v52  ;;  %v8584_v53 = vadd.f32 %v8268_v35, %v815_v8  ;;  %5344 = vperm.xlu0 %7488, %v8256_v63   ;;  %v7539_v54 = vld [vmem:[#allocation5 + $0x148] sm:$0xff]  }
 0x139   : > { %v8580_v1 = vmul.f32 %v1009_v22, %v10593_v11  ;;  %v8586_v41 = vpack.c.bf16 %v1385_v39, %v1383_v19  ;;  %v1888_v16 = vrot.slane %v8559_v10, 4  ;;  %v1889_v9 = vrot.slane %v8570_v17, 4  ;;  %v1019_v19 = vpop.permute.xlu1 %1018  ;;  %6945 = vmatprep.subr.bf16.mxu1 %v8567_v15 }
 0x13a   : > { %v10595_v14 = vmax.f32 %v8344_v24, 0.0  ;;  %v1386_v21 = vrot.slane %v8539_v38, 7  ;;  %v1900_v8 = vsel %vm1887_vm2, %v1892_v37, %v1899_v46  ;;  %v10596_v24 = vrot.slane %v8429_v2, 1 }
 0x13b   : > { %10594 = vst [vmem:[#allocation28_spill] sm:$0xff] %v8586_v41  ;;  %v1580_v56 = vrot.slane %v8580_v1, 1  ;;  %v1024_v25 = vpop.permute.xlu0 %1023  ;;  %v8609_v62 = vpack.c.bf16 %v8543_v59, %v8539_v38  ;;  %v1388_v63 = vrot.slane %v8543_v59, 7  ;;  %v1890_v37 = vsel %vm1887_vm2, %v1888_v16, %v1889_v9  ;;  %6946 = vmatpush3.bf16.msra.mxu1 %v8567_v15 }
 0x13c   : > { %v8592_v6 = vmul.f32 %v1014_v42, %v10595_v14  ;;  %v8605_v39 = vsel %vm1560_vm0, %v1561_v13, %v10596_v24  ;;  %2176 = vmatmul.mubr.bf16.vlgmr.msra.gmra.mrb[0].mxu0 %v1890_v37  ;;  %v10598_v13 = vmax.f32 %v8347_v26, 0.0  ;;  %v10599_v38 = vmax.f32 %v8355_v45, 0.0  ;;  %v7541_v14 = vld [vmem:[#allocation5 + $0x150] sm:$0xff]   ;;  %5354 = vperm.xlu0 %7488, %v8261_v12  }
 0x13d   : > { %10597 = vst [vmem:[#allocation29_spill] sm:$0xff] %v8609_v62  ;;  %v1581_v2 = vsel %vm1560_vm0, %v1578_v52, %v1580_v56  ;;  %v6045_v33 = vunpack.c.h.bf16 %v8467_v23  ;;  %6904 = vmatpush3.bf16.msra.mxu0 %v8250_v61  ;;  %2183 = vmatprep.mubr.bf16.mxu0 %v1900_v8  ;;  %v8630_v24 = vld [vmem:[#allocation5 + $0x90] sm:$0xff]   ;;  %v10600_v23 = vrot.slane %v8516_v32, 7  ;;  %v7651_v8 = vld [vmem:[#allocation7 + $0xf8] sm:$0xff]  ;;  %v1389_v32 = vsel %vm1370_vm1, %v1386_v21, %v1388_v63  ;;  %v8738_v52 = vld [vmem:[%s8185_s16 + $0xa0] sm:$0xff]  }
 0x13e   : > { %v1582_v55 = vrot.slane %v8592_v6, 1  ;;  %v8619_v22 = vmul.f32 %v1019_v19, %v10598_v13  ;;  %v8623_v42 = vmul.f32 %v1024_v25, %v10599_v38  ;;  %v8627_v11 = vpack.c.bf16 %v1581_v2, %v1579_v29  ;;  %v8635_v19 = vld [vmem:[%s8185_s16 + $0x88] sm:$0xff]   ;;  %v8638_v45 = vld [vmem:[%s8185_s16 + $0x90] sm:$0xff]   ;;  %5349 = vperm.xlu1 %7494, %v7651_v8   ;;  %v1029_v25 = vpop.permute.xlu1 %1028  ;;  %2586 = vmatmul.mubr.bf16.gmra.mrb[4].mxu1 %v8559_v10 }
 0x13f   : > { %v1387_v61 = vsel %vm1370_vm1, %v10600_v23, %v1386_v21  ;;  %v1034_v37 = vpop.permute.xlu0 %1033  ;;  %v8648_v2 = vadd.f32 %v8268_v35, %v8472_v28  ;;  %v10602_v38 = vmax.f32 %v8358_v49, 0.0  ;;  %v10463_v12 = vrot.slane %v8609_v62, 4  ;;  %6905 = vmatprep.subr.bf16.mxu0 %v7539_v54  ;;  %2593 = vmatprep.mubr.bf16.mxu1 %v8492_v44 }
 0x140   : > { %v1583_v16 = vsel %vm1560_vm0, %v1580_v56, %v1582_v55  ;;  %v1584_v29 = vrot.slane %v8619_v22, 1  ;;  %v1897_v56 = vrot.slane %v8586_v41, 4  ;;  %v1586_v13 = vrot.slane %v8623_v42, 1  ;;  %6947 = vmatprep.subr.bf16.mxu1 %v8630_v24 }
 0x141   : > { %10601 = vst [vmem:[#allocation30_spill] sm:$0xff] %v8648_v2  ;;  %v8657_v23 = vmul.f32 %v1029_v25, %v10602_v38  ;;  %v10603_v28 = vmax.f32 %v8373_v27, 0.0  ;;  %v8667_v21 = vadd.f32 %v8268_v35, %v816_v20  ;;  %v817_v10 = vmul.f32 %v6045_v33, %v8266_v30  ;;  %6906 = vmatpush3.bf16.msra.mxu0 %v7539_v54  ;;  %v7543_v25 = vld [vmem:[#allocation5 + $0x158] sm:$0xff]   ;;  %v7652_v30 = vld [vmem:[#allocation7 + $0x108] sm:$0xff]  ;;  %v7653_v33 = vld [vmem:[#allocation7 + $0x110] sm:$0xff] }
 0x142   : > { %v1585_v8 = vsel %vm1560_vm0, %v1582_v55, %v1584_v29  ;;  %v1587_v49 = vsel %vm1560_vm0, %v1584_v29, %v1586_v13  ;;  %v6048_v55 = vunpack.c.l.bf16 %v8635_v19  ;;  %v6049_v44 = vunpack.c.h.bf16 %v8635_v19  ;;  %5359 = vperm.xlu1 %7494, %v7652_v30   ;;  %5364 = vperm.xlu0 %7488, %v7653_v33  }
 0x143   : > { %v8664_v26 = vmul.f32 %v1034_v37, %v10603_v28  ;;  %v8670_v40 = vpack.c.bf16 %v1585_v8, %v1583_v16  ;;  %v8676_v27 = vpack.c.bf16 %v1389_v32, %v1387_v61  ;;  %v1390_v20 = vrot.slane %v8580_v1, 7  ;;  %v1039_v16 = vpop.permute.xlu1 %1038  ;;  %v1044_v54 = vpop.permute.xlu0 %1043  ;;  %6907 = vmatprep.subr.bf16.mxu0 %v7541_v14  ;;  %v8697_v28 = vld [vmem:[%s8185_s16 + $0x98] sm:$0xff]   ;;  %6948 = vmatpush3.bf16.msra.mxu1 %v8630_v24 }
 0x144   : > { %v1588_v37 = vrot.slane %v8657_v23, 1  ;;  %v6052_v15 = vunpack.c.l.bf16 %v8638_v45  ;;  %v1898_v19 = vsel %vm1887_vm2, %v1889_v9, %v1897_v56  ;;  %v10606_v29 = vmax.f32 %v8376_v31, 0.0 }
 0x145   : > { %10604 = vst [vmem:[#allocation31_spill] sm:$0xff] %v8670_v40  ;;  %10605 = vst [vmem:[#allocation32_spill] sm:$0xff] %v8676_v27  ;;  %v1590_v61 = vrot.slane %v8664_v26, 1  ;;  %v10607_v38 = vmax.f32 %v8381_v4, 0.0  ;;  %v8701_v30 = vpack.c.bf16 %v8592_v6, %v8580_v1  ;;  %v10462_v9 = vrot.slane %v8592_v6, 7  ;;  %2184 = vmatmul.mubr.bf16.gmra.mrb[4].mxu0 %v1898_v19 }
 0x146   : > { %v8689_v32 = vmul.f32 %v1039_v16, %v10606_v29  ;;  %v1589_v31 = vsel %vm1560_vm0, %v1586_v13, %v1588_v37  ;;  %v1906_v4 = vsel %vm1887_vm2, %v1899_v46, %v10463_v12  ;;  %6908 = vmatpush3.bf16.msra.mxu0 %v7541_v14  ;;  %v8714_v1 = vadd.f32 %v8268_v35, %v817_v10  ;;  %v7655_v46 = vld [vmem:[#allocation7 + $0x120] sm:$0xff]  ;;  %v8723_v14 = vld [vmem:[#allocation8] ss:$0 sm:$0xff] }
 0x147   : > { %v8693_v8 = vmul.f32 %v1044_v54, %v10607_v38  ;;  %10608 = vst [vmem:[#allocation33_spill] sm:$0xff] %v8701_v30  ;;  %v8710_v33 = vpack.c.bf16 %v1589_v31, %v1587_v49  ;;  %2191 = vmatprep.mubr.bf16.mxu0 %v1906_v4  ;;  %v1591_v16 = vsel %vm1560_vm0, %v1588_v37, %v1590_v61  ;;  %v7544_v54 = vld [vmem:[#allocation5 + $0x98] sm:$0xff]   ;;  %v6053_v19 = vunpack.c.h.bf16 %v8638_v45  ;;  %v1049_v49 = vpop.permute.xlu1 %1048  ;;  %v8719_v31 = vpop.permute.xlu0 %1053  ;;  %v8721_v37 = vld [vmem:[#allocation5 + $0x160] sm:$0xff]  }
 0x148   : > { %v1592_v13 = vrot.slane %v8689_v32, 1  ;;  %v7654_v38 = vld [vmem:[#allocation7 + $0x118] sm:$0xff]  ;;  %5374 = vperm.xlu0 %7488, %v7655_v46   ;;  %10610 = vst [vmem:[#allocation35_spill] sm:$0xff] %v8723_v14  ;;  %v818_v35 = vmul.f32 %v8723_v14, %v6048_v55  ;;  %v6056_v45 = vunpack.c.l.bf16 %v8697_v28  ;;  %v1391_v10 = vsel %vm1370_vm1, %v1388_v63, %v1390_v20  ;;  %2594 = vmatmul.mubr.bf16.gmra.mrb[8].mxu1 %v8570_v17 }
 0x149   : > { %10609 = vst [vmem:[#allocation34_spill] sm:$0xff] %v8710_v33  ;;  %v1594_v29 = vrot.slane %v8693_v8, 1  ;;  %5369 = vperm.xlu1 %7494, %v7654_v38   ;;  %v10465_v4 = vrot.slane %v8676_v27, 4  ;;  %v10611_v38 = vmax.f32 %v8384_v5, 0.0  ;;  %6909 = vmatprep.subr.bf16.mxu0 %v7543_v25  ;;  %v819_v18 = vmul.f32 %v8723_v14, %v6049_v44 }
 0x14a   : > { %v1393_v55 = vsel %vm1370_vm1, %v1390_v20, %v10462_v9  ;;  %v1593_v59 = vsel %vm1560_vm0, %v1590_v61, %v1592_v13  ;;  %2601 = vmatprep.mubr.bf16.mxu1 %v8530_v47  ;;  %6910 = vmatpush3.bf16.msra.mxu0 %v7543_v25  ;;  %v6057_v20 = vunpack.c.h.bf16 %v8697_v28  ;;  %v1394_v61 = vrot.slane %v8619_v22, 7  ;;  %v7658_v9 = vld [vmem:[#allocation7 + $0x130] sm:$0xff]  ;;  %v5304_v47 = vld [vmem:[#allocation7 + $0x140] sm:$0xff] }
 0x14b   : > { %v8734_v46 = vmul.f32 %v1049_v49, %v10611_v38  ;;  %v1595_v63 = vsel %vm1560_vm0, %v1592_v13, %v1594_v29  ;;  %v8748_v5 = vpack.c.bf16 %v1593_v59, %v1591_v16  ;;  %v5303_v49 = vld [vmem:[#allocation7 + $0x138] sm:$0xff]  ;;  %6949 = vmatprep.subr.bf16.mxu1 %v7544_v54  ;;  %v820_v38 = vmul.f32 %v8723_v14, %v6052_v15  ;;  %v7657_v13 = vld [vmem:[#allocation7 + $0x128] sm:$0xff]  ;;  %v8754_v12 = vpop.permute.xlu1 %1058  ;;  %v8756_v24 = vpop.permute.xlu0 %1063  ;;  %v3414_v16 = vld [vmem:[#allocation7 + $0x80] sm:$0xff] }
 0x14c   : > { %5384 = vperm.xlu0 %7488, %v7658_v9   ;;  %v821_v59 = vmul.f32 %v8723_v14, %v6053_v19  ;;  %v822_v25 = vmul.f32 %v8723_v14, %v6056_v45  ;;  %v6060_v15 = vunpack.c.l.bf16 %v8738_v52  ;;  %v8761_v17 = vpack.c.bf16 %v1393_v55, %v1391_v10  ;;  %6911 = vmatprep.subr.bf16.mxu0 %v8721_v37 }
 0x14d   : > { %10612 = vst [vmem:[#allocation36_spill] sm:$0xff] %v8748_v5  ;;  %v10464_v44 = vrot.slane %v8734_v46, 1  ;;  %5379 = vperm.xlu1 %7494, %v7657_v13   ;;  %v1904_v28 = vsel %vm1887_vm2, %v1897_v56, %v10465_v4  ;;  %v8772_v13 = vld [vmem:[#allocation10] ss:$0 sm:$0xff]  ;;  %v8779_v45 = vpack.c.bf16 %v8623_v42, %v8619_v22  ;;  %v10617_v56 = vrot.slane %v8701_v30, 4  ;;  %v6226_v4 = vld [vmem:[%s8185_s16 + $0xa8] sm:$0xff]   ;;  %6950 = vmatpush3.bf16.msra.mxu1 %v7544_v54 }
 0x14e   : > { %10613 = vst [vmem:[#allocation37_spill] sm:$0xff] %v8761_v17  ;;  %10614 = vst [vmem:[#allocation38_spill] sm:$0xff] %v8772_v13  ;;  %v8775_v19 = vadd.f32 %v8772_v13, %v818_v35  ;;  %2192 = vmatmul.mubr.bf16.gmra.mrb[8].mxu0 %v1904_v28  ;;  %v8791_v35 = vadd.f32 %v8772_v13, %v819_v18  ;;  %v7546_v22 = vld [vmem:[#allocation5 + $0xa0] sm:$0xff]   ;;  %v8794_v10 = vadd.f32 %v8772_v13, %v820_v38  ;;  %v3416_v5 = vld [vmem:[#allocation7 + $0x90] sm:$0xff] }
 0x14f   : > { %v1597_v9 = vsel %vm1560_vm0, %v1594_v29, %v10464_v44  ;;  %10615 = vst [vmem:[#allocation39_spill] sm:$0xff] %v8779_v45  ;;  %v10618_v29 = vrot.slane %v8609_v62, 4  ;;  %v6061_v28 = vunpack.c.h.bf16 %v8738_v52  ;;  %v824_v38 = vmul.f32 %v8723_v14, %v6060_v15  ;;  %6912 = vmatpush3.bf16.msra.mxu0 %v8721_v37  ;;  %6951 = vmatprep.subr.bf16.mxu1 %v7546_v22 }
 0x150   : > { %v8782_v55 = vpack.c.bf16 %v1597_v9, %v1595_v63  ;;  %v823_v63 = vmul.f32 %v8723_v14, %v6057_v20  ;;  %3504 = vperm.xlu0 %7488, %v3414_v16   ;;  %v8798_v9 = vpop.permute.xlu1 %1068  ;;  %v6227_v20 = vld [vmem:[%s8185_s16 + $0xb0] sm:$0xff]   ;;  %2602 = vmatmul.mubr.bf16.gmra.mrb[12].mxu1 %v8586_v41  ;;  %v6064_v16 = vunpack.c.l.bf16 %v6226_v4  ;;  %v6065_v2 = vunpack.c.h.bf16 %v6226_v4 }
 0x151   : > { %v1912_v44 = vsel %vm1887_vm2, %v10618_v29, %v10617_v56  ;;  %5389 = vperm.xlu1 %7494, %v5303_v49   ;;  %v3415_v56 = vld [vmem:[#allocation7 + $0x88] sm:$0xff]  ;;  %v8805_v29 = vadd.f32 %v8772_v13, %v821_v59  ;;  %v8812_v49 = vadd.f32 %v8772_v13, %v822_v25  ;;  %v10619_v54 = vrot.slane %v8592_v6, 7  ;;  %2609 = vmatprep.mubr.bf16.mxu1 %v8609_v62 }
 0x152   : > { %10616 = vst [vmem:[#allocation40_spill] sm:$0xff] %v8782_v55  ;;  %2199 = vmatprep.mubr.bf16.mxu0 %v1912_v44  ;;  %v8800_v44 = vpop.permute.xlu0 %1073  ;;  %v10620_v59 = vrot.slane %v8623_v42, 7  ;;  %v8830_v25 = vadd.f32 %v8772_v13, %v823_v63  ;;  %v8838_v52 = vadd.f32 %v8772_v13, %v824_v38  ;;  %v6068_v37 = vunpack.c.l.bf16 %v6227_v20  ;;  %v6229_v6 = vld [vmem:[%s8185_s16 + $0xc0] sm:$0xff]   ;;  %6952 = vmatpush3.bf16.msra.mxu1 %v7546_v22 }
 0x153   : > { %v1395_v18 = vsel %vm1370_vm1, %v10619_v54, %v1394_v61  ;;  %v7547_v54 = vld [vmem:[#allocation5 + $0x168] sm:$0xff]   ;;  %v6069_v4 = vunpack.c.h.bf16 %v6227_v20  ;;  %v6072_v62 = vunpack.c.l.bf16 %v8815_v50  ;;  %v10621_v63 = vrot.slane %v8761_v17, 4 }
 0x154   : > { %v1397_v15 = vsel %vm1370_vm1, %v1394_v61, %v10620_v59  ;;  %v825_v61 = vmul.f32 %v8723_v14, %v6061_v28  ;;  %3509 = vperm.xlu0 %7488, %v3415_v56   ;;  %v8833_v59 = vpop.permute.xlu1 %1078  ;;  %v10622_v28 = vrot.slane %v8676_v27, 4  ;;  %v5305_v56 = vld [vmem:[#allocation7 + $0x148] sm:$0xff]  ;;  %v826_v33 = vmul.f32 %v8723_v14, %v6064_v16  ;;  %6913 = vmatprep.subr.bf16.mxu0 %v7547_v54 }
 0x155   : > { %5394 = vperm.xlu1 %7494, %v5304_v47   ;;  %v8842_v55 = vpack.c.bf16 %v1397_v15, %v1395_v18  ;;  %v827_v38 = vmul.f32 %v8723_v14, %v6065_v2  ;;  %v1398_v20 = vrot.slane %v8657_v23, 7  ;;  %v8854_v34 = vpack.c.bf16 %v8664_v26, %v8657_v23  ;;  %v7548_v2 = vld [vmem:[#allocation5 + $0xa8] sm:$0xff]   ;;  %6914 = vmatpush3.bf16.msra.mxu0 %v7547_v54 }
 0x156   : > { %v8835_v41 = vpop.permute.xlu0 %1083  ;;  %v1910_v47 = vsel %vm1887_vm2, %v10622_v28, %v10621_v63  ;;  %v10623_v15 = vrot.slane %v8779_v45, 4  ;;  %v10624_v63 = vrot.slane %v8701_v30, 4  ;;  %v8863_v22 = vadd.f32 %v8772_v13, %v825_v61  ;;  %6953 = vmatprep.subr.bf16.mxu1 %v7548_v2 }
 0x157   : > { %2200 = vmatmul.mubr.bf16.gmra.mrb[12].mxu0 %v1910_v47  ;;  %v6073_v16 = vunpack.c.h.bf16 %v8815_v50  ;;  %v6076_v0 = vunpack.c.l.bf16 %v6229_v6  ;;  %v6077_v23 = vunpack.c.h.bf16 %v6229_v6  ;;  %v830_v61 = vmul.f32 %v8723_v14, %v6072_v62  ;;  %v3417_v6 = vld [vmem:[#allocation7 + $0x98] sm:$0xff]  ;;  %6954 = vmatpush3.bf16.msra.mxu1 %v7548_v2 }
 0x158   : > { %v1918_v28 = vsel %vm1887_vm2, %v10624_v63, %v10623_v15  ;;  %3514 = vperm.xlu0 %7488, %v3416_v5   ;;  %v8866_v18 = vpop.permute.xlu1 %1088  ;;  %v828_v15 = vmul.f32 %v8723_v14, %v6068_v37  ;;  %v829_v63 = vmul.f32 %v8723_v14, %v6069_v4  ;;  %2610 = vmatmul.mubr.bf16.gmra.mrb[16].mxu1 %v8676_v27  ;;  %v10626_v40 = vrot.slane %v8623_v42, 7 }
 0x159   : > { %2207 = vmatprep.mubr.bf16.mxu0 %v1918_v28  ;;  %5399 = vperm.xlu1 %7494, %v5305_v56   ;;  %v5306_v28 = vld [vmem:[#allocation7 + $0x150] sm:$0xff]  ;;  %v10627_v4 = vrot.slane %v8664_v26, 7  ;;  %v8890_v27 = vadd.f32 %v8772_v13, %v827_v38  ;;  %v831_v42 = vmul.f32 %v8723_v14, %v6073_v16  ;;  %v833_v5 = vmul.f32 %v8723_v14, %v6077_v23 }
 0x15a   : > { %v8868_v47 = vpop.permute.xlu0 %1093  ;;  %v1399_v37 = vsel %vm1370_vm1, %v10626_v40, %v1398_v20  ;;  %2617 = vmatprep.mubr.bf16.mxu1 %v8701_v30  ;;  %v832_v40 = vmul.f32 %v8723_v14, %v6076_v0  ;;  %v8902_v54 = vadd.f32 %v8772_v13, %v828_v15  ;;  %v8905_v56 = vadd.f32 %v8772_v13, %v829_v63  ;;  %v5307_v15 = vld [vmem:[#allocation7 + $0x158] sm:$0xff]  ;;  %v3418_v30 = vld [vmem:[#allocation7 + $0xa0] sm:$0xff] }
 0x15b   : > { %10625 = vst [vmem:[#allocation41_spill] sm:$0xff] %v8868_v47  ;;  %v8879_v47 = vadd.f32 %v8772_v13, %v826_v33  ;;  %v1401_v62 = vsel %vm1370_vm1, %v1398_v20, %v10627_v4  ;;  %v7549_v33 = vld [vmem:[#allocation5 + $0x170] sm:$0xff]   ;;  %v8908_v16 = vadd.f32 %v8772_v13, %v830_v61  ;;  %v1402_v23 = vrot.slane %v8689_v32, 7 }
 0x15c   : > { %3519 = vperm.xlu0 %7488, %v3417_v6   ;;  %v8896_v20 = vpop.permute.xlu1 %1098  ;;  %v8910_v0 = vpack.c.bf16 %v1401_v62, %v1399_v37  ;;  %v10629_v6 = vrot.slane %v8842_v55, 4  ;;  %v10630_v50 = vrot.slane %v8761_v17, 4  ;;  %v8921_v63 = vpack.c.bf16 %v8693_v8, %v8689_v32  ;;  %6915 = vmatprep.subr.bf16.mxu0 %v7549_v33 }
 0x15d   : > { %5404 = vperm.xlu1 %7494, %v5306_v28   ;;  %v1404_v28 = vrot.slane %v8693_v8, 7  ;;  %v10632_v61 = vmax.f32 %v8392_v43, 0.0  ;;  %v10633_v62 = vrot.slane %v8854_v34, 4  ;;  %v10634_v14 = vrot.slane %v8779_v45, 4  ;;  %v7550_v43 = vld [vmem:[#allocation5 + $0xb0] sm:$0xff]   ;;  %6916 = vmatpush3.bf16.msra.mxu0 %v7549_v33 }
 0x15e   : > { %v8898_v4 = vpop.permute.xlu0 %1103  ;;  %v1916_v38 = vsel %vm1887_vm2, %v10630_v50, %v10629_v6  ;;  %10631 = vst [vmem:[#allocation43_spill] sm:$0xff] %v8921_v63  ;;  %v8936_v32 = vadd.f32 %v8772_v13, %v831_v42  ;;  %v8939_v8 = vadd.f32 %v8772_v13, %v832_v40  ;;  %v10635_v6 = vmax.f32 %v8395_v60, 0.0  ;;  %6955 = vmatprep.subr.bf16.mxu1 %v7550_v43 }
 0x15f   : > { %10628 = vst [vmem:[#allocation42_spill] sm:$0xff] %v8898_v4  ;;  %v8926_v37 = vmul.f32 %v8719_v31, %v10632_v61  ;;  %2208 = vmatmul.mubr.bf16.gmra.mrb[16].mxu0 %v1916_v38  ;;  %v1924_v4 = vsel %vm1887_vm2, %v10634_v14, %v10633_v62  ;;  %v8942_v31 = vadd.f32 %v8772_v13, %v833_v5  ;;  %v7551_v38 = vld [vmem:[#allocation5 + $0x178] sm:$0xff]   ;;  %v10638_v2 = vrot.slane %v8664_v26, 7 }
 0x160   : > { %2215 = vmatprep.mubr.bf16.mxu0 %v1924_v4  ;;  %v8947_v14 = vmul.f32 %v8754_v12, %v10635_v6  ;;  %v10636_v4 = vmax.f32 %v8406_v58, 0.0  ;;  %3524 = vperm.xlu0 %7488, %v3418_v30   ;;  %v8954_v42 = vpop.permute.xlu1 %1108  ;;  %v1405_v12 = vsel %vm1370_vm1, %v1402_v23, %v1404_v28  ;;  %v1406_v6 = vrot.slane %v8734_v46, 7 }
 0x161   : > { %5409 = vperm.xlu1 %7494, %v5307_v15   ;;  %10637 = vst [vmem:[#allocation44_spill] sm:$0xff] %v8954_v42  ;;  %v1403_v60 = vsel %vm1370_vm1, %v10638_v2, %v1402_v23  ;;  %2618 = vmatmul.mubr.bf16.gmra.mrb[20].mxu1 %v8761_v17  ;;  %v3419_v15 = vld [vmem:[#allocation7 + $0xa8] sm:$0xff]  ;;  %v1598_v5 = vrot.slane %v8926_v37, 1  ;;  %v10639_v23 = vmax.f32 %v8584_v53, 0.0  ;;  %v10642_v33 = vrot.slane %v8910_v0, 4 }
 0x162   : > { %v8952_v61 = vmul.f32 %v8756_v24, %v10636_v4  ;;  %v1114_v40 = vpop.permute.xlu0 %1113  ;;  %v5308_v24 = vld [vmem:[#allocation7 + $0x160] sm:$0xff]  ;;  %v1408_v4 = vrot.slane %v8926_v37, 7  ;;  %2625 = vmatprep.mubr.bf16.mxu1 %v8779_v45  ;;  %6917 = vmatprep.subr.bf16.mxu0 %v7551_v38  ;;  %v8977_v50 = vpack.c.bf16 %v1405_v12, %v1403_v60  ;;  %v1410_v58 = vrot.slane %v8947_v14, 7  ;;  %v3420_v45 = vld [vmem:[#allocation7 + $0xb0] sm:$0xff] }
 0x163   : > { %v8972_v2 = vmul.f32 %v1114_v40, %v10639_v23  ;;  %v8984_v23 = vpack.c.bf16 %v8926_v37, %v8734_v46  ;;  %v10643_v30 = vrot.slane %v8842_v55, 4  ;;  %v10644_v12 = vmax.f32 %v8667_v21, 0.0  ;;  %6956 = vmatpush3.bf16.msra.mxu1 %v7550_v43  ;;  %6918 = vmatpush3.bf16.msra.mxu0 %v7551_v38 }
 0x164   : > { %10640 = vst [vmem:[#allocation45_spill] sm:$0xff] %v8977_v50  ;;  %3529 = vperm.xlu0 %7488, %v3419_v15   ;;  %v1119_v53 = vpop.permute.xlu1 %1118  ;;  %v10645_v26 = vmax.f32 %v8714_v1, 0.0  ;;  %v5309_v15 = vld [vmem:[#allocation7 + $0x168] sm:$0xff]  ;;  %v1407_v37 = vsel %vm1370_vm1, %v1404_v28, %v1406_v6  ;;  %v1409_v17 = vsel %vm1370_vm1, %v1406_v6, %v1408_v4  ;;  %v10646_v42 = vrot.slane %v8734_v46, 1  ;;  %v7553_v6 = vld [vmem:[#allocation5 + $0x1c0] sm:$0xff]  }
 0x165   : > { %5414 = vperm.xlu1 %7494, %v5308_v24   ;;  %10641 = vst [vmem:[#allocation46_spill] sm:$0xff] %v8984_v23  ;;  %v1922_v60 = vsel %vm1887_vm2, %v10643_v30, %v10642_v33  ;;  %v8993_v62 = vmul.f32 %v1119_v53, %v10644_v12  ;;  %v10647_v21 = vrot.slane %v8921_v63, 4  ;;  %v10648_v30 = vrot.slane %v8854_v34, 4  ;;  %6471 = vmatprep.subr.bf16.mxu0 %v7553_v6 }
 0x166   : > { %v1124_v40 = vpop.permute.xlu0 %1123  ;;  %v1599_v13 = vsel %vm1560_vm0, %v10646_v42, %v1598_v5  ;;  %v7552_v42 = vld [vmem:[#allocation5 + $0xb8] sm:$0xff]   ;;  %v1570_v33 = vrot.slane %v8478_v3, 1  ;;  %v1411_v53 = vsel %vm1370_vm1, %v1408_v4, %v1410_v58  ;;  %v10651_v12 = vrot.slane %v8952_v61, 7 }
 0x167   : > { %v8997_v24 = vmul.f32 %v1124_v40, %v10645_v26  ;;  %2216 = vmatmul.mubr.bf16.gmra.mrb[20].mxu0 %v1922_v60  ;;  %v1930_v1 = vsel %vm1887_vm2, %v10648_v30, %v10647_v21  ;;  %v10484_v26 = vrot.slane %v8972_v2, 7  ;;  %v1434_v43 = vrot.slane %v8993_v62, 7  ;;  %6957 = vmatprep.subr.bf16.mxu1 %v7552_v42 }
 0x168   : > { %2223 = vmatprep.mubr.bf16.mxu0 %v1930_v1  ;;  %v10650_v40 = vrot.slane %v8947_v14, 1  ;;  %v1413_v21 = vsel %vm1370_vm1, %v1410_v58, %v10651_v12  ;;  %3534 = vperm.xlu0 %7488, %v3420_v45   ;;  %v1129_v30 = vpop.permute.xlu1 %1128  ;;  %v3421_v58 = vld [vmem:[#allocation7 + $0xb8] sm:$0xff]  ;;  %v10653_v45 = vmax.f32 %v8412_v7, 0.0  ;;  %v10659_v7 = vmax.f32 %v8415_v51, 0.0 }
 0x169   : > { %v9013_v28 = vpack.c.bf16 %v8997_v24, %v8993_v62  ;;  %v1436_v46 = vrot.slane %v8997_v24, 7  ;;  %5419 = vperm.xlu1 %7494, %v5309_v15   ;;  %v1435_v38 = vsel %vm1370_vm1, %v10484_v26, %v1434_v43  ;;  %2626 = vmatmul.mubr.bf16.gmra.mrb[24].mxu1 %v8842_v55  ;;  %v10655_v26 = vmax.f32 %v8791_v35, 0.0 }
 0x16a   : > { %v1601_v60 = vsel %vm1560_vm0, %v1598_v5, %v10650_v40  ;;  %v1134_v1 = vpop.permute.xlu0 %1133  ;;  %v10652_v5 = vmax.f32 %v8775_v19, 0.0  ;;  %v9037_v15 = vmul.f32 %v8798_v9, %v10653_v45  ;;  %2633 = vmatprep.mubr.bf16.mxu1 %v8854_v34  ;;  %v9047_v19 = vpack.c.bf16 %v1409_v17, %v1407_v37  ;;  %6958 = vmatpush3.bf16.msra.mxu1 %v7552_v42 }
 0x16b   : > { %10649 = vst [vmem:[#allocation47_spill] sm:$0xff] %v9013_v28  ;;  %v1437_v3 = vsel %vm1370_vm1, %v1434_v43, %v1436_v46  ;;  %v5310_v28 = vld [vmem:[#allocation7 + $0x170] sm:$0xff]  ;;  %v10485_v43 = vrot.slane %v8984_v23, 4  ;;  %v9045_v4 = vmul.f32 %v1134_v1, %v10655_v26  ;;  %v9056_v9 = vmul.f32 %v8800_v44, %v10659_v7 }
 0x16c   : > { %v9032_v40 = vmul.f32 %v1129_v30, %v10652_v5  ;;  %v9039_v12 = vpack.c.bf16 %v1437_v3, %v1435_v38  ;;  %10657 = vst [vmem:[#allocation50_spill] sm:$0xff] %v9047_v19  ;;  %v9051_v30 = vpack.c.bf16 %v8952_v61, %v8947_v14  ;;  %v9059_v3 = vld [vmem:[#allocation5 + $0x200] sm:$0xff]   ;;  %v9061_v35 = vpack.c.bf16 %v1601_v60, %v1599_v13  ;;  %v1139_v51 = vpop.permute.xlu1 %1138 }
 0x16d   : > { %10656 = vst [vmem:[#allocation49_spill] sm:$0xff] %v9045_v4  ;;  %v9063_v26 = vpack.c.bf16 %v1413_v21, %v1411_v53  ;;  %v1440_v37 = vrot.slane %v9045_v4, 7  ;;  %5424 = vperm.xlu1 %7494, %v5310_v28   ;;  %3539 = vperm.xlu0 %7488, %v3421_v58   ;;  %v10662_v1 = vrot.slane %v8977_v50, 4  ;;  %v10663_v6 = vrot.slane %v8910_v0, 4  ;;  %v5311_v28 = vld [vmem:[#allocation7 + $0x178] sm:$0xff] }
 0x16e   : > { %10654 = vst [vmem:[#allocation48_spill] sm:$0xff] %v9039_v12  ;;  %10658 = vst [vmem:[#allocation51_spill] sm:$0xff] %v9051_v30  ;;  %v1438_v38 = vrot.slane %v9032_v40, 7  ;;  %v9067_v17 = vpack.c.bf16 %v9045_v4, %v9032_v40  ;;  %v1144_v44 = vpop.permute.xlu0 %1143  ;;  %v10664_v53 = vmax.f32 %v8794_v10, 0.0  ;;  %v10666_v21 = vmax.f32 %v8805_v29, 0.0  ;;  %v10669_v10 = vld [vmem:[#allocation21_spill] sm:$0xff]  ;;  %6983 = vmatprep.subr.bf16.mxu1 %v9059_v3 }
 0x16f   : > { %10660 = vst [vmem:[#allocation52_spill] sm:$0xff] %v9063_v26  ;;  %v1928_v5 = vsel %vm1887_vm2, %v10663_v6, %v10662_v1  ;;  %v1414_v58 = vrot.slane %v9037_v15, 7  ;;  %v10668_v7 = vrot.slane %v8921_v63, 4  ;;  %v9095_v29 = vpack.c.bf16 %v9056_v9, %v9037_v15 }
 0x170   : > { %10661 = vst [vmem:[#allocation53_spill] sm:$0xff] %v9067_v17  ;;  %v1439_v13 = vsel %vm1370_vm1, %v1436_v46, %v1438_v38  ;;  %v9078_v60 = vmul.f32 %v1139_v51, %v10664_v53  ;;  %v9082_v45 = vmul.f32 %v1144_v44, %v10666_v21  ;;  %2224 = vmatmul.mubr.bf16.gmra.mrb[24].mxu0 %v1928_v5  ;;  %v1149_v53 = vpop.permute.xlu1 %1148 }
 0x171   : > { %v1936_v1 = vsel %vm1887_vm2, %v10668_v7, %v10485_v43  ;;  %v1441_v46 = vsel %vm1370_vm1, %v1438_v38, %v1440_v37  ;;  %10670 = vst [vmem:[#allocation21_spill] sm:$0xff] %v9095_v29  ;;  %v1416_v38 = vrot.slane %v9056_v9, 7  ;;  %5429 = vperm.xlu1 %7494, %v5311_v28   ;;  %v10673_v7 = vld [vmem:[#allocation20_spill] sm:$0xff]  ;;  %2634 = vmatmul.mubr.bf16.gmra.mrb[28].mxu1 %v8910_v0  ;;  %v10678_v28 = vmax.f32 %v8830_v25, 0.0 }
 0x172   : > { %10665 = vst [vmem:[#allocation54_spill] sm:$0xff] %v9078_v60  ;;  %10667 = vst [vmem:[#allocation55_spill] sm:$0xff] %v9082_v45  ;;  %2231 = vmatprep.mubr.bf16.mxu0 %v1936_v1  ;;  %v9097_v42 = vpack.c.bf16 %v1441_v46, %v1439_v13  ;;  %v1442_v44 = vrot.slane %v9078_v60, 7  ;;  %v9102_v6 = vpack.c.bf16 %v9082_v45, %v9078_v60  ;;  %v1444_v5 = vrot.slane %v9082_v45, 7  ;;  %v1154_v21 = vpop.permute.xlu0 %1153 }
 0x173   : > { %v10674_v51 = vrot.slane %v10673_v7, 1  ;;  %v10675_v1 = vrot.slane %v8512_v57, 1  ;;  %v9122_v12 = vmul.f32 %v1154_v21, %v10678_v28  ;;  %2641 = vmatprep.mubr.bf16.mxu1 %v8921_v63 }
 0x174   : > { %10671 = vst [vmem:[#allocation56_spill] sm:$0xff] %v9097_v42  ;;  %10672 = vst [vmem:[#allocation57_spill] sm:$0xff] %v9102_v6  ;;  %v1443_v43 = vsel %vm1370_vm1, %v1440_v37, %v1442_v44  ;;  %v1933_v6 = vrot.slane %v9047_v19, 4  ;;  %v10676_v42 = vmax.f32 %v8812_v49, 0.0  ;;  %v1941_v37 = vrot.slane %v9051_v30, 4 }
 0x175   : > { %v1571_v13 = vsel %vm1560_vm0, %v10674_v51, %v1570_v33  ;;  %v1573_v46 = vsel %vm1560_vm0, %v1570_v33, %v10675_v1  ;;  %10679 = vst [vmem:[#allocation58_spill] sm:$0xff] %v9122_v12  ;;  %v10680_v51 = vrot.slane %v8952_v61, 7  ;;  %v1445_v33 = vsel %vm1370_vm1, %v1442_v44, %v1444_v5  ;;  %v10681_v1 = vld [vmem:[#allocation19_spill] sm:$0xff] }
 0x176   : > { %v9118_v17 = vmul.f32 %v1149_v53, %v10676_v42  ;;  %v9130_v7 = vpack.c.bf16 %v1573_v46, %v1571_v13  ;;  %v10682_v49 = vmax.f32 %v10681_v1, 0.0  ;;  %v9137_v25 = vpack.c.bf16 %v1445_v33, %v1443_v43  ;;  %v1164_v13 = vpop.permute.xlu0 %1163  ;;  %v10685_v46 = vld [vmem:[#allocation25_spill] sm:$0xff] }
 0x177   : > { %v1415_v57 = vsel %vm1370_vm1, %v10680_v51, %v1414_v58  ;;  %v1417_v44 = vsel %vm1370_vm1, %v1414_v58, %v1416_v38  ;;  %v1448_v28 = vrot.slane %v9122_v12, 7  ;;  %v1159_v51 = vpop.permute.xlu1 %1158  ;;  %v1894_v45 = vrot.slane %v10685_v46, 4 }
 0x178   : > { %10677 = vst [vmem:[#allocation20_spill] sm:$0xff] %v9118_v17  ;;  %v9135_v42 = vmul.f32 %v8833_v59, %v10682_v49  ;;  %10683 = vst [vmem:[#allocation19_spill] sm:$0xff] %v9137_v25  ;;  %v1446_v53 = vrot.slane %v9118_v17, 7  ;;  %v9142_v21 = vpack.c.bf16 %v9122_v12, %v9118_v17  ;;  %v1895_v1 = vrot.slane %v9130_v7, 4 }
 0x179   : > { %v10686_v59 = vrot.slane %v8977_v50, 4  ;;  %v10687_v49 = vmax.f32 %v8838_v52, 0.0  ;;  %v10689_v58 = vmax.f32 %v8863_v22, 0.0  ;;  %v10691_v12 = vmax.f32 %v8450_v36, 0.0  ;;  %2642 = vmatmul.mubr.bf16.gmra.mrb[32].mxu1 %v8977_v50 }
 0x17a   : > { %10684 = vst [vmem:[#allocation59_spill] sm:$0xff] %v9142_v21  ;;  %v1447_v33 = vsel %vm1370_vm1, %v1444_v5, %v1446_v53  ;;  %v10692_v17 = vrot.slane %v8984_v23, 4  ;;  %v1449_v5 = vsel %vm1370_vm1, %v1446_v53, %v1448_v28  ;;  %v9170_v52 = vsel %vm1887_vm2, %v1894_v45, %v1895_v1  ;;  %v1174_v53 = vpop.permute.xlu0 %1173  ;;  %2649 = vmatprep.mubr.bf16.mxu1 %v8984_v23 }
 0x17b   : > { %v1934_v43 = vsel %vm1887_vm2, %v10686_v59, %v1933_v6  ;;  %v9154_v25 = vmul.f32 %v1159_v51, %v10687_v49  ;;  %v9158_v21 = vmul.f32 %v1164_v13, %v10689_v58  ;;  %v9163_v4 = vmul.f32 %v8835_v41, %v10691_v12  ;;  %v1169_v13 = vpop.permute.xlu1 %1168 }
 0x17c   : > { %2232 = vmatmul.mubr.bf16.gmra.mrb[28].mxu0 %v1934_v43  ;;  %v1942_v59 = vsel %vm1887_vm2, %v10692_v17, %v1941_v37  ;;  %v9172_v51 = vpack.c.bf16 %v1417_v44, %v1415_v57  ;;  %v9174_v22 = vpack.c.bf16 %v1449_v5, %v1447_v33  ;;  %v1418_v12 = vrot.slane %v9135_v42, 7 }
 0x17d   : > { %10688 = vst [vmem:[#allocation25_spill] sm:$0xff] %v9154_v25  ;;  %10690 = vst [vmem:[#allocation60_spill] sm:$0xff] %v9158_v21  ;;  %2239 = vmatprep.mubr.bf16.mxu0 %v1942_v59  ;;  %v1450_v36 = vrot.slane %v9154_v25, 7  ;;  %v9179_v41 = vpack.c.bf16 %v9158_v21, %v9154_v25  ;;  %v1452_v17 = vrot.slane %v9158_v21, 7  ;;  %v1901_v45 = vrot.slane %v8575_v48, 4 }
 0x17e   : > { %10693 = vst [vmem:[#allocation61_spill] sm:$0xff] %v9174_v22  ;;  %v1907_v57 = vrot.slane %v8627_v11, 4  ;;  %v1939_v43 = vrot.slane %v9063_v26, 4  ;;  %v10695_v33 = vmax.f32 %v8879_v47, 0.0  ;;  %v10697_v58 = vmax.f32 %v8890_v27, 0.0  ;;  %v1184_v21 = vpop.permute.xlu0 %1183 }
 0x17f   : > { %10694 = vst [vmem:[#allocation62_spill] sm:$0xff] %v9179_v41  ;;  %v1451_v44 = vsel %vm1370_vm1, %v1448_v28, %v1450_v36  ;;  %v9198_v5 = vpack.c.bf16 %v9163_v4, %v9135_v42  ;;  %v1453_v41 = vsel %vm1370_vm1, %v1450_v36, %v1452_v17  ;;  %v1947_v28 = vrot.slane %v9095_v29, 4 }
 0x180   : > { %v9190_v49 = vmul.f32 %v1169_v13, %v10695_v33  ;;  %v9194_v59 = vmul.f32 %v1174_v53, %v10697_v58  ;;  %v9204_v22 = vsel %vm1887_vm2, %v1895_v1, %v1901_v45  ;;  %v9207_v13 = vpack.c.bf16 %v1453_v41, %v1451_v44  ;;  %v1179_v58 = vpop.permute.xlu1 %1178  ;;  %v10702_v1 = vld [vmem:[#allocation31_spill] sm:$0xff] }
 0x181   : > { %10699 = vst [vmem:[#allocation65_spill] sm:$0xff] %v9198_v5  ;;  %v1419_v33 = vsel %vm1370_vm1, %v1416_v38, %v1418_v12  ;;  %v9217_v25 = vsel %vm1887_vm2, %v1901_v45, %v1907_v57  ;;  %v1913_v23 = vrot.slane %v10702_v1, 4  ;;  %v1940_v41 = vsel %vm1887_vm2, %v1933_v6, %v1939_v43  ;;  %2650 = vmatmul.mubr.bf16.gmra.mrb[36].mxu1 %v9047_v19 }
 0x182   : > { %10696 = vst [vmem:[#allocation63_spill] sm:$0xff] %v9190_v49  ;;  %10698 = vst [vmem:[#allocation64_spill] sm:$0xff] %v9194_v59  ;;  %v1454_v27 = vrot.slane %v9190_v49, 7  ;;  %v9212_v53 = vpack.c.bf16 %v9194_v59, %v9190_v49  ;;  %v1456_v36 = vrot.slane %v9194_v59, 7  ;;  %v10703_v47 = vmax.f32 %v8902_v54, 0.0  ;;  %v10707_v59 = vld [vmem:[#allocation22_spill] sm:$0xff]  ;;  %2657 = vmatprep.mubr.bf16.mxu1 %v9051_v30 }
 0x183   : > { %10700 = vst [vmem:[#allocation66_spill] sm:$0xff] %v9207_v13  ;;  %v10708_v49 = vmax.f32 %v10707_v59, 0.0  ;;  %v1948_v45 = vsel %vm1887_vm2, %v1941_v37, %v1947_v28  ;;  %v10709_v54 = vrot.slane %v9163_v4, 7  ;;  %v10714_v59 = vld [vmem:[#allocation41_spill] sm:$0xff] }
 0x184   : > { %10701 = vst [vmem:[#allocation67_spill] sm:$0xff] %v9212_v53  ;;  %v1455_v44 = vsel %vm1370_vm1, %v1452_v17, %v1454_v27  ;;  %v9224_v13 = vmul.f32 %v1179_v58, %v10703_v47  ;;  %v10705_v53 = vmax.f32 %v8905_v56, 0.0  ;;  %2240 = vmatmul.mubr.bf16.gmra.mrb[32].mxu0 %v1940_v41  ;;  %v1457_v6 = vsel %vm1370_vm1, %v1454_v27, %v1456_v36  ;;  %v1194_v58 = vpop.permute.xlu0 %1193  ;;  %v10715_v41 = vld [vmem:[#allocation34_spill] sm:$0xff] }
 0x185   : > { %v9233_v50 = vmul.f32 %v8866_v18, %v10708_v49  ;;  %v9238_v17 = vsel %vm1887_vm2, %v1907_v57, %v1913_v23  ;;  %v1421_v47 = vsel %vm1370_vm1, %v1418_v12, %v10709_v54  ;;  %2247 = vmatprep.mubr.bf16.mxu0 %v1948_v45  ;;  %v9243_v56 = vpack.c.bf16 %v1457_v6, %v1455_v44  ;;  %v10712_v49 = vld [vmem:[#allocation24_spill] sm:$0xff] }
 0x186   : > { %10704 = vst [vmem:[#allocation31_spill] sm:$0xff] %v9224_v13  ;;  %v9228_v38 = vmul.f32 %v1184_v21, %v10705_v53  ;;  %v1458_v21 = vrot.slane %v9224_v13, 7  ;;  %v10713_v37 = vmax.f32 %v10712_v49, 0.0  ;;  %v1189_v53 = vpop.permute.xlu1 %1188  ;;  %v1919_v12 = vrot.slane %v10715_v41, 4  ;;  %v10716_v45 = vld [vmem:[#allocation36_spill] sm:$0xff] }
 0x187   : > { %10710 = vst [vmem:[#allocation22_spill] sm:$0xff] %v9243_v56  ;;  %v1925_v44 = vrot.slane %v10716_v45, 4  ;;  %v1945_v54 = vrot.slane %v9172_v51, 4  ;;  %v9269_v56 = vpack.c.bf16 %v1421_v47, %v1419_v33  ;;  %v1422_v19 = vrot.slane %v9233_v50, 7 }
 0x188   : > { %10706 = vst [vmem:[#allocation68_spill] sm:$0xff] %v9228_v38  ;;  %v9248_v18 = vpack.c.bf16 %v9228_v38, %v9224_v13  ;;  %v9253_v27 = vmul.f32 %v10714_v59, %v10713_v37  ;;  %v1460_v57 = vrot.slane %v9228_v38, 7  ;;  %v1459_v6 = vsel %vm1370_vm1, %v1456_v36, %v1458_v21 }
 0x189   : > { %v10719_v37 = vmax.f32 %v8936_v32, 0.0  ;;  %10720 = vst [vmem:[#allocation41_spill] sm:$0xff] %v9269_v56  ;;  %v1953_v36 = vrot.slane %v9198_v5, 4  ;;  %v9275_v13 = vsel %vm1887_vm2, %v1913_v23, %v1919_v12  ;;  %v9291_v23 = vsel %vm1887_vm2, %v1919_v12, %v1925_v44  ;;  %2658 = vmatmul.mubr.bf16.gmra.mrb[40].mxu1 %v9063_v26 }
 0x18a   : > { %10711 = vst [vmem:[#allocation69_spill] sm:$0xff] %v9248_v18  ;;  %v10717_v18 = vmax.f32 %v8908_v16, 0.0  ;;  %v1461_v38 = vsel %vm1370_vm1, %v1458_v21, %v1460_v57  ;;  %v9287_v33 = vpack.c.bf16 %v9253_v27, %v9233_v50  ;;  %v1199_v21 = vpop.permute.xlu1 %1198  ;;  %v10726_v5 = vmax.f32 %v8942_v31, 0.0  ;;  %2665 = vmatprep.mubr.bf16.mxu1 %v9095_v29  ;;  %v10733_v29 = vld [vmem:[#allocation42_spill] sm:$0xff] }
 0x18b   : > { %v9267_v59 = vmul.f32 %v1194_v58, %v10719_v37  ;;  %v9278_v16 = vpack.c.bf16 %v1461_v38, %v1459_v6  ;;  %v10724_v58 = vld [vmem:[#allocation40_spill] sm:$0xff]  ;;  %v1946_v6 = vsel %vm1887_vm2, %v1939_v43, %v1945_v54  ;;  %v1424_v47 = vrot.slane %v9253_v27, 7 }
 0x18c   : > { %v9263_v49 = vmul.f32 %v1189_v53, %v10717_v18  ;;  %10723 = vst [vmem:[#allocation70_spill] sm:$0xff] %v9287_v33  ;;  %v1204_v53 = vpop.permute.xlu0 %1203  ;;  %v1931_v38 = vrot.slane %v10724_v58, 4  ;;  %2248 = vmatmul.mubr.bf16.gmra.mrb[36].mxu0 %v1946_v6  ;;  %v1954_v12 = vsel %vm1887_vm2, %v1947_v28, %v1953_v36  ;;  %v10730_v28 = vld [vmem:[#allocation30_spill] sm:$0xff] }
 0x18d   : > { %10721 = vst [vmem:[#allocation34_spill] sm:$0xff] %v9278_v16  ;;  %v10725_v16 = vmax.f32 %v8939_v8, 0.0  ;;  %v10727_v30 = vrot.slane %v9267_v59, 7  ;;  %2255 = vmatprep.mubr.bf16.mxu0 %v1954_v12  ;;  %v10525_v12 = vrot.slane %v9287_v33, 4 }
 0x18e   : > { %10718 = vst [vmem:[#allocation24_spill] sm:$0xff] %v9263_v49  ;;  %v1462_v18 = vrot.slane %v9263_v49, 7  ;;  %v9283_v32 = vpack.c.bf16 %v9267_v59, %v9263_v49  ;;  %v9302_v49 = vmul.f32 %v1204_v53, %v10726_v5  ;;  %v10524_v5 = vrot.slane %v9061_v35, 4 }
 0x18f   : > { %v930_v53 = vmax.f32 %v10730_v28, 0.0 }
 0x190   : > { %10722 = vst [vmem:[#allocation36_spill] sm:$0xff] %v9283_v32  ;;  %v1463_v37 = vsel %vm1370_vm1, %v1460_v57, %v1462_v18  ;;  %v9298_v32 = vmul.f32 %v1199_v21, %v10725_v16  ;;  %v1465_v43 = vsel %vm1370_vm1, %v1462_v18, %v10727_v30  ;;  %v9310_v57 = vsel %vm1887_vm2, %v1925_v44, %v1931_v38  ;;  %v10729_v16 = vld [vmem:[#allocation27_spill] sm:$0xff]  ;;  %v6230_v18 = vld [vmem:[%s8185_s16 + $0xc8] sm:$0xff]  }
 0x191   : > { %v9312_v8 = vpack.c.bf16 %v1465_v43, %v1463_v37  ;;  %v929_v21 = vmax.f32 %v10729_v16, 0.0  ;;  %v1951_v30 = vrot.slane %v9269_v56, 4  ;;  %v10731_v44 = vrot.slane %v9163_v4, 7  ;;  %v6231_v43 = vld [vmem:[%s8185_s16 + $0xd0] sm:$0xff]   ;;  %2666 = vmatmul.mubr.bf16.gmra.mrb[44].mxu1 %v9172_v51 }
 0x192   : > { %v9316_v31 = vpack.c.bf16 %v9302_v49, %v9298_v32  ;;  %v1425_v37 = vsel %vm1370_vm1, %v1422_v19, %v1424_v47  ;;  %v9334_v16 = vsel %vm1887_vm2, %v1931_v38, %v10524_v5  ;;  %v6080_v28 = vunpack.c.l.bf16 %v6230_v18  ;;  %v10734_v5 = vld [vmem:[#allocation35_spill] sm:$0xff] }
 0x193   : > { %10728 = vst [vmem:[#allocation40_spill] sm:$0xff] %v9312_v8  ;;  %v1423_v6 = vsel %vm1370_vm1, %v10731_v44, %v1422_v19  ;;  %v6081_v8 = vunpack.c.h.bf16 %v6230_v18  ;;  %v1952_v26 = vsel %vm1887_vm2, %v1945_v54, %v1951_v30  ;;  %v6084_v60 = vunpack.c.l.bf16 %v6231_v43 }
 0x194   : > { %v9336_v56 = vpack.c.bf16 %v1425_v37, %v1423_v6  ;;  %v6085_v44 = vunpack.c.h.bf16 %v6231_v43  ;;  %v9340_v19 = vmul.f32 %v8896_v20, %v929_v21  ;;  %v9343_v63 = vmul.f32 %v10733_v29, %v930_v53  ;;  %2256 = vmatmul.mubr.bf16.gmra.mrb[40].mxu0 %v1952_v26  ;;  %v10736_v21 = vld [vmem:[#allocation38_spill] sm:$0xff]  ;;  %v1209_v43 = vpop.permute.xlu1 %1208 }
 0x195   : > { %v1960_v38 = vsel %vm1887_vm2, %v1953_v36, %v10525_v12  ;;  %v834_v18 = vmul.f32 %v10734_v5, %v6080_v28  ;;  %v835_v6 = vmul.f32 %v10734_v5, %v6081_v8  ;;  %v836_v54 = vmul.f32 %v10734_v5, %v6084_v60 }
 0x196   : > { %10732 = vst [vmem:[#allocation27_spill] sm:$0xff] %v9336_v56  ;;  %2263 = vmatprep.mubr.bf16.mxu0 %v1960_v38  ;;  %v837_v37 = vmul.f32 %v10734_v5, %v6085_v44  ;;  %v10526_v20 = vrot.slane %v9336_v56, 4  ;;  %v1426_v29 = vrot.slane %v9340_v19, 7  ;;  %v1428_v26 = vrot.slane %v9343_v63, 7  ;;  %v7502_v5 = vpop.permute.xlu0 %7501 }
 0x197   : > { %v10735_v36 = vpack.c.bf16 %v10669_v10, %v8605_v39  ;;  %v896_v53 = vadd.f32 %v10736_v21, %v834_v18  ;;  %v897_v8 = vadd.f32 %v10736_v21, %v835_v6  ;;  %v898_v60 = vadd.f32 %v10736_v21, %v836_v54  ;;  %v7558_v10 = vld [vmem:[#allocation5 + $0x208] sm:$0xff]  }
 0x198   : > { %v899_v28 = vadd.f32 %v10736_v21, %v837_v37  ;;  %v1958_v44 = vsel %vm1887_vm2, %v1951_v30, %v10526_v20  ;;  %v1427_v38 = vsel %vm1370_vm1, %v1424_v47, %v1426_v29  ;;  %v1429_v39 = vsel %vm1370_vm1, %v1426_v29, %v1428_v26  ;;  %v1224_v30 = vpop.permute.xlu1 %1223  ;;  %v7554_v47 = vld [vmem:[#allocation5 + $0x180] sm:$0xff]  }
 0x199   : > { %6959 = vmatprep.mubr.bf16.mxu1 %v10735_v36  ;;  %v9371_v18 = vpack.c.bf16 %v1429_v39, %v1427_v38  ;;  %v951_v6 = vmax.f32 %v896_v53, 0.0  ;;  %v952_v54 = vmax.f32 %v897_v8, 0.0  ;;  %v7503_v36 = vunpack.i.l.bf16 %v7502_v5  ;;  %v7561_v53 = vld [vmem:[#allocation5 + $0x210] sm:$0xff]  }
 0x19a   : > { %v953_v37 = vmax.f32 %v898_v60, 0.0  ;;  %v7504_v21 = vunpack.i.h.bf16 %v7502_v5  ;;  %v954_v12 = vmax.f32 %v899_v28, 0.0  ;;  %6960 = vmatmul.mubr.bf16.vlgmr.msra.gmra.mrb[48].mxu1 %v10685_v46  ;;  %v1466_v8 = vrot.slane %v9298_v32, 7  ;;  %v7559_v38 = vld [vmem:[#allocation5 + $0x1d0] sm:$0xff]  }
 0x19b   : > { %10737 = vst [vmem:[#allocation30_spill] sm:$0xff] %v9371_v18  ;;  %6963 = vmatprep.mubr.bf16.mxu1 %v9130_v7  ;;  %6984 = vmatpush3.bf16.msra.mxu1 %v9059_v3  ;;  %v9376_v29 = vmul.f32 %v1209_v43, %v951_v6  ;;  %v1468_v46 = vrot.slane %v9302_v49, 7  ;;  %v7557_v3 = vld [vmem:[#allocation5 + $0x188] sm:$0xff]   ;;  %v7564_v7 = vld [vmem:[#allocation5 + $0x218] sm:$0xff]  }
 0x19c   : > { %2264 = vmatmul.mubr.bf16.gmra.mrb[44].mxu0 %v1958_v44  ;;  %6985 = vmatprep.subr.bf16.mxu1 %v7558_v10  ;;  %v7556_v44 = vld [vmem:[#allocation5 + $0x1c8] sm:$0xff]   ;;  %v9381_v60 = vmul.f32 %v7504_v21, %v953_v37  ;;  %v9383_v5 = vmul.f32 %v1224_v30, %v954_v12  ;;  %v7560_v21 = vld [vmem:[#allocation5 + $0x190] sm:$0xff]  }
 0x19d   : > { %6919 = vmatprep.mubr.bf16.mxu0 %v9170_v52  ;;  %v9378_v52 = vmul.f32 %v7503_v36, %v952_v54  ;;  %v1470_v43 = vrot.slane %v9376_v29, 7  ;;  %v1469_v6 = vsel %vm1370_vm1, %v1466_v8, %v1468_v46  ;;  %v10741_v54 = vld [vmem:[#allocation23_spill] sm:$0xff] }
 0x19e   : > { %10738 = vst [vmem:[#allocation42_spill] sm:$0xff] %v9381_v60  ;;  %10739 = vst [vmem:[#allocation35_spill] sm:$0xff] %v9383_v5  ;;  %v1474_v12 = vrot.slane %v9381_v60, 7  ;;  %v1476_v39 = vrot.slane %v9383_v5, 7  ;;  %v1668_v36 = vrot.slane %v10741_v54, 1  ;;  %v1664_v37 = vrot.slane %v9381_v60, 1 }
 0x19f   : > { %6986 = vmatpush3.bf16.msra.mxu1 %v7558_v10  ;;  %v1472_v28 = vrot.slane %v9378_v52, 7 }
 0x1a0   : > { %6987 = vmatprep.subr.bf16.mxu1 %v7561_v53 }
 0x1a2   : > { %6964 = vmatmul.mubr.bf16.gmra.mrb[52].mxu1 %v8575_v48 }
 0x1a3   : > { %6967 = vmatprep.mubr.bf16.mxu1 %v8627_v11  ;;  %6988 = vmatpush3.bf16.msra.mxu1 %v7561_v53  ;;  %v1471_v53 = vsel %vm1370_vm1, %v1468_v46, %v1470_v43 }
 0x1a4   : > { %6920 = vmatmul.mubr.bf16.vlgmr.msra.gmra.mrb[48].mxu0 %v9204_v22  ;;  %v10740_v22 = vrot.slane %v9267_v59, 7  ;;  %6989 = vmatprep.subr.bf16.mxu1 %v7564_v7 }
 0x1a5   : > { %6472 = vmatpush3.bf16.msra.mxu0 %v7554_v47  ;;  %6923 = vmatprep.mubr.bf16.mxu0 %v9217_v25  ;;  %v1666_v25 = vrot.slane %v9383_v5, 1  ;;  %v7562_v47 = vld [vmem:[#allocation5 + $0x1d8] sm:$0xff]  }
 0x1a6   : > { %6473 = vmatprep.subr.bf16.mxu0 %v7556_v44  ;;  %v1467_v10 = vsel %vm1370_vm1, %v10740_v22, %v1466_v8  ;;  %v7567_v44 = vld [vmem:[#allocation5 + $0x220] sm:$0xff]   ;;  %v9405_v22 = vpack.c.bf16 %v9378_v52, %v9376_v29  ;;  %v1473_v8 = vsel %vm1370_vm1, %v1470_v43, %v1472_v28 }
 0x1a7   : > { %v9401_v30 = vpack.c.bf16 %v1469_v6, %v1467_v10  ;;  %v9412_v20 = vpack.c.bf16 %v1473_v8, %v1471_v53  ;;  %v9415_v10 = vsel %vm1370_vm1, %v1472_v28, %v1474_v12  ;;  %6990 = vmatpush3.bf16.msra.mxu1 %v7564_v7  ;;  %v9427_v6 = vsel %vm1560_vm0, %v1664_v37, %v1666_v25  ;;  %v7570_v7 = vld [vmem:[#allocation5 + $0x228] sm:$0xff]   ;;  %v7565_v43 = vld [vmem:[#allocation5 + $0x1e0] sm:$0xff]  }
 0x1a8   : > { %10742 = vst [vmem:[#allocation38_spill] sm:$0xff] %v9405_v22  ;;  %10744 = vst [vmem:[#allocation71_spill] sm:$0xff] %v9415_v10  ;;  %v3850_v46 = vrot.slane %v9405_v22, 4  ;;  %v9430_v53 = vsel %vm1560_vm0, %v1666_v25, %v1668_v36  ;;  %v1604_v28 = vrot.slane %v9037_v15, 1  ;;  %6991 = vmatprep.subr.bf16.mxu1 %v7567_v44  ;;  %v1602_v15 = vrot.slane %v8952_v61, 1 }
 0x1a9   : > { %6474 = vmatpush3.bf16.msra.mxu0 %v7557_v3  ;;  %v10528_v3 = vrot.slane %v9316_v31, 4  ;;  %10743 = vst [vmem:[#allocation23_spill] sm:$0xff] %v9412_v20  ;;  %10746 = vst [vmem:[#allocation73_spill] sm:$0xff] %v9427_v6  ;;  %v10748_v61 = vrot.slane %v8947_v14, 1  ;;  %v7571_v14 = vld [vmem:[#allocation5 + $0x1f0] sm:$0xff]   ;;  %v7615_v6 = vld [vmem:[#allocation5 + $0x48] sm:$0xff]  }
 0x1aa   : > { %6475 = vmatprep.subr.bf16.mxu0 %v7559_v38  ;;  %v9418_v38 = vsel %vm1370_vm1, %v1474_v12, %v1476_v39  ;;  %10747 = vst [vmem:[#allocation74_spill] sm:$0xff] %v9430_v53  ;;  %v10527_v12 = vrot.slane %v9401_v30, 4  ;;  %v3848_v39 = vrot.slane %v9412_v20, 4  ;;  %6968 = vmatmul.mubr.bf16.gmra.mrb[56].mxu1 %v10702_v1  ;;  %v1605_v36 = vsel %vm1560_vm0, %v1602_v15, %v1604_v28 }
 0x1ab   : > { %10745 = vst [vmem:[#allocation72_spill] sm:$0xff] %v9418_v38  ;;  %v9441_v25 = vsel %vm1887_vm2, %v10528_v3, %v3850_v46  ;;  %6971 = vmatprep.mubr.bf16.mxu1 %v10715_v41  ;;  %6992 = vmatpush3.bf16.msra.mxu1 %v7567_v44  ;;  %v7573_v46 = vld [vmem:[#allocation5 + $0x230] sm:$0xff]   ;;  %v1603_v8 = vsel %vm1560_vm0, %v10748_v61, %v1602_v15  ;;  %v1612_v44 = vrot.slane %v9233_v50, 1  ;;  %v7579_v15 = vld [vmem:[#allocation5 + $0x140] sm:$0xff]  }
 0x1ac   : > { %6924 = vmatmul.mubr.bf16.gmra.mrb[52].mxu0 %v9238_v17  ;;  %v7563_v17 = vld [vmem:[#allocation5 + $0x198] sm:$0xff]   ;;  %6993 = vmatprep.subr.bf16.mxu1 %v7570_v7  ;;  %v9455_v54 = vpack.c.bf16 %v1605_v36, %v1603_v8  ;;  %v1610_v8 = vrot.slane %v9163_v4, 1  ;;  %v7610_v3 = vld [vmem:[#allocation5] sm:$0xff]  }
 0x1ad   : > { %6927 = vmatprep.mubr.bf16.mxu0 %v9275_v13  ;;  %6476 = vmatpush3.bf16.msra.mxu0 %v7560_v21  ;;  %v9448_v13 = vsel %vm1887_vm2, %v10527_v12, %v3848_v39  ;;  %v7566_v21 = vld [vmem:[#allocation5 + $0x1a0] sm:$0xff]   ;;  %v1608_v39 = vrot.slane %v9135_v42, 1  ;;  %v1606_v12 = vrot.slane %v9056_v9, 1 }
 0x1ae   : > { %6477 = vmatprep.subr.bf16.mxu0 %v7562_v47  ;;  %v7568_v47 = vld [vmem:[#allocation5 + $0x1e8] sm:$0xff]   ;;  %v1943_v50 = vrot.slane %v9455_v54, 4 }
 0x1af   : > { %6994 = vmatpush3.bf16.msra.mxu1 %v7570_v7  ;;  %v1609_v42 = vsel %vm1560_vm0, %v1606_v12, %v1608_v39  ;;  %v1607_v9 = vsel %vm1560_vm0, %v1604_v28, %v1606_v12  ;;  %v7574_v7 = vld [vmem:[#allocation5 + $0x1f8] sm:$0xff]   ;;  %v1611_v36 = vsel %vm1560_vm0, %v1608_v39, %v1610_v8  ;;  %v1614_v12 = vrot.slane %v9253_v27, 1 }
 0x1b0   : > { %6995 = vmatprep.subr.bf16.mxu1 %v7573_v46  ;;  %v9469_v4 = vpack.c.bf16 %v1609_v42, %v1607_v9  ;;  %v7575_v28 = vld [vmem:[#allocation5 + $0x1b8] sm:$0xff]   ;;  %v7580_v9 = vld [vmem:[#allocation5 + $0x148] sm:$0xff]  }
 0x1b1   : > { %6478 = vmatpush3.bf16.msra.mxu0 %v7563_v17  ;;  %v7569_v17 = vld [vmem:[#allocation5 + $0x1a8] sm:$0xff]  }
 0x1b2   : > { %6479 = vmatprep.subr.bf16.mxu0 %v7565_v43  ;;  %v7576_v43 = vld [vmem:[#allocation5 + $0x238] sm:$0xff]   ;;  %6972 = vmatmul.mubr.bf16.gmra.mrb[60].mxu1 %v10716_v45  ;;  %v1949_v39 = vrot.slane %v9469_v4, 4 }
 0x1b3   : > { %6975 = vmatprep.mubr.bf16.mxu1 %v10724_v58  ;;  %6996 = vmatpush3.bf16.msra.mxu1 %v7573_v46  ;;  %v10749_v46 = vrot.slane %v9061_v35, 4 }
 0x1b4   : > { %6928 = vmatmul.mubr.bf16.gmra.mrb[56].mxu0 %v9291_v23  ;;  %v1613_v23 = vsel %vm1560_vm0, %v1610_v8, %v1612_v44  ;;  %6997 = vmatprep.subr.bf16.mxu1 %v7576_v43  ;;  %v1950_v8 = vsel %vm1887_vm2, %v1943_v50, %v1949_v39 }
 0x1b5   : > { %6931 = vmatprep.mubr.bf16.mxu0 %v9310_v57  ;;  %6480 = vmatpush3.bf16.msra.mxu0 %v7566_v21  ;;  %v7572_v57 = vld [vmem:[#allocation5 + $0x1b0] sm:$0xff]   ;;  %v9472_v21 = vpack.c.bf16 %v1613_v23, %v1611_v36  ;;  %v1944_v61 = vsel %vm1887_vm2, %v10749_v46, %v1943_v50  ;;  %v7578_v50 = vld [vmem:[#allocation5 + $0xc0] sm:$0xff]  }
 0x1b6   : > { %6481 = vmatprep.subr.bf16.mxu0 %v7568_v47  ;;  %v1616_v47 = vrot.slane %v9340_v19, 1  ;;  %v7583_v36 = vld [vmem:[#allocation5 + $0x150] sm:$0xff]   ;;  %v7660_v46 = vld [vmem:[%s8185_s16 + $0x78] sm:$0xff]  }
 0x1b7   : > { %6998 = vmatpush3.bf16.msra.mxu1 %v7576_v43  ;;  %v1955_v43 = vrot.slane %v9472_v21, 4 }
 0x1b8   : > { %7023 = vmatprep.subr.bf16.mxu1 %v7579_v15 }
 0x1b9   : > { %6482 = vmatpush3.bf16.msra.mxu0 %v7569_v17  ;;  %v7577_v17 = vld [vmem:[#allocation5 + $0x100] sm:$0xff]   ;;  %v1956_v42 = vsel %vm1887_vm2, %v1949_v39, %v1955_v43  ;;  %v7586_v39 = vld [vmem:[#allocation5 + $0xd0] sm:$0xff]  }
 0x1ba   : > { %6483 = vmatprep.subr.bf16.mxu0 %v7571_v14  ;;  %6976 = vmatmul.mubr.bf16.gmra.mrb[64].mxu1 %v9061_v35  ;;  %v1615_v14 = vsel %vm1560_vm0, %v1612_v44, %v1614_v12 }
 0x1bb   : > { %6979 = vmatprep.mubr.bf16.mxu1 %v9455_v54 }
 0x1bc   : > { %6932 = vmatmul.mubr.bf16.gmra.mrb[60].mxu0 %v9334_v16  ;;  %v1617_v16 = vsel %vm1560_vm0, %v1614_v12, %v1616_v47  ;;  %v7582_v12 = vld [vmem:[#allocation5 + $0xc8] sm:$0xff]  }
 0x1bd   : > { %6935 = vmatprep.mubr.bf16.mxu0 %v1944_v61  ;;  %6484 = vmatpush3.bf16.msra.mxu0 %v7572_v57  ;;  %v9488_v27 = vpack.c.bf16 %v1617_v16, %v1615_v14  ;;  %v10750_v57 = vld [vmem:[#allocation26_spill] sm:$0xff]  ;;  %v6040_v61 = vunpack.c.l.bf16 %v7660_v46  ;;  %v7587_v16 = vld [vmem:[#allocation5 + $0x160] sm:$0xff]   ;;  %v10755_v46 = vld [vmem:[#allocation44_spill] sm:$0xff] }
 0x1be   : > { %6485 = vmatprep.subr.bf16.mxu0 %v7574_v7  ;;  %v7581_v7 = vld [vmem:[#allocation5 + $0x108] sm:$0xff]   ;;  %v7662_v14 = vld [vmem:[#allocation10] ss:$0 sm:$0xff] }
 0x1bf   : > { %v1961_v23 = vrot.slane %v9488_v27, 4 }
 0x1c1   : > { %6486 = vmatpush3.bf16.msra.mxu0 %v7575_v28  ;;  %v1962_v44 = vsel %vm1887_vm2, %v1955_v43, %v1961_v23  ;;  %v10752_v28 = vld [vmem:[#allocation29_spill] sm:$0xff]  ;;  %v7589_v43 = vld [vmem:[#allocation5 + $0x118] sm:$0xff]  }
 0x1c2   : > { %6579 = vmatprep.subr.bf16.mxu0 %v7577_v17  ;;  %6980 = vmatmul.mubr.bf16.gmra.mrb[68].mxu1 %v9469_v4  ;;  %v7584_v17 = vld [vmem:[#allocation5 + $0x158] sm:$0xff]  }
 0x1c3   : > { %6999 = vmatprep.mubr.bf16.mxu1 %v8575_v48  ;;  %v10751_v48 = vld [vmem:[#allocation28_spill] sm:$0xff] }
 0x1c4   : > { %6936 = vmatmul.mubr.bf16.gmra.mrb[64].mxu0 %v1950_v8 }
 0x1c5   : > { %6939 = vmatprep.mubr.bf16.mxu0 %v1956_v42  ;;  %v10753_v42 = vld [vmem:[#allocation32_spill] sm:$0xff] }
 0x1ca   : > { %7000 = vmatmul.mubr.bf16.vlgmr.msra.gmra.mrb[48].mxu1 %v8627_v11  ;;  %v7585_v11 = vld [vmem:[#allocation5 + $0x110] sm:$0xff]  }
 0x1cb   : > { %7003 = vmatprep.mubr.bf16.mxu1 %v10702_v1  ;;  %7024 = vmatpush3.bf16.msra.mxu1 %v7579_v15  ;;  %v7661_v1 = vld [vmem:[#allocation8] ss:$0 sm:$0xff] }
 0x1cc   : > { %6940 = vmatmul.mubr.bf16.gmra.mrb[68].mxu0 %v1962_v44  ;;  %7025 = vmatprep.subr.bf16.mxu1 %v7580_v9  ;;  %v814_v15 = vmul.f32 %v7661_v1, %v6040_v61  ;;  %v10754_v44 = vld [vmem:[#allocation33_spill] sm:$0xff]  ;;  %v1618_v1 = vrot.slane %v9343_v63, 1 }
 0x1cd   : > { %3028 = vmatprep.mubr.bf16.mxu0 %v10750_v57  ;;  %v7590_v57 = vld [vmem:[#allocation5 + $0xd8] sm:$0xff]  }
 0x1ce   : > { %v876_v8 = vadd.f32 %v7662_v14, %v814_v15  ;;  %v7602_v15 = vld [vmem:[#allocation5 + $0xf0] sm:$0xff]  }
 0x1cf   : > { %7026 = vmatpush3.bf16.msra.mxu1 %v7580_v9 }
 0x1d0   : > { %7027 = vmatprep.subr.bf16.mxu1 %v7583_v36  ;;  %v931_v9 = vmax.f32 %v876_v8, 0.0  ;;  %v1628_v8 = vrot.slane %v9032_v40, 1 }
 0x1d2   : > { %7004 = vmatmul.mubr.bf16.gmra.mrb[52].mxu1 %v10715_v41  ;;  %v7588_v41 = vld [vmem:[#allocation5 + $0x168] sm:$0xff]   ;;  %v9511_v61 = vmul.f32 %v10755_v46, %v931_v9  ;;  %v10763_v46 = vld [vmem:[#allocation49_spill] sm:$0xff] }
 0x1d3   : > { %7007 = vmatprep.mubr.bf16.mxu1 %v10716_v45  ;;  %7028 = vmatpush3.bf16.msra.mxu1 %v7583_v36  ;;  %v7593_v45 = vld [vmem:[#allocation5 + $0x120] sm:$0xff]   ;;  %v7597_v36 = vld [vmem:[#allocation5 + $0x128] sm:$0xff]  }
 0x1d4   : > { %3029 = vmatmul.mubr.bf16.vlgmr.msra.gmra.mrb[72].mxu0 %v10751_v48  ;;  %7029 = vmatprep.subr.bf16.mxu1 %v7584_v17  ;;  %v10756_v48 = vld [vmem:[#allocation37_spill] sm:$0xff] }
 0x1d5   : > { %6580 = vmatpush3.bf16.msra.mxu0 %v7578_v50  ;;  %3036 = vmatprep.mubr.bf16.mxu0 %v10752_v28  ;;  %v7591_v50 = vld [vmem:[#allocation5 + $0x170] sm:$0xff]   ;;  %v10757_v28 = vld [vmem:[#allocation39_spill] sm:$0xff] }
 0x1d6   : > { %6581 = vmatprep.subr.bf16.mxu0 %v7581_v7  ;;  %v7594_v7 = vld [vmem:[#allocation5 + $0xe0] sm:$0xff]  }
 0x1d7   : > { %7030 = vmatpush3.bf16.msra.mxu1 %v7584_v17  ;;  %v1620_v17 = vrot.slane %v9511_v61, 1 }
 0x1d8   : > { %7031 = vmatprep.subr.bf16.mxu1 %v7587_v16 }
 0x1d9   : > { %6582 = vmatpush3.bf16.msra.mxu0 %v7582_v12  ;;  %v7598_v12 = vld [vmem:[#allocation5 + $0xe8] sm:$0xff]  }
 0x1da   : > { %6583 = vmatprep.subr.bf16.mxu0 %v7585_v11  ;;  %7008 = vmatmul.mubr.bf16.gmra.mrb[56].mxu1 %v10724_v58  ;;  %v7592_v58 = vld [vmem:[#allocation5 + $0x178] sm:$0xff]   ;;  %v7595_v11 = vld [vmem:[#allocation5 + $0x80] sm:$0xff]  }
 0x1db   : > { %7011 = vmatprep.mubr.bf16.mxu1 %v9061_v35  ;;  %7032 = vmatpush3.bf16.msra.mxu1 %v7587_v16  ;;  %v7601_v35 = vld [vmem:[#allocation5 + $0x130] sm:$0xff]   ;;  %v1621_v16 = vsel %vm1560_vm0, %v1618_v1, %v1620_v17 }
 0x1dc   : > { %3037 = vmatmul.mubr.bf16.gmra.mrb[76].mxu0 %v10753_v42  ;;  %7033 = vmatprep.subr.bf16.mxu1 %v7588_v41  ;;  %v1626_v42 = vrot.slane %v8997_v24, 1  ;;  %v10761_v24 = vld [vmem:[#allocation54_spill] sm:$0xff] }
 0x1dd   : > { %3044 = vmatprep.mubr.bf16.mxu0 %v10754_v44  ;;  %6584 = vmatpush3.bf16.msra.mxu0 %v7586_v39  ;;  %v7605_v39 = vld [vmem:[#allocation5 + $0x138] sm:$0xff]  }
 0x1de   : > { %6585 = vmatprep.subr.bf16.mxu0 %v7589_v43  ;;  %v1624_v43 = vrot.slane %v8993_v62, 1  ;;  %v1629_v62 = vsel %vm1560_vm0, %v1626_v42, %v1628_v8 }
 0x1df   : > { %7034 = vmatpush3.bf16.msra.mxu1 %v7588_v41 }
 0x1e0   : > { %7035 = vmatprep.subr.bf16.mxu1 %v7591_v50 }
 0x1e1   : > { %6586 = vmatpush3.bf16.msra.mxu0 %v7590_v57  ;;  %v10758_v57 = vld [vmem:[#allocation43_spill] sm:$0xff] }
 0x1e2   : > { %6587 = vmatprep.subr.bf16.mxu0 %v7593_v45  ;;  %7012 = vmatmul.mubr.bf16.gmra.mrb[60].mxu1 %v9455_v54  ;;  %v1619_v54 = vsel %vm1560_vm0, %v1616_v47, %v1618_v1  ;;  %v1627_v45 = vsel %vm1560_vm0, %v1624_v43, %v1626_v42 }
 0x1e3   : > { %7015 = vmatprep.mubr.bf16.mxu1 %v9469_v4  ;;  %7036 = vmatpush3.bf16.msra.mxu1 %v7591_v50  ;;  %v7606_v4 = vld [vmem:[#allocation5 + $0xf8] sm:$0xff]   ;;  %v9527_v14 = vpack.c.bf16 %v1621_v16, %v1619_v54  ;;  %v9542_v9 = vpack.c.bf16 %v1629_v62, %v1627_v45  ;;  %v1632_v50 = vrot.slane %v10761_v24, 1  ;;  %v7596_v16 = vld [vmem:[#allocation5 + $0x88] sm:$0xff]   ;;  %v10770_v62 = vld [vmem:[#allocation63_spill] sm:$0xff] }
 0x1e4   : > { %3045 = vmatmul.mubr.bf16.gmra.mrb[80].mxu0 %v10756_v48  ;;  %7037 = vmatprep.subr.bf16.mxu1 %v7592_v58  ;;  %v1630_v48 = vrot.slane %v10763_v46, 1  ;;  %v7599_v45 = vld [vmem:[#allocation5 + $0x90] sm:$0xff]   ;;  %v10772_v24 = vld [vmem:[#allocation60_spill] sm:$0xff] }
 0x1e5   : > { %3052 = vmatprep.mubr.bf16.mxu0 %v10757_v28  ;;  %6588 = vmatpush3.bf16.msra.mxu0 %v7594_v7  ;;  %v3786_v44 = vrot.slane %v9527_v14, 4  ;;  %10760 = vst [vmem:[#allocation28_spill] sm:$0xff] %v9542_v9  ;;  %v10764_v28 = vld [vmem:[#allocation55_spill] sm:$0xff] }
 0x1e6   : > { %6589 = vmatprep.subr.bf16.mxu0 %v7597_v36  ;;  %v10762_v36 = vld [vmem:[#allocation20_spill] sm:$0xff] }
 0x1e7   : > { %7038 = vmatpush3.bf16.msra.mxu1 %v7592_v58  ;;  %v3787_v7 = vsel %vm1887_vm2, %v1961_v23, %v3786_v44  ;;  %v1634_v58 = vrot.slane %v10764_v28, 1  ;;  %v10766_v23 = vld [vmem:[#allocation46_spill] sm:$0xff] }
 0x1e8   : > { %7063 = vmatprep.subr.bf16.mxu1 %v7595_v11 }
 0x1e9   : > { %6590 = vmatpush3.bf16.msra.mxu0 %v7598_v12 }
 0x1ea   : > { %6591 = vmatprep.subr.bf16.mxu0 %v7601_v35  ;;  %7016 = vmatmul.mubr.bf16.gmra.mrb[64].mxu1 %v9472_v21  ;;  %v1633_v35 = vsel %vm1560_vm0, %v1630_v48, %v1632_v50 }
 0x1eb   : > { %7019 = vmatprep.mubr.bf16.mxu1 %v9488_v27 }
 0x1ec   : > { %3053 = vmatmul.mubr.bf16.gmra.mrb[84].mxu0 %v8842_v55  ;;  %v7609_v55 = vld [vmem:[#allocation5 + $0x40] sm:$0xff]  }
 0x1ed   : > { %3060 = vmatprep.mubr.bf16.mxu0 %v8854_v34  ;;  %6592 = vmatpush3.bf16.msra.mxu0 %v7602_v15  ;;  %v1622_v34 = vrot.slane %v8972_v2, 1  ;;  %v10765_v15 = vld [vmem:[#allocation45_spill] sm:$0xff] }
 0x1ee   : > { %6593 = vmatprep.subr.bf16.mxu0 %v7605_v39  ;;  %v1631_v39 = vsel %vm1560_vm0, %v1628_v8, %v1630_v48  ;;  %v10771_v8 = vld [vmem:[#allocation58_spill] sm:$0xff] }
 0x1ef   : > { %v1625_v47 = vsel %vm1560_vm0, %v1622_v34, %v1624_v43  ;;  %v1623_v41 = vsel %vm1560_vm0, %v1620_v17, %v1622_v34  ;;  %v3798_v17 = vrot.slane %v9542_v9, 4  ;;  %v9559_v54 = vpack.c.bf16 %v1633_v35, %v1631_v39  ;;  %v10769_v34 = vld [vmem:[#allocation25_spill] sm:$0xff]  ;;  %v10773_v48 = vld [vmem:[#allocation50_spill] sm:$0xff]  ;;  %v10777_v39 = vld [vmem:[#allocation31_spill] sm:$0xff] }
 0x1f0   : > { %v9539_v40 = vpack.c.bf16 %v1625_v47, %v1623_v41  ;;  %v1640_v42 = vrot.slane %v10769_v34, 1  ;;  %v1644_v41 = vrot.slane %v10770_v62, 1  ;;  %v10780_v62 = vld [vmem:[#allocation68_spill] sm:$0xff] }
 0x1f1   : > { %6594 = vmatpush3.bf16.msra.mxu0 %v7606_v4  ;;  %10767 = vst [vmem:[#allocation29_spill] sm:$0xff] %v9559_v54  ;;  %v1635_v4 = vsel %vm1560_vm0, %v1632_v50, %v1634_v58  ;;  %v3804_v50 = vrot.slane %v9559_v54, 4 }
 0x1f2   : > { %6687 = vmatprep.subr.bf16.mxu0 %v7609_v55  ;;  %10759 = vst [vmem:[#allocation26_spill] sm:$0xff] %v9539_v40  ;;  %7020 = vmatmul.mubr.bf16.gmra.mrb[68].mxu1 %v9527_v14  ;;  %v3792_v12 = vrot.slane %v9539_v40, 4 }
 0x1f3   : > { %7039 = vmatprep.mubr.bf16.mxu1 %v3787_v7  ;;  %v1642_v7 = vrot.slane %v10772_v24, 1 }
 0x1f4   : > { %3061 = vmatmul.mubr.bf16.gmra.mrb[88].mxu0 %v8910_v0  ;;  %v1636_v0 = vrot.slane %v10762_v36, 1  ;;  %v3793_v43 = vsel %vm1887_vm2, %v3786_v44, %v3792_v12  ;;  %v3799_v47 = vsel %vm1887_vm2, %v3792_v12, %v3798_v17 }
 0x1f5   : > { %3068 = vmatprep.mubr.bf16.mxu0 %v10758_v57  ;;  %v1638_v57 = vrot.slane %v10771_v8, 1  ;;  %v1645_v46 = vsel %vm1560_vm0, %v1642_v7, %v1644_v41  ;;  %v1643_v35 = vsel %vm1560_vm0, %v1640_v42, %v1642_v7  ;;  %v1650_v8 = vrot.slane %v10780_v62, 1  ;;  %v10781_v7 = vld [vmem:[#allocation52_spill] sm:$0xff] }
 0x1f6   : > { %v1637_v1 = vsel %vm1560_vm0, %v1634_v58, %v1636_v0  ;;  %v7600_v58 = vld [vmem:[#allocation5 + $0x98] sm:$0xff]  }
 0x1f7   : > { %v9563_v55 = vpack.c.bf16 %v1637_v1, %v1635_v4  ;;  %v1641_v44 = vsel %vm1560_vm0, %v1638_v57, %v1640_v42  ;;  %v1639_v28 = vsel %vm1560_vm0, %v1636_v0, %v1638_v57  ;;  %v3805_v1 = vsel %vm1887_vm2, %v3798_v17, %v3804_v50  ;;  %v10779_v0 = vld [vmem:[#allocation64_spill] sm:$0xff] }
 0x1f8   : > { %v9577_v12 = vpack.c.bf16 %v1641_v44, %v1639_v28  ;;  %v1646_v34 = vrot.slane %v10779_v0, 1  ;;  %v7604_v44 = vld [vmem:[#allocation5 + $0xa8] sm:$0xff]  }
 0x1f9   : > { %10768 = vst [vmem:[#allocation32_spill] sm:$0xff] %v9563_v55  ;;  %v3810_v36 = vrot.slane %v9563_v55, 4 }
 0x1fa   : > { %7040 = vmatmul.mubr.bf16.vlgmr.msra.gmra.mrb[72].mxu1 %v3793_v43  ;;  %10775 = vst [vmem:[#allocation33_spill] sm:$0xff] %v9577_v12  ;;  %v3816_v42 = vrot.slane %v9577_v12, 4 }
 0x1fb   : > { %7043 = vmatprep.mubr.bf16.mxu1 %v3799_v47  ;;  %7064 = vmatpush3.bf16.msra.mxu1 %v7595_v11  ;;  %v10774_v11 = vld [vmem:[#allocation51_spill] sm:$0xff]  ;;  %v3811_v4 = vsel %vm1887_vm2, %v3804_v50, %v3810_v36  ;;  %v1647_v50 = vsel %vm1560_vm0, %v1644_v41, %v1646_v34  ;;  %v1654_v41 = vrot.slane %v9267_v59, 1 }
 0x1fc   : > { %3069 = vmatmul.mubr.bf16.gmra.mrb[92].mxu0 %v10765_v15  ;;  %7065 = vmatprep.subr.bf16.mxu1 %v7596_v16  ;;  %v9581_v15 = vpack.c.bf16 %v1645_v46, %v1643_v35  ;;  %v7603_v47 = vld [vmem:[#allocation5 + $0xa0] sm:$0xff]   ;;  %v3817_v28 = vsel %vm1887_vm2, %v3810_v36, %v3816_v42  ;;  %v1656_v35 = vrot.slane %v9298_v32, 1 }
 0x1fd   : > { %3076 = vmatprep.mubr.bf16.mxu0 %v10766_v23  ;;  %v1648_v23 = vrot.slane %v10777_v39, 1 }
 0x1fe   : > { %10776 = vst [vmem:[#allocation44_spill] sm:$0xff] %v9581_v15  ;;  %v3822_v57 = vrot.slane %v9581_v15, 4  ;;  %v1657_v0 = vsel %vm1560_vm0, %v1654_v41, %v1656_v35 }
 0x1ff   : > { %7066 = vmatpush3.bf16.msra.mxu1 %v7596_v16  ;;  %v10778_v16 = vld [vmem:[#allocation24_spill] sm:$0xff]  ;;  %v1649_v17 = vsel %vm1560_vm0, %v1646_v34, %v1648_v23 }
 0x200   : > { %7067 = vmatprep.subr.bf16.mxu1 %v7599_v45  ;;  %v1652_v43 = vrot.slane %v10778_v16, 1  ;;  %v9595_v46 = vpack.c.bf16 %v1649_v17, %v1647_v50 }
 0x202   : > { %7044 = vmatmul.mubr.bf16.gmra.mrb[76].mxu1 %v3805_v1  ;;  %v1653_v24 = vsel %vm1560_vm0, %v1650_v8, %v1652_v43  ;;  %10783 = vst [vmem:[#allocation37_spill] sm:$0xff] %v9595_v46  ;;  %v3823_v1 = vsel %vm1887_vm2, %v3816_v42, %v3822_v57  ;;  %v3828_v36 = vrot.slane %v9595_v46, 4  ;;  %v7608_v42 = vld [vmem:[#allocation5 + $0xb8] sm:$0xff]  }
 0x203   : > { %7047 = vmatprep.mubr.bf16.mxu1 %v3811_v4  ;;  %7068 = vmatpush3.bf16.msra.mxu1 %v7599_v45  ;;  %v10782_v45 = vld [vmem:[#allocation21_spill] sm:$0xff] }
 0x204   : > { %3077 = vmatmul.mubr.bf16.gmra.mrb[96].mxu0 %v10773_v48  ;;  %7069 = vmatprep.subr.bf16.mxu1 %v7600_v58  ;;  %v1651_v48 = vsel %vm1560_vm0, %v1648_v23, %v1650_v8  ;;  %v7607_v4 = vld [vmem:[#allocation5 + $0xb0] sm:$0xff]   ;;  %v1658_v23 = vrot.slane %v9302_v49, 1 }
 0x205   : > { %3084 = vmatprep.mubr.bf16.mxu0 %v10774_v11  ;;  %v9599_v11 = vpack.c.bf16 %v1653_v24, %v1651_v48  ;;  %v10785_v8 = vld [vmem:[#allocation65_spill] sm:$0xff]  ;;  %v3829_v24 = vsel %vm1887_vm2, %v3822_v57, %v3828_v36 }
 0x207   : > { %7070 = vmatpush3.bf16.msra.mxu1 %v7600_v58  ;;  %10784 = vst [vmem:[#allocation39_spill] sm:$0xff] %v9599_v11  ;;  %v1660_v58 = vrot.slane %v9376_v29, 1  ;;  %v3834_v62 = vrot.slane %v9599_v11, 4 }
 0x208   : > { %7071 = vmatprep.subr.bf16.mxu1 %v7603_v47 }
 0x209   : > { %v6379_v39 = vpop.f32.mrb[0].mxu1  ;;  %v1661_v59 = vsel %vm1560_vm0, %v1658_v23, %v1660_v58 }
 0x20a   : > { %7048 = vmatmul.mubr.bf16.gmra.mrb[80].mxu1 %v3817_v28  ;;  %v6380_v16 = vpop.f32.mrb[1].mxu1 }
 0x20b   : > { %7051 = vmatprep.mubr.bf16.mxu1 %v3823_v1  ;;  %7072 = vmatpush3.bf16.msra.mxu1 %v7603_v47  ;;  %v9608_v32 = vadd.f32 %v6380_v16, %v6379_v39  ;;  %v6382_v34 = vpop.f32.mrb[2].mxu1  ;;  %v1655_v47 = vsel %vm1560_vm0, %v1652_v43, %v1654_v41  ;;  %v7611_v1 = vld [vmem:[#allocation5 + $0x1c0] sm:$0xff]  }
 0x20c   : > { %3085 = vmatmul.mubr.bf16.gmra.mrb[100].mxu0 %v10781_v7  ;;  %7073 = vmatprep.subr.bf16.mxu1 %v7604_v44  ;;  %v6383_v29 = vpop.f32.mrb[3].mxu1  ;;  %v9617_v17 = vpack.c.bf16 %v1657_v0, %v1655_v47  ;;  %v1659_v7 = vsel %vm1560_vm0, %v1656_v35, %v1658_v23 }
 0x20d   : > { %3092 = vmatprep.mubr.bf16.mxu0 %v10782_v45  ;;  %v9615_v49 = vadd.f32 %v6383_v29, %v6382_v34  ;;  %v3835_v45 = vsel %vm1887_vm2, %v3828_v36, %v3834_v62  ;;  %v10788_v36 = vld [vmem:[#allocation41_spill] sm:$0xff] }
 0x20e   : > { %10786 = vst [vmem:[#allocation43_spill] sm:$0xff] %v9617_v17  ;;  %v3840_v35 = vrot.slane %v9617_v17, 4 }
 0x20f   : > { %7074 = vmatpush3.bf16.msra.mxu1 %v7604_v44  ;;  %v6271_v50 = vpop.f32.mrb[0].mxu0  ;;  %v9623_v44 = vpack.c.bf16 %v1661_v59, %v1659_v7 }
 0x210   : > { %7075 = vmatprep.subr.bf16.mxu1 %v7607_v4  ;;  %v6272_v43 = vpop.f32.mrb[1].mxu0  ;;  %v3841_v47 = vsel %vm1887_vm2, %v3834_v62, %v3840_v35  ;;  %v9652_v62 = vpack.c.bf16 %v9343_v63, %v9340_v19 }
 0x211   : > { %10787 = vst [vmem:[#allocation54_spill] sm:$0xff] %v9623_v44  ;;  %v9625_v48 = vadd.f32 %v6272_v43, %v6271_v50  ;;  %v6274_v28 = vpop.f32.mrb[2].mxu0  ;;  %v6385_v57 = vpop.f32.mrb[4].mxu1  ;;  %v3846_v23 = vrot.slane %v9623_v44, 4  ;;  %v7627_v44 = vld [vmem:[#allocation5 + $0x58] sm:$0xff]  }
 0x212   : > { %7052 = vmatmul.mubr.bf16.gmra.mrb[84].mxu1 %v3829_v24  ;;  %v6275_v41 = vpop.f32.mrb[3].mxu0  ;;  %10790 = vst [vmem:[#allocation49_spill] sm:$0xff] %v9652_v62  ;;  %v3784_v19 = vrot.slane %v9652_v62, 4 }
 0x213   : > { %7055 = vmatprep.mubr.bf16.mxu1 %v3835_v45  ;;  %7076 = vmatpush3.bf16.msra.mxu1 %v7607_v4  ;;  %v9628_v39 = vadd.f32 %v6275_v41, %v6274_v28 }
 0x214   : > { %3093 = vmatmul.mubr.bf16.gmra.mrb[104].mxu0 %v9172_v51  ;;  %v1662_v51 = vrot.slane %v9378_v52, 1  ;;  %7077 = vmatprep.subr.bf16.mxu1 %v7608_v42  ;;  %v6386_v52 = vpop.f32.mrb[5].mxu1 }
 0x215   : > { %3100 = vmatprep.mubr.bf16.mxu0 %v10785_v8  ;;  %v9636_v0 = vadd.f32 %v6386_v52, %v6385_v57  ;;  %v6388_v34 = vpop.f32.mrb[6].mxu1 }
 0x216   : > { %v1663_v16 = vsel %vm1560_vm0, %v1660_v58, %v1662_v51  ;;  %v1665_v4 = vsel %vm1560_vm0, %v1662_v51, %v1664_v37  ;;  %v6389_v29 = vpop.f32.mrb[7].mxu1  ;;  %v3847_v37 = vsel %vm1887_vm2, %v3840_v35, %v3846_v23 }
 0x217   : > { %7078 = vmatpush3.bf16.msra.mxu1 %v7608_v42  ;;  %v9639_v59 = vadd.f32 %v6389_v29, %v6388_v34  ;;  %v9642_v24 = vpack.c.bf16 %v1665_v4, %v1663_v16 }
 0x218   : > { %6795 = vmatprep.subr.bf16.mxu1 %v7611_v1  ;;  %v6277_v58 = vpop.f32.mrb[4].mxu0 }
 0x219   : > { %10789 = vst [vmem:[#allocation20_spill] sm:$0xff] %v9642_v24  ;;  %v6278_v7 = vpop.f32.mrb[5].mxu0  ;;  %v3852_v43 = vrot.slane %v9642_v24, 4 }
 0x21a   : > { %7056 = vmatmul.mubr.bf16.gmra.mrb[88].mxu1 %v3841_v47  ;;  %v9645_v51 = vadd.f32 %v6278_v7, %v6277_v58  ;;  %v6280_v50 = vpop.f32.mrb[6].mxu0 }
 0x21b   : > { %7059 = vmatprep.mubr.bf16.mxu1 %v3847_v37  ;;  %v6281_v42 = vpop.f32.mrb[7].mxu0  ;;  %v6391_v45 = vpop.f32.mrb[8].mxu1  ;;  %v3853_v16 = vsel %vm1887_vm2, %v3846_v23, %v3852_v43  ;;  %v9670_v23 = vpack.c.bf16 %v8972_v2, %v9511_v61 }
 0x21c   : > { %3101 = vmatmul.mubr.bf16.gmra.mrb[108].mxu0 %v10788_v36  ;;  %v9648_v28 = vadd.f32 %v6281_v42, %v6280_v50  ;;  %v6392_v1 = vpop.f32.mrb[9].mxu1  ;;  %v1430_v42 = vrot.slane %v9511_v61, 7 }
 0x21d   : > { %3108 = vmatprep.mubr.bf16.mxu0 %v9287_v33  ;;  %v9655_v41 = vadd.f32 %v6392_v1, %v6391_v45  ;;  %v6394_v57 = vpop.f32.mrb[10].mxu1  ;;  %10791 = vst [vmem:[#allocation55_spill] sm:$0xff] %v9670_v23 }
 0x21e   : > { %v6395_v35 = vpop.f32.mrb[11].mxu1  ;;  %v1431_v61 = vsel %vm1370_vm1, %v1428_v26, %v1430_v42  ;;  %v7617_v26 = vld [vmem:[#allocation5 + $0x1d0] sm:$0xff]  }
 0x21f   : > { %v9658_v52 = vadd.f32 %v6395_v35, %v6394_v57  ;;  %v7612_v57 = vld [vmem:[#allocation5 + $0x180] sm:$0xff]  }
 0x221   : > { %v6283_v4 = vpop.f32.mrb[8].mxu0 }
 0x222   : > { %7060 = vmatmul.mubr.bf16.gmra.mrb[92].mxu1 %v3853_v16  ;;  %v6284_v34 = vpop.f32.mrb[9].mxu0  ;;  %v7613_v16 = vld [vmem:[#allocation5 + $0x1c8] sm:$0xff]  }
 0x223   : > { %7079 = vmatprep.mubr.bf16.mxu1 %v9472_v21  ;;  %v9663_v29 = vadd.f32 %v6284_v34, %v6283_v4  ;;  %v6286_v47 = vpop.f32.mrb[10].mxu0  ;;  %v6397_v37 = vpop.f32.mrb[12].mxu1  ;;  %v10792_v21 = vrot.slane %v9287_v33, 4  ;;  %v3782_v34 = vrot.slane %v9371_v18, 4 }
 0x224   : > { %3109 = vmatmul.mubr.bf16.gmra.mrb[112].mxu0 %v9336_v56  ;;  %v6287_v58 = vpop.f32.mrb[11].mxu0  ;;  %v6398_v50 = vpop.f32.mrb[13].mxu1 }
 0x225   : > { %3116 = vmatprep.mubr.bf16.mxu0 %v9652_v62  ;;  %v9665_v7 = vadd.f32 %v6287_v58, %v6286_v47  ;;  %v3785_v45 = vsel %vm1887_vm2, %v10792_v21, %v3784_v19  ;;  %v9676_v43 = vadd.f32 %v6398_v50, %v6397_v37  ;;  %v6400_v1 = vpop.f32.mrb[14].mxu1  ;;  %v10793_v58 = vrot.slane %v8972_v2, 7 }
 0x226   : > { %v6401_v35 = vpop.f32.mrb[15].mxu1  ;;  %v3790_v21 = vrot.slane %v9670_v23, 4 }
 0x227   : > { %v9678_v4 = vadd.f32 %v6401_v35, %v6400_v1  ;;  %v1433_v37 = vsel %vm1370_vm1, %v1430_v42, %v10793_v58  ;;  %v10795_v42 = vrot.slane %v9336_v56, 4 }
 0x228   : > { %v9692_v53 = vpack.c.bf16 %v1433_v37, %v1431_v61  ;;  %v7616_v61 = vld [vmem:[#allocation5 + $0x8] sm:$0xff]   ;;  %v7619_v37 = vld [vmem:[#allocation5 + $0x1d8] sm:$0xff]  }
 0x22a   : > { %v6289_v47 = vpop.f32.mrb[12].mxu0  ;;  %7080 = vmatmul.mubr.bf16.vlgmr.msra.gmra.mrb[72].mxu1 %v9488_v27  ;;  %10794 = vst [vmem:[#allocation45_spill] sm:$0xff] %v9692_v53 }
 0x22b   : > { %v6290_v50 = vpop.f32.mrb[13].mxu0  ;;  %7083 = vmatprep.mubr.bf16.mxu1 %v9527_v14  ;;  %6796 = vmatpush3.bf16.msra.mxu1 %v7612_v57  ;;  %v6403_v63 = vpop.f32.mrb[16].mxu1  ;;  %v3783_v14 = vsel %vm1887_vm2, %v10795_v42, %v3782_v34  ;;  %v3791_v57 = vsel %vm1887_vm2, %v3784_v19, %v3790_v21  ;;  %v3788_v19 = vrot.slane %v9692_v53, 4 }
 0x22c   : > { %3117 = vmatmul.mubr.bf16.gmra.mrb[116].mxu0 %v9371_v18  ;;  %v9690_v1 = vadd.f32 %v6290_v50, %v6289_v47  ;;  %v6292_v35 = vpop.f32.mrb[14].mxu0  ;;  %6797 = vmatprep.subr.bf16.mxu1 %v7613_v16  ;;  %v6404_v58 = vpop.f32.mrb[17].mxu1  ;;  %v7618_v16 = vld [vmem:[#allocation5 + $0x190] sm:$0xff]  }
 0x22d   : > { %4066 = vmatprep.mubr.bf16.mxu0 %v3785_v45  ;;  %v7614_v45 = vld [vmem:[#allocation5 + $0x188] sm:$0xff]   ;;  %v6293_v27 = vpop.f32.mrb[15].mxu0  ;;  %v9700_v47 = vadd.f32 %v6404_v58, %v6403_v63  ;;  %v6406_v50 = vpop.f32.mrb[18].mxu1  ;;  %v3789_v10 = vsel %vm1887_vm2, %v3782_v34, %v3788_v19 }
 0x22e   : > { %v9694_v2 = vadd.f32 %v6293_v27, %v6292_v35  ;;  %v6407_v24 = vpop.f32.mrb[19].mxu1  ;;  %v7621_v27 = vld [vmem:[#allocation5 + $0x50] sm:$0xff]  }
 0x22f   : > { %6798 = vmatpush3.bf16.msra.mxu1 %v7614_v45  ;;  %v9702_v35 = vadd.f32 %v6407_v24, %v6406_v50  ;;  %v10796_v45 = vld [vmem:[#allocation47_spill] sm:$0xff] }
 0x230   : > { %6799 = vmatprep.subr.bf16.mxu1 %v7617_v26  ;;  %v7623_v50 = vld [vmem:[#allocation5 + $0x1e0] sm:$0xff]  }
 0x232   : > { %v6295_v42 = vpop.f32.mrb[16].mxu0  ;;  %7084 = vmatmul.mubr.bf16.gmra.mrb[76].mxu1 %v9539_v40 }
 0x233   : > { %v6296_v63 = vpop.f32.mrb[17].mxu0  ;;  %7087 = vmatprep.mubr.bf16.mxu1 %v9542_v9  ;;  %6800 = vmatpush3.bf16.msra.mxu1 %v7618_v16 }
 0x234   : > { %4067 = vmatmul.mubr.bf16.vlgmr.msra.gmra.mrb[120].mxu0 %v3783_v14  ;;  %v3796_v14 = vrot.slane %v10796_v45, 4  ;;  %v9708_v58 = vadd.f32 %v6296_v63, %v6295_v42  ;;  %6801 = vmatprep.subr.bf16.mxu1 %v7619_v37  ;;  %v6409_v26 = vpop.f32.mrb[20].mxu1  ;;  %v7625_v63 = vld [vmem:[#allocation5 + $0x1e8] sm:$0xff]  }
 0x235   : > { %6688 = vmatpush3.bf16.msra.mxu0 %v7610_v3  ;;  %4074 = vmatprep.mubr.bf16.mxu0 %v3791_v57  ;;  %v7620_v3 = vld [vmem:[#allocation5 + $0x198] sm:$0xff]   ;;  %v6298_v57 = vpop.f32.mrb[18].mxu0  ;;  %v6410_v9 = vpop.f32.mrb[21].mxu1 }
 0x236   : > { %6689 = vmatprep.subr.bf16.mxu0 %v7615_v6  ;;  %v7622_v6 = vld [vmem:[#allocation5 + $0x10] sm:$0xff]   ;;  %v6299_v24 = vpop.f32.mrb[19].mxu0  ;;  %v3797_v16 = vsel %vm1887_vm2, %v3790_v21, %v3796_v14  ;;  %v9714_v38 = vadd.f32 %v6410_v9, %v6409_v26  ;;  %v6412_v42 = vpop.f32.mrb[22].mxu1  ;;  %v7626_v26 = vld [vmem:[#allocation5 + $0x1a8] sm:$0xff]  }
 0x237   : > { %v9710_v40 = vadd.f32 %v6299_v24, %v6298_v57  ;;  %6802 = vmatpush3.bf16.msra.mxu1 %v7620_v3  ;;  %v6413_v37 = vpop.f32.mrb[23].mxu1  ;;  %v7633_v57 = vld [vmem:[#allocation5 + $0x60] sm:$0xff]   ;;  %v10798_v3 = vld [vmem:[#allocation53_spill] sm:$0xff] }
 0x238   : > { %v9716_v60 = vadd.f32 %v6413_v37, %v6412_v42  ;;  %6803 = vmatprep.subr.bf16.mxu1 %v7623_v50  ;;  %v3802_v24 = vrot.slane %v10798_v3, 4  ;;  %v7629_v50 = vld [vmem:[#allocation5 + $0x1f0] sm:$0xff]   ;;  %v7634_v37 = vld [vmem:[#allocation5 + $0x20] sm:$0xff]  }
 0x239   : > { %6690 = vmatpush3.bf16.msra.mxu0 %v7616_v61  ;;  %v7624_v61 = vld [vmem:[#allocation5 + $0x1a0] sm:$0xff]  }
 0x23a   : > { %6691 = vmatprep.subr.bf16.mxu0 %v7621_v27  ;;  %v7628_v27 = vld [vmem:[#allocation5 + $0x18] sm:$0xff]   ;;  %v6301_v34 = vpop.f32.mrb[20].mxu0  ;;  %7088 = vmatmul.mubr.bf16.gmra.mrb[80].mxu1 %v9559_v54 }
 0x23b   : > { %v6302_v9 = vpop.f32.mrb[21].mxu0  ;;  %7091 = vmatprep.mubr.bf16.mxu1 %v9563_v55  ;;  %6804 = vmatpush3.bf16.msra.mxu1 %v7624_v61  ;;  %v7636_v55 = vld [vmem:[#allocation5 + $0x68] sm:$0xff]   ;;  %v3803_v61 = vsel %vm1887_vm2, %v3796_v14, %v3802_v24  ;;  %v7639_v14 = vld [vmem:[#allocation5 + $0x70] sm:$0xff]  }
 0x23c   : > { %4075 = vmatmul.mubr.bf16.gmra.mrb[124].mxu0 %v3789_v10  ;;  %v10797_v10 = vld [vmem:[#allocation48_spill] sm:$0xff]  ;;  %6805 = vmatprep.subr.bf16.mxu1 %v7625_v63  ;;  %v6415_v42 = vpop.f32.mrb[24].mxu1  ;;  %v7630_v63 = vld [vmem:[#allocation5 + $0x1b0] sm:$0xff]  }
 0x23d   : > { %4082 = vmatprep.mubr.bf16.mxu0 %v3797_v16  ;;  %6692 = vmatpush3.bf16.msra.mxu0 %v7622_v6  ;;  %v3794_v21 = vrot.slane %v10797_v10, 4  ;;  %v9722_v6 = vadd.f32 %v6302_v9, %v6301_v34  ;;  %v6304_v16 = vpop.f32.mrb[22].mxu0  ;;  %v6416_v20 = vpop.f32.mrb[25].mxu1  ;;  %v7631_v9 = vld [vmem:[#allocation5 + $0x1f8] sm:$0xff]  }
 0x23e   : > { %6693 = vmatprep.subr.bf16.mxu0 %v7627_v44  ;;  %v6305_v44 = vpop.f32.mrb[23].mxu0  ;;  %v9728_v22 = vadd.f32 %v6416_v20, %v6415_v42  ;;  %v6418_v34 = vpop.f32.mrb[26].mxu1 }
 0x23f   : > { %v9724_v54 = vadd.f32 %v6305_v44, %v6304_v16  ;;  %v3795_v5 = vsel %vm1887_vm2, %v3788_v19, %v3794_v21  ;;  %6806 = vmatpush3.bf16.msra.mxu1 %v7626_v26  ;;  %v7637_v16 = vld [vmem:[#allocation5 + $0x28] sm:$0xff]   ;;  %v10801_v26 = vld [vmem:[#allocation57_spill] sm:$0xff] }
 0x240   : > { %6807 = vmatprep.subr.bf16.mxu1 %v7629_v50  ;;  %v10800_v19 = vld [vmem:[#allocation56_spill] sm:$0xff]  ;;  %v3808_v42 = vrot.slane %v10801_v26, 4 }
 0x241   : > { %6694 = vmatpush3.bf16.msra.mxu0 %v7628_v27  ;;  %v6419_v27 = vpop.f32.mrb[27].mxu1 }
 0x242   : > { %6695 = vmatprep.subr.bf16.mxu0 %v7633_v57  ;;  %v9730_v57 = vadd.f32 %v6419_v27, %v6418_v34  ;;  %7092 = vmatmul.mubr.bf16.gmra.mrb[84].mxu1 %v9577_v12  ;;  %v7640_v12 = vld [vmem:[#allocation5 + $0x30] sm:$0xff]  }
 0x243   : > { %v6307_v44 = vpop.f32.mrb[24].mxu0  ;;  %7095 = vmatprep.mubr.bf16.mxu1 %v9581_v15  ;;  %6808 = vmatpush3.bf16.msra.mxu1 %v7630_v63  ;;  %v7642_v15 = vld [vmem:[#allocation5 + $0x78] sm:$0xff]   ;;  %v3809_v63 = vsel %vm1887_vm2, %v3802_v24, %v3808_v42 }
 0x244   : > { %4083 = vmatmul.mubr.bf16.gmra.mrb[128].mxu0 %v3795_v5  ;;  %10799 = vst [vmem:[#allocation46_spill] sm:$0xff] %v9730_v57  ;;  %v3800_v5 = vrot.slane %v10800_v19, 4  ;;  %v6308_v20 = vpop.f32.mrb[25].mxu0  ;;  %6809 = vmatprep.subr.bf16.mxu1 %v7631_v9  ;;  %v6421_v18 = vpop.f32.mrb[28].mxu1 }
 0x245   : > { %4090 = vmatprep.mubr.bf16.mxu0 %v3803_v61  ;;  %6696 = vmatpush3.bf16.msra.mxu0 %v7634_v37  ;;  %v7632_v61 = vld [vmem:[#allocation5 + $0x1b8] sm:$0xff]   ;;  %v9736_v50 = vadd.f32 %v6308_v20, %v6307_v44  ;;  %v6310_v34 = vpop.f32.mrb[26].mxu0  ;;  %v9738_v37 = vld [vmem:[#allocation5 + $0x200] sm:$0xff]   ;;  %v6422_v56 = vpop.f32.mrb[29].mxu1 }
 0x246   : > { %6697 = vmatprep.subr.bf16.mxu0 %v7636_v55  ;;  %v6311_v27 = vpop.f32.mrb[27].mxu0  ;;  %v3801_v55 = vsel %vm1887_vm2, %v3794_v21, %v3800_v5  ;;  %v9744_v44 = vadd.f32 %v6422_v56, %v6421_v18  ;;  %v6424_v20 = vpop.f32.mrb[30].mxu1  ;;  %v10804_v21 = vld [vmem:[#allocation19_spill] sm:$0xff] }
 0x247   : > { %v9740_v62 = vadd.f32 %v6311_v27, %v6310_v34  ;;  %6810 = vmatpush3.bf16.msra.mxu1 %v7632_v61  ;;  %v6425_v9 = vpop.f32.mrb[31].mxu1  ;;  %v7643_v34 = vld [vmem:[#allocation5 + $0x38] sm:$0xff]   ;;  %v10805_v56 = vld [vmem:[#allocation59_spill] sm:$0xff] }
 0x248   : > { %7103 = vmatprep.subr.bf16.mxu1 %v9738_v37  ;;  %v3814_v18 = vrot.slane %v10805_v56, 4 }
 0x249   : > { %6698 = vmatpush3.bf16.msra.mxu0 %v7637_v16  ;;  %10802 = vst [vmem:[#allocation25_spill] sm:$0xff] %v9740_v62  ;;  %v9747_v16 = vadd.f32 %v6425_v9, %v6424_v20 }
 0x24a   : > { %6699 = vmatprep.subr.bf16.mxu0 %v7639_v14  ;;  %7096 = vmatmul.mubr.bf16.gmra.mrb[88].mxu1 %v9595_v46  ;;  %v3806_v14 = vrot.slane %v10804_v21, 4  ;;  %v3815_v46 = vsel %vm1887_vm2, %v3808_v42, %v3814_v18 }
 0x24b   : > { %10803 = vst [vmem:[#allocation63_spill] sm:$0xff] %v9747_v16  ;;  %7099 = vmatprep.mubr.bf16.mxu1 %v9599_v11  ;;  %v7638_v16 = vld [vmem:[#allocation5 + $0x208] sm:$0xff]  }
 0x24c   : > { %4091 = vmatmul.mubr.bf16.gmra.mrb[132].mxu0 %v3801_v55  ;;  %v6427_v33 = vpop.f32.mrb[32].mxu1 }
 0x24d   : > { %4098 = vmatprep.mubr.bf16.mxu0 %v3809_v63  ;;  %6700 = vmatpush3.bf16.msra.mxu0 %v7640_v12  ;;  %v3807_v12 = vsel %vm1887_vm2, %v3800_v5, %v3806_v14  ;;  %v6428_v9 = vpop.f32.mrb[33].mxu1  ;;  %v10809_v5 = vld [vmem:[#allocation62_spill] sm:$0xff] }
 0x24e   : > { %6701 = vmatprep.subr.bf16.mxu0 %v7642_v15  ;;  %v9759_v15 = vadd.f32 %v6428_v9, %v6427_v33  ;;  %v6430_v57 = vpop.f32.mrb[34].mxu1 }
 0x24f   : > { %v6313_v27 = vpop.f32.mrb[28].mxu0  ;;  %v6431_v11 = vpop.f32.mrb[35].mxu1 }
 0x250   : > { %v6314_v55 = vpop.f32.mrb[29].mxu0  ;;  %10806 = vst [vmem:[#allocation58_spill] sm:$0xff] %v9759_v15  ;;  %v9761_v36 = vadd.f32 %v6431_v11, %v6430_v57 }
 0x251   : > { %v9753_v24 = vadd.f32 %v6314_v55, %v6313_v27  ;;  %v6316_v61 = vpop.f32.mrb[30].mxu0  ;;  %6702 = vmatpush3.bf16.msra.mxu0 %v7643_v34  ;;  %v10808_v55 = vld [vmem:[#allocation61_spill] sm:$0xff] }
 0x252   : > { %v6317_v63 = vpop.f32.mrb[31].mxu0  ;;  %10807 = vst [vmem:[#allocation60_spill] sm:$0xff] %v9761_v36  ;;  %7100 = vmatmul.mubr.bf16.gmra.mrb[92].mxu1 %v9617_v17  ;;  %v3812_v34 = vrot.slane %v10808_v55, 4 }
 0x253   : > { %v9755_v20 = vadd.f32 %v6317_v63, %v6316_v61  ;;  %4918 = vmatprep.mubr.bf16.mxu1 %v9670_v23  ;;  %v3820_v63 = vrot.slane %v10809_v5, 4 }
 0x254   : > { %4099 = vmatmul.mubr.bf16.gmra.mrb[136].mxu0 %v3807_v12  ;;  %v6433_v9 = vpop.f32.mrb[36].mxu1 }
 0x255   : > { %4106 = vmatprep.mubr.bf16.mxu0 %v3815_v46  ;;  %v3813_v46 = vsel %vm1887_vm2, %v3806_v14, %v3812_v34  ;;  %v6434_v11 = vpop.f32.mrb[37].mxu1  ;;  %v3821_v57 = vsel %vm1887_vm2, %v3814_v18, %v3820_v63  ;;  %v10815_v14 = vld [vmem:[#allocation67_spill] sm:$0xff] }
 0x256   : > { %v9773_v17 = vadd.f32 %v6434_v11, %v6433_v9  ;;  %v6436_v36 = vpop.f32.mrb[38].mxu1  ;;  %v7641_v11 = vld [vmem:[#allocation5 + $0x210] sm:$0xff]  }
 0x257   : > { %v6319_v27 = vpop.f32.mrb[32].mxu0  ;;  %v6437_v23 = vpop.f32.mrb[39].mxu1 }
 0x258   : > { %v6320_v61 = vpop.f32.mrb[33].mxu0  ;;  %10812 = vst [vmem:[#allocation31_spill] sm:$0xff] %v9773_v17  ;;  %v9775_v62 = vadd.f32 %v6437_v23, %v6436_v36 }
 0x259   : > { %v9767_v12 = vadd.f32 %v6320_v61, %v6319_v27  ;;  %v6322_v42 = vpop.f32.mrb[34].mxu0  ;;  %v10814_v61 = vld [vmem:[#allocation66_spill] sm:$0xff] }
 0x25a   : > { %v6323_v33 = vpop.f32.mrb[35].mxu0  ;;  %10813 = vst [vmem:[#allocation24_spill] sm:$0xff] %v9775_v62  ;;  %4919 = vmatmul.mubr.bf16.vlgmr.msra.gmra.mrb[96].mxu1 %v9692_v53 }
 0x25b   : > { %10810 = vst [vmem:[#allocation50_spill] sm:$0xff] %v9767_v12  ;;  %v9769_v15 = vadd.f32 %v6323_v33, %v6322_v42  ;;  %v3818_v42 = vrot.slane %v10814_v61, 4  ;;  %4926 = vmatprep.mubr.bf16.mxu1 %v10796_v45  ;;  %7104 = vmatpush3.bf16.msra.mxu1 %v9738_v37 }
 0x25c   : > { %4107 = vmatmul.mubr.bf16.gmra.mrb[140].mxu0 %v3813_v46  ;;  %v3826_v46 = vrot.slane %v10815_v14, 4  ;;  %7105 = vmatprep.subr.bf16.mxu1 %v7638_v16  ;;  %v6439_v36 = vpop.f32.mrb[40].mxu1 }
 0x25d   : > { %10811 = vst [vmem:[#allocation51_spill] sm:$0xff] %v9769_v15  ;;  %4114 = vmatprep.mubr.bf16.mxu0 %v3821_v57  ;;  %v3819_v53 = vsel %vm1887_vm2, %v3812_v34, %v3818_v42  ;;  %v6440_v62 = vpop.f32.mrb[41].mxu1 }
 0x25e   : > { %v3827_v15 = vsel %vm1887_vm2, %v3820_v63, %v3826_v46  ;;  %v9788_v45 = vadd.f32 %v6440_v62, %v6439_v36  ;;  %v6442_v17 = vpop.f32.mrb[42].mxu1 }
 0x25f   : > { %v6325_v27 = vpop.f32.mrb[36].mxu0  ;;  %7106 = vmatpush3.bf16.msra.mxu1 %v7638_v16  ;;  %v6443_v37 = vpop.f32.mrb[43].mxu1 }
 0x260   : > { %v6326_v33 = vpop.f32.mrb[37].mxu0  ;;  %10817 = vst [vmem:[#allocation68_spill] sm:$0xff] %v9788_v45  ;;  %7107 = vmatprep.subr.bf16.mxu1 %v7641_v11 }
 0x261   : > { %v9782_v18 = vadd.f32 %v6326_v33, %v6325_v27  ;;  %v6328_v9 = vpop.f32.mrb[38].mxu0  ;;  %v7644_v27 = vld [vmem:[#allocation5 + $0x218] sm:$0xff]   ;;  %v9790_v33 = vadd.f32 %v6443_v37, %v6442_v17 }
 0x262   : > { %v6329_v57 = vpop.f32.mrb[39].mxu0  ;;  %4927 = vmatmul.mubr.bf16.gmra.mrb[100].mxu1 %v10797_v10 }
 0x263   : > { %v9784_v23 = vadd.f32 %v6329_v57, %v6328_v9  ;;  %10818 = vst [vmem:[#allocation52_spill] sm:$0xff] %v9790_v33  ;;  %v10819_v9 = vld [vmem:[#allocation22_spill] sm:$0xff]  ;;  %4934 = vmatprep.mubr.bf16.mxu1 %v10798_v3  ;;  %7108 = vmatpush3.bf16.msra.mxu1 %v7641_v11  ;;  %v7646_v11 = vld [vmem:[#allocation5 + $0x228] sm:$0xff]  }
 0x264   : > { %4115 = vmatmul.mubr.bf16.gmra.mrb[144].mxu0 %v3819_v53  ;;  %v3824_v57 = vrot.slane %v10819_v9, 4  ;;  %v10820_v53 = vld [vmem:[#allocation69_spill] sm:$0xff]  ;;  %7109 = vmatprep.subr.bf16.mxu1 %v7644_v27  ;;  %v6445_v45 = vpop.f32.mrb[44].mxu1 }
 0x265   : > { %10816 = vst [vmem:[#allocation64_spill] sm:$0xff] %v9784_v23  ;;  %4122 = vmatprep.mubr.bf16.mxu0 %v3827_v15  ;;  %v3832_v63 = vrot.slane %v10820_v53, 4  ;;  %v7645_v15 = vld [vmem:[#allocation5 + $0x220] sm:$0xff]   ;;  %v6446_v10 = vpop.f32.mrb[45].mxu1 }
 0x266   : > { %v3825_v37 = vsel %vm1887_vm2, %v3818_v42, %v3824_v57  ;;  %v9802_v23 = vadd.f32 %v6446_v10, %v6445_v45  ;;  %v6448_v3 = vpop.f32.mrb[46].mxu1 }
 0x267   : > { %v6331_v12 = vpop.f32.mrb[40].mxu0  ;;  %v3833_v33 = vsel %vm1887_vm2, %v3826_v46, %v3832_v63  ;;  %7110 = vmatpush3.bf16.msra.mxu1 %v7644_v27  ;;  %v7647_v27 = vld [vmem:[#allocation5 + $0x230] sm:$0xff]  }
 0x268   : > { %v6332_v34 = vpop.f32.mrb[41].mxu0  ;;  %7111 = vmatprep.subr.bf16.mxu1 %v7645_v15 }
 0x269   : > { %v9796_v62 = vadd.f32 %v6332_v34, %v6331_v12  ;;  %v6334_v16 = vpop.f32.mrb[42].mxu0  ;;  %v6449_v12 = vpop.f32.mrb[47].mxu1 }
 0x26a   : > { %v6335_v36 = vpop.f32.mrb[43].mxu0  ;;  %v9804_v34 = vadd.f32 %v6449_v12, %v6448_v3  ;;  %4935 = vmatmul.mubr.bf16.gmra.mrb[104].mxu1 %v10800_v19 }
 0x26b   : > { %10821 = vst [vmem:[#allocation21_spill] sm:$0xff] %v9796_v62  ;;  %v9798_v17 = vadd.f32 %v6335_v36, %v6334_v16  ;;  %v10824_v16 = vld [vmem:[#allocation34_spill] sm:$0xff]  ;;  %4942 = vmatprep.mubr.bf16.mxu1 %v10801_v26  ;;  %7112 = vmatpush3.bf16.msra.mxu1 %v7645_v15 }
 0x26c   : > { %4123 = vmatmul.mubr.bf16.gmra.mrb[148].mxu0 %v3825_v37  ;;  %10823 = vst [vmem:[#allocation19_spill] sm:$0xff] %v9804_v34  ;;  %v3830_v36 = vrot.slane %v10824_v16, 4  ;;  %v10825_v37 = vld [vmem:[#allocation36_spill] sm:$0xff]  ;;  %7113 = vmatprep.subr.bf16.mxu1 %v7646_v11  ;;  %v7648_v26 = vld [vmem:[#allocation5 + $0x238] sm:$0xff]  }
 0x26d   : > { %10822 = vst [vmem:[#allocation65_spill] sm:$0xff] %v9798_v17  ;;  %4130 = vmatprep.mubr.bf16.mxu0 %v3833_v33  ;;  %v3838_v46 = vrot.slane %v10825_v37, 4 }
 0x26e   : > { %v3831_v3 = vsel %vm1887_vm2, %v3824_v57, %v3830_v36 }
 0x26f   : > { %v6337_v62 = vpop.f32.mrb[44].mxu0  ;;  %v3839_v12 = vsel %vm1887_vm2, %v3832_v63, %v3838_v46  ;;  %7114 = vmatpush3.bf16.msra.mxu1 %v7646_v11 }
 0x270   : > { %v6338_v42 = vpop.f32.mrb[45].mxu0  ;;  %7115 = vmatprep.subr.bf16.mxu1 %v7647_v27 }
 0x271   : > { %v9810_v45 = vadd.f32 %v6338_v42, %v6337_v62  ;;  %v6340_v10 = vpop.f32.mrb[46].mxu0  ;;  %v10826_v62 = vld [vmem:[#allocation40_spill] sm:$0xff] }
 0x272   : > { %v6341_v33 = vpop.f32.mrb[47].mxu0  ;;  %4943 = vmatmul.mubr.bf16.gmra.mrb[108].mxu1 %v10804_v21  ;;  %v3836_v15 = vrot.slane %v10826_v62, 4 }
 0x273   : > { %v9812_v17 = vadd.f32 %v6341_v33, %v6340_v10  ;;  %4950 = vmatprep.mubr.bf16.mxu1 %v10805_v56  ;;  %7116 = vmatpush3.bf16.msra.mxu1 %v7647_v27 }
 0x274   : > { %4131 = vmatmul.mubr.bf16.gmra.mrb[152].mxu0 %v3831_v3  ;;  %7117 = vmatprep.subr.bf16.mxu1 %v7648_v26 }
 0x275   : > { %4138 = vmatprep.mubr.bf16.mxu0 %v3839_v12 }
 0x277   : > { %v6921_v19 = vpop.f32.mrb[48].mxu0  ;;  %7118 = vmatpush3.bf16.msra.mxu1 %v7648_v26 }
 0x278   : > { %v2315_v42 = vadd.f32 %v6921_v19, %v9645_v51  ;;  %v2306_v34 = vpop.f32.mrb[49].mxu0  ;;  %v3837_v51 = vsel %vm1887_vm2, %v3830_v36, %v3836_v15 }
 0x279   : > { %v2307_v57 = vadd.f32 %v9625_v48, %v2306_v34  ;;  %v6922_v10 = vpop.f32.mrb[50].mxu0  ;;  %v10827_v48 = vrot.slane %v9316_v31, 4 }
 0x27a   : > { %v9822_v63 = vadd.f32 %v9636_v0, %v2315_v42  ;;  %v2318_v11 = vadd.f32 %v6922_v10, %v9648_v28  ;;  %v2309_v33 = vpop.f32.mrb[51].mxu0  ;;  %v9836_v0 = vpop.permute.xlu0 %3424  ;;  %4951 = vmatmul.mubr.bf16.gmra.mrb[112].mxu1 %v10808_v55 }
 0x27b   : > { %v9826_v3 = vadd.f32 %v9608_v32, %v2307_v57  ;;  %v2310_v12 = vadd.f32 %v9628_v39, %v2309_v33  ;;  %v3845_v34 = vsel %vm1887_vm2, %v3838_v46, %v10827_v48  ;;  %4958 = vmatprep.mubr.bf16.mxu1 %v10809_v5 }
 0x27c   : > { %v9831_v19 = vadd.f32 %v9639_v59, %v2318_v11  ;;  %4139 = vmatmul.mubr.bf16.gmra.mrb[156].mxu0 %v3837_v51 }
 0x27d   : > { %v9839_v28 = vadd.f32 %v9615_v49, %v2310_v12  ;;  %4146 = vmatprep.mubr.bf16.mxu0 %v3845_v34 }
 0x27e   : > { %v9849_v49 = vpop.permute.xlu0 %3434 }
 0x27f   : > { %v6925_v32 = vpop.f32.mrb[52].mxu0 }
 0x280   : > { %v2331_v39 = vadd.f32 %v6925_v32, %v9690_v1  ;;  %v2322_v36 = vpop.f32.mrb[53].mxu0  ;;  %v10828_v1 = vrot.slane %v9401_v30, 4 }
 0x281   : > { %v2323_v59 = vadd.f32 %v9663_v29, %v2322_v36  ;;  %v6926_v27 = vpop.f32.mrb[54].mxu0 }
 0x282   : > { %v9846_v46 = vadd.f32 %v9676_v43, %v2331_v39  ;;  %v2334_v26 = vadd.f32 %v6926_v27, %v9694_v2  ;;  %v2325_v42 = vpop.f32.mrb[55].mxu0  ;;  %v3843_v11 = vsel %vm1887_vm2, %v3836_v15, %v10828_v1  ;;  %4959 = vmatmul.mubr.bf16.gmra.mrb[116].mxu1 %v10814_v61  ;;  %v10829_v39 = vld [vmem:[#allocation25_spill] sm:$0xff]  ;;  %v10834_v1 = vld [vmem:[#allocation50_spill] sm:$0xff] }
 0x283   : > { %v9852_v57 = vadd.f32 %v9655_v41, %v2323_v59  ;;  %v2326_v10 = vadd.f32 %v9665_v7, %v2325_v42  ;;  %4966 = vmatprep.mubr.bf16.mxu1 %v10815_v14  ;;  %v9868_v7 = vpop.permute.xlu0 %3444  ;;  %v10830_v59 = vld [vmem:[#allocation63_spill] sm:$0xff] }
 0x284   : > { %v9859_v29 = vadd.f32 %v9678_v4, %v2334_v26  ;;  %4147 = vmatmul.mubr.bf16.gmra.mrb[160].mxu0 %v3843_v11 }
 0x285   : > { %v9862_v43 = vadd.f32 %v9658_v52, %v2326_v10  ;;  %4154 = vmatprep.mubr.bf16.mxu0 %v9441_v25 }
 0x287   : > { %v6929_v2 = vpop.f32.mrb[56].mxu0 }
 0x288   : > { %v2347_v41 = vadd.f32 %v6929_v2, %v9722_v6  ;;  %v2338_v33 = vpop.f32.mrb[57].mxu0 }
 0x289   : > { %v2339_v15 = vadd.f32 %v9708_v58, %v2338_v33  ;;  %v6930_v4 = vpop.f32.mrb[58].mxu0 }
 0x28a   : > { %v9872_v12 = vadd.f32 %v9714_v38, %v2347_v41  ;;  %v2350_v52 = vadd.f32 %v6930_v4, %v9724_v54  ;;  %v2341_v51 = vpop.f32.mrb[59].mxu0  ;;  %v9887_v38 = vpop.permute.xlu0 %3454  ;;  %4967 = vmatmul.mubr.bf16.gmra.mrb[120].mxu1 %v10819_v9  ;;  %v10835_v41 = vld [vmem:[#allocation31_spill] sm:$0xff] }
 0x28b   : > { %v9876_v25 = vadd.f32 %v9700_v47, %v2339_v15  ;;  %v2342_v48 = vadd.f32 %v9710_v40, %v2341_v51  ;;  %4974 = vmatprep.mubr.bf16.mxu1 %v10820_v53  ;;  %v10836_v15 = vld [vmem:[#allocation64_spill] sm:$0xff] }
 0x28c   : > { %v9880_v6 = vadd.f32 %v9716_v60, %v2350_v52  ;;  %4155 = vmatmul.mubr.bf16.gmra.mrb[164].mxu0 %v9448_v13 }
 0x28d   : > { %v9884_v34 = vadd.f32 %v9702_v35, %v2342_v48  ;;  %4468 = vmatprep.mubr.bf16.mxu0 %v10785_v8  ;;  %v10837_v48 = vld [vmem:[#allocation58_spill] sm:$0xff] }
 0x28e   : > { %v9905_v26 = vpop.permute.xlu0 %3464 }
 0x28f   : > { %v6933_v58 = vpop.f32.mrb[60].mxu0 }
 0x290   : > { %v2363_v54 = vadd.f32 %v6933_v58, %v9753_v24  ;;  %v2354_v47 = vpop.f32.mrb[61].mxu0  ;;  %v10831_v24 = vld [vmem:[#allocation41_spill] sm:$0xff] }
 0x291   : > { %v2355_v60 = vadd.f32 %v9736_v50, %v2354_v47  ;;  %v6934_v40 = vpop.f32.mrb[62].mxu0  ;;  %v10832_v50 = vld [vmem:[#allocation46_spill] sm:$0xff] }
 0x292   : > { %v9894_v13 = vadd.f32 %v9744_v44, %v2363_v54  ;;  %v2366_v35 = vadd.f32 %v6934_v40, %v9755_v20  ;;  %v2357_v32 = vpop.f32.mrb[63].mxu0  ;;  %v10833_v44 = vld [vmem:[#allocation70_spill] sm:$0xff]  ;;  %4975 = vmatmul.mubr.bf16.gmra.mrb[124].mxu1 %v10824_v16  ;;  %v9919_v51 = vpop.permute.xlu0 %3474  ;;  %v10838_v54 = vld [vmem:[#allocation51_spill] sm:$0xff] }
 0x293   : > { %v9898_v8 = vadd.f32 %v9728_v22, %v2355_v60  ;;  %v2358_v36 = vadd.f32 %v10829_v39, %v2357_v32  ;;  %4982 = vmatprep.mubr.bf16.mxu1 %v10825_v37  ;;  %v10841_v40 = vld [vmem:[#allocation27_spill] sm:$0xff]  ;;  %v10843_v39 = vld [vmem:[#allocation49_spill] sm:$0xff] }
 0x294   : > { %v9902_v27 = vadd.f32 %v10830_v59, %v2366_v35  ;;  %4469 = vmatmul.mubr.bf16.vlgmr.msra.gmra.mrb[168].mxu0 %v10831_v24  ;;  %v10842_v35 = vld [vmem:[#allocation60_spill] sm:$0xff] }
 0x295   : > { %v9908_v42 = vadd.f32 %v10832_v50, %v2358_v36  ;;  %4476 = vmatprep.mubr.bf16.mxu0 %v10833_v44  ;;  %v10844_v44 = vld [vmem:[#allocation21_spill] sm:$0xff] }
 0x296   : > { %v9936_v50 = vpop.permute.xlu0 %3484 }
 0x297   : > { %v6937_v10 = vpop.f32.mrb[64].mxu0 }
 0x298   : > { %v2379_v22 = vadd.f32 %v6937_v10, %v9782_v18  ;;  %v2370_v20 = vpop.f32.mrb[65].mxu0  ;;  %v10839_v18 = vld [vmem:[#allocation24_spill] sm:$0xff] }
 0x299   : > { %v2371_v11 = vadd.f32 %v10834_v1, %v2370_v20  ;;  %v6938_v2 = vpop.f32.mrb[66].mxu0 }
 0x29a   : > { %v9916_v33 = vadd.f32 %v10835_v41, %v2379_v22  ;;  %v2382_v4 = vadd.f32 %v6938_v2, %v10836_v15  ;;  %v2373_v52 = vpop.f32.mrb[67].mxu0  ;;  %4983 = vmatmul.mubr.bf16.gmra.mrb[128].mxu1 %v10826_v62  ;;  %v10846_v41 = vld [vmem:[#allocation68_spill] sm:$0xff] }
 0x29b   : > { %v9922_v58 = vadd.f32 %v10837_v48, %v2371_v11  ;;  %v2374_v47 = vadd.f32 %v10838_v54, %v2373_v52  ;;  %4990 = vmatprep.mubr.bf16.mxu1 %v9316_v31  ;;  %v10849_v48 = vld [vmem:[#allocation19_spill] sm:$0xff]  ;;  %v10851_v54 = vld [vmem:[#allocation30_spill] sm:$0xff] }
 0x29c   : > { %v9926_v60 = vadd.f32 %v10839_v18, %v2382_v4  ;;  %4477 = vmatmul.mubr.bf16.gmra.mrb[172].mxu0 %v10841_v40  ;;  %v10848_v4 = vld [vmem:[#allocation65_spill] sm:$0xff]  ;;  %v10852_v18 = vld [vmem:[#allocation52_spill] sm:$0xff]  ;;  %v10854_v40 = vld [vmem:[#allocation55_spill] sm:$0xff] }
 0x29d   : > { %v9930_v32 = vadd.f32 %v10842_v35, %v2374_v47  ;;  %4484 = vmatprep.mubr.bf16.mxu0 %v10843_v39  ;;  %v7001_v2 = vpop.f32.mrb[48].mxu1  ;;  %v9955_v35 = vpop.permute.xlu0 %3494 }
 0x29e   : > { %10840 = vst [vmem:[#allocation59_spill] sm:$0xff] %v9926_v60  ;;  %v3159_v52 = vpop.f32.mrb[49].mxu1  ;;  %v10870_v60 = vld [vmem:[#allocation56_spill] sm:$0xff] }
 0x29f   : > { %v6941_v36 = vpop.f32.mrb[68].mxu0  ;;  %v7002_v47 = vpop.f32.mrb[50].mxu1 }
 0x2a0   : > { %v2395_v59 = vadd.f32 %v6941_v36, %v9810_v45  ;;  %v2386_v24 = vpop.f32.mrb[69].mxu0 }
 0x2a1   : > { %v2387_v10 = vadd.f32 %v10844_v44, %v2386_v24  ;;  %v6942_v22 = vpop.f32.mrb[70].mxu0 }
 0x2a2   : > { %v9940_v20 = vadd.f32 %v9802_v23, %v2395_v59  ;;  %v2398_v1 = vadd.f32 %v6942_v22, %v9812_v17  ;;  %v2389_v11 = vpop.f32.mrb[71].mxu0  ;;  %v3162_v17 = vpop.f32.mrb[51].mxu1  ;;  %4991 = vmatmul.mubr.bf16.gmra.mrb[132].mxu1 %v9401_v30  ;;  %v10855_v59 = vld [vmem:[#allocation38_spill] sm:$0xff] }
 0x2a3   : > { %v9944_v15 = vadd.f32 %v10846_v41, %v2387_v10  ;;  %v2390_v45 = vadd.f32 %v10848_v4, %v2389_v11  ;;  %4998 = vmatprep.mubr.bf16.mxu1 %v10855_v59  ;;  %v10856_v4 = vld [vmem:[#allocation45_spill] sm:$0xff]  ;;  %v10859_v59 = vld [vmem:[#allocation23_spill] sm:$0xff] }
 0x2a4   : > { %10845 = vst [vmem:[#allocation61_spill] sm:$0xff] %v9940_v20  ;;  %v9948_v31 = vadd.f32 %v10849_v48, %v2398_v1  ;;  %4485 = vmatmul.mubr.bf16.gmra.mrb[176].mxu0 %v10851_v54  ;;  %v9968_v48 = vpop.permute.xlu0 %5314 }
 0x2a5   : > { %10847 = vst [vmem:[#allocation62_spill] sm:$0xff] %v9944_v15  ;;  %v9952_v23 = vadd.f32 %v10852_v18, %v2390_v45  ;;  %4492 = vmatprep.mubr.bf16.mxu0 %v10854_v40  ;;  %v9959_v22 = vpop.f32.mrb[52].mxu1  ;;  %10857 = vst [vmem:[#allocation22_spill] sm:$0xff] %v9968_v48  ;;  %v10858_v18 = vld [vmem:[#allocation47_spill] sm:$0xff] }
 0x2a6   : > { %10850 = vst [vmem:[#allocation66_spill] sm:$0xff] %v9948_v31  ;;  %v9962_v41 = vpop.f32.mrb[53].mxu1 }
 0x2a7   : > { %10853 = vst [vmem:[#allocation67_spill] sm:$0xff] %v9952_v23  ;;  %v6487_v39 = vpop.f32.mrb[72].mxu0  ;;  %v9966_v45 = vpop.f32.mrb[54].mxu1 }
 0x2a8   : > { %v6488_v36 = vpop.f32.mrb[73].mxu0  ;;  %v3178_v40 = vpop.f32.mrb[55].mxu1 }
 0x2a9   : > { %v6489_v24 = vadd.f32 %v6488_v36, %v6487_v39  ;;  %v6490_v44 = vpop.f32.mrb[74].mxu0  ;;  %v9979_v23 = vpop.permute.xlu0 %5324 }
 0x2aa   : > { %v6491_v10 = vpop.f32.mrb[75].mxu0  ;;  %4999 = vmatmul.mubr.bf16.gmra.mrb[136].mxu1 %v10859_v59  ;;  %10863 = vst [vmem:[#allocation69_spill] sm:$0xff] %v9979_v23 }
 0x2ab   : > { %v7149_v1 = vadd.f32 %v6489_v24, %v9826_v3  ;;  %v6492_v11 = vadd.f32 %v6491_v10, %v6490_v44  ;;  %v3430_v24 = vpop.permute.xlu1 %3429  ;;  %v10860_v10 = vld [vmem:[#allocation35_spill] sm:$0xff] }
 0x2ac   : > { %4493 = vmatmul.mubr.bf16.gmra.mrb[180].mxu0 %v10856_v4  ;;  %v10861_v4 = vld [vmem:[#allocation42_spill] sm:$0xff] }
 0x2ad   : > { %v7150_v30 = vadd.f32 %v7149_v1, %v3159_v52  ;;  %v7157_v54 = vadd.f32 %v6492_v11, %v9839_v28  ;;  %4500 = vmatprep.mubr.bf16.mxu0 %v10858_v18  ;;  %v10862_v31 = vpack.c.bf16 %v10860_v10, %v10861_v4  ;;  %v9977_v18 = vpop.f32.mrb[56].mxu1  ;;  %v10865_v4 = vld [vmem:[#allocation53_spill] sm:$0xff] }
 0x2af   : > { %v3542_v39 = vmul.f32 %v7150_v30, %v9836_v0  ;;  %v7158_v36 = vadd.f32 %v7157_v54, %v3162_v17  ;;  %v6493_v3 = vpop.f32.mrb[76].mxu0  ;;  %5006 = vmatprep.mubr.bf16.mxu1 %v10862_v31  ;;  %v9985_v31 = vpop.f32.mrb[57].mxu1 }
 0x2b0   : > { %v6494_v44 = vpop.f32.mrb[77].mxu0 }
 0x2b1   : > { %v6089_v20 = vpack.c.bf16 %v7158_v36, %v7150_v30  ;;  %v3543_v48 = vmul.f32 %v7158_v36, %v3430_v24  ;;  %v6495_v52 = vadd.f32 %v6494_v44, %v6493_v3  ;;  %v6496_v1 = vpop.f32.mrb[78].mxu0  ;;  %v3596_v28 = vmul.f32 %v7150_v30, %v3542_v39  ;;  %v10864_v24 = vld [vmem:[#allocation48_spill] sm:$0xff]  ;;  %v9988_v3 = vpop.f32.mrb[58].mxu1 }
 0x2b2   : > { %v6497_v11 = vpop.f32.mrb[79].mxu0  ;;  %v9992_v23 = vpop.f32.mrb[59].mxu1 }
 0x2b3   : > { %6090 = vst [vmem:[%s9981_s29] sm:$0xff] %v6089_v20   ;;  %v3566_v0 = vadd.f32 %v3543_v48, %v3542_v39  ;;  %v3597_v17 = vmul.f32 %v7158_v36, %v3543_v48  ;;  %v7145_v54 = vadd.f32 %v6495_v52, %v9822_v63  ;;  %v6498_v59 = vadd.f32 %v6497_v11, %v6496_v1  ;;  %v10866_v39 = vld [vmem:[#allocation72_spill] sm:$0xff]  ;;  %v10867_v36 = vld [vmem:[#allocation71_spill] sm:$0xff]  ;;  %v3440_v1 = vpop.permute.xlu1 %3439 }
 0x2b4   : > { %4501 = vmatmul.mubr.bf16.gmra.mrb[184].mxu0 %v10864_v24  ;;  %v10868_v52 = vpack.c.bf16 %v10866_v39, %v10867_v36  ;;  %v10869_v24 = vld [vmem:[#allocation26_spill] sm:$0xff] }
 0x2b5   : > { %v3620_v30 = vadd.f32 %v3597_v17, %v3596_v28  ;;  %v7146_v44 = vadd.f32 %v7145_v54, %v7001_v2  ;;  %v7153_v10 = vadd.f32 %v6498_v59, %v9831_v19  ;;  %4508 = vmatprep.mubr.bf16.mxu0 %v10865_v4  ;;  %v9999_v2 = vpop.permute.xlu0 %5334 }
 0x2b6   : > { %5007 = vmatmul.mubr.bf16.gmra.mrb[140].mxu1 %v10868_v52 }
 0x2b7   : > { %v3544_v20 = vmul.f32 %v7146_v44, %v9849_v49  ;;  %v7154_v48 = vadd.f32 %v7153_v10, %v7002_v47  ;;  %v6499_v63 = vpop.f32.mrb[80].mxu0  ;;  %7119 = vmatprep.mubr.bf16.mxu1 %v10869_v24  ;;  %v10001_v47 = vpop.f32.mrb[60].mxu1 }
 0x2b8   : > { %v6500_v11 = vpop.f32.mrb[81].mxu0  ;;  %v10004_v52 = vpop.f32.mrb[61].mxu1 }
 0x2b9   : > { %v3567_v19 = vadd.f32 %v3566_v0, %v3544_v20  ;;  %v3598_v28 = vmul.f32 %v7146_v44, %v3544_v20  ;;  %v6094_v17 = vpack.c.bf16 %v7154_v48, %v7146_v44  ;;  %v3545_v54 = vmul.f32 %v7154_v48, %v3440_v1  ;;  %v6502_v59 = vpop.f32.mrb[82].mxu0  ;;  %v10008_v0 = vpop.f32.mrb[62].mxu1 }
 0x2ba   : > { %v6501_v4 = vadd.f32 %v6500_v11, %v6499_v63  ;;  %v6503_v49 = vpop.f32.mrb[83].mxu0  ;;  %v10871_v63 = vld [vmem:[#allocation57_spill] sm:$0xff]  ;;  %v10012_v1 = vpop.f32.mrb[63].mxu1 }
 0x2bb   : > { %v3621_v10 = vadd.f32 %v3620_v30, %v3598_v28  ;;  %6232 = vst [vmem:[%s9981_s29 + $0x8] sm:$0xff] %v6094_v17   ;;  %v3568_v15 = vadd.f32 %v3567_v19, %v3545_v54  ;;  %v3599_v39 = vmul.f32 %v7154_v48, %v3545_v54  ;;  %v6504_v36 = vadd.f32 %v6503_v49, %v6502_v59  ;;  %v3450_v11 = vpop.permute.xlu1 %3449  ;;  %v10872_v28 = vld [vmem:[#allocation28_spill] sm:$0xff]  ;;  %v10873_v54 = vld [vmem:[#allocation29_spill] sm:$0xff] }
 0x2bc   : > { %v7165_v24 = vadd.f32 %v6501_v4, %v9852_v57  ;;  %4509 = vmatmul.mubr.bf16.gmra.mrb[188].mxu0 %v10870_v60  ;;  %v10016_v57 = vpop.permute.xlu0 %5344 }
 0x2bd   : > { %v3622_v44 = vadd.f32 %v3621_v10, %v3599_v39  ;;  %v7173_v20 = vadd.f32 %v6504_v36, %v9862_v43  ;;  %4516 = vmatprep.mubr.bf16.mxu0 %v10871_v63  ;;  %v10020_v36 = vpop.f32.mrb[64].mxu1 }
 0x2be   : > { %v7166_v30 = vadd.f32 %v7165_v24, %v9962_v41  ;;  %7120 = vmatmul.mubr.bf16.vlgmr.msra.gmra.mrb[72].mxu1 %v10872_v28  ;;  %v10024_v63 = vpop.f32.mrb[65].mxu1 }
 0x2bf   : > { %v7174_v48 = vadd.f32 %v7173_v20, %v3178_v40  ;;  %v6505_v19 = vpop.f32.mrb[84].mxu0  ;;  %7123 = vmatprep.mubr.bf16.mxu1 %v10873_v54  ;;  %v10027_v54 = vpop.f32.mrb[66].mxu1 }
 0x2c0   : > { %v3546_v60 = vmul.f32 %v7166_v30, %v9868_v7  ;;  %v6506_v17 = vpop.f32.mrb[85].mxu0 }
 0x2c1   : > { %v6099_v43 = vpack.c.bf16 %v7174_v48, %v7166_v30  ;;  %v3547_v59 = vmul.f32 %v7174_v48, %v3450_v11  ;;  %v6507_v4 = vadd.f32 %v6506_v17, %v6505_v19  ;;  %v6508_v49 = vpop.f32.mrb[86].mxu0  ;;  %v3460_v17 = vpop.permute.xlu1 %3459 }
 0x2c2   : > { %v3569_v10 = vadd.f32 %v3568_v15, %v3546_v60  ;;  %v3600_v39 = vmul.f32 %v7166_v30, %v3546_v60  ;;  %v6509_v41 = vpop.f32.mrb[87].mxu0  ;;  %v10032_v30 = vpop.f32.mrb[67].mxu1 }
 0x2c3   : > { %6233 = vst [vmem:[%s9981_s29 + $0x10] sm:$0xff] %v6099_v43   ;;  %v3601_v40 = vmul.f32 %v7174_v48, %v3547_v59  ;;  %v7161_v24 = vadd.f32 %v6507_v4, %v9846_v46  ;;  %v6510_v20 = vadd.f32 %v6509_v41, %v6508_v49  ;;  %v10034_v48 = vpop.permute.xlu0 %5354 }
 0x2c4   : > { %v3623_v7 = vadd.f32 %v3622_v44, %v3600_v39  ;;  %v3570_v28 = vadd.f32 %v3569_v10, %v3547_v59  ;;  %4517 = vmatmul.mubr.bf16.gmra.mrb[192].mxu0 %v10804_v21  ;;  %v10874_v21 = vld [vmem:[#allocation32_spill] sm:$0xff] }
 0x2c5   : > { %v7162_v11 = vadd.f32 %v7161_v24, %v9959_v22  ;;  %v7169_v15 = vadd.f32 %v6510_v20, %v9859_v29  ;;  %4524 = vmatprep.mubr.bf16.mxu0 %v10805_v56  ;;  %v10875_v22 = vld [vmem:[#allocation33_spill] sm:$0xff]  ;;  %v10040_v41 = vpop.f32.mrb[68].mxu1 }
 0x2c6   : > { %v3624_v46 = vadd.f32 %v3623_v7, %v3601_v40  ;;  %7124 = vmatmul.mubr.bf16.gmra.mrb[76].mxu1 %v10874_v21  ;;  %v10043_v20 = vpop.f32.mrb[69].mxu1 }
 0x2c7   : > { %v3548_v19 = vmul.f32 %v7162_v11, %v9887_v38  ;;  %v7170_v44 = vadd.f32 %v7169_v15, %v9966_v45  ;;  %v6511_v60 = vpop.f32.mrb[88].mxu0  ;;  %7127 = vmatprep.mubr.bf16.mxu1 %v10875_v22  ;;  %v10045_v7 = vpop.permute.xlu0 %5364  ;;  %v10877_v22 = vld [vmem:[#allocation37_spill] sm:$0xff] }
 0x2c8   : > { %v6512_v43 = vpop.f32.mrb[89].mxu0 }
 0x2c9   : > { %v3571_v29 = vadd.f32 %v3570_v28, %v3548_v19  ;;  %v3602_v59 = vmul.f32 %v7162_v11, %v3548_v19  ;;  %v6104_v56 = vpack.c.bf16 %v7170_v44, %v7162_v11  ;;  %v3549_v4 = vmul.f32 %v7170_v44, %v3460_v17  ;;  %v6514_v49 = vpop.f32.mrb[90].mxu0  ;;  %v10049_v28 = vpop.f32.mrb[70].mxu1  ;;  %v10876_v17 = vld [vmem:[#allocation44_spill] sm:$0xff] }
 0x2ca   : > { %v6513_v10 = vadd.f32 %v6512_v43, %v6511_v60  ;;  %v6515_v39 = vpop.f32.mrb[91].mxu0 }
 0x2cb   : > { %v3625_v38 = vadd.f32 %v3624_v46, %v3602_v59  ;;  %6234 = vst [vmem:[%s9981_s29 + $0x18] sm:$0xff] %v6104_v56   ;;  %v3572_v40 = vadd.f32 %v3571_v29, %v3549_v4  ;;  %v3603_v45 = vmul.f32 %v7170_v44, %v3549_v4  ;;  %v6516_v24 = vadd.f32 %v6515_v39, %v6514_v49  ;;  %v10053_v46 = vpop.f32.mrb[71].mxu1  ;;  %v10060_v56 = vpop.permute.xlu0 %5374 }
 0x2cc   : > { %v7181_v15 = vadd.f32 %v6513_v10, %v9876_v25  ;;  %4525 = vmatmul.mubr.bf16.gmra.mrb[196].mxu0 %v10808_v55  ;;  %v3470_v25 = vpop.permute.xlu1 %3469 }
 0x2cd   : > { %v3626_v11 = vadd.f32 %v3625_v38, %v3603_v45  ;;  %v7189_v19 = vadd.f32 %v6516_v24, %v9884_v34  ;;  %4532 = vmatprep.mubr.bf16.mxu0 %v10809_v5 }
 0x2ce   : > { %v7182_v44 = vadd.f32 %v7181_v15, %v9985_v31  ;;  %7128 = vmatmul.mubr.bf16.gmra.mrb[80].mxu1 %v10876_v17 }
 0x2cf   : > { %v7190_v60 = vadd.f32 %v7189_v19, %v9992_v23  ;;  %v6517_v21 = vpop.f32.mrb[92].mxu0  ;;  %7131 = vmatprep.mubr.bf16.mxu1 %v10877_v22 }
 0x2d0   : > { %v3550_v55 = vmul.f32 %v7182_v44, %v9905_v26  ;;  %v6518_v43 = vpop.f32.mrb[93].mxu0  ;;  %v3480_v19 = vpop.permute.xlu1 %3479 }
 0x2d1   : > { %v6109_v29 = vpack.c.bf16 %v7190_v60, %v7182_v44  ;;  %v3551_v34 = vmul.f32 %v7190_v60, %v3470_v25  ;;  %v6519_v59 = vadd.f32 %v6518_v43, %v6517_v21  ;;  %v6520_v5 = vpop.f32.mrb[94].mxu0 }
 0x2d2   : > { %v3573_v4 = vadd.f32 %v3572_v40, %v3550_v55  ;;  %v3604_v31 = vmul.f32 %v7182_v44, %v3550_v55  ;;  %v6521_v49 = vpop.f32.mrb[95].mxu0 }
 0x2d3   : > { %6235 = vst [vmem:[%s9981_s29 + $0x20] sm:$0xff] %v6109_v29   ;;  %v3605_v23 = vmul.f32 %v7190_v60, %v3551_v34  ;;  %v7177_v10 = vadd.f32 %v6519_v59, %v9872_v12  ;;  %v6522_v39 = vadd.f32 %v6521_v49, %v6520_v5  ;;  %v10878_v12 = vld [vmem:[#allocation39_spill] sm:$0xff] }
 0x2d4   : > { %v3627_v38 = vadd.f32 %v3626_v11, %v3604_v31  ;;  %v3574_v45 = vadd.f32 %v3573_v4, %v3551_v34  ;;  %4533 = vmatmul.mubr.bf16.gmra.mrb[200].mxu0 %v10814_v61  ;;  %v10071_v11 = vpop.permute.xlu0 %5384  ;;  %v10879_v61 = vld [vmem:[#allocation43_spill] sm:$0xff] }
 0x2d5   : > { %v7178_v26 = vadd.f32 %v7177_v10, %v9977_v18  ;;  %v7185_v24 = vadd.f32 %v6522_v39, %v9880_v6  ;;  %4540 = vmatprep.mubr.bf16.mxu0 %v10815_v14  ;;  %v10880_v10 = vld [vmem:[#allocation54_spill] sm:$0xff]  ;;  %v3490_v39 = vpop.permute.xlu1 %3489 }
 0x2d6   : > { %v3628_v15 = vadd.f32 %v3627_v38, %v3605_v23  ;;  %7132 = vmatmul.mubr.bf16.gmra.mrb[84].mxu1 %v10878_v12 }
 0x2d7   : > { %v3552_v40 = vmul.f32 %v7178_v26, %v9919_v51  ;;  %v7186_v44 = vadd.f32 %v7185_v24, %v9988_v3  ;;  %v6523_v60 = vpop.f32.mrb[96].mxu0  ;;  %7135 = vmatprep.mubr.bf16.mxu1 %v10879_v61 }
 0x2d8   : > { %v6524_v21 = vpop.f32.mrb[97].mxu0  ;;  %v3505_v4 = vpop.permute.xlu0 %3504 }
 0x2d9   : > { %v3575_v18 = vadd.f32 %v3574_v45, %v3552_v40  ;;  %v3606_v17 = vmul.f32 %v7178_v26, %v3552_v40  ;;  %v6114_v6 = vpack.c.bf16 %v7186_v44, %v7178_v26  ;;  %v3553_v25 = vmul.f32 %v7186_v44, %v3480_v19  ;;  %v6526_v14 = vpop.f32.mrb[98].mxu0  ;;  %v10881_v45 = vld [vmem:[#allocation20_spill] sm:$0xff] }
 0x2da   : > { %v6525_v55 = vadd.f32 %v6524_v21, %v6523_v60  ;;  %v6527_v43 = vpop.f32.mrb[99].mxu0 }
 0x2db   : > { %v3629_v22 = vadd.f32 %v3628_v15, %v3606_v17  ;;  %6236 = vst [vmem:[%s9981_s29 + $0x28] sm:$0xff] %v6114_v6   ;;  %v3576_v51 = vadd.f32 %v3575_v18, %v3553_v25  ;;  %v3607_v29 = vmul.f32 %v7186_v44, %v3553_v25  ;;  %v6528_v3 = vadd.f32 %v6527_v43, %v6526_v14  ;;  %v10883_v25 = vld [vmem:[#allocation73_spill] sm:$0xff] }
 0x2dc   : > { %v7197_v34 = vadd.f32 %v6525_v55, %v9898_v8  ;;  %4541 = vmatmul.mubr.bf16.gmra.mrb[204].mxu0 %v10819_v9  ;;  %v3510_v44 = vpop.permute.xlu0 %3509  ;;  %v3500_v55 = vpop.permute.xlu1 %3499 }
 0x2dd   : > { %v3630_v59 = vadd.f32 %v3629_v22, %v3607_v29  ;;  %v7205_v5 = vadd.f32 %v6528_v3, %v9908_v42  ;;  %4548 = vmatprep.mubr.bf16.mxu0 %v10820_v53 }
 0x2de   : > { %v7198_v31 = vadd.f32 %v7197_v34, %v10004_v52  ;;  %7136 = vmatmul.mubr.bf16.gmra.mrb[88].mxu1 %v10880_v10 }
 0x2df   : > { %v7206_v49 = vadd.f32 %v7205_v5, %v10012_v1  ;;  %v6529_v23 = vpop.f32.mrb[100].mxu0  ;;  %7139 = vmatprep.mubr.bf16.mxu1 %v10881_v45 }
 0x2e0   : > { %v3554_v38 = vmul.f32 %v7198_v31, %v9936_v50  ;;  %v6530_v8 = vpop.f32.mrb[101].mxu0  ;;  %v3515_v29 = vpop.permute.xlu0 %3514 }
 0x2e1   : > { %v6119_v9 = vpack.c.bf16 %v7206_v49, %v7198_v31  ;;  %v3555_v26 = vmul.f32 %v7206_v49, %v3490_v39  ;;  %v6531_v42 = vadd.f32 %v6530_v8, %v6529_v23  ;;  %v6532_v24 = vpop.f32.mrb[102].mxu0 }
 0x2e2   : > { %v3577_v53 = vadd.f32 %v3576_v51, %v3554_v38  ;;  %v3608_v15 = vmul.f32 %v7198_v31, %v3554_v38  ;;  %v6533_v19 = vpop.f32.mrb[103].mxu0 }
 0x2e3   : > { %6237 = vst [vmem:[%s9981_s29 + $0x30] sm:$0xff] %v6119_v9   ;;  %v3609_v52 = vmul.f32 %v7206_v49, %v3555_v26  ;;  %v7193_v1 = vadd.f32 %v6531_v42, %v9894_v13  ;;  %v6534_v40 = vadd.f32 %v6533_v19, %v6532_v24  ;;  %v10882_v13 = vld [vmem:[#allocation74_spill] sm:$0xff] }
 0x2e4   : > { %v3631_v60 = vadd.f32 %v3630_v59, %v3608_v15  ;;  %v3578_v12 = vadd.f32 %v3577_v53, %v3555_v26  ;;  %4549 = vmatmul.mubr.bf16.gmra.mrb[208].mxu0 %v10824_v16  ;;  %v10884_v14 = vpack.c.bf16 %v10882_v13, %v10883_v25  ;;  %v3520_v38 = vpop.permute.xlu0 %3519 }
 0x2e5   : > { %v7194_v50 = vadd.f32 %v7193_v1, %v10001_v47  ;;  %v7201_v21 = vadd.f32 %v6534_v40, %v9902_v27  ;;  %4556 = vmatprep.mubr.bf16.mxu0 %v10825_v37  ;;  %v10885_v1 = vld [vmem:[#allocation59_spill] sm:$0xff] }
 0x2e6   : > { %v3632_v61 = vadd.f32 %v3631_v60, %v3609_v52  ;;  %7140 = vmatmul.mubr.bf16.gmra.mrb[92].mxu1 %v10884_v14 }
 0x2e7   : > { %v3556_v18 = vmul.f32 %v7194_v50, %v9955_v35  ;;  %v7202_v17 = vadd.f32 %v7201_v21, %v10008_v0  ;;  %v6535_v6 = vpop.f32.mrb[104].mxu0 }
 0x2e8   : > { %v6536_v43 = vpop.f32.mrb[105].mxu0  ;;  %v3525_v40 = vpop.permute.xlu0 %3524 }
 0x2e9   : > { %v3579_v16 = vadd.f32 %v3578_v12, %v3556_v18  ;;  %v3610_v22 = vmul.f32 %v7194_v50, %v3556_v18  ;;  %v6124_v47 = vpack.c.bf16 %v7202_v17, %v7194_v50  ;;  %v3557_v51 = vmul.f32 %v7202_v17, %v3500_v55  ;;  %v6538_v27 = vpop.f32.mrb[106].mxu0 }
 0x2ea   : > { %v6537_v37 = vadd.f32 %v6536_v43, %v6535_v6  ;;  %v6539_v3 = vpop.f32.mrb[107].mxu0 }
 0x2eb   : > { %v3633_v34 = vadd.f32 %v3632_v61, %v3610_v22  ;;  %6238 = vst [vmem:[%s9981_s29 + $0x38] sm:$0xff] %v6124_v47   ;;  %v3580_v35 = vadd.f32 %v3579_v16, %v3557_v51  ;;  %v3611_v59 = vmul.f32 %v7202_v17, %v3557_v51  ;;  %v6540_v0 = vadd.f32 %v6539_v3, %v6538_v27  ;;  %v10886_v22 = vld [vmem:[#allocation62_spill] sm:$0xff] }
 0x2ec   : > { %v7213_v5 = vadd.f32 %v6537_v37, %v9922_v58  ;;  %4557 = vmatmul.mubr.bf16.gmra.mrb[212].mxu0 %v10826_v62  ;;  %v3530_v16 = vpop.permute.xlu0 %3529 }
 0x2ed   : > { %v3634_v31 = vadd.f32 %v3633_v34, %v3611_v59  ;;  %v7221_v49 = vadd.f32 %v6540_v0, %v9930_v32 }
 0x2ee   : > { %v7214_v23 = vadd.f32 %v7213_v5, %v10024_v63 }
 0x2ef   : > { %v7222_v10 = vadd.f32 %v7221_v49, %v10032_v30  ;;  %v6541_v39 = vpop.f32.mrb[108].mxu0 }
 0x2f0   : > { %v3558_v8 = vmul.f32 %v7214_v23, %v3505_v4  ;;  %v6542_v45 = vpop.f32.mrb[109].mxu0  ;;  %v3535_v49 = vpop.permute.xlu0 %3534 }
 0x2f1   : > { %v6129_v9 = vpack.c.bf16 %v7222_v10, %v7214_v23  ;;  %v3559_v26 = vmul.f32 %v7222_v10, %v3510_v44  ;;  %v6543_v42 = vadd.f32 %v6542_v45, %v6541_v39  ;;  %v6544_v24 = vpop.f32.mrb[110].mxu0 }
 0x2f2   : > { %v3581_v53 = vadd.f32 %v3580_v35, %v3558_v8  ;;  %v3612_v58 = vmul.f32 %v7214_v23, %v3558_v8  ;;  %v6545_v15 = vpop.f32.mrb[111].mxu0  ;;  %v10888_v8 = vld [vmem:[#allocation61_spill] sm:$0xff] }
 0x2f3   : > { %6239 = vst [vmem:[%s9981_s29 + $0x40] sm:$0xff] %v6129_v9   ;;  %v3613_v62 = vmul.f32 %v7222_v10, %v3559_v26  ;;  %v7209_v19 = vadd.f32 %v6543_v42, %v9916_v33  ;;  %v6546_v32 = vadd.f32 %v6545_v15, %v6544_v24  ;;  %v10889_v42 = vld [vmem:[#allocation66_spill] sm:$0xff] }
 0x2f4   : > { %v3635_v52 = vadd.f32 %v3634_v31, %v3612_v58  ;;  %v3582_v63 = vadd.f32 %v3581_v53, %v3559_v26 }
 0x2f5   : > { %v7210_v30 = vadd.f32 %v7209_v19, %v10020_v36  ;;  %v7217_v4 = vadd.f32 %v6546_v32, %v10885_v1  ;;  %v3540_v19 = vpop.permute.xlu0 %3539 }
 0x2f6   : > { %v3636_v60 = vadd.f32 %v3635_v52, %v3613_v62 }
 0x2f7   : > { %v3560_v44 = vmul.f32 %v7210_v30, %v3515_v29  ;;  %v7218_v12 = vadd.f32 %v7217_v4, %v10027_v54  ;;  %v6547_v50 = vpop.f32.mrb[112].mxu0  ;;  %v10887_v54 = vld [vmem:[#allocation67_spill] sm:$0xff] }
 0x2f8   : > { %v6548_v21 = vpop.f32.mrb[113].mxu0 }
 0x2f9   : > { %v3583_v61 = vadd.f32 %v3582_v63, %v3560_v44  ;;  %v3614_v18 = vmul.f32 %v7210_v30, %v3560_v44  ;;  %v6134_v17 = vpack.c.bf16 %v7218_v12, %v7210_v30  ;;  %v3561_v6 = vmul.f32 %v7218_v12, %v3520_v38  ;;  %v6550_v33 = vpop.f32.mrb[114].mxu0 }
 0x2fa   : > { %v6549_v13 = vadd.f32 %v6548_v21, %v6547_v50  ;;  %v6551_v25 = vpop.f32.mrb[115].mxu0 }
 0x2fb   : > { %v3637_v14 = vadd.f32 %v3636_v60, %v3614_v18  ;;  %6240 = vst [vmem:[%s9981_s29 + $0x48] sm:$0xff] %v6134_v17   ;;  %v3584_v36 = vadd.f32 %v3583_v61, %v3561_v6  ;;  %v3615_v55 = vmul.f32 %v7218_v12, %v3561_v6  ;;  %v6552_v43 = vadd.f32 %v6551_v25, %v6550_v33 }
 0x2fc   : > { %v7229_v47 = vadd.f32 %v6549_v13, %v10886_v22 }
 0x2fd   : > { %v3638_v51 = vadd.f32 %v3637_v14, %v3615_v55  ;;  %v7237_v27 = vadd.f32 %v6552_v43, %v10887_v54 }
 0x2fe   : > { %v7230_v29 = vadd.f32 %v7229_v47, %v10043_v20 }
 0x2ff   : > { %v7238_v37 = vadd.f32 %v7237_v27, %v10053_v46  ;;  %v6553_v3 = vpop.f32.mrb[116].mxu0 }
 0x300   : > { %v3562_v34 = vmul.f32 %v7230_v29, %v3525_v40  ;;  %v6554_v35 = vpop.f32.mrb[117].mxu0 }
 0x301   : > { %v6139_v59 = vpack.c.bf16 %v7238_v37, %v7230_v29  ;;  %v3563_v0 = vmul.f32 %v7238_v37, %v3530_v16  ;;  %v6555_v5 = vadd.f32 %v6554_v35, %v6553_v3  ;;  %v6556_v31 = vpop.f32.mrb[118].mxu0 }
 0x302   : > { %v3585_v23 = vadd.f32 %v3584_v36, %v3562_v34  ;;  %v3616_v10 = vmul.f32 %v7230_v29, %v3562_v34  ;;  %v6557_v39 = vpop.f32.mrb[119].mxu0 }
 0x303   : > { %6241 = vst [vmem:[%s9981_s29 + $0x50] sm:$0xff] %v6139_v59   ;;  %v3617_v38 = vmul.f32 %v7238_v37, %v3563_v0  ;;  %v7225_v45 = vadd.f32 %v6555_v5, %v10888_v8  ;;  %v6558_v9 = vadd.f32 %v6557_v39, %v6556_v31 }
 0x304   : > { %v3639_v26 = vadd.f32 %v3638_v51, %v3616_v10  ;;  %v3586_v20 = vadd.f32 %v3585_v23, %v3563_v0 }
 0x305   : > { %v7226_v46 = vadd.f32 %v7225_v45, %v10040_v41  ;;  %v7233_v24 = vadd.f32 %v6558_v9, %v10889_v42 }
 0x306   : > { %v3640_v53 = vadd.f32 %v3639_v26, %v3617_v38 }
 0x307   : > { %v3564_v58 = vmul.f32 %v7226_v46, %v3535_v49  ;;  %v7234_v15 = vadd.f32 %v7233_v24, %v10049_v28  ;;  %v6595_v62 = vpop.f32.mrb[120].mxu0 }
 0x308   : > { %v6596_v32 = vpop.f32.mrb[121].mxu0 }
 0x309   : > { %v3587_v52 = vadd.f32 %v3586_v20, %v3564_v58  ;;  %v3618_v63 = vmul.f32 %v7226_v46, %v3564_v58  ;;  %v6144_v30 = vpack.c.bf16 %v7234_v15, %v7226_v46  ;;  %v3565_v1 = vmul.f32 %v7234_v15, %v3540_v19  ;;  %v6598_v4 = vpop.f32.mrb[122].mxu0 }
 0x30a   : > { %v10116_v40 = vadd.f32 %v6596_v32, %v6595_v62  ;;  %v6599_v60 = vpop.f32.mrb[123].mxu0 }
 0x30b   : > { %v3641_v44 = vadd.f32 %v3640_v53, %v3618_v63  ;;  %6242 = vst [vmem:[%s9981_s29 + $0x58] sm:$0xff] %v6144_v30   ;;  %v10119_v41 = vadd.f32 %v3587_v52, %v3565_v1  ;;  %v3619_v12 = vmul.f32 %v7234_v15, %v3565_v1  ;;  %v10121_v50 = vadd.f32 %v6599_v60, %v6598_v4 }
 0x30d   : > { %10890 = vst [vmem:[#allocation34_spill] sm:$0xff] %v10119_v41  ;;  %v10123_v21 = vadd.f32 %v3641_v44, %v3619_v12 }
 0x30f   : > { %10891 = vst [vmem:[#allocation36_spill] sm:$0xff] %v10123_v21  ;;  %v6601_v28 = vpop.f32.mrb[124].mxu0 }
 0x310   : > { %v6602_v61 = vpop.f32.mrb[125].mxu0 }
 0x311   : > { %v10125_v18 = vadd.f32 %v6602_v61, %v6601_v28  ;;  %v6604_v17 = vpop.f32.mrb[126].mxu0 }
 0x312   : > { %v6605_v6 = vpop.f32.mrb[127].mxu0 }
 0x313   : > { %v10127_v33 = vadd.f32 %v6605_v6, %v6604_v17 }
 0x317   : > { %v6607_v13 = vpop.f32.mrb[128].mxu0 }
 0x318   : > { %v6608_v25 = vpop.f32.mrb[129].mxu0 }
 0x319   : > { %v10129_v14 = vadd.f32 %v6608_v25, %v6607_v13  ;;  %v6610_v36 = vpop.f32.mrb[130].mxu0 }
 0x31a   : > { %v6611_v55 = vpop.f32.mrb[131].mxu0 }
 0x31b   : > { %v10131_v43 = vadd.f32 %v6611_v55, %v6610_v36 }
 0x31f   : > { %v6613_v16 = vpop.f32.mrb[132].mxu0 }
 0x320   : > { %v6614_v22 = vpop.f32.mrb[133].mxu0 }
 0x321   : > { %v10133_v47 = vadd.f32 %v6614_v22, %v6613_v16  ;;  %v6616_v51 = vpop.f32.mrb[134].mxu0 }
 0x322   : > { %v6617_v54 = vpop.f32.mrb[135].mxu0 }
 0x323   : > { %v10135_v27 = vadd.f32 %v6617_v54, %v6616_v51 }
 0x327   : > { %v6619_v29 = vpop.f32.mrb[136].mxu0 }
 0x328   : > { %v6620_v37 = vpop.f32.mrb[137].mxu0 }
 0x329   : > { %v10137_v3 = vadd.f32 %v6620_v37, %v6619_v29  ;;  %v6622_v34 = vpop.f32.mrb[138].mxu0 }
 0x32a   : > { %v6623_v35 = vpop.f32.mrb[139].mxu0 }
 0x32b   : > { %v10139_v59 = vadd.f32 %v6623_v35, %v6622_v34 }
 0x32d   : > { %v6811_v10 = vpop.f32.mrb[96].mxu1 }
 0x32e   : > { %v6812_v38 = vpop.f32.mrb[97].mxu1 }
 0x32f   : > { %v6625_v0 = vpop.f32.mrb[140].mxu0  ;;  %v10145_v8 = vadd.f32 %v6812_v38, %v6811_v10  ;;  %v6814_v45 = vpop.f32.mrb[98].mxu1 }
 0x330   : > { %v6626_v5 = vpop.f32.mrb[141].mxu0  ;;  %v6815_v9 = vpop.f32.mrb[99].mxu1 }
 0x331   : > { %v10141_v31 = vadd.f32 %v6626_v5, %v6625_v0  ;;  %v6628_v49 = vpop.f32.mrb[142].mxu0  ;;  %v10147_v26 = vadd.f32 %v6815_v9, %v6814_v45 }
 0x332   : > { %v6629_v23 = vpop.f32.mrb[143].mxu0 }
 0x333   : > { %v10143_v39 = vadd.f32 %v6629_v23, %v6628_v49 }
 0x335   : > { %v6817_v58 = vpop.f32.mrb[100].mxu1 }
 0x336   : > { %v6818_v62 = vpop.f32.mrb[101].mxu1 }
 0x337   : > { %v6631_v20 = vpop.f32.mrb[144].mxu0  ;;  %v10153_v19 = vadd.f32 %v6818_v62, %v6817_v58  ;;  %v6820_v32 = vpop.f32.mrb[102].mxu1 }
 0x338   : > { %v6632_v46 = vpop.f32.mrb[145].mxu0  ;;  %v6821_v52 = vpop.f32.mrb[103].mxu1 }
 0x339   : > { %v10149_v42 = vadd.f32 %v6632_v46, %v6631_v20  ;;  %v6634_v24 = vpop.f32.mrb[146].mxu0  ;;  %v10155_v63 = vadd.f32 %v6821_v52, %v6820_v32 }
 0x33a   : > { %v6635_v53 = vpop.f32.mrb[147].mxu0 }
 0x33b   : > { %v10151_v15 = vadd.f32 %v6635_v53, %v6634_v24 }
 0x33d   : > { %v6823_v12 = vpop.f32.mrb[104].mxu1 }
 0x33e   : > { %v6824_v61 = vpop.f32.mrb[105].mxu1 }
 0x33f   : > { %v6637_v30 = vpop.f32.mrb[148].mxu0  ;;  %v10161_v17 = vadd.f32 %v6824_v61, %v6823_v12  ;;  %v6826_v6 = vpop.f32.mrb[106].mxu1 }
 0x340   : > { %v6638_v1 = vpop.f32.mrb[149].mxu0  ;;  %v6827_v13 = vpop.f32.mrb[107].mxu1 }
 0x341   : > { %v10157_v4 = vadd.f32 %v6638_v1, %v6637_v30  ;;  %v6640_v60 = vpop.f32.mrb[150].mxu0  ;;  %v10163_v25 = vadd.f32 %v6827_v13, %v6826_v6 }
 0x342   : > { %v6641_v44 = vpop.f32.mrb[151].mxu0 }
 0x343   : > { %v10159_v28 = vadd.f32 %v6641_v44, %v6640_v60 }
 0x345   : > { %v6829_v54 = vpop.f32.mrb[108].mxu1 }
 0x346   : > { %v6830_v37 = vpop.f32.mrb[109].mxu1 }
 0x347   : > { %v6643_v36 = vpop.f32.mrb[152].mxu0  ;;  %v10169_v34 = vadd.f32 %v6830_v37, %v6829_v54  ;;  %v6832_v35 = vpop.f32.mrb[110].mxu1 }
 0x348   : > { %v6644_v55 = vpop.f32.mrb[153].mxu0  ;;  %v6833_v0 = vpop.f32.mrb[111].mxu1 }
 0x349   : > { %v10165_v16 = vadd.f32 %v6644_v55, %v6643_v36  ;;  %v6646_v22 = vpop.f32.mrb[154].mxu0  ;;  %v10171_v5 = vadd.f32 %v6833_v0, %v6832_v35 }
 0x34a   : > { %v6647_v51 = vpop.f32.mrb[155].mxu0 }
 0x34b   : > { %v10167_v29 = vadd.f32 %v6647_v51, %v6646_v22 }
 0x34d   : > { %v6835_v9 = vpop.f32.mrb[112].mxu1 }
 0x34e   : > { %v6836_v46 = vpop.f32.mrb[113].mxu1 }
 0x34f   : > { %v6649_v49 = vpop.f32.mrb[156].mxu0  ;;  %v10177_v24 = vadd.f32 %v6836_v46, %v6835_v9  ;;  %v6838_v53 = vpop.f32.mrb[114].mxu1 }
 0x350   : > { %v6650_v23 = vpop.f32.mrb[157].mxu0  ;;  %v6839_v58 = vpop.f32.mrb[115].mxu1 }
 0x351   : > { %v10173_v10 = vadd.f32 %v6650_v23, %v6649_v49  ;;  %v6652_v38 = vpop.f32.mrb[158].mxu0  ;;  %v10179_v62 = vadd.f32 %v6839_v58, %v6838_v53 }
 0x352   : > { %v6653_v45 = vpop.f32.mrb[159].mxu0 }
 0x353   : > { %v10175_v20 = vadd.f32 %v6653_v45, %v6652_v38 }
 0x355   : > { %v6841_v44 = vpop.f32.mrb[116].mxu1 }
 0x356   : > { %v6842_v61 = vpop.f32.mrb[117].mxu1 }
 0x357   : > { %v6655_v32 = vpop.f32.mrb[160].mxu0  ;;  %v10185_v6 = vadd.f32 %v6842_v61, %v6841_v44  ;;  %v6844_v13 = vpop.f32.mrb[118].mxu1 }
 0x358   : > { %v6656_v52 = vpop.f32.mrb[161].mxu0  ;;  %v6845_v36 = vpop.f32.mrb[119].mxu1 }
 0x359   : > { %v10181_v30 = vadd.f32 %v6656_v52, %v6655_v32  ;;  %v6658_v1 = vpop.f32.mrb[162].mxu0  ;;  %v10187_v55 = vadd.f32 %v6845_v36, %v6844_v13 }
 0x35a   : > { %v6659_v60 = vpop.f32.mrb[163].mxu0 }
 0x35b   : > { %v10183_v12 = vadd.f32 %v6659_v60, %v6658_v1 }
 0x35d   : > { %10892 = vst [vmem:[#allocation40_spill] sm:$0xff] %v10183_v12  ;;  %v6847_v0 = vpop.f32.mrb[120].mxu1 }
 0x35e   : > { %v6848_v23 = vpop.f32.mrb[121].mxu1 }
 0x35f   : > { %v6661_v22 = vpop.f32.mrb[164].mxu0  ;;  %v10193_v38 = vadd.f32 %v6848_v23, %v6847_v0  ;;  %v6850_v45 = vpop.f32.mrb[122].mxu1 }
 0x360   : > { %v6662_v51 = vpop.f32.mrb[165].mxu0  ;;  %v6851_v9 = vpop.f32.mrb[123].mxu1 }
 0x361   : > { %v10189_v54 = vadd.f32 %v6662_v51, %v6661_v22  ;;  %v6664_v37 = vpop.f32.mrb[166].mxu0  ;;  %v10195_v46 = vadd.f32 %v6851_v9, %v6850_v45  ;;  %v10206_v23 = vpop.permute.xlu1 %5319 }
 0x362   : > { %v6665_v35 = vpop.f32.mrb[167].mxu0 }
 0x363   : > { %10893 = vst [vmem:[#allocation25_spill] sm:$0xff] %v10189_v54  ;;  %v10191_v49 = vadd.f32 %v6665_v35, %v6664_v37 }
 0x365   : > { %10894 = vst [vmem:[#allocation63_spill] sm:$0xff] %v10191_v49  ;;  %v6853_v60 = vpop.f32.mrb[124].mxu1 }
 0x366   : > { %v6854_v13 = vpop.f32.mrb[125].mxu1 }
 0x367   : > { %v6703_v53 = vpop.f32.mrb[168].mxu0  ;;  %v10198_v36 = vadd.f32 %v6854_v13, %v6853_v60  ;;  %v6856_v22 = vpop.f32.mrb[126].mxu1 }
 0x368   : > { %v6704_v58 = vpop.f32.mrb[169].mxu0  ;;  %v6857_v37 = vpop.f32.mrb[127].mxu1 }
 0x369   : > { %v6705_v32 = vadd.f32 %v6704_v58, %v6703_v53  ;;  %v6706_v52 = vpop.f32.mrb[170].mxu0  ;;  %v10204_v0 = vadd.f32 %v6857_v37, %v6856_v22 }
 0x36a   : > { %v6707_v1 = vpop.f32.mrb[171].mxu0 }
 0x36b   : > { %v7242_v44 = vadd.f32 %v6705_v32, %v10116_v40  ;;  %v6708_v61 = vadd.f32 %v6707_v1, %v6706_v52 }
 0x36d   : > { %v7248_v51 = vadd.f32 %v6708_v61, %v10121_v50  ;;  %v10202_v35 = vadd.f32 %v7242_v44, %v10145_v8  ;;  %v6859_v52 = vpop.f32.mrb[128].mxu1  ;;  %v10214_v44 = vpop.permute.xlu1 %5329 }
 0x36e   : > { %v6860_v60 = vpop.f32.mrb[129].mxu1 }
 0x36f   : > { %v6709_v45 = vpop.f32.mrb[172].mxu0  ;;  %v10209_v9 = vadd.f32 %v7248_v51, %v10147_v26  ;;  %v10212_v61 = vadd.f32 %v6860_v60, %v6859_v52  ;;  %v6862_v8 = vpop.f32.mrb[130].mxu1 }
 0x370   : > { %v6710_v40 = vpop.f32.mrb[173].mxu0  ;;  %v6863_v22 = vpop.f32.mrb[131].mxu1 }
 0x371   : > { %v6711_v53 = vadd.f32 %v6710_v40, %v6709_v45  ;;  %v6712_v58 = vpop.f32.mrb[174].mxu0  ;;  %v10220_v51 = vadd.f32 %v6863_v22, %v6862_v8  ;;  %v10225_v52 = vpop.permute.xlu1 %5339 }
 0x372   : > { %v6713_v32 = vpop.f32.mrb[175].mxu0 }
 0x373   : > { %v7239_v1 = vadd.f32 %v6711_v53, %v10125_v18  ;;  %v6714_v50 = vadd.f32 %v6713_v32, %v6712_v58 }
 0x375   : > { %v7245_v13 = vadd.f32 %v6714_v50, %v10127_v33  ;;  %v10218_v26 = vadd.f32 %v7239_v1, %v10153_v19  ;;  %v6865_v32 = vpop.f32.mrb[132].mxu1  ;;  %v10239_v49 = vpop.permute.xlu1 %5349 }
 0x376   : > { %v6866_v50 = vpop.f32.mrb[133].mxu1 }
 0x377   : > { %v6715_v37 = vpop.f32.mrb[176].mxu0  ;;  %v10223_v45 = vadd.f32 %v7245_v13, %v10155_v63  ;;  %v10228_v21 = vadd.f32 %v6866_v50, %v6865_v32  ;;  %v6868_v19 = vpop.f32.mrb[134].mxu1 }
 0x378   : > { %v6716_v18 = vpop.f32.mrb[177].mxu0  ;;  %v6869_v8 = vpop.f32.mrb[135].mxu1 }
 0x379   : > { %v6717_v40 = vadd.f32 %v6716_v18, %v6715_v37  ;;  %v6718_v53 = vpop.f32.mrb[178].mxu0  ;;  %v10234_v13 = vadd.f32 %v6869_v8, %v6868_v19  ;;  %v10248_v8 = vpop.permute.xlu1 %5359 }
 0x37a   : > { %v6719_v58 = vpop.f32.mrb[179].mxu0 }
 0x37b   : > { %v7254_v60 = vadd.f32 %v6717_v40, %v10129_v14  ;;  %v6720_v33 = vadd.f32 %v6719_v58, %v6718_v53 }
 0x37d   : > { %v7260_v1 = vadd.f32 %v6720_v33, %v10131_v43  ;;  %v10232_v63 = vadd.f32 %v7254_v60, %v10161_v17  ;;  %v6871_v58 = vpop.f32.mrb[136].mxu1 }
 0x37e   : > { %v6872_v33 = vpop.f32.mrb[137].mxu1 }
 0x37f   : > { %v6721_v22 = vpop.f32.mrb[180].mxu0  ;;  %v10237_v37 = vadd.f32 %v7260_v1, %v10163_v25  ;;  %v10242_v50 = vadd.f32 %v6872_v33, %v6871_v58  ;;  %v6874_v17 = vpop.f32.mrb[138].mxu1 }
 0x380   : > { %v6722_v18 = vpop.f32.mrb[181].mxu0  ;;  %v6875_v19 = vpop.f32.mrb[139].mxu1 }
 0x381   : > { %v6723_v14 = vadd.f32 %v6722_v18, %v6721_v22  ;;  %v6724_v40 = vpop.f32.mrb[182].mxu0  ;;  %10895 = vst [vmem:[#allocation41_spill] sm:$0xff] %v10242_v50  ;;  %v10246_v1 = vadd.f32 %v6875_v19, %v6874_v17 }
 0x382   : > { %v6725_v53 = vpop.f32.mrb[183].mxu0 }
 0x383   : > { %v7251_v32 = vadd.f32 %v6723_v14, %v10133_v47  ;;  %v6726_v43 = vadd.f32 %v6725_v53, %v6724_v40  ;;  %10896 = vst [vmem:[#allocation46_spill] sm:$0xff] %v10246_v1 }
 0x385   : > { %v7257_v60 = vadd.f32 %v6726_v43, %v10135_v27  ;;  %v7252_v25 = vadd.f32 %v7251_v32, %v10169_v34  ;;  %v10256_v32 = vpop.permute.xlu1 %5369 }
 0x387   : > { %v6727_v22 = vpop.f32.mrb[184].mxu0  ;;  %v10251_v18 = vadd.f32 %v7257_v60, %v10171_v5 }
 0x388   : > { %v6728_v41 = vpop.f32.mrb[185].mxu0 }
 0x389   : > { %v6729_v47 = vadd.f32 %v6728_v41, %v6727_v22  ;;  %v6730_v14 = vpop.f32.mrb[186].mxu0  ;;  %v6877_v53 = vpop.f32.mrb[140].mxu1 }
 0x38a   : > { %v6731_v40 = vpop.f32.mrb[187].mxu0  ;;  %v6878_v27 = vpop.f32.mrb[141].mxu1 }
 0x38b   : > { %v7266_v58 = vadd.f32 %v6729_v47, %v10137_v3  ;;  %v6732_v33 = vadd.f32 %v6731_v40, %v6730_v14  ;;  %v10254_v43 = vadd.f32 %v6878_v27, %v6877_v53  ;;  %v6880_v34 = vpop.f32.mrb[142].mxu1  ;;  %v10267_v27 = vpop.permute.xlu1 %5379 }
 0x38c   : > { %v6881_v19 = vpop.f32.mrb[143].mxu1 }
 0x38d   : > { %10897 = vst [vmem:[#allocation70_spill] sm:$0xff] %v10254_v43  ;;  %v7272_v17 = vadd.f32 %v6732_v33, %v10139_v59  ;;  %v10260_v5 = vadd.f32 %v7266_v58, %v10177_v24  ;;  %v10262_v60 = vadd.f32 %v6881_v19, %v6880_v34 }
 0x38f   : > { %10898 = vst [vmem:[#allocation50_spill] sm:$0xff] %v10262_v60  ;;  %v6733_v41 = vpop.f32.mrb[188].mxu0  ;;  %v10265_v22 = vadd.f32 %v7272_v17, %v10179_v62 }
 0x390   : > { %v6734_v3 = vpop.f32.mrb[189].mxu0 }
 0x391   : > { %v6735_v47 = vadd.f32 %v6734_v3, %v6733_v41  ;;  %v6736_v14 = vpop.f32.mrb[190].mxu0  ;;  %v7121_v53 = vpop.f32.mrb[72].mxu1  ;;  %v10899_v3 = vld [vmem:[#allocation22_spill] sm:$0xff] }
 0x392   : > { %v6737_v40 = vpop.f32.mrb[191].mxu0  ;;  %v7241_v33 = vadd.f32 %v10218_v26, %v7121_v53  ;;  %v5049_v24 = vpop.f32.mrb[73].mxu1 }
 0x393   : > { %v7263_v43 = vadd.f32 %v6735_v47, %v10141_v31  ;;  %v6738_v59 = vadd.f32 %v6737_v40, %v6736_v14  ;;  %v7244_v58 = vadd.f32 %v10202_v35, %v5049_v24  ;;  %v7122_v34 = vpop.f32.mrb[74].mxu1  ;;  %v10900_v35 = vld [vmem:[#allocation69_spill] sm:$0xff] }
 0x394   : > { %v7247_v17 = vadd.f32 %v10223_v45, %v7122_v34  ;;  %v5052_v19 = vpop.f32.mrb[75].mxu1  ;;  %v5434_v40 = vmul.f32 %v7241_v33, %v10900_v35 }
 0x395   : > { %v7269_v62 = vadd.f32 %v6738_v59, %v10143_v39  ;;  %v10275_v41 = vadd.f32 %v7263_v43, %v10185_v6  ;;  %v5432_v60 = vmul.f32 %v7244_v58, %v10899_v3  ;;  %v7250_v31 = vadd.f32 %v10209_v9, %v5052_v19  ;;  %v10284_v59 = vpop.permute.xlu1 %5389 }
 0x396   : > { %v6154_v26 = vpack.c.bf16 %v7247_v17, %v7241_v33  ;;  %v5435_v43 = vmul.f32 %v7247_v17, %v10214_v44  ;;  %v5488_v12 = vmul.f32 %v7241_v33, %v5434_v40 }
 0x397   : > { %v6739_v47 = vpop.f32.mrb[192].mxu0  ;;  %v10280_v14 = vadd.f32 %v7269_v62, %v10187_v55  ;;  %v6149_v39 = vpack.c.bf16 %v7250_v31, %v7244_v58  ;;  %v5433_v45 = vmul.f32 %v7250_v31, %v10206_v23  ;;  %v5486_v34 = vmul.f32 %v7244_v58, %v5432_v60 }
 0x398   : > { %v6740_v53 = vpop.f32.mrb[193].mxu0  ;;  %6244 = vst [vmem:[%s9981_s29 + $0x68] sm:$0xff] %v6154_v26  }
 0x399   : > { %v6741_v6 = vadd.f32 %v6740_v53, %v6739_v47  ;;  %v6742_v24 = vpop.f32.mrb[194].mxu0  ;;  %6243 = vst [vmem:[%s9981_s29 + $0x60] sm:$0xff] %v6149_v39   ;;  %v5456_v9 = vadd.f32 %v5433_v45, %v5432_v60  ;;  %v5487_v19 = vmul.f32 %v7250_v31, %v5433_v45  ;;  %v7125_v55 = vpop.f32.mrb[76].mxu1  ;;  %v5489_v53 = vmul.f32 %v7247_v17, %v5435_v43 }
 0x39a   : > { %v6743_v3 = vpop.f32.mrb[195].mxu0  ;;  %v7253_v54 = vadd.f32 %v7252_v25, %v7125_v55  ;;  %v5065_v1 = vpop.f32.mrb[77].mxu1 }
 0x39b   : > { %v7278_v62 = vadd.f32 %v6741_v6, %v10149_v42  ;;  %v6744_v35 = vadd.f32 %v6743_v3, %v6742_v24  ;;  %v5457_v23 = vadd.f32 %v5456_v9, %v5434_v40  ;;  %v5510_v50 = vadd.f32 %v5487_v19, %v5486_v34  ;;  %v7126_v26 = vpop.f32.mrb[78].mxu1  ;;  %v10298_v40 = vpop.permute.xlu1 %5394 }
 0x39c   : > { %v7256_v47 = vadd.f32 %v10232_v63, %v5065_v1  ;;  %v7259_v58 = vadd.f32 %v10251_v18, %v7126_v26  ;;  %v5068_v60 = vpop.f32.mrb[79].mxu1  ;;  %v5438_v63 = vmul.f32 %v7253_v54, %v10016_v57 }
 0x39d   : > { %v7284_v44 = vadd.f32 %v6744_v35, %v10151_v15  ;;  %v10294_v31 = vadd.f32 %v7278_v62, %v10193_v38  ;;  %v5511_v42 = vadd.f32 %v5510_v50, %v5488_v12  ;;  %v5458_v39 = vadd.f32 %v5457_v23, %v5435_v43 }
 0x39e   : > { %v5436_v25 = vmul.f32 %v7256_v47, %v9999_v2  ;;  %v7262_v33 = vadd.f32 %v10237_v37, %v5068_v60  ;;  %v6164_v15 = vpack.c.bf16 %v7259_v58, %v7253_v54  ;;  %v5439_v24 = vmul.f32 %v7259_v58, %v10239_v49 }
 0x39f   : > { %v6745_v1 = vpop.f32.mrb[196].mxu0  ;;  %v10302_v18 = vadd.f32 %v7284_v44, %v10195_v46  ;;  %v5512_v45 = vadd.f32 %v5511_v42, %v5489_v53  ;;  %v5492_v62 = vmul.f32 %v7253_v54, %v5438_v63  ;;  %v10311_v26 = vpop.permute.xlu1 %5399 }
 0x3a0   : > { %v5459_v17 = vadd.f32 %v5458_v39, %v5436_v25  ;;  %v5490_v38 = vmul.f32 %v7256_v47, %v5436_v25  ;;  %v6746_v6 = vpop.f32.mrb[197].mxu0  ;;  %v6159_v12 = vpack.c.bf16 %v7262_v33, %v7256_v47  ;;  %6246 = vst [vmem:[%s9981_s29 + $0x78] sm:$0xff] %v6164_v15   ;;  %v5437_v37 = vmul.f32 %v7262_v33, %v10225_v52 }
 0x3a1   : > { %v6747_v50 = vadd.f32 %v6746_v6, %v6745_v1  ;;  %v6748_v2 = vpop.f32.mrb[198].mxu0  ;;  %v7129_v34 = vpop.f32.mrb[80].mxu1 }
 0x3a2   : > { %v5513_v43 = vadd.f32 %v5512_v45, %v5490_v38  ;;  %6245 = vst [vmem:[%s9981_s29 + $0x70] sm:$0xff] %v6159_v12   ;;  %v6749_v57 = vpop.f32.mrb[199].mxu0  ;;  %v5460_v46 = vadd.f32 %v5459_v17, %v5437_v37  ;;  %v5491_v19 = vmul.f32 %v7262_v33, %v5437_v37  ;;  %v5081_v55 = vpop.f32.mrb[81].mxu1  ;;  %v7265_v35 = vadd.f32 %v10275_v41, %v7129_v34 }
 0x3a3   : > { %v7275_v9 = vadd.f32 %v6747_v50, %v10157_v4  ;;  %v6750_v3 = vadd.f32 %v6749_v57, %v6748_v2  ;;  %v7268_v23 = vadd.f32 %v10260_v5, %v5081_v55  ;;  %v7130_v47 = vpop.f32.mrb[82].mxu1  ;;  %v5493_v41 = vmul.f32 %v7259_v58, %v5439_v24  ;;  %v10324_v50 = vpop.permute.xlu1 %5404 }
 0x3a4   : > { %v5461_v52 = vadd.f32 %v5460_v46, %v5438_v63  ;;  %v5514_v53 = vadd.f32 %v5513_v43, %v5491_v19  ;;  %v7271_v44 = vadd.f32 %v10280_v14, %v7130_v47  ;;  %v5084_v60 = vpop.f32.mrb[83].mxu1  ;;  %v5442_v63 = vmul.f32 %v7265_v35, %v10045_v7 }
 0x3a5   : > { %v7281_v49 = vadd.f32 %v6750_v3, %v10159_v28  ;;  %v5440_v4 = vmul.f32 %v7268_v23, %v10034_v48  ;;  %v7274_v42 = vadd.f32 %v10265_v22, %v5084_v60  ;;  %v7276_v54 = vadd.f32 %v7275_v9, %v10198_v36 }
 0x3a6   : > { %v5515_v5 = vadd.f32 %v5514_v53, %v5492_v62  ;;  %v5462_v39 = vadd.f32 %v5461_v52, %v5439_v24  ;;  %v6174_v33 = vpack.c.bf16 %v7271_v44, %v7265_v35  ;;  %v5443_v36 = vmul.f32 %v7271_v44, %v10256_v32 }
 0x3a7   : > { %v6751_v25 = vpop.f32.mrb[200].mxu0  ;;  %v5494_v1 = vmul.f32 %v7268_v23, %v5440_v4  ;;  %v6169_v15 = vpack.c.bf16 %v7274_v42, %v7268_v23  ;;  %v5441_v14 = vmul.f32 %v7274_v42, %v10248_v8  ;;  %v7282_v12 = vadd.f32 %v7281_v49, %v10204_v0 }
 0x3a8   : > { %v6752_v28 = vpop.f32.mrb[201].mxu0  ;;  %v5463_v17 = vadd.f32 %v5462_v39, %v5440_v4  ;;  %v5516_v48 = vadd.f32 %v5515_v5, %v5493_v41  ;;  %6248 = vst [vmem:[%s9981_s29 + $0x88] sm:$0xff] %v6174_v33   ;;  %v5496_v24 = vmul.f32 %v7265_v35, %v5442_v63  ;;  %v5497_v23 = vmul.f32 %v7271_v44, %v5443_v36 }
 0x3a9   : > { %v6753_v38 = vadd.f32 %v6752_v28, %v6751_v25  ;;  %v6754_v22 = vpop.f32.mrb[202].mxu0  ;;  %6247 = vst [vmem:[%s9981_s29 + $0x80] sm:$0xff] %v6169_v15   ;;  %v5495_v58 = vmul.f32 %v7274_v42, %v5441_v14  ;;  %v7133_v6 = vpop.f32.mrb[84].mxu1 }
 0x3aa   : > { %v6755_v45 = vpop.f32.mrb[203].mxu0  ;;  %v5517_v7 = vadd.f32 %v5516_v48, %v5494_v1  ;;  %v5464_v37 = vadd.f32 %v5463_v17, %v5441_v14  ;;  %v5097_v43 = vpop.f32.mrb[85].mxu1  ;;  %v7277_v57 = vadd.f32 %v7276_v54, %v7133_v6 }
 0x3ab   : > { %v7290_v2 = vadd.f32 %v6753_v38, %v10165_v16  ;;  %v6756_v8 = vadd.f32 %v6755_v45, %v6754_v22  ;;  %v7280_v34 = vadd.f32 %v10294_v31, %v5097_v43  ;;  %v7134_v9 = vpop.f32.mrb[86].mxu1  ;;  %v5410_v42 = vpop.permute.xlu1 %5409 }
 0x3ac   : > { %v5465_v32 = vadd.f32 %v5464_v37, %v5442_v63  ;;  %v5518_v46 = vadd.f32 %v5517_v7, %v5495_v58  ;;  %v7283_v3 = vadd.f32 %v7282_v12, %v7134_v9  ;;  %v5100_v55 = vpop.f32.mrb[87].mxu1  ;;  %v5446_v53 = vmul.f32 %v7277_v57, %v10071_v11 }
 0x3ad   : > { %v7296_v19 = vadd.f32 %v6756_v8, %v10167_v29  ;;  %v5444_v0 = vmul.f32 %v7280_v34, %v10060_v56  ;;  %v7286_v62 = vadd.f32 %v10302_v18, %v5100_v55  ;;  %v7291_v16 = vadd.f32 %v7290_v2, %v10212_v61 }
 0x3ae   : > { %v5519_v47 = vadd.f32 %v5518_v46, %v5496_v24  ;;  %v5466_v52 = vadd.f32 %v5465_v32, %v5443_v36  ;;  %v6184_v31 = vpack.c.bf16 %v7283_v3, %v7277_v57  ;;  %v5447_v61 = vmul.f32 %v7283_v3, %v10284_v59 }
 0x3af   : > { %v6757_v35 = vpop.f32.mrb[204].mxu0  ;;  %v5498_v49 = vmul.f32 %v7280_v34, %v5444_v0  ;;  %v6179_v29 = vpack.c.bf16 %v7286_v62, %v7280_v34  ;;  %v5445_v4 = vmul.f32 %v7286_v62, %v10267_v27  ;;  %v7297_v39 = vadd.f32 %v7296_v19, %v10220_v51  ;;  %v5415_v2 = vpop.permute.xlu1 %5414 }
 0x3b0   : > { %v6758_v60 = vpop.f32.mrb[205].mxu0  ;;  %v5467_v56 = vadd.f32 %v5466_v52, %v5444_v0  ;;  %v5520_v54 = vadd.f32 %v5519_v47, %v5497_v23  ;;  %6250 = vst [vmem:[%s9981_s29 + $0x98] sm:$0xff] %v6184_v31   ;;  %v5500_v28 = vmul.f32 %v7277_v57, %v5446_v53  ;;  %v5501_v36 = vmul.f32 %v7283_v3, %v5447_v61  ;;  %v10901_v52 = vld [vmem:[#allocation41_spill] sm:$0xff] }
 0x3b1   : > { %v6759_v18 = vadd.f32 %v6758_v60, %v6757_v35  ;;  %v6760_v41 = vpop.f32.mrb[206].mxu0  ;;  %6249 = vst [vmem:[%s9981_s29 + $0x90] sm:$0xff] %v6179_v29   ;;  %v5499_v44 = vmul.f32 %v7286_v62, %v5445_v4  ;;  %v7137_v25 = vpop.f32.mrb[88].mxu1  ;;  %v10902_v60 = vld [vmem:[#allocation40_spill] sm:$0xff] }
 0x3b2   : > { %v6761_v5 = vpop.f32.mrb[207].mxu0  ;;  %v5521_v11 = vadd.f32 %v5520_v54, %v5498_v49  ;;  %v5468_v63 = vadd.f32 %v5467_v56, %v5445_v4  ;;  %v5113_v27 = vpop.f32.mrb[89].mxu1 }
 0x3b3   : > { %v7287_v33 = vadd.f32 %v6759_v18, %v10173_v10  ;;  %v6762_v1 = vadd.f32 %v6761_v5, %v6760_v41  ;;  %v7292_v15 = vadd.f32 %v7291_v16, %v5113_v27  ;;  %v7138_v14 = vpop.f32.mrb[90].mxu1  ;;  %v5420_v49 = vpop.permute.xlu1 %5419  ;;  %v10904_v27 = vld [vmem:[#allocation25_spill] sm:$0xff] }
 0x3b4   : > { %v5469_v17 = vadd.f32 %v5468_v63, %v5446_v53  ;;  %v5522_v48 = vadd.f32 %v5521_v11, %v5499_v44  ;;  %v5116_v22 = vpop.f32.mrb[91].mxu1 }
 0x3b5   : > { %v7293_v38 = vadd.f32 %v6762_v1, %v10175_v20  ;;  %v7288_v59 = vadd.f32 %v7287_v33, %v10228_v21  ;;  %v5448_v58 = vmul.f32 %v7292_v15, %v10298_v40  ;;  %v7298_v51 = vadd.f32 %v7297_v39, %v5116_v22 }
 0x3b6   : > { %v5523_v45 = vadd.f32 %v5522_v48, %v5500_v28  ;;  %v5470_v12 = vadd.f32 %v5469_v17, %v5447_v61  ;;  %v10903_v61 = vld [vmem:[#allocation46_spill] sm:$0xff] }
 0x3b7   : > { %v7289_v10 = vadd.f32 %v7288_v59, %v7137_v25  ;;  %v6763_v6 = vpop.f32.mrb[208].mxu0  ;;  %v7294_v7 = vadd.f32 %v7293_v38, %v10234_v13  ;;  %v5502_v37 = vmul.f32 %v7292_v15, %v5448_v58  ;;  %v6189_v43 = vpack.c.bf16 %v7298_v51, %v7292_v15  ;;  %v10905_v38 = vld [vmem:[#allocation34_spill] sm:$0xff] }
 0x3b8   : > { %v6764_v8 = vpop.f32.mrb[209].mxu0  ;;  %v5449_v20 = vmul.f32 %v7298_v51, %v10311_v26  ;;  %v5471_v24 = vadd.f32 %v5470_v12, %v5448_v58  ;;  %v5524_v57 = vadd.f32 %v5523_v45, %v5501_v36  ;;  %v3589_v59 = vrot.slane %v10905_v38, 4  ;;  %v10906_v36 = vld [vmem:[#allocation70_spill] sm:$0xff] }
 0x3b9   : > { %v5450_v21 = vmul.f32 %v7289_v10, %v10324_v50  ;;  %v6765_v34 = vadd.f32 %v6764_v8, %v6763_v6  ;;  %v6766_v40 = vpop.f32.mrb[210].mxu0  ;;  %v7295_v9 = vadd.f32 %v7294_v7, %v7138_v14  ;;  %6251 = vst [vmem:[%s9981_s29 + $0xa0] sm:$0xff] %v6189_v43   ;;  %v7141_v19 = vpop.f32.mrb[92].mxu1 }
 0x3ba   : > { %v5503_v32 = vmul.f32 %v7298_v51, %v5449_v20  ;;  %v6767_v46 = vpop.f32.mrb[211].mxu0  ;;  %v5525_v3 = vadd.f32 %v5524_v57, %v5502_v37  ;;  %v5472_v55 = vadd.f32 %v5471_v24, %v5449_v20  ;;  %v5129_v0 = vpop.f32.mrb[93].mxu1  ;;  %v10907_v51 = vld [vmem:[#allocation63_spill] sm:$0xff]  ;;  %v10909_v37 = vld [vmem:[#allocation50_spill] sm:$0xff]  ;;  %v3590_v20 = vadd.f32 %v3589_v59, %v10905_v38 }
 0x3bb   : > { %v7302_v13 = vadd.f32 %v6765_v34, %v10181_v30  ;;  %v6194_v62 = vpack.c.bf16 %v7295_v9, %v7289_v10  ;;  %v5451_v16 = vmul.f32 %v7295_v9, %v5410_v42  ;;  %v6768_v26 = vadd.f32 %v6767_v46, %v6766_v40  ;;  %v7142_v23 = vpop.f32.mrb[94].mxu1  ;;  %v5425_v14 = vpop.permute.xlu1 %5424 }
 0x3bc   : > { %v5504_v50 = vmul.f32 %v7289_v10, %v5450_v21  ;;  %v5473_v47 = vadd.f32 %v5472_v55, %v5450_v21  ;;  %v5526_v35 = vadd.f32 %v5525_v3, %v5503_v32  ;;  %v5132_v53 = vpop.f32.mrb[95].mxu1  ;;  %v10908_v10 = vld [vmem:[#allocation36_spill] sm:$0xff] }
 0x3bd   : > { %v7303_v31 = vadd.f32 %v7302_v13, %v10901_v52  ;;  %6252 = vst [vmem:[%s9981_s29 + $0xa8] sm:$0xff] %v6194_v62   ;;  %v7308_v29 = vadd.f32 %v6768_v26, %v10902_v60  ;;  %v5505_v4 = vmul.f32 %v7295_v9, %v5451_v16  ;;  %v3643_v6 = vrot.slane %v10908_v10, 4 }
 0x3be   : > { %v5527_v56 = vadd.f32 %v5526_v35, %v5504_v50  ;;  %v5474_v18 = vadd.f32 %v5473_v47, %v5451_v16 }
 0x3bf   : > { %v6769_v54 = vpop.f32.mrb[212].mxu0  ;;  %v7304_v30 = vadd.f32 %v7303_v31, %v5129_v0  ;;  %v7309_v42 = vadd.f32 %v7308_v29, %v10903_v61  ;;  %v5430_v57 = vpop.permute.xlu1 %5429  ;;  %v3644_v34 = vadd.f32 %v3643_v6, %v10908_v10 }
 0x3c0   : > { %v6770_v41 = vpop.f32.mrb[213].mxu0  ;;  %v5528_v5 = vadd.f32 %v5527_v56, %v5505_v4 }
 0x3c1   : > { %v5452_v44 = vmul.f32 %v7304_v30, %v5415_v2  ;;  %v6771_v25 = vadd.f32 %v6770_v41, %v6769_v54  ;;  %v6772_v39 = vpop.f32.mrb[214].mxu0  ;;  %v7310_v11 = vadd.f32 %v7309_v42, %v5132_v53 }
 0x3c2   : > { %v6773_v33 = vpop.f32.mrb[215].mxu0 }
 0x3c3   : > { %v5475_v63 = vadd.f32 %v5474_v18, %v5452_v44  ;;  %v5506_v1 = vmul.f32 %v7304_v30, %v5452_v44  ;;  %v7299_v28 = vadd.f32 %v6771_v25, %v10904_v27  ;;  %v6774_v15 = vadd.f32 %v6773_v33, %v6772_v39 }
 0x3c4   : > { %v6199_v17 = vpack.c.bf16 %v7310_v11, %v7304_v30  ;;  %v5453_v48 = vmul.f32 %v7310_v11, %v5420_v49 }
 0x3c5   : > { %v5529_v22 = vadd.f32 %v5528_v5, %v5506_v1  ;;  %v7300_v58 = vadd.f32 %v7299_v28, %v10906_v36  ;;  %v7305_v45 = vadd.f32 %v6774_v15, %v10907_v51 }
 0x3c6   : > { %6253 = vst [vmem:[%s9981_s29 + $0xb0] sm:$0xff] %v6199_v17   ;;  %v5476_v12 = vadd.f32 %v5475_v63, %v5453_v48  ;;  %v5507_v7 = vmul.f32 %v7310_v11, %v5453_v48 }
 0x3c7   : > { %v7301_v2 = vadd.f32 %v7300_v58, %v7141_v19  ;;  %v7306_v8 = vadd.f32 %v7305_v45, %v10909_v37  ;;  %v3591_v19 = vrot.slane %v3590_v20, 2 }
 0x3c8   : > { %v5530_v43 = vadd.f32 %v5529_v22, %v5507_v7 }
 0x3c9   : > { %v5454_v21 = vmul.f32 %v7301_v2, %v5425_v14  ;;  %v7307_v24 = vadd.f32 %v7306_v8, %v7142_v23 }
 0x3cb   : > { %v5477_v40 = vadd.f32 %v5476_v12, %v5454_v21  ;;  %v5508_v9 = vmul.f32 %v7301_v2, %v5454_v21  ;;  %v6204_v32 = vpack.c.bf16 %v7307_v24, %v7301_v2  ;;  %v5455_v46 = vmul.f32 %v7307_v24, %v5430_v57 }
 0x3cd   : > { %v5531_v3 = vadd.f32 %v5530_v43, %v5508_v9  ;;  %6254 = vst [vmem:[%s9981_s29 + $0xb8] sm:$0xff] %v6204_v32   ;;  %v5478_v13 = vadd.f32 %v5477_v40, %v5455_v46  ;;  %v5509_v55 = vmul.f32 %v7307_v24, %v5455_v46 }
 0x3ce   : > { %7818 = shalt.err (!%p7815_p13)
}
 0x3cf   : > { %s7819_s7 = scalar_lea.hbm %s10365_s19, 3072  ;;  %s7823_s29 = scalar_lea.hbm %s10448_s5, 6144 }
 0x3d0   : > { %p7820_p9 = scmp.ne.s32.totalorder %s10365_s19, %s7819_s7  ;;  %p7824_p4 = scmp.lt.u32.totalorder %s10365_s19, %s10448_s5 }
 0x3d1   : > { %p7825_p8 = scmp.lt.u32.totalorder %s7823_s29, %s7819_s7  ;;  %p7827_p3 = scmp.lt.u32.totalorder %s7819_s7, %s10365_s19 }
 0x3d2   : > { %p7821_p0 = pnand %p7820_p9, %p8126_p10 }
 0x3d3   : > { %p7826_p6 = por %p7825_p8, %p7824_p4 }
 0x3d4   : > { %p7822_p11 = pneg %p7821_p0 }
 0x3d5   : > { %p7828_p5 = por %p7827_p3, %p7826_p6 }
 0x3d7   : > { %p7829_p7 = pnand %p7828_p5, %p7822_p11 }
 0x3d9   : > { %7832 = shalt.err (!%p7829_p7)
}
 0x3da   : > { %s7925_s13 = smov 64   ;;  %s7926_s30 = smov 4   ;;  %v3645_v0 = vrot.slane %v3644_v34, 2  ;;  %v5479_v62 = vrot.slane %v5478_v13, 4  ;;  %v5532_v16 = vadd.f32 %v5531_v3, %v5509_v55  ;;  %v3592_v26 = vadd.f32 %v3591_v19, %v3590_v20 }
 0x3db   : > { %7406 = dma.vmem_to_hbm [thread:$0]  (%p8126_p10), %s10367_s11, 3072, %s10365_s19, %s5543_s12, %s7925_s13, %s7925_s13, %s7926_s30  }
 0x3dc   : > { %v5480_v23 = vadd.f32 %v5479_v62, %v5478_v13  ;;  %v5533_v50 = vrot.slane %v5532_v16, 4  ;;  %v3646_v47 = vadd.f32 %v3645_v0, %v3644_v34  ;;  %s5730_s14 = sshll.u32 %s8181_s17, 1  ;;  %v3593_v53 = vrot.slane %v3592_v26, 1  ;;  %s5927_s11 = sshll.u32 %s7984_s25, 5 }
 0x3dd   : > { %s334_s19 = scalar_lea.vmem [#allocation12], %s5730_s14  ;;  %s10399_s7 = scalar_lea.hbm %s10449_s6, %s5927_s11 }
 0x3de   : > { %v5481_v35 = vrot.slane %v5480_v23, 2  ;;  %v5534_v52 = vadd.f32 %v5533_v50, %v5532_v16  ;;  %v3647_v60 = vrot.slane %v3646_v47, 1  ;;  %v3594_v56 = vadd.f32 %v3593_v53, %v3592_v26  ;;  %s5577_s12 = sshll.u32 %s334_s19, 4  ;;  %s5548_s16 = scalar_lea.sflag [#allocation13], %s8181_s17  ;;  %s10401_s12 = int_to_ptr.vmem [resolvable:$true] %s5577_s12 }
 0x3df   : > { %s7833_s25 = scalar_lea.vmem %s10401_s12, 32  ;;  %s7927_s27 = smov [#allocation12]  }
 0x3e0   : > { %v5535_v31 = vrot.slane %v5534_v52, 2  ;;  %v5482_v49 = vadd.f32 %v5481_v35, %v5480_v23  ;;  %v3648_v18 = vadd.f32 %v3647_v60, %v3646_v47  ;;  %p7834_p12 = scmp.ne.s32.totalorder %s10401_s12, %s7833_s25  ;;  %s7837_s29 = sshll.u32 %s7927_s27, 4  ;;  %s7838_s29 = int_to_ptr.vmem [resolvable:$false] %s7837_s29 }
 0x3e1   : > { %s7839_s20 = scalar_lea.vmem %s7838_s29, 64  ;;  %p7840_p13 = scmp.lt.s32.totalorder %s10401_s12, %s7838_s29 }
 0x3e2   : > { %v5483_v29 = vrot.slane %v5482_v49, 1  ;;  %v5536_v4 = vadd.f32 %v5535_v31, %v5534_v52  ;;  %p7835_p1 = pnand %p7834_p12, %p8126_p10  ;;  %p7841_p9 = scmp.lt.s32.totalorder %s7839_s20, %s7833_s25 }
 0x3e4   : > { %v5484_v54 = vadd.f32 %v5483_v29, %v5482_v49  ;;  %v5537_v30 = vrot.slane %v5536_v4, 1  ;;  %p7836_p2 = pneg %p7835_p1  ;;  %p7842_p0 = por %p7841_p9, %p7840_p13 }
 0x3e6   : > { %v5485_v41 = vadd.f32 %v5484_v54, %v3594_v56  ;;  %v5538_v61 = vadd.f32 %v5537_v30, %v5536_v4  ;;  %p7843_p11 = pnand %p7842_p0, %p7836_p2 }
 0x3e8   : > { %v5539_v42 = vadd.f32 %v5538_v61, %v3648_v18  ;;  %5540 = vst [vmem:[%s334_s19] sm:$0x1] %v5485_v41 }
 0x3ea   : > { %5541 = vst [vmem:[%s334_s19 + $0x1] sm:$0x1] %v5539_v42 }
 0x3eb   : > { %7846 = shalt.err (!%p7843_p11)
}
 0x3ec   : > { %s7847_s17 = scalar_lea.hbm %s10399_s7, 32  ;;  %s7851_s30 = scalar_lea.hbm %s10449_s6, 64 }
 0x3ed   : > { %p7848_p4 = scmp.ne.s32.totalorder %s10399_s7, %s7847_s17  ;;  %p7852_p3 = scmp.lt.u32.totalorder %s10399_s7, %s10449_s6 }
 0x3ee   : > { %p7853_p5 = scmp.lt.u32.totalorder %s7851_s30, %s7847_s17  ;;  %p7855_p12 = scmp.lt.u32.totalorder %s7847_s17, %s10399_s7 }
 0x3ef   : > { %p7849_p8 = pnand %p7848_p4, %p8126_p10 }
 0x3f0   : > { %p7854_p7 = por %p7853_p5, %p7852_p3 }
 0x3f1   : > { %p7850_p6 = pneg %p7849_p8 }
 0x3f2   : > { %p7856_p1 = por %p7855_p12, %p7854_p7 }
 0x3f4   : > { %p7857_p2 = pnand %p7856_p1, %p7850_p6 }
 0x3f6   : > { %7860 = shalt.err (!%p7857_p2)
}
 0x3f7   : > { %7407 = dma.vmem_to_hbm [thread:$0]  (%p8126_p10), %s10401_s12, 32, %s10399_s7, %s5548_s16  }
 0x3f8 PF: > { %s5589_s19 = sand.u32 1, %s7899_s21   ;;  %p10910_p13 = scmp.ne.s32.totalorder %s10562_s28, 0 }
 0x3f9   : > { %p10911_p9 = scmp.ge.s32.totalorder %s7911_s24, 2  ;;  %s5590_s8 = scalar_lea.sflag [#allocation4], %s5589_s19 }
 0x3fb   : > { %p7428_p0 = pnand %p10911_p9, %p10910_p13 }
 0x3fd   : > { %7890 = dma.done.wait (!%p7428_p0), %s5590_s8, 3072  }
 0x3fe   : > { %7892 = vsyncadd (!%p7428_p0), %s5590_s8, 4294964224  ;;  %s5599_s26 = scalar_lea.sflag [#allocation13], %s5589_s19 }
 0x3ff   : > { %7894 = dma.done.wait (!%p7428_p0), %s5599_s26, 32  }
 0x400   : > { %7896 = vsyncadd (!%p7428_p0), %s5599_s26, 4294967264  ;;  %p25_p10 = scmp.ge.s32.totalorder %s8116_s18, 4   ;;  %s10912_s21 = smov %s7903_s22 }
 0x401   : > { %s10913_s22 = smov %s7907_s23  ;;  %s10914_s23 = smov %s8132_s15 }
 0x402   : > { %s10915_s24 = smov %s8116_s18  ;;  %27 = sbr.rel (!%p25_p10) target bundleno = 9 (0x9), region = 120 }
 0x409   :  { %5604 = vsyncpa [#allocation3], 1 }
 0x40a   :  { %5606 = vsyncpa [#allocation3 + $0x1], 1 }
 0x40b   :  { %5607 = vsyncpa [#allocation6], 1 }
 0x40c   :  { %5608 = vsyncpa [#allocation9], 1 }
 0x40d   :  { %5609 = vsyncpa [#allocation4], 1 }
 0x40e   :  { %5611 = vsyncpa [#allocation4 + $0x1], 1 }
 0x40f   :  { %5612 = vsyncpa [#allocation13], 1 }
 0x410   :  { %5614 = vsyncpa [#allocation13 + $0x1], 1 }

</bundles_post_ra>
